<compile_context>
chip_gen: v5e
topology: v5e:2x2
jax: 0.10.0
libtpu: 0.0.40
codegen_flags: <defaults>
</compile_context>

<pallas_src>
import jax
import jax.numpy as jnp
import numpy as np
from jax import lax
from jax.experimental import pallas as pl
from jax.experimental.pallas import tpu as pltpu

GRAVITY = 9.81007
_LANES = 128


def _round_up(x, m):
    return ((x + m - 1) // m) * m


# ---------------------------------------------------------------------------
# Per-component quaternion / so3 helpers (tuples of arrays -> pure elementwise
# VPU math, no lane slicing / concatenation). Quaternion convention: (x,y,z,w),
# Hamilton product, like pypose.SO3.
# ---------------------------------------------------------------------------
def _qmul_c(a, b):
    ax, ay, az, aw = a
    bx, by, bz, bw = b
    x = aw * bx + ax * bw + ay * bz - az * by
    y = aw * by - ax * bz + ay * bw + az * bx
    z = aw * bz + ax * by - ay * bx + az * bw
    w = aw * bw - ax * bx - ay * by - az * bz
    return x, y, z, w


def _cross_c(a, b):
    ax, ay, az = a
    bx, by, bz = b
    return ay * bz - az * by, az * bx - ax * bz, ax * by - ay * bx


def _qrot_c(q, v):
    # rotate vector v by unit quaternion q: v' = v + 2 w (q_v x v) + 2 q_v x (q_v x v)
    qx, qy, qz, qw = q
    tx, ty, tz = _cross_c((qx, qy, qz), v)
    tx, ty, tz = 2.0 * tx, 2.0 * ty, 2.0 * tz
    cx, cy, cz = _cross_c((qx, qy, qz), (tx, ty, tz))
    return v[0] + qw * tx + cx, v[1] + qw * ty + cy, v[2] + qw * tz + cz


def _so3_exp_c(wx, wy, wz):
    # rotation vector -> quaternion (xyzw), Taylor fallback for small angles (pypose so3.Exp)
    theta2 = wx * wx + wy * wy + wz * wz
    theta = jnp.sqrt(theta2)
    theta4 = theta2 * theta2
    eps = 1e-6
    safe = jnp.where(theta > eps, theta, 1.0)
    imag = jnp.where(theta > eps,
                     jnp.sin(0.5 * theta) / safe,
                     0.5 - theta2 / 48.0 + theta4 / 3840.0)
    real = jnp.where(theta > eps,
                     jnp.cos(0.5 * theta),
                     1.0 - theta2 / 8.0 + theta4 / 384.0)
    return wx * imag, wy * imag, wz * imag, real


# ---------------------------------------------------------------------------
# Pallas kernel: one grid step == T frames for one 128-lane batch tile.
# ---------------------------------------------------------------------------
def _make_imu_kernel(num_frames, unroll):
    def kernel(x_ref, init_ref, out_ref, carry_ref):
        # x_ref:    (T, 8, 128)  rows: [dt, gx, gy, gz, ax, ay, az, pad]
        # init_ref: (10, 128)    rows: [q0 (xyzw), v0 (xyz), p0 (xyz)]
        # out_ref:  (T, 10, 128) rows: [rot (xyzw), vel (xyz), pos (xyz)]
        # carry_ref:(16, 128)    rows: [q_inc (xyzw), dv (xyz), dp (xyz), t, unused...]
        f_blk = pl.program_id(1)
        lanes = carry_ref.shape[1]

        # reset the recurrence carry at the first frame block of every batch tile
        @pl.when(f_blk == 0)
        def _():
            carry_ref[...] = jnp.zeros(carry_ref.shape, carry_ref.dtype)
            carry_ref[3:4, :] = jnp.ones((1, lanes), jnp.float32)   # q_inc = identity (w = 1)

        # ---- loop-invariant quantities (hoisted out of the per-frame recurrence) ----
        q0x, q0y, q0z, q0w = (init_ref[0, :], init_ref[1, :],
                              init_ref[2, :], init_ref[3, :])
        v0x, v0y, v0z = init_ref[4, :], init_ref[5, :], init_ref[6, :]
        p0x, p0y, p0z = init_ref[7, :], init_ref[8, :], init_ref[9, :]

        # gravity in the init/body frame: g0 = R(q0)^T (0,0,g).  The reference computes
        # R(q_inc) [acc - R(q_inc)^T R(q0)^T g]; with R(q_inc) R(q_inc)^T = I this is
        # R(q_inc) acc - g0, so the per-frame gravity rotation collapses into this constant.
        g0x, g0y, g0z = _qrot_c((-q0x, -q0y, -q0z, q0w), (0.0, 0.0, GRAVITY))

        carry0 = tuple(carry_ref[i, :] for i in range(11))

        def step(k, c):
            qx, qy, qz, qw, dvx, dvy, dvz, dpx, dpy, dpz, tt = c

            fr = x_ref[k]                     # (8, 128): one aligned tile per frame
            dt_k = fr[0]

            # per-frame delta rotation; independent of the carry, so the unrolled loop
            # overlaps these transcendentals with neighbouring frames' carry chains.
            drx, dry, drz, drw = _so3_exp_c(fr[1] * dt_k, fr[2] * dt_k, fr[3] * dt_k)

            # cumulative incremental rotation:  q_inc <- q_inc (x) dr
            # NOTE: no renormalisation, faithful to the reference module (tiny drift).
            qx, qy, qz, qw = _qmul_c((qx, qy, qz, qw), (drx, dry, drz, drw))

            # dv = (R(q_inc) acc - g0) * dt
            rx, ry, rz = _qrot_c((qx, qy, qz, qw), (fr[4], fr[5], fr[6]))
            ddvx = (rx - g0x) * dt_k
            ddvy = (ry - g0y) * dt_k
            ddvz = (rz - g0z) * dt_k

            dpx = dpx + dvx * dt_k + 0.5 * ddvx * dt_k
            dpy = dpy + dvy * dt_k + 0.5 * ddvy * dt_k
            dpz = dpz + dvz * dt_k + 0.5 * ddvz * dt_k
            dvx = dvx + ddvx
            dvy = dvy + ddvy
            dvz = dvz + ddvz
            tt = tt + dt_k

            # predict(): compose with the initial state and emit this frame's outputs
            wx_, wy_, wz_, ww_ = _qmul_c((q0x, q0y, q0z, q0w), (qx, qy, qz, qw))
            vx_, vy_, vz_ = _qrot_c((q0x, q0y, q0z, q0w), (dvx, dvy, dvz))
            px_, py_, pz_ = _qrot_c((q0x, q0y, q0z, q0w), (dpx, dpy, dpz))

            out_ref[k, 0, :] = wx_
            out_ref[k, 1, :] = wy_
            out_ref[k, 2, :] = wz_
            out_ref[k, 3, :] = ww_
            out_ref[k, 4, :] = v0x + vx_
            out_ref[k, 5, :] = v0y + vy_
            out_ref[k, 6, :] = v0z + vz_
            out_ref[k, 7, :] = p0x + v0x * tt + px_
            out_ref[k, 8, :] = p0y + v0y * tt + py_
            out_ref[k, 9, :] = p0z + v0z * tt + pz_

            return (qx, qy, qz, qw, dvx, dvy, dvz, dpx, dpy, dpz, tt)

        carry = lax.fori_loop(0, num_frames, step, carry0, unroll=unroll)

        # persist the carry for the next frame block of this batch tile
        for i, v in enumerate(carry):
            carry_ref[i, :] = v

    return kernel


def imu_integrator_forward(data, init_state, *, frames_per_block=256, unroll=8):
    """Pallas implementation of IMUIntegrator.forward (rot always None, see header note)."""
    dt = jnp.asarray(data['dt'], jnp.float32)      # (B, F, 1)
    gyro = jnp.asarray(data['gyro'], jnp.float32)  # (B, F, 3)
    acc = jnp.asarray(data['acc'], jnp.float32)    # (B, F, 3)
    B, F, _ = dt.shape

    p0 = jnp.asarray(init_state['pos'], jnp.float32).reshape(B, 3)
    q0 = jnp.asarray(init_state['rot'], jnp.float32).reshape(B, 4)
    v0 = jnp.asarray(init_state['vel'], jnp.float32).reshape(B, 3)

    # frames-per-block: multiple of 8, at most frames_per_block; pad F to a multiple of T.
    frames_per_block = max(8, _round_up(frames_per_block, 8))
    T = min(frames_per_block, _round_up(F, 8))
    F_pad = _round_up(F, T)
    B_pad = _round_up(B, _LANES)
    num_b = B_pad // _LANES
    num_f = F_pad // T
    unroll = max(1, min(unroll, T))

    # pack inputs into a frame-major, lane-dense slab (F, 8, B): [dt, gyro, acc, pad]
    # (the transposes cost one extra HBM pass each; the module's contract is (B,F,C) so
    #  we keep them in the wrapper rather than changing the external layout)
    to_fcb = lambda a: jnp.transpose(a, (1, 2, 0))            # (B,F,C) -> (F,C,B)
    x = jnp.concatenate(
        [to_fcb(dt), to_fcb(gyro), to_fcb(acc),
         jnp.zeros((F, 1, B), jnp.float32)], axis=1)          # (F, 8, B)
    x = jnp.pad(x, ((0, F_pad - F), (0, 0), (0, B_pad - B)))  # dt=0 padding is a no-op frame

    init = jnp.concatenate([q0.T, v0.T, p0.T], axis=0)        # (10, B)
    init = jnp.pad(init, ((0, 0), (0, B_pad - B)))

    grid_spec = pltpu.PrefetchScalarGridSpec(
        num_scalar_prefetch=0,
        grid=(num_b, num_f),
        in_specs=[
            pl.BlockSpec((T, 8, _LANES), lambda b, f: (f, 0, b)),
            pl.BlockSpec((10, _LANES), lambda b, f: (0, b)),
        ],
        out_specs=pl.BlockSpec((T, 10, _LANES), lambda b, f: (f, 0, b)),
        scratch_shapes=[
            pltpu.VMEM((16, _LANES), jnp.float32),  # carry: q_inc(4), dv(3), dp(3), t(1)
        ],
    )

    out = pl.pallas_call(
        _make_imu_kernel(T, unroll),
        out_shape=jax.ShapeDtypeStruct((F_pad, 10, B_pad), jnp.float32),
        grid_spec=grid_spec,
        compiler_params=pltpu.CompilerParams(
            # batch tiles are independent (megacore on v7x); frame axis is the recurrence
            dimension_semantics=("parallel", "arbitrary")),
    )(x, init)

    rot = jnp.transpose(out[:F, 0:4, :B], (2, 0, 1))
    vel = jnp.transpose(out[:F, 4:7, :B], (2, 0, 1))
    pos = jnp.transpose(out[:F, 7:10, :B], (2, 0, 1))
    return {'rot': rot, 'vel': vel, 'pos': pos, 'cov': None}   # prop_cov=False


# ---------------------------------------------------------------------------
# Pure-JAX reference (lax.scan, faithful to the original per-frame formulation)
# ---------------------------------------------------------------------------
def _qmul(q1, q2):
    c = _qmul_c(tuple(q1[..., i] for i in range(4)), tuple(q2[..., i] for i in range(4)))
    return jnp.stack(c, axis=-1)


def _qconj(q):
    return jnp.concatenate([-q[..., 0:3], q[..., 3:4]], axis=-1)


def _qrot(q, v):
    c = _qrot_c(tuple(q[..., i] for i in range(4)), tuple(v[..., i] for i in range(3)))
    return jnp.stack(c, axis=-1)


def _so3_exp(w):
    c = _so3_exp_c(w[..., 0], w[..., 1], w[..., 2])
    return jnp.stack(c, axis=-1)


def imu_integrator_reference(data, init_state):
    dt = jnp.asarray(data['dt'], jnp.float32)
    gyro = jnp.asarray(data['gyro'], jnp.float32)
    acc = jnp.asarray(data['acc'], jnp.float32)
    B, F, _ = dt.shape
    p0 = jnp.asarray(init_state['pos'], jnp.float32).reshape(B, 3)
    q0 = jnp.asarray(init_state['rot'], jnp.float32).reshape(B, 4)
    v0 = jnp.asarray(init_state['vel'], jnp.float32).reshape(B, 3)
    g = jnp.array([0.0, 0.0, GRAVITY], jnp.float32)[None, :]

    def step(carry, x):
        q_inc, dv_cum, dp_cum, t_cum = carry
        dt_k, gyro_k, acc_k = x
        dr = _so3_exp(gyro_k * dt_k)
        q_inc = _qmul(q_inc, dr)
        q_world = _qmul(q0, q_inc)
        a = acc_k - _qrot(_qconj(q_world), jnp.broadcast_to(g, acc_k.shape))
        dv = _qrot(q_inc, a) * dt_k
        dp_cum = dp_cum + dv_cum * dt_k + 0.5 * dv * dt_k
        dv_cum = dv_cum + dv
        t_cum = t_cum + dt_k
        rot = q_world
        vel = v0 + _qrot(q0, dv_cum)
        pos = p0 + v0 * t_cum + _qrot(q0, dp_cum)
        return (q_inc, dv_cum, dp_cum, t_cum), (rot, vel, pos)

    init = (jnp.broadcast_to(jnp.array([0., 0., 0., 1.], jnp.float32), (B, 4)),
            jnp.zeros((B, 3), jnp.float32),
            jnp.zeros((B, 3), jnp.float32),
            jnp.zeros((B, 1), jnp.float32))
    xs = (jnp.transpose(dt, (1, 0, 2)),
          jnp.transpose(gyro, (1, 0, 2)),
          jnp.transpose(acc, (1, 0, 2)))
    _, (rot, vel, pos) = jax.lax.scan(step, init, xs)
    return {'rot': jnp.transpose(rot, (1, 0, 2)),
            'vel': jnp.transpose(vel, (1, 0, 2)),
            'pos': jnp.transpose(pos, (1, 0, 2)),
            'cov': None}


if __name__ == "__main__":
    key = jax.random.PRNGKey(0)
    B, F = 3, 20
    k1, k2, k3, k4, k5, k6, k7 = jax.random.split(key, 7)

    dt = jax.random.uniform(k1, (B, F, 1), jnp.float32, 0.005, 0.02)
    gyro = 0.1 * jax.random.normal(k2, (B, F, 3), jnp.float32)
    acc = jax.random.normal(k3, (B, F, 3), jnp.float32) + jnp.array([0., 0., GRAVITY], jnp.float32)
    gt_rot = jax.random.normal(k4, (B, F, 4), jnp.float32)
    gt_rot = gt_rot / jnp.linalg.norm(gt_rot, axis=-1, keepdims=True)  # unused (self.eval quirk)

    init_rot = jax.random.normal(k5, (B, 1, 4), jnp.float32)
    init_rot = init_rot / jnp.linalg.norm(init_rot, axis=-1, keepdims=True)
    init_pos = jax.random.normal(k6, (B, 1, 3), jnp.float32)
    init_vel = 0.1 * jax.random.normal(k7, (B, 1, 3), jnp.float32)

    data = {'dt': dt, 'gyro': gyro, 'acc': acc, 'gt_rot': gt_rot}
    init_state = {'pos': init_pos, 'rot': init_rot, 'vel': init_vel}

    # small frames_per_block so the test exercises multi-block carry + frame padding
    out = imu_integrator_forward(data, init_state, frames_per_block=8)
    jax.block_until_ready((out['rot'], out['vel'], out['pos']))

    ref = imu_integrator_reference(data, init_state)
    for name in ('rot', 'vel', 'pos'):
        np.testing.assert_allclose(np.asarray(out[name]), np.asarray(ref[name]),
                                   rtol=1e-4, atol=1e-4)

    print("KERNEL_OK")
</pallas_src>

<mosaic_0001>
module attributes {stable_mosaic.version = 11 : i64} {
  func.func @kernel(%arg0: i32, %arg1: i32, %arg2: memref<8x8x128xf32, #tpu.memory_space<vmem>>, %arg3: memref<10x128xf32, #tpu.memory_space<vmem>>, %arg4: memref<8x10x128xf32, #tpu.memory_space<vmem>>, %arg5: memref<16x128xf32, #tpu.memory_space<vmem>>) attributes {dimension_semantics = [#tpu.dimension_semantics<parallel>, #tpu.dimension_semantics<arbitrary>], iteration_bounds = array<i64: 1, 3>, scalar_prefetch = 0 : i64, scratch_operands = 1 : i64, tpu.core_type = #tpu.core_type<tc>, window_params = [{transform_indices = @transform_0, window_bounds = array<i64: 8, 8, 128>}, {transform_indices = @transform_1, window_bounds = array<i64: 10, 128>}, {transform_indices = @transform_2, window_bounds = array<i64: 8, 10, 128>}]} {
    %c0_i32 = arith.constant 0 : i32
    %0 = arith.cmpi eq, %arg1, %c0_i32 : i32
    %1 = arith.extui %0 : i1 to i32
    %c0_i32_0 = arith.constant 0 : i32
    %2 = arith.cmpi ne, %1, %c0_i32_0 : i32
    scf.if %2 {
      %cst_437 = arith.constant 0.000000e+00 : f32
      %2494 = vector.broadcast %cst_437 : f32 to vector<16x128xf32>
      %c0_438 = arith.constant 0 : index
      %c0_439 = arith.constant 0 : index
      %2495 = vector.load %arg5[%c0_438, %c0_439] : memref<16x128xf32, #tpu.memory_space<vmem>>, vector<16x128xf32>
      tpu.vector_store %arg5[%c0_438, %c0_439], %2494 {strides = array<i32>} : memref<16x128xf32, #tpu.memory_space<vmem>>, vector<16x128xf32>,
      %cst_440 = arith.constant 1.000000e+00 : f32
      %2496 = vector.broadcast %cst_440 : f32 to vector<1x128xf32>
      %c3_441 = arith.constant 3 : index
      %c0_442 = arith.constant 0 : index
      %2497 = vector.load %arg5[%c3_441, %c0_442] : memref<16x128xf32, #tpu.memory_space<vmem>>, vector<1x128xf32>
      tpu.vector_store %arg5[%c3_441, %c0_442], %2496 {strides = array<i32>} : memref<16x128xf32, #tpu.memory_space<vmem>>, vector<1x128xf32>,
    } else {
    }
    %c0 = arith.constant 0 : index
    %c0_1 = arith.constant 0 : index
    %3 = vector.load %arg3[%c0, %c0_1] : memref<10x128xf32, #tpu.memory_space<vmem>>, vector<1x128xf32>
    %4 = vector.shape_cast %3 : vector<1x128xf32> to vector<128xf32>
    %c1 = arith.constant 1 : index
    %c0_2 = arith.constant 0 : index
    %5 = vector.load %arg3[%c1, %c0_2] : memref<10x128xf32, #tpu.memory_space<vmem>>, vector<1x128xf32>
    %6 = vector.shape_cast %5 : vector<1x128xf32> to vector<128xf32>
    %c2 = arith.constant 2 : index
    %c0_3 = arith.constant 0 : index
    %7 = vector.load %arg3[%c2, %c0_3] : memref<10x128xf32, #tpu.memory_space<vmem>>, vector<1x128xf32>
    %8 = vector.shape_cast %7 : vector<1x128xf32> to vector<128xf32>
    %c3 = arith.constant 3 : index
    %c0_4 = arith.constant 0 : index
    %9 = vector.load %arg3[%c3, %c0_4] : memref<10x128xf32, #tpu.memory_space<vmem>>, vector<1x128xf32>
    %10 = vector.shape_cast %9 : vector<1x128xf32> to vector<128xf32>
    %c4 = arith.constant 4 : index
    %c0_5 = arith.constant 0 : index
    %11 = vector.load %arg3[%c4, %c0_5] : memref<10x128xf32, #tpu.memory_space<vmem>>, vector<1x128xf32>
    %12 = vector.shape_cast %11 : vector<1x128xf32> to vector<128xf32>
    %c5 = arith.constant 5 : index
    %c0_6 = arith.constant 0 : index
    %13 = vector.load %arg3[%c5, %c0_6] : memref<10x128xf32, #tpu.memory_space<vmem>>, vector<1x128xf32>
    %14 = vector.shape_cast %13 : vector<1x128xf32> to vector<128xf32>
    %c6 = arith.constant 6 : index
    %c0_7 = arith.constant 0 : index
    %15 = vector.load %arg3[%c6, %c0_7] : memref<10x128xf32, #tpu.memory_space<vmem>>, vector<1x128xf32>
    %16 = vector.shape_cast %15 : vector<1x128xf32> to vector<128xf32>
    %c7 = arith.constant 7 : index
    %c0_8 = arith.constant 0 : index
    %17 = vector.load %arg3[%c7, %c0_8] : memref<10x128xf32, #tpu.memory_space<vmem>>, vector<1x128xf32>
    %18 = vector.shape_cast %17 : vector<1x128xf32> to vector<128xf32>
    %c8 = arith.constant 8 : index
    %c0_9 = arith.constant 0 : index
    %19 = vector.load %arg3[%c8, %c0_9] : memref<10x128xf32, #tpu.memory_space<vmem>>, vector<1x128xf32>
    %20 = vector.shape_cast %19 : vector<1x128xf32> to vector<128xf32>
    %c9 = arith.constant 9 : index
    %c0_10 = arith.constant 0 : index
    %21 = vector.load %arg3[%c9, %c0_10] : memref<10x128xf32, #tpu.memory_space<vmem>>, vector<1x128xf32>
    %22 = vector.shape_cast %21 : vector<1x128xf32> to vector<128xf32>
    %cst = arith.constant 0.000000e+00 : f32
    %23 = vector.broadcast %cst : f32 to vector<128xf32>
    %24 = arith.subf %23, %4 : vector<128xf32>
    %cst_11 = arith.constant 0.000000e+00 : f32
    %25 = vector.broadcast %cst_11 : f32 to vector<128xf32>
    %26 = arith.subf %25, %6 : vector<128xf32>
    %cst_12 = arith.constant 0.000000e+00 : f32
    %27 = vector.broadcast %cst_12 : f32 to vector<128xf32>
    %28 = arith.subf %27, %8 : vector<128xf32>
    %cst_13 = arith.constant 9.810070e+00 : f32
    %29 = vector.broadcast %cst_13 : f32 to vector<128xf32>
    %30 = arith.mulf %26, %29 : vector<128xf32>
    %cst_14 = arith.constant 0.000000e+00 : f32
    %31 = vector.broadcast %cst_14 : f32 to vector<128xf32>
    %32 = arith.mulf %28, %31 : vector<128xf32>
    %33 = arith.subf %30, %32 : vector<128xf32>
    %cst_15 = arith.constant 0.000000e+00 : f32
    %34 = vector.broadcast %cst_15 : f32 to vector<128xf32>
    %35 = arith.mulf %28, %34 : vector<128xf32>
    %cst_16 = arith.constant 9.810070e+00 : f32
    %36 = vector.broadcast %cst_16 : f32 to vector<128xf32>
    %37 = arith.mulf %24, %36 : vector<128xf32>
    %38 = arith.subf %35, %37 : vector<128xf32>
    %cst_17 = arith.constant 0.000000e+00 : f32
    %39 = vector.broadcast %cst_17 : f32 to vector<128xf32>
    %40 = arith.mulf %24, %39 : vector<128xf32>
    %cst_18 = arith.constant 0.000000e+00 : f32
    %41 = vector.broadcast %cst_18 : f32 to vector<128xf32>
    %42 = arith.mulf %26, %41 : vector<128xf32>
    %43 = arith.subf %40, %42 : vector<128xf32>
    %cst_19 = arith.constant 2.000000e+00 : f32
    %44 = vector.broadcast %cst_19 : f32 to vector<128xf32>
    %45 = arith.mulf %44, %33 : vector<128xf32>
    %cst_20 = arith.constant 2.000000e+00 : f32
    %46 = vector.broadcast %cst_20 : f32 to vector<128xf32>
    %47 = arith.mulf %46, %38 : vector<128xf32>
    %cst_21 = arith.constant 2.000000e+00 : f32
    %48 = vector.broadcast %cst_21 : f32 to vector<128xf32>
    %49 = arith.mulf %48, %43 : vector<128xf32>
    %50 = arith.mulf %26, %49 : vector<128xf32>
    %51 = arith.mulf %28, %47 : vector<128xf32>
    %52 = arith.subf %50, %51 : vector<128xf32>
    %53 = arith.mulf %28, %45 : vector<128xf32>
    %54 = arith.mulf %24, %49 : vector<128xf32>
    %55 = arith.subf %53, %54 : vector<128xf32>
    %56 = arith.mulf %24, %47 : vector<128xf32>
    %57 = arith.mulf %26, %45 : vector<128xf32>
    %58 = arith.subf %56, %57 : vector<128xf32>
    %59 = arith.mulf %10, %45 : vector<128xf32>
    %cst_22 = arith.constant 0.000000e+00 : f32
    %60 = vector.broadcast %cst_22 : f32 to vector<128xf32>
    %61 = arith.addf %60, %59 : vector<128xf32>
    %62 = arith.addf %61, %52 : vector<128xf32>
    %63 = arith.mulf %10, %47 : vector<128xf32>
    %cst_23 = arith.constant 0.000000e+00 : f32
    %64 = vector.broadcast %cst_23 : f32 to vector<128xf32>
    %65 = arith.addf %64, %63 : vector<128xf32>
    %66 = arith.addf %65, %55 : vector<128xf32>
    %67 = arith.mulf %10, %49 : vector<128xf32>
    %cst_24 = arith.constant 9.810070e+00 : f32
    %68 = vector.broadcast %cst_24 : f32 to vector<128xf32>
    %69 = arith.addf %68, %67 : vector<128xf32>
    %70 = arith.addf %69, %58 : vector<128xf32>
    %c0_25 = arith.constant 0 : index
    %c0_26 = arith.constant 0 : index
    %71 = vector.load %arg5[%c0_25, %c0_26] : memref<16x128xf32, #tpu.memory_space<vmem>>, vector<1x128xf32>
    %72 = vector.shape_cast %71 : vector<1x128xf32> to vector<128xf32>
    %c1_27 = arith.constant 1 : index
    %c0_28 = arith.constant 0 : index
    %73 = vector.load %arg5[%c1_27, %c0_28] : memref<16x128xf32, #tpu.memory_space<vmem>>, vector<1x128xf32>
    %74 = vector.shape_cast %73 : vector<1x128xf32> to vector<128xf32>
    %c2_29 = arith.constant 2 : index
    %c0_30 = arith.constant 0 : index
    %75 = vector.load %arg5[%c2_29, %c0_30] : memref<16x128xf32, #tpu.memory_space<vmem>>, vector<1x128xf32>
    %76 = vector.shape_cast %75 : vector<1x128xf32> to vector<128xf32>
    %c3_31 = arith.constant 3 : index
    %c0_32 = arith.constant 0 : index
    %77 = vector.load %arg5[%c3_31, %c0_32] : memref<16x128xf32, #tpu.memory_space<vmem>>, vector<1x128xf32>
    %78 = vector.shape_cast %77 : vector<1x128xf32> to vector<128xf32>
    %c4_33 = arith.constant 4 : index
    %c0_34 = arith.constant 0 : index
    %79 = vector.load %arg5[%c4_33, %c0_34] : memref<16x128xf32, #tpu.memory_space<vmem>>, vector<1x128xf32>
    %80 = vector.shape_cast %79 : vector<1x128xf32> to vector<128xf32>
    %c5_35 = arith.constant 5 : index
    %c0_36 = arith.constant 0 : index
    %81 = vector.load %arg5[%c5_35, %c0_36] : memref<16x128xf32, #tpu.memory_space<vmem>>, vector<1x128xf32>
    %82 = vector.shape_cast %81 : vector<1x128xf32> to vector<128xf32>
    %c6_37 = arith.constant 6 : index
    %c0_38 = arith.constant 0 : index
    %83 = vector.load %arg5[%c6_37, %c0_38] : memref<16x128xf32, #tpu.memory_space<vmem>>, vector<1x128xf32>
    %84 = vector.shape_cast %83 : vector<1x128xf32> to vector<128xf32>
    %c7_39 = arith.constant 7 : index
    %c0_40 = arith.constant 0 : index
    %85 = vector.load %arg5[%c7_39, %c0_40] : memref<16x128xf32, #tpu.memory_space<vmem>>, vector<1x128xf32>
    %86 = vector.shape_cast %85 : vector<1x128xf32> to vector<128xf32>
    %c8_41 = arith.constant 8 : index
    %c0_42 = arith.constant 0 : index
    %87 = vector.load %arg5[%c8_41, %c0_42] : memref<16x128xf32, #tpu.memory_space<vmem>>, vector<1x128xf32>
    %88 = vector.shape_cast %87 : vector<1x128xf32> to vector<128xf32>
    %c9_43 = arith.constant 9 : index
    %c0_44 = arith.constant 0 : index
    %89 = vector.load %arg5[%c9_43, %c0_44] : memref<16x128xf32, #tpu.memory_space<vmem>>, vector<1x128xf32>
    %90 = vector.shape_cast %89 : vector<1x128xf32> to vector<128xf32>
    %c10 = arith.constant 10 : index
    %c0_45 = arith.constant 0 : index
    %91 = vector.load %arg5[%c10, %c0_45] : memref<16x128xf32, #tpu.memory_space<vmem>>, vector<1x128xf32>
    %92 = vector.shape_cast %91 : vector<1x128xf32> to vector<128xf32>
    %c0_i32_46 = arith.constant 0 : i32
    %93 = arith.index_cast %c0_i32_46 : i32 to index
    %c0_47 = arith.constant 0 : index
    %c0_48 = arith.constant 0 : index
    %94 = vector.load %arg2[%93, %c0_47, %c0_48] : memref<8x8x128xf32, #tpu.memory_space<vmem>>, vector<1x8x128xf32>
    %95 = vector.shape_cast %94 : vector<1x8x128xf32> to vector<8x128xf32>
    %96 = vector.extract_strided_slice %95 {offsets = [0, 0], sizes = [1, 128], strides = [1, 1]} : vector<8x128xf32> to vector<1x128xf32>
    %97 = vector.shape_cast %96 : vector<1x128xf32> to vector<128xf32>
    %98 = vector.extract_strided_slice %95 {offsets = [1, 0], sizes = [1, 128], strides = [1, 1]} : vector<8x128xf32> to vector<1x128xf32>
    %99 = vector.shape_cast %98 : vector<1x128xf32> to vector<128xf32>
    %100 = arith.mulf %99, %97 : vector<128xf32>
    %101 = vector.extract_strided_slice %95 {offsets = [2, 0], sizes = [1, 128], strides = [1, 1]} : vector<8x128xf32> to vector<1x128xf32>
    %102 = vector.shape_cast %101 : vector<1x128xf32> to vector<128xf32>
    %103 = arith.mulf %102, %97 : vector<128xf32>
    %104 = vector.extract_strided_slice %95 {offsets = [3, 0], sizes = [1, 128], strides = [1, 1]} : vector<8x128xf32> to vector<1x128xf32>
    %105 = vector.shape_cast %104 : vector<1x128xf32> to vector<128xf32>
    %106 = arith.mulf %105, %97 : vector<128xf32>
    %107 = arith.mulf %100, %100 : vector<128xf32>
    %108 = arith.mulf %103, %103 : vector<128xf32>
    %109 = arith.addf %107, %108 : vector<128xf32>
    %110 = arith.mulf %106, %106 : vector<128xf32>
    %111 = arith.addf %109, %110 : vector<128xf32>
    %112 = math.sqrt %111 : vector<128xf32>
    %113 = arith.mulf %111, %111 : vector<128xf32>
    %cst_49 = arith.constant 9.99999997E-7 : f32
    %114 = vector.broadcast %cst_49 : f32 to vector<128xf32>
    %115 = arith.cmpf ogt, %112, %114 : vector<128xf32>
    %cst_50 = arith.constant 1.000000e+00 : f32
    %116 = vector.broadcast %cst_50 : f32 to vector<128xf32>
    %117 = arith.select %115, %112, %116 : vector<128xi1>, vector<128xf32>
    %cst_51 = arith.constant 9.99999997E-7 : f32
    %118 = vector.broadcast %cst_51 : f32 to vector<128xf32>
    %119 = arith.cmpf ogt, %112, %118 : vector<128xf32>
    %cst_52 = arith.constant 5.000000e-01 : f32
    %120 = vector.broadcast %cst_52 : f32 to vector<128xf32>
    %121 = arith.mulf %120, %112 : vector<128xf32>
    %122 = math.sin %121 : vector<128xf32>
    %123 = arith.divf %122, %117 : vector<128xf32>
    %cst_53 = arith.constant 4.800000e+01 : f32
    %124 = vector.broadcast %cst_53 : f32 to vector<128xf32>
    %125 = arith.divf %111, %124 : vector<128xf32>
    %cst_54 = arith.constant 5.000000e-01 : f32
    %126 = vector.broadcast %cst_54 : f32 to vector<128xf32>
    %127 = arith.subf %126, %125 : vector<128xf32>
    %cst_55 = arith.constant 3.840000e+03 : f32
    %128 = vector.broadcast %cst_55 : f32 to vector<128xf32>
    %129 = arith.divf %113, %128 : vector<128xf32>
    %130 = arith.addf %127, %129 : vector<128xf32>
    %131 = arith.select %119, %123, %130 : vector<128xi1>, vector<128xf32>
    %cst_56 = arith.constant 9.99999997E-7 : f32
    %132 = vector.broadcast %cst_56 : f32 to vector<128xf32>
    %133 = arith.cmpf ogt, %112, %132 : vector<128xf32>
    %cst_57 = arith.constant 5.000000e-01 : f32
    %134 = vector.broadcast %cst_57 : f32 to vector<128xf32>
    %135 = arith.mulf %134, %112 : vector<128xf32>
    %136 = math.cos %135 : vector<128xf32>
    %cst_58 = arith.constant 8.000000e+00 : f32
    %137 = vector.broadcast %cst_58 : f32 to vector<128xf32>
    %138 = arith.divf %111, %137 : vector<128xf32>
    %cst_59 = arith.constant 1.000000e+00 : f32
    %139 = vector.broadcast %cst_59 : f32 to vector<128xf32>
    %140 = arith.subf %139, %138 : vector<128xf32>
    %cst_60 = arith.constant 3.840000e+02 : f32
    %141 = vector.broadcast %cst_60 : f32 to vector<128xf32>
    %142 = arith.divf %113, %141 : vector<128xf32>
    %143 = arith.addf %140, %142 : vector<128xf32>
    %144 = arith.select %133, %136, %143 : vector<128xi1>, vector<128xf32>
    %145 = arith.mulf %100, %131 : vector<128xf32>
    %146 = arith.mulf %103, %131 : vector<128xf32>
    %147 = arith.mulf %106, %131 : vector<128xf32>
    %148 = arith.mulf %78, %145 : vector<128xf32>
    %149 = arith.mulf %72, %144 : vector<128xf32>
    %150 = arith.addf %148, %149 : vector<128xf32>
    %151 = arith.mulf %74, %147 : vector<128xf32>
    %152 = arith.addf %150, %151 : vector<128xf32>
    %153 = arith.mulf %76, %146 : vector<128xf32>
    %154 = arith.subf %152, %153 : vector<128xf32>
    %155 = arith.mulf %78, %146 : vector<128xf32>
    %156 = arith.mulf %72, %147 : vector<128xf32>
    %157 = arith.subf %155, %156 : vector<128xf32>
    %158 = arith.mulf %74, %144 : vector<128xf32>
    %159 = arith.addf %157, %158 : vector<128xf32>
    %160 = arith.mulf %76, %145 : vector<128xf32>
    %161 = arith.addf %159, %160 : vector<128xf32>
    %162 = arith.mulf %78, %147 : vector<128xf32>
    %163 = arith.mulf %72, %146 : vector<128xf32>
    %164 = arith.addf %162, %163 : vector<128xf32>
    %165 = arith.mulf %74, %145 : vector<128xf32>
    %166 = arith.subf %164, %165 : vector<128xf32>
    %167 = arith.mulf %76, %144 : vector<128xf32>
    %168 = arith.addf %166, %167 : vector<128xf32>
    %169 = arith.mulf %78, %144 : vector<128xf32>
    %170 = arith.mulf %72, %145 : vector<128xf32>
    %171 = arith.subf %169, %170 : vector<128xf32>
    %172 = arith.mulf %74, %146 : vector<128xf32>
    %173 = arith.subf %171, %172 : vector<128xf32>
    %174 = arith.mulf %76, %147 : vector<128xf32>
    %175 = arith.subf %173, %174 : vector<128xf32>
    %176 = vector.extract_strided_slice %95 {offsets = [4, 0], sizes = [1, 128], strides = [1, 1]} : vector<8x128xf32> to vector<1x128xf32>
    %177 = vector.shape_cast %176 : vector<1x128xf32> to vector<128xf32>
    %178 = vector.extract_strided_slice %95 {offsets = [5, 0], sizes = [1, 128], strides = [1, 1]} : vector<8x128xf32> to vector<1x128xf32>
    %179 = vector.shape_cast %178 : vector<1x128xf32> to vector<128xf32>
    %180 = vector.extract_strided_slice %95 {offsets = [6, 0], sizes = [1, 128], strides = [1, 1]} : vector<8x128xf32> to vector<1x128xf32>
    %181 = vector.shape_cast %180 : vector<1x128xf32> to vector<128xf32>
    %182 = arith.mulf %161, %181 : vector<128xf32>
    %183 = arith.mulf %168, %179 : vector<128xf32>
    %184 = arith.subf %182, %183 : vector<128xf32>
    %185 = arith.mulf %168, %177 : vector<128xf32>
    %186 = arith.mulf %154, %181 : vector<128xf32>
    %187 = arith.subf %185, %186 : vector<128xf32>
    %188 = arith.mulf %154, %179 : vector<128xf32>
    %189 = arith.mulf %161, %177 : vector<128xf32>
    %190 = arith.subf %188, %189 : vector<128xf32>
    %cst_61 = arith.constant 2.000000e+00 : f32
    %191 = vector.broadcast %cst_61 : f32 to vector<128xf32>
    %192 = arith.mulf %191, %184 : vector<128xf32>
    %cst_62 = arith.constant 2.000000e+00 : f32
    %193 = vector.broadcast %cst_62 : f32 to vector<128xf32>
    %194 = arith.mulf %193, %187 : vector<128xf32>
    %cst_63 = arith.constant 2.000000e+00 : f32
    %195 = vector.broadcast %cst_63 : f32 to vector<128xf32>
    %196 = arith.mulf %195, %190 : vector<128xf32>
    %197 = arith.mulf %161, %196 : vector<128xf32>
    %198 = arith.mulf %168, %194 : vector<128xf32>
    %199 = arith.subf %197, %198 : vector<128xf32>
    %200 = arith.mulf %168, %192 : vector<128xf32>
    %201 = arith.mulf %154, %196 : vector<128xf32>
    %202 = arith.subf %200, %201 : vector<128xf32>
    %203 = arith.mulf %154, %194 : vector<128xf32>
    %204 = arith.mulf %161, %192 : vector<128xf32>
    %205 = arith.subf %203, %204 : vector<128xf32>
    %206 = arith.mulf %175, %192 : vector<128xf32>
    %207 = arith.addf %177, %206 : vector<128xf32>
    %208 = arith.addf %207, %199 : vector<128xf32>
    %209 = arith.mulf %175, %194 : vector<128xf32>
    %210 = arith.addf %179, %209 : vector<128xf32>
    %211 = arith.addf %210, %202 : vector<128xf32>
    %212 = arith.mulf %175, %196 : vector<128xf32>
    %213 = arith.addf %181, %212 : vector<128xf32>
    %214 = arith.addf %213, %205 : vector<128xf32>
    %215 = arith.subf %208, %62 : vector<128xf32>
    %216 = arith.mulf %215, %97 : vector<128xf32>
    %217 = arith.subf %211, %66 : vector<128xf32>
    %218 = arith.mulf %217, %97 : vector<128xf32>
    %219 = arith.subf %214, %70 : vector<128xf32>
    %220 = arith.mulf %219, %97 : vector<128xf32>
    %221 = arith.mulf %80, %97 : vector<128xf32>
    %222 = arith.addf %86, %221 : vector<128xf32>
    %cst_64 = arith.constant 5.000000e-01 : f32
    %223 = vector.broadcast %cst_64 : f32 to vector<128xf32>
    %224 = arith.mulf %223, %216 : vector<128xf32>
    %225 = arith.mulf %224, %97 : vector<128xf32>
    %226 = arith.addf %222, %225 : vector<128xf32>
    %227 = arith.mulf %82, %97 : vector<128xf32>
    %228 = arith.addf %88, %227 : vector<128xf32>
    %cst_65 = arith.constant 5.000000e-01 : f32
    %229 = vector.broadcast %cst_65 : f32 to vector<128xf32>
    %230 = arith.mulf %229, %218 : vector<128xf32>
    %231 = arith.mulf %230, %97 : vector<128xf32>
    %232 = arith.addf %228, %231 : vector<128xf32>
    %233 = arith.mulf %84, %97 : vector<128xf32>
    %234 = arith.addf %90, %233 : vector<128xf32>
    %cst_66 = arith.constant 5.000000e-01 : f32
    %235 = vector.broadcast %cst_66 : f32 to vector<128xf32>
    %236 = arith.mulf %235, %220 : vector<128xf32>
    %237 = arith.mulf %236, %97 : vector<128xf32>
    %238 = arith.addf %234, %237 : vector<128xf32>
    %239 = arith.addf %80, %216 : vector<128xf32>
    %240 = arith.addf %82, %218 : vector<128xf32>
    %241 = arith.addf %84, %220 : vector<128xf32>
    %242 = arith.addf %92, %97 : vector<128xf32>
    %243 = arith.mulf %10, %154 : vector<128xf32>
    %244 = arith.mulf %4, %175 : vector<128xf32>
    %245 = arith.addf %243, %244 : vector<128xf32>
    %246 = arith.mulf %6, %168 : vector<128xf32>
    %247 = arith.addf %245, %246 : vector<128xf32>
    %248 = arith.mulf %8, %161 : vector<128xf32>
    %249 = arith.subf %247, %248 : vector<128xf32>
    %250 = arith.mulf %10, %161 : vector<128xf32>
    %251 = arith.mulf %4, %168 : vector<128xf32>
    %252 = arith.subf %250, %251 : vector<128xf32>
    %253 = arith.mulf %6, %175 : vector<128xf32>
    %254 = arith.addf %252, %253 : vector<128xf32>
    %255 = arith.mulf %8, %154 : vector<128xf32>
    %256 = arith.addf %254, %255 : vector<128xf32>
    %257 = arith.mulf %10, %168 : vector<128xf32>
    %258 = arith.mulf %4, %161 : vector<128xf32>
    %259 = arith.addf %257, %258 : vector<128xf32>
    %260 = arith.mulf %6, %154 : vector<128xf32>
    %261 = arith.subf %259, %260 : vector<128xf32>
    %262 = arith.mulf %8, %175 : vector<128xf32>
    %263 = arith.addf %261, %262 : vector<128xf32>
    %264 = arith.mulf %10, %175 : vector<128xf32>
    %265 = arith.mulf %4, %154 : vector<128xf32>
    %266 = arith.subf %264, %265 : vector<128xf32>
    %267 = arith.mulf %6, %161 : vector<128xf32>
    %268 = arith.subf %266, %267 : vector<128xf32>
    %269 = arith.mulf %8, %168 : vector<128xf32>
    %270 = arith.subf %268, %269 : vector<128xf32>
    %271 = arith.mulf %6, %241 : vector<128xf32>
    %272 = arith.mulf %8, %240 : vector<128xf32>
    %273 = arith.subf %271, %272 : vector<128xf32>
    %274 = arith.mulf %8, %239 : vector<128xf32>
    %275 = arith.mulf %4, %241 : vector<128xf32>
    %276 = arith.subf %274, %275 : vector<128xf32>
    %277 = arith.mulf %4, %240 : vector<128xf32>
    %278 = arith.mulf %6, %239 : vector<128xf32>
    %279 = arith.subf %277, %278 : vector<128xf32>
    %cst_67 = arith.constant 2.000000e+00 : f32
    %280 = vector.broadcast %cst_67 : f32 to vector<128xf32>
    %281 = arith.mulf %280, %273 : vector<128xf32>
    %cst_68 = arith.constant 2.000000e+00 : f32
    %282 = vector.broadcast %cst_68 : f32 to vector<128xf32>
    %283 = arith.mulf %282, %276 : vector<128xf32>
    %cst_69 = arith.constant 2.000000e+00 : f32
    %284 = vector.broadcast %cst_69 : f32 to vector<128xf32>
    %285 = arith.mulf %284, %279 : vector<128xf32>
    %286 = arith.mulf %6, %285 : vector<128xf32>
    %287 = arith.mulf %8, %283 : vector<128xf32>
    %288 = arith.subf %286, %287 : vector<128xf32>
    %289 = arith.mulf %8, %281 : vector<128xf32>
    %290 = arith.mulf %4, %285 : vector<128xf32>
    %291 = arith.subf %289, %290 : vector<128xf32>
    %292 = arith.mulf %4, %283 : vector<128xf32>
    %293 = arith.mulf %6, %281 : vector<128xf32>
    %294 = arith.subf %292, %293 : vector<128xf32>
    %295 = arith.mulf %10, %281 : vector<128xf32>
    %296 = arith.addf %239, %295 : vector<128xf32>
    %297 = arith.addf %296, %288 : vector<128xf32>
    %298 = arith.mulf %10, %283 : vector<128xf32>
    %299 = arith.addf %240, %298 : vector<128xf32>
    %300 = arith.addf %299, %291 : vector<128xf32>
    %301 = arith.mulf %10, %285 : vector<128xf32>
    %302 = arith.addf %241, %301 : vector<128xf32>
    %303 = arith.addf %302, %294 : vector<128xf32>
    %304 = arith.mulf %6, %238 : vector<128xf32>
    %305 = arith.mulf %8, %232 : vector<128xf32>
    %306 = arith.subf %304, %305 : vector<128xf32>
    %307 = arith.mulf %8, %226 : vector<128xf32>
    %308 = arith.mulf %4, %238 : vector<128xf32>
    %309 = arith.subf %307, %308 : vector<128xf32>
    %310 = arith.mulf %4, %232 : vector<128xf32>
    %311 = arith.mulf %6, %226 : vector<128xf32>
    %312 = arith.subf %310, %311 : vector<128xf32>
    %cst_70 = arith.constant 2.000000e+00 : f32
    %313 = vector.broadcast %cst_70 : f32 to vector<128xf32>
    %314 = arith.mulf %313, %306 : vector<128xf32>
    %cst_71 = arith.constant 2.000000e+00 : f32
    %315 = vector.broadcast %cst_71 : f32 to vector<128xf32>
    %316 = arith.mulf %315, %309 : vector<128xf32>
    %cst_72 = arith.constant 2.000000e+00 : f32
    %317 = vector.broadcast %cst_72 : f32 to vector<128xf32>
    %318 = arith.mulf %317, %312 : vector<128xf32>
    %319 = arith.mulf %6, %318 : vector<128xf32>
    %320 = arith.mulf %8, %316 : vector<128xf32>
    %321 = arith.subf %319, %320 : vector<128xf32>
    %322 = arith.mulf %8, %314 : vector<128xf32>
    %323 = arith.mulf %4, %318 : vector<128xf32>
    %324 = arith.subf %322, %323 : vector<128xf32>
    %325 = arith.mulf %4, %316 : vector<128xf32>
    %326 = arith.mulf %6, %314 : vector<128xf32>
    %327 = arith.subf %325, %326 : vector<128xf32>
    %328 = arith.mulf %10, %314 : vector<128xf32>
    %329 = arith.addf %226, %328 : vector<128xf32>
    %330 = arith.addf %329, %321 : vector<128xf32>
    %331 = arith.mulf %10, %316 : vector<128xf32>
    %332 = arith.addf %232, %331 : vector<128xf32>
    %333 = arith.addf %332, %324 : vector<128xf32>
    %334 = arith.mulf %10, %318 : vector<128xf32>
    %335 = arith.addf %238, %334 : vector<128xf32>
    %336 = arith.addf %335, %327 : vector<128xf32>
    %337 = arith.index_cast %c0_i32_46 : i32 to index
    %c0_73 = arith.constant 0 : index
    %c0_74 = arith.constant 0 : index
    %338 = vector.load %arg4[%337, %c0_73, %c0_74] : memref<8x10x128xf32, #tpu.memory_space<vmem>>, vector<1x1x128xf32>
    %339 = vector.shape_cast %338 : vector<1x1x128xf32> to vector<128xf32>
    %340 = vector.shape_cast %249 : vector<128xf32> to vector<1x1x128xf32>
    tpu.vector_store %arg4[%337, %c0_73, %c0_74], %340 {strides = array<i32>} : memref<8x10x128xf32, #tpu.memory_space<vmem>>, vector<1x1x128xf32>,
    %341 = arith.index_cast %c0_i32_46 : i32 to index
    %c1_75 = arith.constant 1 : index
    %c0_76 = arith.constant 0 : index
    %342 = vector.load %arg4[%341, %c1_75, %c0_76] : memref<8x10x128xf32, #tpu.memory_space<vmem>>, vector<1x1x128xf32>
    %343 = vector.shape_cast %342 : vector<1x1x128xf32> to vector<128xf32>
    %344 = vector.shape_cast %256 : vector<128xf32> to vector<1x1x128xf32>
    tpu.vector_store %arg4[%341, %c1_75, %c0_76], %344 {strides = array<i32>} : memref<8x10x128xf32, #tpu.memory_space<vmem>>, vector<1x1x128xf32>,
    %345 = arith.index_cast %c0_i32_46 : i32 to index
    %c2_77 = arith.constant 2 : index
    %c0_78 = arith.constant 0 : index
    %346 = vector.load %arg4[%345, %c2_77, %c0_78] : memref<8x10x128xf32, #tpu.memory_space<vmem>>, vector<1x1x128xf32>
    %347 = vector.shape_cast %346 : vector<1x1x128xf32> to vector<128xf32>
    %348 = vector.shape_cast %263 : vector<128xf32> to vector<1x1x128xf32>
    tpu.vector_store %arg4[%345, %c2_77, %c0_78], %348 {strides = array<i32>} : memref<8x10x128xf32, #tpu.memory_space<vmem>>, vector<1x1x128xf32>,
    %349 = arith.index_cast %c0_i32_46 : i32 to index
    %c3_79 = arith.constant 3 : index
    %c0_80 = arith.constant 0 : index
    %350 = vector.load %arg4[%349, %c3_79, %c0_80] : memref<8x10x128xf32, #tpu.memory_space<vmem>>, vector<1x1x128xf32>
    %351 = vector.shape_cast %350 : vector<1x1x128xf32> to vector<128xf32>
    %352 = vector.shape_cast %270 : vector<128xf32> to vector<1x1x128xf32>
    tpu.vector_store %arg4[%349, %c3_79, %c0_80], %352 {strides = array<i32>} : memref<8x10x128xf32, #tpu.memory_space<vmem>>, vector<1x1x128xf32>,
    %353 = arith.addf %12, %297 : vector<128xf32>
    %354 = arith.index_cast %c0_i32_46 : i32 to index
    %c4_81 = arith.constant 4 : index
    %c0_82 = arith.constant 0 : index
    %355 = vector.load %arg4[%354, %c4_81, %c0_82] : memref<8x10x128xf32, #tpu.memory_space<vmem>>, vector<1x1x128xf32>
    %356 = vector.shape_cast %355 : vector<1x1x128xf32> to vector<128xf32>
    %357 = vector.shape_cast %353 : vector<128xf32> to vector<1x1x128xf32>
    tpu.vector_store %arg4[%354, %c4_81, %c0_82], %357 {strides = array<i32>} : memref<8x10x128xf32, #tpu.memory_space<vmem>>, vector<1x1x128xf32>,
    %358 = arith.addf %14, %300 : vector<128xf32>
    %359 = arith.index_cast %c0_i32_46 : i32 to index
    %c5_83 = arith.constant 5 : index
    %c0_84 = arith.constant 0 : index
    %360 = vector.load %arg4[%359, %c5_83, %c0_84] : memref<8x10x128xf32, #tpu.memory_space<vmem>>, vector<1x1x128xf32>
    %361 = vector.shape_cast %360 : vector<1x1x128xf32> to vector<128xf32>
    %362 = vector.shape_cast %358 : vector<128xf32> to vector<1x1x128xf32>
    tpu.vector_store %arg4[%359, %c5_83, %c0_84], %362 {strides = array<i32>} : memref<8x10x128xf32, #tpu.memory_space<vmem>>, vector<1x1x128xf32>,
    %363 = arith.addf %16, %303 : vector<128xf32>
    %364 = arith.index_cast %c0_i32_46 : i32 to index
    %c6_85 = arith.constant 6 : index
    %c0_86 = arith.constant 0 : index
    %365 = vector.load %arg4[%364, %c6_85, %c0_86] : memref<8x10x128xf32, #tpu.memory_space<vmem>>, vector<1x1x128xf32>
    %366 = vector.shape_cast %365 : vector<1x1x128xf32> to vector<128xf32>
    %367 = vector.shape_cast %363 : vector<128xf32> to vector<1x1x128xf32>
    tpu.vector_store %arg4[%364, %c6_85, %c0_86], %367 {strides = array<i32>} : memref<8x10x128xf32, #tpu.memory_space<vmem>>, vector<1x1x128xf32>,
    %368 = arith.mulf %12, %242 : vector<128xf32>
    %369 = arith.addf %18, %368 : vector<128xf32>
    %370 = arith.addf %369, %330 : vector<128xf32>
    %371 = arith.index_cast %c0_i32_46 : i32 to index
    %c7_87 = arith.constant 7 : index
    %c0_88 = arith.constant 0 : index
    %372 = vector.load %arg4[%371, %c7_87, %c0_88] : memref<8x10x128xf32, #tpu.memory_space<vmem>>, vector<1x1x128xf32>
    %373 = vector.shape_cast %372 : vector<1x1x128xf32> to vector<128xf32>
    %374 = vector.shape_cast %370 : vector<128xf32> to vector<1x1x128xf32>
    tpu.vector_store %arg4[%371, %c7_87, %c0_88], %374 {strides = array<i32>} : memref<8x10x128xf32, #tpu.memory_space<vmem>>, vector<1x1x128xf32>,
    %375 = arith.mulf %14, %242 : vector<128xf32>
    %376 = arith.addf %20, %375 : vector<128xf32>
    %377 = arith.addf %376, %333 : vector<128xf32>
    %378 = arith.index_cast %c0_i32_46 : i32 to index
    %c8_89 = arith.constant 8 : index
    %c0_90 = arith.constant 0 : index
    %379 = vector.load %arg4[%378, %c8_89, %c0_90] : memref<8x10x128xf32, #tpu.memory_space<vmem>>, vector<1x1x128xf32>
    %380 = vector.shape_cast %379 : vector<1x1x128xf32> to vector<128xf32>
    %381 = vector.shape_cast %377 : vector<128xf32> to vector<1x1x128xf32>
    tpu.vector_store %arg4[%378, %c8_89, %c0_90], %381 {strides = array<i32>} : memref<8x10x128xf32, #tpu.memory_space<vmem>>, vector<1x1x128xf32>,
    %382 = arith.mulf %16, %242 : vector<128xf32>
    %383 = arith.addf %22, %382 : vector<128xf32>
    %384 = arith.addf %383, %336 : vector<128xf32>
    %385 = arith.index_cast %c0_i32_46 : i32 to index
    %c9_91 = arith.constant 9 : index
    %c0_92 = arith.constant 0 : index
    %386 = vector.load %arg4[%385, %c9_91, %c0_92] : memref<8x10x128xf32, #tpu.memory_space<vmem>>, vector<1x1x128xf32>
    %387 = vector.shape_cast %386 : vector<1x1x128xf32> to vector<128xf32>
    %388 = vector.shape_cast %384 : vector<128xf32> to vector<1x1x128xf32>
    tpu.vector_store %arg4[%385, %c9_91, %c0_92], %388 {strides = array<i32>} : memref<8x10x128xf32, #tpu.memory_space<vmem>>, vector<1x1x128xf32>,
    %c1_i32 = arith.constant 1 : i32
    %389 = arith.index_cast %c1_i32 : i32 to index
    %c0_93 = arith.constant 0 : index
    %c0_94 = arith.constant 0 : index
    %390 = vector.load %arg2[%389, %c0_93, %c0_94] : memref<8x8x128xf32, #tpu.memory_space<vmem>>, vector<1x8x128xf32>
    %391 = vector.shape_cast %390 : vector<1x8x128xf32> to vector<8x128xf32>
    %392 = vector.extract_strided_slice %391 {offsets = [0, 0], sizes = [1, 128], strides = [1, 1]} : vector<8x128xf32> to vector<1x128xf32>
    %393 = vector.shape_cast %392 : vector<1x128xf32> to vector<128xf32>
    %394 = vector.extract_strided_slice %391 {offsets = [1, 0], sizes = [1, 128], strides = [1, 1]} : vector<8x128xf32> to vector<1x128xf32>
    %395 = vector.shape_cast %394 : vector<1x128xf32> to vector<128xf32>
    %396 = arith.mulf %395, %393 : vector<128xf32>
    %397 = vector.extract_strided_slice %391 {offsets = [2, 0], sizes = [1, 128], strides = [1, 1]} : vector<8x128xf32> to vector<1x128xf32>
    %398 = vector.shape_cast %397 : vector<1x128xf32> to vector<128xf32>
    %399 = arith.mulf %398, %393 : vector<128xf32>
    %400 = vector.extract_strided_slice %391 {offsets = [3, 0], sizes = [1, 128], strides = [1, 1]} : vector<8x128xf32> to vector<1x128xf32>
    %401 = vector.shape_cast %400 : vector<1x128xf32> to vector<128xf32>
    %402 = arith.mulf %401, %393 : vector<128xf32>
    %403 = arith.mulf %396, %396 : vector<128xf32>
    %404 = arith.mulf %399, %399 : vector<128xf32>
    %405 = arith.addf %403, %404 : vector<128xf32>
    %406 = arith.mulf %402, %402 : vector<128xf32>
    %407 = arith.addf %405, %406 : vector<128xf32>
    %408 = math.sqrt %407 : vector<128xf32>
    %409 = arith.mulf %407, %407 : vector<128xf32>
    %cst_95 = arith.constant 9.99999997E-7 : f32
    %410 = vector.broadcast %cst_95 : f32 to vector<128xf32>
    %411 = arith.cmpf ogt, %408, %410 : vector<128xf32>
    %cst_96 = arith.constant 1.000000e+00 : f32
    %412 = vector.broadcast %cst_96 : f32 to vector<128xf32>
    %413 = arith.select %411, %408, %412 : vector<128xi1>, vector<128xf32>
    %cst_97 = arith.constant 9.99999997E-7 : f32
    %414 = vector.broadcast %cst_97 : f32 to vector<128xf32>
    %415 = arith.cmpf ogt, %408, %414 : vector<128xf32>
    %cst_98 = arith.constant 5.000000e-01 : f32
    %416 = vector.broadcast %cst_98 : f32 to vector<128xf32>
    %417 = arith.mulf %416, %408 : vector<128xf32>
    %418 = math.sin %417 : vector<128xf32>
    %419 = arith.divf %418, %413 : vector<128xf32>
    %cst_99 = arith.constant 4.800000e+01 : f32
    %420 = vector.broadcast %cst_99 : f32 to vector<128xf32>
    %421 = arith.divf %407, %420 : vector<128xf32>
    %cst_100 = arith.constant 5.000000e-01 : f32
    %422 = vector.broadcast %cst_100 : f32 to vector<128xf32>
    %423 = arith.subf %422, %421 : vector<128xf32>
    %cst_101 = arith.constant 3.840000e+03 : f32
    %424 = vector.broadcast %cst_101 : f32 to vector<128xf32>
    %425 = arith.divf %409, %424 : vector<128xf32>
    %426 = arith.addf %423, %425 : vector<128xf32>
    %427 = arith.select %415, %419, %426 : vector<128xi1>, vector<128xf32>
    %cst_102 = arith.constant 9.99999997E-7 : f32
    %428 = vector.broadcast %cst_102 : f32 to vector<128xf32>
    %429 = arith.cmpf ogt, %408, %428 : vector<128xf32>
    %cst_103 = arith.constant 5.000000e-01 : f32
    %430 = vector.broadcast %cst_103 : f32 to vector<128xf32>
    %431 = arith.mulf %430, %408 : vector<128xf32>
    %432 = math.cos %431 : vector<128xf32>
    %cst_104 = arith.constant 8.000000e+00 : f32
    %433 = vector.broadcast %cst_104 : f32 to vector<128xf32>
    %434 = arith.divf %407, %433 : vector<128xf32>
    %cst_105 = arith.constant 1.000000e+00 : f32
    %435 = vector.broadcast %cst_105 : f32 to vector<128xf32>
    %436 = arith.subf %435, %434 : vector<128xf32>
    %cst_106 = arith.constant 3.840000e+02 : f32
    %437 = vector.broadcast %cst_106 : f32 to vector<128xf32>
    %438 = arith.divf %409, %437 : vector<128xf32>
    %439 = arith.addf %436, %438 : vector<128xf32>
    %440 = arith.select %429, %432, %439 : vector<128xi1>, vector<128xf32>
    %441 = arith.mulf %396, %427 : vector<128xf32>
    %442 = arith.mulf %399, %427 : vector<128xf32>
    %443 = arith.mulf %402, %427 : vector<128xf32>
    %444 = arith.mulf %175, %441 : vector<128xf32>
    %445 = arith.mulf %154, %440 : vector<128xf32>
    %446 = arith.addf %444, %445 : vector<128xf32>
    %447 = arith.mulf %161, %443 : vector<128xf32>
    %448 = arith.addf %446, %447 : vector<128xf32>
    %449 = arith.mulf %168, %442 : vector<128xf32>
    %450 = arith.subf %448, %449 : vector<128xf32>
    %451 = arith.mulf %175, %442 : vector<128xf32>
    %452 = arith.mulf %154, %443 : vector<128xf32>
    %453 = arith.subf %451, %452 : vector<128xf32>
    %454 = arith.mulf %161, %440 : vector<128xf32>
    %455 = arith.addf %453, %454 : vector<128xf32>
    %456 = arith.mulf %168, %441 : vector<128xf32>
    %457 = arith.addf %455, %456 : vector<128xf32>
    %458 = arith.mulf %175, %443 : vector<128xf32>
    %459 = arith.mulf %154, %442 : vector<128xf32>
    %460 = arith.addf %458, %459 : vector<128xf32>
    %461 = arith.mulf %161, %441 : vector<128xf32>
    %462 = arith.subf %460, %461 : vector<128xf32>
    %463 = arith.mulf %168, %440 : vector<128xf32>
    %464 = arith.addf %462, %463 : vector<128xf32>
    %465 = arith.mulf %175, %440 : vector<128xf32>
    %466 = arith.mulf %154, %441 : vector<128xf32>
    %467 = arith.subf %465, %466 : vector<128xf32>
    %468 = arith.mulf %161, %442 : vector<128xf32>
    %469 = arith.subf %467, %468 : vector<128xf32>
    %470 = arith.mulf %168, %443 : vector<128xf32>
    %471 = arith.subf %469, %470 : vector<128xf32>
    %472 = vector.extract_strided_slice %391 {offsets = [4, 0], sizes = [1, 128], strides = [1, 1]} : vector<8x128xf32> to vector<1x128xf32>
    %473 = vector.shape_cast %472 : vector<1x128xf32> to vector<128xf32>
    %474 = vector.extract_strided_slice %391 {offsets = [5, 0], sizes = [1, 128], strides = [1, 1]} : vector<8x128xf32> to vector<1x128xf32>
    %475 = vector.shape_cast %474 : vector<1x128xf32> to vector<128xf32>
    %476 = vector.extract_strided_slice %391 {offsets = [6, 0], sizes = [1, 128], strides = [1, 1]} : vector<8x128xf32> to vector<1x128xf32>
    %477 = vector.shape_cast %476 : vector<1x128xf32> to vector<128xf32>
    %478 = arith.mulf %457, %477 : vector<128xf32>
    %479 = arith.mulf %464, %475 : vector<128xf32>
    %480 = arith.subf %478, %479 : vector<128xf32>
    %481 = arith.mulf %464, %473 : vector<128xf32>
    %482 = arith.mulf %450, %477 : vector<128xf32>
    %483 = arith.subf %481, %482 : vector<128xf32>
    %484 = arith.mulf %450, %475 : vector<128xf32>
    %485 = arith.mulf %457, %473 : vector<128xf32>
    %486 = arith.subf %484, %485 : vector<128xf32>
    %cst_107 = arith.constant 2.000000e+00 : f32
    %487 = vector.broadcast %cst_107 : f32 to vector<128xf32>
    %488 = arith.mulf %487, %480 : vector<128xf32>
    %cst_108 = arith.constant 2.000000e+00 : f32
    %489 = vector.broadcast %cst_108 : f32 to vector<128xf32>
    %490 = arith.mulf %489, %483 : vector<128xf32>
    %cst_109 = arith.constant 2.000000e+00 : f32
    %491 = vector.broadcast %cst_109 : f32 to vector<128xf32>
    %492 = arith.mulf %491, %486 : vector<128xf32>
    %493 = arith.mulf %457, %492 : vector<128xf32>
    %494 = arith.mulf %464, %490 : vector<128xf32>
    %495 = arith.subf %493, %494 : vector<128xf32>
    %496 = arith.mulf %464, %488 : vector<128xf32>
    %497 = arith.mulf %450, %492 : vector<128xf32>
    %498 = arith.subf %496, %497 : vector<128xf32>
    %499 = arith.mulf %450, %490 : vector<128xf32>
    %500 = arith.mulf %457, %488 : vector<128xf32>
    %501 = arith.subf %499, %500 : vector<128xf32>
    %502 = arith.mulf %471, %488 : vector<128xf32>
    %503 = arith.addf %473, %502 : vector<128xf32>
    %504 = arith.addf %503, %495 : vector<128xf32>
    %505 = arith.mulf %471, %490 : vector<128xf32>
    %506 = arith.addf %475, %505 : vector<128xf32>
    %507 = arith.addf %506, %498 : vector<128xf32>
    %508 = arith.mulf %471, %492 : vector<128xf32>
    %509 = arith.addf %477, %508 : vector<128xf32>
    %510 = arith.addf %509, %501 : vector<128xf32>
    %511 = arith.subf %504, %62 : vector<128xf32>
    %512 = arith.mulf %511, %393 : vector<128xf32>
    %513 = arith.subf %507, %66 : vector<128xf32>
    %514 = arith.mulf %513, %393 : vector<128xf32>
    %515 = arith.subf %510, %70 : vector<128xf32>
    %516 = arith.mulf %515, %393 : vector<128xf32>
    %517 = arith.mulf %239, %393 : vector<128xf32>
    %518 = arith.addf %226, %517 : vector<128xf32>
    %cst_110 = arith.constant 5.000000e-01 : f32
    %519 = vector.broadcast %cst_110 : f32 to vector<128xf32>
    %520 = arith.mulf %519, %512 : vector<128xf32>
    %521 = arith.mulf %520, %393 : vector<128xf32>
    %522 = arith.addf %518, %521 : vector<128xf32>
    %523 = arith.mulf %240, %393 : vector<128xf32>
    %524 = arith.addf %232, %523 : vector<128xf32>
    %cst_111 = arith.constant 5.000000e-01 : f32
    %525 = vector.broadcast %cst_111 : f32 to vector<128xf32>
    %526 = arith.mulf %525, %514 : vector<128xf32>
    %527 = arith.mulf %526, %393 : vector<128xf32>
    %528 = arith.addf %524, %527 : vector<128xf32>
    %529 = arith.mulf %241, %393 : vector<128xf32>
    %530 = arith.addf %238, %529 : vector<128xf32>
    %cst_112 = arith.constant 5.000000e-01 : f32
    %531 = vector.broadcast %cst_112 : f32 to vector<128xf32>
    %532 = arith.mulf %531, %516 : vector<128xf32>
    %533 = arith.mulf %532, %393 : vector<128xf32>
    %534 = arith.addf %530, %533 : vector<128xf32>
    %535 = arith.addf %239, %512 : vector<128xf32>
    %536 = arith.addf %240, %514 : vector<128xf32>
    %537 = arith.addf %241, %516 : vector<128xf32>
    %538 = arith.addf %242, %393 : vector<128xf32>
    %539 = arith.mulf %10, %450 : vector<128xf32>
    %540 = arith.mulf %4, %471 : vector<128xf32>
    %541 = arith.addf %539, %540 : vector<128xf32>
    %542 = arith.mulf %6, %464 : vector<128xf32>
    %543 = arith.addf %541, %542 : vector<128xf32>
    %544 = arith.mulf %8, %457 : vector<128xf32>
    %545 = arith.subf %543, %544 : vector<128xf32>
    %546 = arith.mulf %10, %457 : vector<128xf32>
    %547 = arith.mulf %4, %464 : vector<128xf32>
    %548 = arith.subf %546, %547 : vector<128xf32>
    %549 = arith.mulf %6, %471 : vector<128xf32>
    %550 = arith.addf %548, %549 : vector<128xf32>
    %551 = arith.mulf %8, %450 : vector<128xf32>
    %552 = arith.addf %550, %551 : vector<128xf32>
    %553 = arith.mulf %10, %464 : vector<128xf32>
    %554 = arith.mulf %4, %457 : vector<128xf32>
    %555 = arith.addf %553, %554 : vector<128xf32>
    %556 = arith.mulf %6, %450 : vector<128xf32>
    %557 = arith.subf %555, %556 : vector<128xf32>
    %558 = arith.mulf %8, %471 : vector<128xf32>
    %559 = arith.addf %557, %558 : vector<128xf32>
    %560 = arith.mulf %10, %471 : vector<128xf32>
    %561 = arith.mulf %4, %450 : vector<128xf32>
    %562 = arith.subf %560, %561 : vector<128xf32>
    %563 = arith.mulf %6, %457 : vector<128xf32>
    %564 = arith.subf %562, %563 : vector<128xf32>
    %565 = arith.mulf %8, %464 : vector<128xf32>
    %566 = arith.subf %564, %565 : vector<128xf32>
    %567 = arith.mulf %6, %537 : vector<128xf32>
    %568 = arith.mulf %8, %536 : vector<128xf32>
    %569 = arith.subf %567, %568 : vector<128xf32>
    %570 = arith.mulf %8, %535 : vector<128xf32>
    %571 = arith.mulf %4, %537 : vector<128xf32>
    %572 = arith.subf %570, %571 : vector<128xf32>
    %573 = arith.mulf %4, %536 : vector<128xf32>
    %574 = arith.mulf %6, %535 : vector<128xf32>
    %575 = arith.subf %573, %574 : vector<128xf32>
    %cst_113 = arith.constant 2.000000e+00 : f32
    %576 = vector.broadcast %cst_113 : f32 to vector<128xf32>
    %577 = arith.mulf %576, %569 : vector<128xf32>
    %cst_114 = arith.constant 2.000000e+00 : f32
    %578 = vector.broadcast %cst_114 : f32 to vector<128xf32>
    %579 = arith.mulf %578, %572 : vector<128xf32>
    %cst_115 = arith.constant 2.000000e+00 : f32
    %580 = vector.broadcast %cst_115 : f32 to vector<128xf32>
    %581 = arith.mulf %580, %575 : vector<128xf32>
    %582 = arith.mulf %6, %581 : vector<128xf32>
    %583 = arith.mulf %8, %579 : vector<128xf32>
    %584 = arith.subf %582, %583 : vector<128xf32>
    %585 = arith.mulf %8, %577 : vector<128xf32>
    %586 = arith.mulf %4, %581 : vector<128xf32>
    %587 = arith.subf %585, %586 : vector<128xf32>
    %588 = arith.mulf %4, %579 : vector<128xf32>
    %589 = arith.mulf %6, %577 : vector<128xf32>
    %590 = arith.subf %588, %589 : vector<128xf32>
    %591 = arith.mulf %10, %577 : vector<128xf32>
    %592 = arith.addf %535, %591 : vector<128xf32>
    %593 = arith.addf %592, %584 : vector<128xf32>
    %594 = arith.mulf %10, %579 : vector<128xf32>
    %595 = arith.addf %536, %594 : vector<128xf32>
    %596 = arith.addf %595, %587 : vector<128xf32>
    %597 = arith.mulf %10, %581 : vector<128xf32>
    %598 = arith.addf %537, %597 : vector<128xf32>
    %599 = arith.addf %598, %590 : vector<128xf32>
    %600 = arith.mulf %6, %534 : vector<128xf32>
    %601 = arith.mulf %8, %528 : vector<128xf32>
    %602 = arith.subf %600, %601 : vector<128xf32>
    %603 = arith.mulf %8, %522 : vector<128xf32>
    %604 = arith.mulf %4, %534 : vector<128xf32>
    %605 = arith.subf %603, %604 : vector<128xf32>
    %606 = arith.mulf %4, %528 : vector<128xf32>
    %607 = arith.mulf %6, %522 : vector<128xf32>
    %608 = arith.subf %606, %607 : vector<128xf32>
    %cst_116 = arith.constant 2.000000e+00 : f32
    %609 = vector.broadcast %cst_116 : f32 to vector<128xf32>
    %610 = arith.mulf %609, %602 : vector<128xf32>
    %cst_117 = arith.constant 2.000000e+00 : f32
    %611 = vector.broadcast %cst_117 : f32 to vector<128xf32>
    %612 = arith.mulf %611, %605 : vector<128xf32>
    %cst_118 = arith.constant 2.000000e+00 : f32
    %613 = vector.broadcast %cst_118 : f32 to vector<128xf32>
    %614 = arith.mulf %613, %608 : vector<128xf32>
    %615 = arith.mulf %6, %614 : vector<128xf32>
    %616 = arith.mulf %8, %612 : vector<128xf32>
    %617 = arith.subf %615, %616 : vector<128xf32>
    %618 = arith.mulf %8, %610 : vector<128xf32>
    %619 = arith.mulf %4, %614 : vector<128xf32>
    %620 = arith.subf %618, %619 : vector<128xf32>
    %621 = arith.mulf %4, %612 : vector<128xf32>
    %622 = arith.mulf %6, %610 : vector<128xf32>
    %623 = arith.subf %621, %622 : vector<128xf32>
    %624 = arith.mulf %10, %610 : vector<128xf32>
    %625 = arith.addf %522, %624 : vector<128xf32>
    %626 = arith.addf %625, %617 : vector<128xf32>
    %627 = arith.mulf %10, %612 : vector<128xf32>
    %628 = arith.addf %528, %627 : vector<128xf32>
    %629 = arith.addf %628, %620 : vector<128xf32>
    %630 = arith.mulf %10, %614 : vector<128xf32>
    %631 = arith.addf %534, %630 : vector<128xf32>
    %632 = arith.addf %631, %623 : vector<128xf32>
    %633 = arith.index_cast %c1_i32 : i32 to index
    %c0_119 = arith.constant 0 : index
    %c0_120 = arith.constant 0 : index
    %634 = vector.load %arg4[%633, %c0_119, %c0_120] : memref<8x10x128xf32, #tpu.memory_space<vmem>>, vector<1x1x128xf32>
    %635 = vector.shape_cast %634 : vector<1x1x128xf32> to vector<128xf32>
    %636 = vector.shape_cast %545 : vector<128xf32> to vector<1x1x128xf32>
    tpu.vector_store %arg4[%633, %c0_119, %c0_120], %636 {strides = array<i32>} : memref<8x10x128xf32, #tpu.memory_space<vmem>>, vector<1x1x128xf32>,
    %637 = arith.index_cast %c1_i32 : i32 to index
    %c1_121 = arith.constant 1 : index
    %c0_122 = arith.constant 0 : index
    %638 = vector.load %arg4[%637, %c1_121, %c0_122] : memref<8x10x128xf32, #tpu.memory_space<vmem>>, vector<1x1x128xf32>
    %639 = vector.shape_cast %638 : vector<1x1x128xf32> to vector<128xf32>
    %640 = vector.shape_cast %552 : vector<128xf32> to vector<1x1x128xf32>
    tpu.vector_store %arg4[%637, %c1_121, %c0_122], %640 {strides = array<i32>} : memref<8x10x128xf32, #tpu.memory_space<vmem>>, vector<1x1x128xf32>,
    %641 = arith.index_cast %c1_i32 : i32 to index
    %c2_123 = arith.constant 2 : index
    %c0_124 = arith.constant 0 : index
    %642 = vector.load %arg4[%641, %c2_123, %c0_124] : memref<8x10x128xf32, #tpu.memory_space<vmem>>, vector<1x1x128xf32>
    %643 = vector.shape_cast %642 : vector<1x1x128xf32> to vector<128xf32>
    %644 = vector.shape_cast %559 : vector<128xf32> to vector<1x1x128xf32>
    tpu.vector_store %arg4[%641, %c2_123, %c0_124], %644 {strides = array<i32>} : memref<8x10x128xf32, #tpu.memory_space<vmem>>, vector<1x1x128xf32>,
    %645 = arith.index_cast %c1_i32 : i32 to index
    %c3_125 = arith.constant 3 : index
    %c0_126 = arith.constant 0 : index
    %646 = vector.load %arg4[%645, %c3_125, %c0_126] : memref<8x10x128xf32, #tpu.memory_space<vmem>>, vector<1x1x128xf32>
    %647 = vector.shape_cast %646 : vector<1x1x128xf32> to vector<128xf32>
    %648 = vector.shape_cast %566 : vector<128xf32> to vector<1x1x128xf32>
    tpu.vector_store %arg4[%645, %c3_125, %c0_126], %648 {strides = array<i32>} : memref<8x10x128xf32, #tpu.memory_space<vmem>>, vector<1x1x128xf32>,
    %649 = arith.addf %12, %593 : vector<128xf32>
    %650 = arith.index_cast %c1_i32 : i32 to index
    %c4_127 = arith.constant 4 : index
    %c0_128 = arith.constant 0 : index
    %651 = vector.load %arg4[%650, %c4_127, %c0_128] : memref<8x10x128xf32, #tpu.memory_space<vmem>>, vector<1x1x128xf32>
    %652 = vector.shape_cast %651 : vector<1x1x128xf32> to vector<128xf32>
    %653 = vector.shape_cast %649 : vector<128xf32> to vector<1x1x128xf32>
    tpu.vector_store %arg4[%650, %c4_127, %c0_128], %653 {strides = array<i32>} : memref<8x10x128xf32, #tpu.memory_space<vmem>>, vector<1x1x128xf32>,
    %654 = arith.addf %14, %596 : vector<128xf32>
    %655 = arith.index_cast %c1_i32 : i32 to index
    %c5_129 = arith.constant 5 : index
    %c0_130 = arith.constant 0 : index
    %656 = vector.load %arg4[%655, %c5_129, %c0_130] : memref<8x10x128xf32, #tpu.memory_space<vmem>>, vector<1x1x128xf32>
    %657 = vector.shape_cast %656 : vector<1x1x128xf32> to vector<128xf32>
    %658 = vector.shape_cast %654 : vector<128xf32> to vector<1x1x128xf32>
    tpu.vector_store %arg4[%655, %c5_129, %c0_130], %658 {strides = array<i32>} : memref<8x10x128xf32, #tpu.memory_space<vmem>>, vector<1x1x128xf32>,
    %659 = arith.addf %16, %599 : vector<128xf32>
    %660 = arith.index_cast %c1_i32 : i32 to index
    %c6_131 = arith.constant 6 : index
    %c0_132 = arith.constant 0 : index
    %661 = vector.load %arg4[%660, %c6_131, %c0_132] : memref<8x10x128xf32, #tpu.memory_space<vmem>>, vector<1x1x128xf32>
    %662 = vector.shape_cast %661 : vector<1x1x128xf32> to vector<128xf32>
    %663 = vector.shape_cast %659 : vector<128xf32> to vector<1x1x128xf32>
    tpu.vector_store %arg4[%660, %c6_131, %c0_132], %663 {strides = array<i32>} : memref<8x10x128xf32, #tpu.memory_space<vmem>>, vector<1x1x128xf32>,
    %664 = arith.mulf %12, %538 : vector<128xf32>
    %665 = arith.addf %18, %664 : vector<128xf32>
    %666 = arith.addf %665, %626 : vector<128xf32>
    %667 = arith.index_cast %c1_i32 : i32 to index
    %c7_133 = arith.constant 7 : index
    %c0_134 = arith.constant 0 : index
    %668 = vector.load %arg4[%667, %c7_133, %c0_134] : memref<8x10x128xf32, #tpu.memory_space<vmem>>, vector<1x1x128xf32>
    %669 = vector.shape_cast %668 : vector<1x1x128xf32> to vector<128xf32>
    %670 = vector.shape_cast %666 : vector<128xf32> to vector<1x1x128xf32>
    tpu.vector_store %arg4[%667, %c7_133, %c0_134], %670 {strides = array<i32>} : memref<8x10x128xf32, #tpu.memory_space<vmem>>, vector<1x1x128xf32>,
    %671 = arith.mulf %14, %538 : vector<128xf32>
    %672 = arith.addf %20, %671 : vector<128xf32>
    %673 = arith.addf %672, %629 : vector<128xf32>
    %674 = arith.index_cast %c1_i32 : i32 to index
    %c8_135 = arith.constant 8 : index
    %c0_136 = arith.constant 0 : index
    %675 = vector.load %arg4[%674, %c8_135, %c0_136] : memref<8x10x128xf32, #tpu.memory_space<vmem>>, vector<1x1x128xf32>
    %676 = vector.shape_cast %675 : vector<1x1x128xf32> to vector<128xf32>
    %677 = vector.shape_cast %673 : vector<128xf32> to vector<1x1x128xf32>
    tpu.vector_store %arg4[%674, %c8_135, %c0_136], %677 {strides = array<i32>} : memref<8x10x128xf32, #tpu.memory_space<vmem>>, vector<1x1x128xf32>,
    %678 = arith.mulf %16, %538 : vector<128xf32>
    %679 = arith.addf %22, %678 : vector<128xf32>
    %680 = arith.addf %679, %632 : vector<128xf32>
    %681 = arith.index_cast %c1_i32 : i32 to index
    %c9_137 = arith.constant 9 : index
    %c0_138 = arith.constant 0 : index
    %682 = vector.load %arg4[%681, %c9_137, %c0_138] : memref<8x10x128xf32, #tpu.memory_space<vmem>>, vector<1x1x128xf32>
    %683 = vector.shape_cast %682 : vector<1x1x128xf32> to vector<128xf32>
    %684 = vector.shape_cast %680 : vector<128xf32> to vector<1x1x128xf32>
    tpu.vector_store %arg4[%681, %c9_137, %c0_138], %684 {strides = array<i32>} : memref<8x10x128xf32, #tpu.memory_space<vmem>>, vector<1x1x128xf32>,
    %c2_i32 = arith.constant 2 : i32
    %685 = arith.index_cast %c2_i32 : i32 to index
    %c0_139 = arith.constant 0 : index
    %c0_140 = arith.constant 0 : index
    %686 = vector.load %arg2[%685, %c0_139, %c0_140] : memref<8x8x128xf32, #tpu.memory_space<vmem>>, vector<1x8x128xf32>
    %687 = vector.shape_cast %686 : vector<1x8x128xf32> to vector<8x128xf32>
    %688 = vector.extract_strided_slice %687 {offsets = [0, 0], sizes = [1, 128], strides = [1, 1]} : vector<8x128xf32> to vector<1x128xf32>
    %689 = vector.shape_cast %688 : vector<1x128xf32> to vector<128xf32>
    %690 = vector.extract_strided_slice %687 {offsets = [1, 0], sizes = [1, 128], strides = [1, 1]} : vector<8x128xf32> to vector<1x128xf32>
    %691 = vector.shape_cast %690 : vector<1x128xf32> to vector<128xf32>
    %692 = arith.mulf %691, %689 : vector<128xf32>
    %693 = vector.extract_strided_slice %687 {offsets = [2, 0], sizes = [1, 128], strides = [1, 1]} : vector<8x128xf32> to vector<1x128xf32>
    %694 = vector.shape_cast %693 : vector<1x128xf32> to vector<128xf32>
    %695 = arith.mulf %694, %689 : vector<128xf32>
    %696 = vector.extract_strided_slice %687 {offsets = [3, 0], sizes = [1, 128], strides = [1, 1]} : vector<8x128xf32> to vector<1x128xf32>
    %697 = vector.shape_cast %696 : vector<1x128xf32> to vector<128xf32>
    %698 = arith.mulf %697, %689 : vector<128xf32>
    %699 = arith.mulf %692, %692 : vector<128xf32>
    %700 = arith.mulf %695, %695 : vector<128xf32>
    %701 = arith.addf %699, %700 : vector<128xf32>
    %702 = arith.mulf %698, %698 : vector<128xf32>
    %703 = arith.addf %701, %702 : vector<128xf32>
    %704 = math.sqrt %703 : vector<128xf32>
    %705 = arith.mulf %703, %703 : vector<128xf32>
    %cst_141 = arith.constant 9.99999997E-7 : f32
    %706 = vector.broadcast %cst_141 : f32 to vector<128xf32>
    %707 = arith.cmpf ogt, %704, %706 : vector<128xf32>
    %cst_142 = arith.constant 1.000000e+00 : f32
    %708 = vector.broadcast %cst_142 : f32 to vector<128xf32>
    %709 = arith.select %707, %704, %708 : vector<128xi1>, vector<128xf32>
    %cst_143 = arith.constant 9.99999997E-7 : f32
    %710 = vector.broadcast %cst_143 : f32 to vector<128xf32>
    %711 = arith.cmpf ogt, %704, %710 : vector<128xf32>
    %cst_144 = arith.constant 5.000000e-01 : f32
    %712 = vector.broadcast %cst_144 : f32 to vector<128xf32>
    %713 = arith.mulf %712, %704 : vector<128xf32>
    %714 = math.sin %713 : vector<128xf32>
    %715 = arith.divf %714, %709 : vector<128xf32>
    %cst_145 = arith.constant 4.800000e+01 : f32
    %716 = vector.broadcast %cst_145 : f32 to vector<128xf32>
    %717 = arith.divf %703, %716 : vector<128xf32>
    %cst_146 = arith.constant 5.000000e-01 : f32
    %718 = vector.broadcast %cst_146 : f32 to vector<128xf32>
    %719 = arith.subf %718, %717 : vector<128xf32>
    %cst_147 = arith.constant 3.840000e+03 : f32
    %720 = vector.broadcast %cst_147 : f32 to vector<128xf32>
    %721 = arith.divf %705, %720 : vector<128xf32>
    %722 = arith.addf %719, %721 : vector<128xf32>
    %723 = arith.select %711, %715, %722 : vector<128xi1>, vector<128xf32>
    %cst_148 = arith.constant 9.99999997E-7 : f32
    %724 = vector.broadcast %cst_148 : f32 to vector<128xf32>
    %725 = arith.cmpf ogt, %704, %724 : vector<128xf32>
    %cst_149 = arith.constant 5.000000e-01 : f32
    %726 = vector.broadcast %cst_149 : f32 to vector<128xf32>
    %727 = arith.mulf %726, %704 : vector<128xf32>
    %728 = math.cos %727 : vector<128xf32>
    %cst_150 = arith.constant 8.000000e+00 : f32
    %729 = vector.broadcast %cst_150 : f32 to vector<128xf32>
    %730 = arith.divf %703, %729 : vector<128xf32>
    %cst_151 = arith.constant 1.000000e+00 : f32
    %731 = vector.broadcast %cst_151 : f32 to vector<128xf32>
    %732 = arith.subf %731, %730 : vector<128xf32>
    %cst_152 = arith.constant 3.840000e+02 : f32
    %733 = vector.broadcast %cst_152 : f32 to vector<128xf32>
    %734 = arith.divf %705, %733 : vector<128xf32>
    %735 = arith.addf %732, %734 : vector<128xf32>
    %736 = arith.select %725, %728, %735 : vector<128xi1>, vector<128xf32>
    %737 = arith.mulf %692, %723 : vector<128xf32>
    %738 = arith.mulf %695, %723 : vector<128xf32>
    %739 = arith.mulf %698, %723 : vector<128xf32>
    %740 = arith.mulf %471, %737 : vector<128xf32>
    %741 = arith.mulf %450, %736 : vector<128xf32>
    %742 = arith.addf %740, %741 : vector<128xf32>
    %743 = arith.mulf %457, %739 : vector<128xf32>
    %744 = arith.addf %742, %743 : vector<128xf32>
    %745 = arith.mulf %464, %738 : vector<128xf32>
    %746 = arith.subf %744, %745 : vector<128xf32>
    %747 = arith.mulf %471, %738 : vector<128xf32>
    %748 = arith.mulf %450, %739 : vector<128xf32>
    %749 = arith.subf %747, %748 : vector<128xf32>
    %750 = arith.mulf %457, %736 : vector<128xf32>
    %751 = arith.addf %749, %750 : vector<128xf32>
    %752 = arith.mulf %464, %737 : vector<128xf32>
    %753 = arith.addf %751, %752 : vector<128xf32>
    %754 = arith.mulf %471, %739 : vector<128xf32>
    %755 = arith.mulf %450, %738 : vector<128xf32>
    %756 = arith.addf %754, %755 : vector<128xf32>
    %757 = arith.mulf %457, %737 : vector<128xf32>
    %758 = arith.subf %756, %757 : vector<128xf32>
    %759 = arith.mulf %464, %736 : vector<128xf32>
    %760 = arith.addf %758, %759 : vector<128xf32>
    %761 = arith.mulf %471, %736 : vector<128xf32>
    %762 = arith.mulf %450, %737 : vector<128xf32>
    %763 = arith.subf %761, %762 : vector<128xf32>
    %764 = arith.mulf %457, %738 : vector<128xf32>
    %765 = arith.subf %763, %764 : vector<128xf32>
    %766 = arith.mulf %464, %739 : vector<128xf32>
    %767 = arith.subf %765, %766 : vector<128xf32>
    %768 = vector.extract_strided_slice %687 {offsets = [4, 0], sizes = [1, 128], strides = [1, 1]} : vector<8x128xf32> to vector<1x128xf32>
    %769 = vector.shape_cast %768 : vector<1x128xf32> to vector<128xf32>
    %770 = vector.extract_strided_slice %687 {offsets = [5, 0], sizes = [1, 128], strides = [1, 1]} : vector<8x128xf32> to vector<1x128xf32>
    %771 = vector.shape_cast %770 : vector<1x128xf32> to vector<128xf32>
    %772 = vector.extract_strided_slice %687 {offsets = [6, 0], sizes = [1, 128], strides = [1, 1]} : vector<8x128xf32> to vector<1x128xf32>
    %773 = vector.shape_cast %772 : vector<1x128xf32> to vector<128xf32>
    %774 = arith.mulf %753, %773 : vector<128xf32>
    %775 = arith.mulf %760, %771 : vector<128xf32>
    %776 = arith.subf %774, %775 : vector<128xf32>
    %777 = arith.mulf %760, %769 : vector<128xf32>
    %778 = arith.mulf %746, %773 : vector<128xf32>
    %779 = arith.subf %777, %778 : vector<128xf32>
    %780 = arith.mulf %746, %771 : vector<128xf32>
    %781 = arith.mulf %753, %769 : vector<128xf32>
    %782 = arith.subf %780, %781 : vector<128xf32>
    %cst_153 = arith.constant 2.000000e+00 : f32
    %783 = vector.broadcast %cst_153 : f32 to vector<128xf32>
    %784 = arith.mulf %783, %776 : vector<128xf32>
    %cst_154 = arith.constant 2.000000e+00 : f32
    %785 = vector.broadcast %cst_154 : f32 to vector<128xf32>
    %786 = arith.mulf %785, %779 : vector<128xf32>
    %cst_155 = arith.constant 2.000000e+00 : f32
    %787 = vector.broadcast %cst_155 : f32 to vector<128xf32>
    %788 = arith.mulf %787, %782 : vector<128xf32>
    %789 = arith.mulf %753, %788 : vector<128xf32>
    %790 = arith.mulf %760, %786 : vector<128xf32>
    %791 = arith.subf %789, %790 : vector<128xf32>
    %792 = arith.mulf %760, %784 : vector<128xf32>
    %793 = arith.mulf %746, %788 : vector<128xf32>
    %794 = arith.subf %792, %793 : vector<128xf32>
    %795 = arith.mulf %746, %786 : vector<128xf32>
    %796 = arith.mulf %753, %784 : vector<128xf32>
    %797 = arith.subf %795, %796 : vector<128xf32>
    %798 = arith.mulf %767, %784 : vector<128xf32>
    %799 = arith.addf %769, %798 : vector<128xf32>
    %800 = arith.addf %799, %791 : vector<128xf32>
    %801 = arith.mulf %767, %786 : vector<128xf32>
    %802 = arith.addf %771, %801 : vector<128xf32>
    %803 = arith.addf %802, %794 : vector<128xf32>
    %804 = arith.mulf %767, %788 : vector<128xf32>
    %805 = arith.addf %773, %804 : vector<128xf32>
    %806 = arith.addf %805, %797 : vector<128xf32>
    %807 = arith.subf %800, %62 : vector<128xf32>
    %808 = arith.mulf %807, %689 : vector<128xf32>
    %809 = arith.subf %803, %66 : vector<128xf32>
    %810 = arith.mulf %809, %689 : vector<128xf32>
    %811 = arith.subf %806, %70 : vector<128xf32>
    %812 = arith.mulf %811, %689 : vector<128xf32>
    %813 = arith.mulf %535, %689 : vector<128xf32>
    %814 = arith.addf %522, %813 : vector<128xf32>
    %cst_156 = arith.constant 5.000000e-01 : f32
    %815 = vector.broadcast %cst_156 : f32 to vector<128xf32>
    %816 = arith.mulf %815, %808 : vector<128xf32>
    %817 = arith.mulf %816, %689 : vector<128xf32>
    %818 = arith.addf %814, %817 : vector<128xf32>
    %819 = arith.mulf %536, %689 : vector<128xf32>
    %820 = arith.addf %528, %819 : vector<128xf32>
    %cst_157 = arith.constant 5.000000e-01 : f32
    %821 = vector.broadcast %cst_157 : f32 to vector<128xf32>
    %822 = arith.mulf %821, %810 : vector<128xf32>
    %823 = arith.mulf %822, %689 : vector<128xf32>
    %824 = arith.addf %820, %823 : vector<128xf32>
    %825 = arith.mulf %537, %689 : vector<128xf32>
    %826 = arith.addf %534, %825 : vector<128xf32>
    %cst_158 = arith.constant 5.000000e-01 : f32
    %827 = vector.broadcast %cst_158 : f32 to vector<128xf32>
    %828 = arith.mulf %827, %812 : vector<128xf32>
    %829 = arith.mulf %828, %689 : vector<128xf32>
    %830 = arith.addf %826, %829 : vector<128xf32>
    %831 = arith.addf %535, %808 : vector<128xf32>
    %832 = arith.addf %536, %810 : vector<128xf32>
    %833 = arith.addf %537, %812 : vector<128xf32>
    %834 = arith.addf %538, %689 : vector<128xf32>
    %835 = arith.mulf %10, %746 : vector<128xf32>
    %836 = arith.mulf %4, %767 : vector<128xf32>
    %837 = arith.addf %835, %836 : vector<128xf32>
    %838 = arith.mulf %6, %760 : vector<128xf32>
    %839 = arith.addf %837, %838 : vector<128xf32>
    %840 = arith.mulf %8, %753 : vector<128xf32>
    %841 = arith.subf %839, %840 : vector<128xf32>
    %842 = arith.mulf %10, %753 : vector<128xf32>
    %843 = arith.mulf %4, %760 : vector<128xf32>
    %844 = arith.subf %842, %843 : vector<128xf32>
    %845 = arith.mulf %6, %767 : vector<128xf32>
    %846 = arith.addf %844, %845 : vector<128xf32>
    %847 = arith.mulf %8, %746 : vector<128xf32>
    %848 = arith.addf %846, %847 : vector<128xf32>
    %849 = arith.mulf %10, %760 : vector<128xf32>
    %850 = arith.mulf %4, %753 : vector<128xf32>
    %851 = arith.addf %849, %850 : vector<128xf32>
    %852 = arith.mulf %6, %746 : vector<128xf32>
    %853 = arith.subf %851, %852 : vector<128xf32>
    %854 = arith.mulf %8, %767 : vector<128xf32>
    %855 = arith.addf %853, %854 : vector<128xf32>
    %856 = arith.mulf %10, %767 : vector<128xf32>
    %857 = arith.mulf %4, %746 : vector<128xf32>
    %858 = arith.subf %856, %857 : vector<128xf32>
    %859 = arith.mulf %6, %753 : vector<128xf32>
    %860 = arith.subf %858, %859 : vector<128xf32>
    %861 = arith.mulf %8, %760 : vector<128xf32>
    %862 = arith.subf %860, %861 : vector<128xf32>
    %863 = arith.mulf %6, %833 : vector<128xf32>
    %864 = arith.mulf %8, %832 : vector<128xf32>
    %865 = arith.subf %863, %864 : vector<128xf32>
    %866 = arith.mulf %8, %831 : vector<128xf32>
    %867 = arith.mulf %4, %833 : vector<128xf32>
    %868 = arith.subf %866, %867 : vector<128xf32>
    %869 = arith.mulf %4, %832 : vector<128xf32>
    %870 = arith.mulf %6, %831 : vector<128xf32>
    %871 = arith.subf %869, %870 : vector<128xf32>
    %cst_159 = arith.constant 2.000000e+00 : f32
    %872 = vector.broadcast %cst_159 : f32 to vector<128xf32>
    %873 = arith.mulf %872, %865 : vector<128xf32>
    %cst_160 = arith.constant 2.000000e+00 : f32
    %874 = vector.broadcast %cst_160 : f32 to vector<128xf32>
    %875 = arith.mulf %874, %868 : vector<128xf32>
    %cst_161 = arith.constant 2.000000e+00 : f32
    %876 = vector.broadcast %cst_161 : f32 to vector<128xf32>
    %877 = arith.mulf %876, %871 : vector<128xf32>
    %878 = arith.mulf %6, %877 : vector<128xf32>
    %879 = arith.mulf %8, %875 : vector<128xf32>
    %880 = arith.subf %878, %879 : vector<128xf32>
    %881 = arith.mulf %8, %873 : vector<128xf32>
    %882 = arith.mulf %4, %877 : vector<128xf32>
    %883 = arith.subf %881, %882 : vector<128xf32>
    %884 = arith.mulf %4, %875 : vector<128xf32>
    %885 = arith.mulf %6, %873 : vector<128xf32>
    %886 = arith.subf %884, %885 : vector<128xf32>
    %887 = arith.mulf %10, %873 : vector<128xf32>
    %888 = arith.addf %831, %887 : vector<128xf32>
    %889 = arith.addf %888, %880 : vector<128xf32>
    %890 = arith.mulf %10, %875 : vector<128xf32>
    %891 = arith.addf %832, %890 : vector<128xf32>
    %892 = arith.addf %891, %883 : vector<128xf32>
    %893 = arith.mulf %10, %877 : vector<128xf32>
    %894 = arith.addf %833, %893 : vector<128xf32>
    %895 = arith.addf %894, %886 : vector<128xf32>
    %896 = arith.mulf %6, %830 : vector<128xf32>
    %897 = arith.mulf %8, %824 : vector<128xf32>
    %898 = arith.subf %896, %897 : vector<128xf32>
    %899 = arith.mulf %8, %818 : vector<128xf32>
    %900 = arith.mulf %4, %830 : vector<128xf32>
    %901 = arith.subf %899, %900 : vector<128xf32>
    %902 = arith.mulf %4, %824 : vector<128xf32>
    %903 = arith.mulf %6, %818 : vector<128xf32>
    %904 = arith.subf %902, %903 : vector<128xf32>
    %cst_162 = arith.constant 2.000000e+00 : f32
    %905 = vector.broadcast %cst_162 : f32 to vector<128xf32>
    %906 = arith.mulf %905, %898 : vector<128xf32>
    %cst_163 = arith.constant 2.000000e+00 : f32
    %907 = vector.broadcast %cst_163 : f32 to vector<128xf32>
    %908 = arith.mulf %907, %901 : vector<128xf32>
    %cst_164 = arith.constant 2.000000e+00 : f32
    %909 = vector.broadcast %cst_164 : f32 to vector<128xf32>
    %910 = arith.mulf %909, %904 : vector<128xf32>
    %911 = arith.mulf %6, %910 : vector<128xf32>
    %912 = arith.mulf %8, %908 : vector<128xf32>
    %913 = arith.subf %911, %912 : vector<128xf32>
    %914 = arith.mulf %8, %906 : vector<128xf32>
    %915 = arith.mulf %4, %910 : vector<128xf32>
    %916 = arith.subf %914, %915 : vector<128xf32>
    %917 = arith.mulf %4, %908 : vector<128xf32>
    %918 = arith.mulf %6, %906 : vector<128xf32>
    %919 = arith.subf %917, %918 : vector<128xf32>
    %920 = arith.mulf %10, %906 : vector<128xf32>
    %921 = arith.addf %818, %920 : vector<128xf32>
    %922 = arith.addf %921, %913 : vector<128xf32>
    %923 = arith.mulf %10, %908 : vector<128xf32>
    %924 = arith.addf %824, %923 : vector<128xf32>
    %925 = arith.addf %924, %916 : vector<128xf32>
    %926 = arith.mulf %10, %910 : vector<128xf32>
    %927 = arith.addf %830, %926 : vector<128xf32>
    %928 = arith.addf %927, %919 : vector<128xf32>
    %929 = arith.index_cast %c2_i32 : i32 to index
    %c0_165 = arith.constant 0 : index
    %c0_166 = arith.constant 0 : index
    %930 = vector.load %arg4[%929, %c0_165, %c0_166] : memref<8x10x128xf32, #tpu.memory_space<vmem>>, vector<1x1x128xf32>
    %931 = vector.shape_cast %930 : vector<1x1x128xf32> to vector<128xf32>
    %932 = vector.shape_cast %841 : vector<128xf32> to vector<1x1x128xf32>
    tpu.vector_store %arg4[%929, %c0_165, %c0_166], %932 {strides = array<i32>} : memref<8x10x128xf32, #tpu.memory_space<vmem>>, vector<1x1x128xf32>,
    %933 = arith.index_cast %c2_i32 : i32 to index
    %c1_167 = arith.constant 1 : index
    %c0_168 = arith.constant 0 : index
    %934 = vector.load %arg4[%933, %c1_167, %c0_168] : memref<8x10x128xf32, #tpu.memory_space<vmem>>, vector<1x1x128xf32>
    %935 = vector.shape_cast %934 : vector<1x1x128xf32> to vector<128xf32>
    %936 = vector.shape_cast %848 : vector<128xf32> to vector<1x1x128xf32>
    tpu.vector_store %arg4[%933, %c1_167, %c0_168], %936 {strides = array<i32>} : memref<8x10x128xf32, #tpu.memory_space<vmem>>, vector<1x1x128xf32>,
    %937 = arith.index_cast %c2_i32 : i32 to index
    %c2_169 = arith.constant 2 : index
    %c0_170 = arith.constant 0 : index
    %938 = vector.load %arg4[%937, %c2_169, %c0_170] : memref<8x10x128xf32, #tpu.memory_space<vmem>>, vector<1x1x128xf32>
    %939 = vector.shape_cast %938 : vector<1x1x128xf32> to vector<128xf32>
    %940 = vector.shape_cast %855 : vector<128xf32> to vector<1x1x128xf32>
    tpu.vector_store %arg4[%937, %c2_169, %c0_170], %940 {strides = array<i32>} : memref<8x10x128xf32, #tpu.memory_space<vmem>>, vector<1x1x128xf32>,
    %941 = arith.index_cast %c2_i32 : i32 to index
    %c3_171 = arith.constant 3 : index
    %c0_172 = arith.constant 0 : index
    %942 = vector.load %arg4[%941, %c3_171, %c0_172] : memref<8x10x128xf32, #tpu.memory_space<vmem>>, vector<1x1x128xf32>
    %943 = vector.shape_cast %942 : vector<1x1x128xf32> to vector<128xf32>
    %944 = vector.shape_cast %862 : vector<128xf32> to vector<1x1x128xf32>
    tpu.vector_store %arg4[%941, %c3_171, %c0_172], %944 {strides = array<i32>} : memref<8x10x128xf32, #tpu.memory_space<vmem>>, vector<1x1x128xf32>,
    %945 = arith.addf %12, %889 : vector<128xf32>
    %946 = arith.index_cast %c2_i32 : i32 to index
    %c4_173 = arith.constant 4 : index
    %c0_174 = arith.constant 0 : index
    %947 = vector.load %arg4[%946, %c4_173, %c0_174] : memref<8x10x128xf32, #tpu.memory_space<vmem>>, vector<1x1x128xf32>
    %948 = vector.shape_cast %947 : vector<1x1x128xf32> to vector<128xf32>
    %949 = vector.shape_cast %945 : vector<128xf32> to vector<1x1x128xf32>
    tpu.vector_store %arg4[%946, %c4_173, %c0_174], %949 {strides = array<i32>} : memref<8x10x128xf32, #tpu.memory_space<vmem>>, vector<1x1x128xf32>,
    %950 = arith.addf %14, %892 : vector<128xf32>
    %951 = arith.index_cast %c2_i32 : i32 to index
    %c5_175 = arith.constant 5 : index
    %c0_176 = arith.constant 0 : index
    %952 = vector.load %arg4[%951, %c5_175, %c0_176] : memref<8x10x128xf32, #tpu.memory_space<vmem>>, vector<1x1x128xf32>
    %953 = vector.shape_cast %952 : vector<1x1x128xf32> to vector<128xf32>
    %954 = vector.shape_cast %950 : vector<128xf32> to vector<1x1x128xf32>
    tpu.vector_store %arg4[%951, %c5_175, %c0_176], %954 {strides = array<i32>} : memref<8x10x128xf32, #tpu.memory_space<vmem>>, vector<1x1x128xf32>,
    %955 = arith.addf %16, %895 : vector<128xf32>
    %956 = arith.index_cast %c2_i32 : i32 to index
    %c6_177 = arith.constant 6 : index
    %c0_178 = arith.constant 0 : index
    %957 = vector.load %arg4[%956, %c6_177, %c0_178] : memref<8x10x128xf32, #tpu.memory_space<vmem>>, vector<1x1x128xf32>
    %958 = vector.shape_cast %957 : vector<1x1x128xf32> to vector<128xf32>
    %959 = vector.shape_cast %955 : vector<128xf32> to vector<1x1x128xf32>
    tpu.vector_store %arg4[%956, %c6_177, %c0_178], %959 {strides = array<i32>} : memref<8x10x128xf32, #tpu.memory_space<vmem>>, vector<1x1x128xf32>,
    %960 = arith.mulf %12, %834 : vector<128xf32>
    %961 = arith.addf %18, %960 : vector<128xf32>
    %962 = arith.addf %961, %922 : vector<128xf32>
    %963 = arith.index_cast %c2_i32 : i32 to index
    %c7_179 = arith.constant 7 : index
    %c0_180 = arith.constant 0 : index
    %964 = vector.load %arg4[%963, %c7_179, %c0_180] : memref<8x10x128xf32, #tpu.memory_space<vmem>>, vector<1x1x128xf32>
    %965 = vector.shape_cast %964 : vector<1x1x128xf32> to vector<128xf32>
    %966 = vector.shape_cast %962 : vector<128xf32> to vector<1x1x128xf32>
    tpu.vector_store %arg4[%963, %c7_179, %c0_180], %966 {strides = array<i32>} : memref<8x10x128xf32, #tpu.memory_space<vmem>>, vector<1x1x128xf32>,
    %967 = arith.mulf %14, %834 : vector<128xf32>
    %968 = arith.addf %20, %967 : vector<128xf32>
    %969 = arith.addf %968, %925 : vector<128xf32>
    %970 = arith.index_cast %c2_i32 : i32 to index
    %c8_181 = arith.constant 8 : index
    %c0_182 = arith.constant 0 : index
    %971 = vector.load %arg4[%970, %c8_181, %c0_182] : memref<8x10x128xf32, #tpu.memory_space<vmem>>, vector<1x1x128xf32>
    %972 = vector.shape_cast %971 : vector<1x1x128xf32> to vector<128xf32>
    %973 = vector.shape_cast %969 : vector<128xf32> to vector<1x1x128xf32>
    tpu.vector_store %arg4[%970, %c8_181, %c0_182], %973 {strides = array<i32>} : memref<8x10x128xf32, #tpu.memory_space<vmem>>, vector<1x1x128xf32>,
    %974 = arith.mulf %16, %834 : vector<128xf32>
    %975 = arith.addf %22, %974 : vector<128xf32>
    %976 = arith.addf %975, %928 : vector<128xf32>
    %977 = arith.index_cast %c2_i32 : i32 to index
    %c9_183 = arith.constant 9 : index
    %c0_184 = arith.constant 0 : index
    %978 = vector.load %arg4[%977, %c9_183, %c0_184] : memref<8x10x128xf32, #tpu.memory_space<vmem>>, vector<1x1x128xf32>
    %979 = vector.shape_cast %978 : vector<1x1x128xf32> to vector<128xf32>
    %980 = vector.shape_cast %976 : vector<128xf32> to vector<1x1x128xf32>
    tpu.vector_store %arg4[%977, %c9_183, %c0_184], %980 {strides = array<i32>} : memref<8x10x128xf32, #tpu.memory_space<vmem>>, vector<1x1x128xf32>,
    %c3_i32 = arith.constant 3 : i32
    %981 = arith.index_cast %c3_i32 : i32 to index
    %c0_185 = arith.constant 0 : index
    %c0_186 = arith.constant 0 : index
    %982 = vector.load %arg2[%981, %c0_185, %c0_186] : memref<8x8x128xf32, #tpu.memory_space<vmem>>, vector<1x8x128xf32>
    %983 = vector.shape_cast %982 : vector<1x8x128xf32> to vector<8x128xf32>
    %984 = vector.extract_strided_slice %983 {offsets = [0, 0], sizes = [1, 128], strides = [1, 1]} : vector<8x128xf32> to vector<1x128xf32>
    %985 = vector.shape_cast %984 : vector<1x128xf32> to vector<128xf32>
    %986 = vector.extract_strided_slice %983 {offsets = [1, 0], sizes = [1, 128], strides = [1, 1]} : vector<8x128xf32> to vector<1x128xf32>
    %987 = vector.shape_cast %986 : vector<1x128xf32> to vector<128xf32>
    %988 = arith.mulf %987, %985 : vector<128xf32>
    %989 = vector.extract_strided_slice %983 {offsets = [2, 0], sizes = [1, 128], strides = [1, 1]} : vector<8x128xf32> to vector<1x128xf32>
    %990 = vector.shape_cast %989 : vector<1x128xf32> to vector<128xf32>
    %991 = arith.mulf %990, %985 : vector<128xf32>
    %992 = vector.extract_strided_slice %983 {offsets = [3, 0], sizes = [1, 128], strides = [1, 1]} : vector<8x128xf32> to vector<1x128xf32>
    %993 = vector.shape_cast %992 : vector<1x128xf32> to vector<128xf32>
    %994 = arith.mulf %993, %985 : vector<128xf32>
    %995 = arith.mulf %988, %988 : vector<128xf32>
    %996 = arith.mulf %991, %991 : vector<128xf32>
    %997 = arith.addf %995, %996 : vector<128xf32>
    %998 = arith.mulf %994, %994 : vector<128xf32>
    %999 = arith.addf %997, %998 : vector<128xf32>
    %1000 = math.sqrt %999 : vector<128xf32>
    %1001 = arith.mulf %999, %999 : vector<128xf32>
    %cst_187 = arith.constant 9.99999997E-7 : f32
    %1002 = vector.broadcast %cst_187 : f32 to vector<128xf32>
    %1003 = arith.cmpf ogt, %1000, %1002 : vector<128xf32>
    %cst_188 = arith.constant 1.000000e+00 : f32
    %1004 = vector.broadcast %cst_188 : f32 to vector<128xf32>
    %1005 = arith.select %1003, %1000, %1004 : vector<128xi1>, vector<128xf32>
    %cst_189 = arith.constant 9.99999997E-7 : f32
    %1006 = vector.broadcast %cst_189 : f32 to vector<128xf32>
    %1007 = arith.cmpf ogt, %1000, %1006 : vector<128xf32>
    %cst_190 = arith.constant 5.000000e-01 : f32
    %1008 = vector.broadcast %cst_190 : f32 to vector<128xf32>
    %1009 = arith.mulf %1008, %1000 : vector<128xf32>
    %1010 = math.sin %1009 : vector<128xf32>
    %1011 = arith.divf %1010, %1005 : vector<128xf32>
    %cst_191 = arith.constant 4.800000e+01 : f32
    %1012 = vector.broadcast %cst_191 : f32 to vector<128xf32>
    %1013 = arith.divf %999, %1012 : vector<128xf32>
    %cst_192 = arith.constant 5.000000e-01 : f32
    %1014 = vector.broadcast %cst_192 : f32 to vector<128xf32>
    %1015 = arith.subf %1014, %1013 : vector<128xf32>
    %cst_193 = arith.constant 3.840000e+03 : f32
    %1016 = vector.broadcast %cst_193 : f32 to vector<128xf32>
    %1017 = arith.divf %1001, %1016 : vector<128xf32>
    %1018 = arith.addf %1015, %1017 : vector<128xf32>
    %1019 = arith.select %1007, %1011, %1018 : vector<128xi1>, vector<128xf32>
    %cst_194 = arith.constant 9.99999997E-7 : f32
    %1020 = vector.broadcast %cst_194 : f32 to vector<128xf32>
    %1021 = arith.cmpf ogt, %1000, %1020 : vector<128xf32>
    %cst_195 = arith.constant 5.000000e-01 : f32
    %1022 = vector.broadcast %cst_195 : f32 to vector<128xf32>
    %1023 = arith.mulf %1022, %1000 : vector<128xf32>
    %1024 = math.cos %1023 : vector<128xf32>
    %cst_196 = arith.constant 8.000000e+00 : f32
    %1025 = vector.broadcast %cst_196 : f32 to vector<128xf32>
    %1026 = arith.divf %999, %1025 : vector<128xf32>
    %cst_197 = arith.constant 1.000000e+00 : f32
    %1027 = vector.broadcast %cst_197 : f32 to vector<128xf32>
    %1028 = arith.subf %1027, %1026 : vector<128xf32>
    %cst_198 = arith.constant 3.840000e+02 : f32
    %1029 = vector.broadcast %cst_198 : f32 to vector<128xf32>
    %1030 = arith.divf %1001, %1029 : vector<128xf32>
    %1031 = arith.addf %1028, %1030 : vector<128xf32>
    %1032 = arith.select %1021, %1024, %1031 : vector<128xi1>, vector<128xf32>
    %1033 = arith.mulf %988, %1019 : vector<128xf32>
    %1034 = arith.mulf %991, %1019 : vector<128xf32>
    %1035 = arith.mulf %994, %1019 : vector<128xf32>
    %1036 = arith.mulf %767, %1033 : vector<128xf32>
    %1037 = arith.mulf %746, %1032 : vector<128xf32>
    %1038 = arith.addf %1036, %1037 : vector<128xf32>
    %1039 = arith.mulf %753, %1035 : vector<128xf32>
    %1040 = arith.addf %1038, %1039 : vector<128xf32>
    %1041 = arith.mulf %760, %1034 : vector<128xf32>
    %1042 = arith.subf %1040, %1041 : vector<128xf32>
    %1043 = arith.mulf %767, %1034 : vector<128xf32>
    %1044 = arith.mulf %746, %1035 : vector<128xf32>
    %1045 = arith.subf %1043, %1044 : vector<128xf32>
    %1046 = arith.mulf %753, %1032 : vector<128xf32>
    %1047 = arith.addf %1045, %1046 : vector<128xf32>
    %1048 = arith.mulf %760, %1033 : vector<128xf32>
    %1049 = arith.addf %1047, %1048 : vector<128xf32>
    %1050 = arith.mulf %767, %1035 : vector<128xf32>
    %1051 = arith.mulf %746, %1034 : vector<128xf32>
    %1052 = arith.addf %1050, %1051 : vector<128xf32>
    %1053 = arith.mulf %753, %1033 : vector<128xf32>
    %1054 = arith.subf %1052, %1053 : vector<128xf32>
    %1055 = arith.mulf %760, %1032 : vector<128xf32>
    %1056 = arith.addf %1054, %1055 : vector<128xf32>
    %1057 = arith.mulf %767, %1032 : vector<128xf32>
    %1058 = arith.mulf %746, %1033 : vector<128xf32>
    %1059 = arith.subf %1057, %1058 : vector<128xf32>
    %1060 = arith.mulf %753, %1034 : vector<128xf32>
    %1061 = arith.subf %1059, %1060 : vector<128xf32>
    %1062 = arith.mulf %760, %1035 : vector<128xf32>
    %1063 = arith.subf %1061, %1062 : vector<128xf32>
    %1064 = vector.extract_strided_slice %983 {offsets = [4, 0], sizes = [1, 128], strides = [1, 1]} : vector<8x128xf32> to vector<1x128xf32>
    %1065 = vector.shape_cast %1064 : vector<1x128xf32> to vector<128xf32>
    %1066 = vector.extract_strided_slice %983 {offsets = [5, 0], sizes = [1, 128], strides = [1, 1]} : vector<8x128xf32> to vector<1x128xf32>
    %1067 = vector.shape_cast %1066 : vector<1x128xf32> to vector<128xf32>
    %1068 = vector.extract_strided_slice %983 {offsets = [6, 0], sizes = [1, 128], strides = [1, 1]} : vector<8x128xf32> to vector<1x128xf32>
    %1069 = vector.shape_cast %1068 : vector<1x128xf32> to vector<128xf32>
    %1070 = arith.mulf %1049, %1069 : vector<128xf32>
    %1071 = arith.mulf %1056, %1067 : vector<128xf32>
    %1072 = arith.subf %1070, %1071 : vector<128xf32>
    %1073 = arith.mulf %1056, %1065 : vector<128xf32>
    %1074 = arith.mulf %1042, %1069 : vector<128xf32>
    %1075 = arith.subf %1073, %1074 : vector<128xf32>
    %1076 = arith.mulf %1042, %1067 : vector<128xf32>
    %1077 = arith.mulf %1049, %1065 : vector<128xf32>
    %1078 = arith.subf %1076, %1077 : vector<128xf32>
    %cst_199 = arith.constant 2.000000e+00 : f32
    %1079 = vector.broadcast %cst_199 : f32 to vector<128xf32>
    %1080 = arith.mulf %1079, %1072 : vector<128xf32>
    %cst_200 = arith.constant 2.000000e+00 : f32
    %1081 = vector.broadcast %cst_200 : f32 to vector<128xf32>
    %1082 = arith.mulf %1081, %1075 : vector<128xf32>
    %cst_201 = arith.constant 2.000000e+00 : f32
    %1083 = vector.broadcast %cst_201 : f32 to vector<128xf32>
    %1084 = arith.mulf %1083, %1078 : vector<128xf32>
    %1085 = arith.mulf %1049, %1084 : vector<128xf32>
    %1086 = arith.mulf %1056, %1082 : vector<128xf32>
    %1087 = arith.subf %1085, %1086 : vector<128xf32>
    %1088 = arith.mulf %1056, %1080 : vector<128xf32>
    %1089 = arith.mulf %1042, %1084 : vector<128xf32>
    %1090 = arith.subf %1088, %1089 : vector<128xf32>
    %1091 = arith.mulf %1042, %1082 : vector<128xf32>
    %1092 = arith.mulf %1049, %1080 : vector<128xf32>
    %1093 = arith.subf %1091, %1092 : vector<128xf32>
    %1094 = arith.mulf %1063, %1080 : vector<128xf32>
    %1095 = arith.addf %1065, %1094 : vector<128xf32>
    %1096 = arith.addf %1095, %1087 : vector<128xf32>
    %1097 = arith.mulf %1063, %1082 : vector<128xf32>
    %1098 = arith.addf %1067, %1097 : vector<128xf32>
    %1099 = arith.addf %1098, %1090 : vector<128xf32>
    %1100 = arith.mulf %1063, %1084 : vector<128xf32>
    %1101 = arith.addf %1069, %1100 : vector<128xf32>
    %1102 = arith.addf %1101, %1093 : vector<128xf32>
    %1103 = arith.subf %1096, %62 : vector<128xf32>
    %1104 = arith.mulf %1103, %985 : vector<128xf32>
    %1105 = arith.subf %1099, %66 : vector<128xf32>
    %1106 = arith.mulf %1105, %985 : vector<128xf32>
    %1107 = arith.subf %1102, %70 : vector<128xf32>
    %1108 = arith.mulf %1107, %985 : vector<128xf32>
    %1109 = arith.mulf %831, %985 : vector<128xf32>
    %1110 = arith.addf %818, %1109 : vector<128xf32>
    %cst_202 = arith.constant 5.000000e-01 : f32
    %1111 = vector.broadcast %cst_202 : f32 to vector<128xf32>
    %1112 = arith.mulf %1111, %1104 : vector<128xf32>
    %1113 = arith.mulf %1112, %985 : vector<128xf32>
    %1114 = arith.addf %1110, %1113 : vector<128xf32>
    %1115 = arith.mulf %832, %985 : vector<128xf32>
    %1116 = arith.addf %824, %1115 : vector<128xf32>
    %cst_203 = arith.constant 5.000000e-01 : f32
    %1117 = vector.broadcast %cst_203 : f32 to vector<128xf32>
    %1118 = arith.mulf %1117, %1106 : vector<128xf32>
    %1119 = arith.mulf %1118, %985 : vector<128xf32>
    %1120 = arith.addf %1116, %1119 : vector<128xf32>
    %1121 = arith.mulf %833, %985 : vector<128xf32>
    %1122 = arith.addf %830, %1121 : vector<128xf32>
    %cst_204 = arith.constant 5.000000e-01 : f32
    %1123 = vector.broadcast %cst_204 : f32 to vector<128xf32>
    %1124 = arith.mulf %1123, %1108 : vector<128xf32>
    %1125 = arith.mulf %1124, %985 : vector<128xf32>
    %1126 = arith.addf %1122, %1125 : vector<128xf32>
    %1127 = arith.addf %831, %1104 : vector<128xf32>
    %1128 = arith.addf %832, %1106 : vector<128xf32>
    %1129 = arith.addf %833, %1108 : vector<128xf32>
    %1130 = arith.addf %834, %985 : vector<128xf32>
    %1131 = arith.mulf %10, %1042 : vector<128xf32>
    %1132 = arith.mulf %4, %1063 : vector<128xf32>
    %1133 = arith.addf %1131, %1132 : vector<128xf32>
    %1134 = arith.mulf %6, %1056 : vector<128xf32>
    %1135 = arith.addf %1133, %1134 : vector<128xf32>
    %1136 = arith.mulf %8, %1049 : vector<128xf32>
    %1137 = arith.subf %1135, %1136 : vector<128xf32>
    %1138 = arith.mulf %10, %1049 : vector<128xf32>
    %1139 = arith.mulf %4, %1056 : vector<128xf32>
    %1140 = arith.subf %1138, %1139 : vector<128xf32>
    %1141 = arith.mulf %6, %1063 : vector<128xf32>
    %1142 = arith.addf %1140, %1141 : vector<128xf32>
    %1143 = arith.mulf %8, %1042 : vector<128xf32>
    %1144 = arith.addf %1142, %1143 : vector<128xf32>
    %1145 = arith.mulf %10, %1056 : vector<128xf32>
    %1146 = arith.mulf %4, %1049 : vector<128xf32>
    %1147 = arith.addf %1145, %1146 : vector<128xf32>
    %1148 = arith.mulf %6, %1042 : vector<128xf32>
    %1149 = arith.subf %1147, %1148 : vector<128xf32>
    %1150 = arith.mulf %8, %1063 : vector<128xf32>
    %1151 = arith.addf %1149, %1150 : vector<128xf32>
    %1152 = arith.mulf %10, %1063 : vector<128xf32>
    %1153 = arith.mulf %4, %1042 : vector<128xf32>
    %1154 = arith.subf %1152, %1153 : vector<128xf32>
    %1155 = arith.mulf %6, %1049 : vector<128xf32>
    %1156 = arith.subf %1154, %1155 : vector<128xf32>
    %1157 = arith.mulf %8, %1056 : vector<128xf32>
    %1158 = arith.subf %1156, %1157 : vector<128xf32>
    %1159 = arith.mulf %6, %1129 : vector<128xf32>
    %1160 = arith.mulf %8, %1128 : vector<128xf32>
    %1161 = arith.subf %1159, %1160 : vector<128xf32>
    %1162 = arith.mulf %8, %1127 : vector<128xf32>
    %1163 = arith.mulf %4, %1129 : vector<128xf32>
    %1164 = arith.subf %1162, %1163 : vector<128xf32>
    %1165 = arith.mulf %4, %1128 : vector<128xf32>
    %1166 = arith.mulf %6, %1127 : vector<128xf32>
    %1167 = arith.subf %1165, %1166 : vector<128xf32>
    %cst_205 = arith.constant 2.000000e+00 : f32
    %1168 = vector.broadcast %cst_205 : f32 to vector<128xf32>
    %1169 = arith.mulf %1168, %1161 : vector<128xf32>
    %cst_206 = arith.constant 2.000000e+00 : f32
    %1170 = vector.broadcast %cst_206 : f32 to vector<128xf32>
    %1171 = arith.mulf %1170, %1164 : vector<128xf32>
    %cst_207 = arith.constant 2.000000e+00 : f32
    %1172 = vector.broadcast %cst_207 : f32 to vector<128xf32>
    %1173 = arith.mulf %1172, %1167 : vector<128xf32>
    %1174 = arith.mulf %6, %1173 : vector<128xf32>
    %1175 = arith.mulf %8, %1171 : vector<128xf32>
    %1176 = arith.subf %1174, %1175 : vector<128xf32>
    %1177 = arith.mulf %8, %1169 : vector<128xf32>
    %1178 = arith.mulf %4, %1173 : vector<128xf32>
    %1179 = arith.subf %1177, %1178 : vector<128xf32>
    %1180 = arith.mulf %4, %1171 : vector<128xf32>
    %1181 = arith.mulf %6, %1169 : vector<128xf32>
    %1182 = arith.subf %1180, %1181 : vector<128xf32>
    %1183 = arith.mulf %10, %1169 : vector<128xf32>
    %1184 = arith.addf %1127, %1183 : vector<128xf32>
    %1185 = arith.addf %1184, %1176 : vector<128xf32>
    %1186 = arith.mulf %10, %1171 : vector<128xf32>
    %1187 = arith.addf %1128, %1186 : vector<128xf32>
    %1188 = arith.addf %1187, %1179 : vector<128xf32>
    %1189 = arith.mulf %10, %1173 : vector<128xf32>
    %1190 = arith.addf %1129, %1189 : vector<128xf32>
    %1191 = arith.addf %1190, %1182 : vector<128xf32>
    %1192 = arith.mulf %6, %1126 : vector<128xf32>
    %1193 = arith.mulf %8, %1120 : vector<128xf32>
    %1194 = arith.subf %1192, %1193 : vector<128xf32>
    %1195 = arith.mulf %8, %1114 : vector<128xf32>
    %1196 = arith.mulf %4, %1126 : vector<128xf32>
    %1197 = arith.subf %1195, %1196 : vector<128xf32>
    %1198 = arith.mulf %4, %1120 : vector<128xf32>
    %1199 = arith.mulf %6, %1114 : vector<128xf32>
    %1200 = arith.subf %1198, %1199 : vector<128xf32>
    %cst_208 = arith.constant 2.000000e+00 : f32
    %1201 = vector.broadcast %cst_208 : f32 to vector<128xf32>
    %1202 = arith.mulf %1201, %1194 : vector<128xf32>
    %cst_209 = arith.constant 2.000000e+00 : f32
    %1203 = vector.broadcast %cst_209 : f32 to vector<128xf32>
    %1204 = arith.mulf %1203, %1197 : vector<128xf32>
    %cst_210 = arith.constant 2.000000e+00 : f32
    %1205 = vector.broadcast %cst_210 : f32 to vector<128xf32>
    %1206 = arith.mulf %1205, %1200 : vector<128xf32>
    %1207 = arith.mulf %6, %1206 : vector<128xf32>
    %1208 = arith.mulf %8, %1204 : vector<128xf32>
    %1209 = arith.subf %1207, %1208 : vector<128xf32>
    %1210 = arith.mulf %8, %1202 : vector<128xf32>
    %1211 = arith.mulf %4, %1206 : vector<128xf32>
    %1212 = arith.subf %1210, %1211 : vector<128xf32>
    %1213 = arith.mulf %4, %1204 : vector<128xf32>
    %1214 = arith.mulf %6, %1202 : vector<128xf32>
    %1215 = arith.subf %1213, %1214 : vector<128xf32>
    %1216 = arith.mulf %10, %1202 : vector<128xf32>
    %1217 = arith.addf %1114, %1216 : vector<128xf32>
    %1218 = arith.addf %1217, %1209 : vector<128xf32>
    %1219 = arith.mulf %10, %1204 : vector<128xf32>
    %1220 = arith.addf %1120, %1219 : vector<128xf32>
    %1221 = arith.addf %1220, %1212 : vector<128xf32>
    %1222 = arith.mulf %10, %1206 : vector<128xf32>
    %1223 = arith.addf %1126, %1222 : vector<128xf32>
    %1224 = arith.addf %1223, %1215 : vector<128xf32>
    %1225 = arith.index_cast %c3_i32 : i32 to index
    %c0_211 = arith.constant 0 : index
    %c0_212 = arith.constant 0 : index
    %1226 = vector.load %arg4[%1225, %c0_211, %c0_212] : memref<8x10x128xf32, #tpu.memory_space<vmem>>, vector<1x1x128xf32>
    %1227 = vector.shape_cast %1226 : vector<1x1x128xf32> to vector<128xf32>
    %1228 = vector.shape_cast %1137 : vector<128xf32> to vector<1x1x128xf32>
    tpu.vector_store %arg4[%1225, %c0_211, %c0_212], %1228 {strides = array<i32>} : memref<8x10x128xf32, #tpu.memory_space<vmem>>, vector<1x1x128xf32>,
    %1229 = arith.index_cast %c3_i32 : i32 to index
    %c1_213 = arith.constant 1 : index
    %c0_214 = arith.constant 0 : index
    %1230 = vector.load %arg4[%1229, %c1_213, %c0_214] : memref<8x10x128xf32, #tpu.memory_space<vmem>>, vector<1x1x128xf32>
    %1231 = vector.shape_cast %1230 : vector<1x1x128xf32> to vector<128xf32>
    %1232 = vector.shape_cast %1144 : vector<128xf32> to vector<1x1x128xf32>
    tpu.vector_store %arg4[%1229, %c1_213, %c0_214], %1232 {strides = array<i32>} : memref<8x10x128xf32, #tpu.memory_space<vmem>>, vector<1x1x128xf32>,
    %1233 = arith.index_cast %c3_i32 : i32 to index
    %c2_215 = arith.constant 2 : index
    %c0_216 = arith.constant 0 : index
    %1234 = vector.load %arg4[%1233, %c2_215, %c0_216] : memref<8x10x128xf32, #tpu.memory_space<vmem>>, vector<1x1x128xf32>
    %1235 = vector.shape_cast %1234 : vector<1x1x128xf32> to vector<128xf32>
    %1236 = vector.shape_cast %1151 : vector<128xf32> to vector<1x1x128xf32>
    tpu.vector_store %arg4[%1233, %c2_215, %c0_216], %1236 {strides = array<i32>} : memref<8x10x128xf32, #tpu.memory_space<vmem>>, vector<1x1x128xf32>,
    %1237 = arith.index_cast %c3_i32 : i32 to index
    %c3_217 = arith.constant 3 : index
    %c0_218 = arith.constant 0 : index
    %1238 = vector.load %arg4[%1237, %c3_217, %c0_218] : memref<8x10x128xf32, #tpu.memory_space<vmem>>, vector<1x1x128xf32>
    %1239 = vector.shape_cast %1238 : vector<1x1x128xf32> to vector<128xf32>
    %1240 = vector.shape_cast %1158 : vector<128xf32> to vector<1x1x128xf32>
    tpu.vector_store %arg4[%1237, %c3_217, %c0_218], %1240 {strides = array<i32>} : memref<8x10x128xf32, #tpu.memory_space<vmem>>, vector<1x1x128xf32>,
    %1241 = arith.addf %12, %1185 : vector<128xf32>
    %1242 = arith.index_cast %c3_i32 : i32 to index
    %c4_219 = arith.constant 4 : index
    %c0_220 = arith.constant 0 : index
    %1243 = vector.load %arg4[%1242, %c4_219, %c0_220] : memref<8x10x128xf32, #tpu.memory_space<vmem>>, vector<1x1x128xf32>
    %1244 = vector.shape_cast %1243 : vector<1x1x128xf32> to vector<128xf32>
    %1245 = vector.shape_cast %1241 : vector<128xf32> to vector<1x1x128xf32>
    tpu.vector_store %arg4[%1242, %c4_219, %c0_220], %1245 {strides = array<i32>} : memref<8x10x128xf32, #tpu.memory_space<vmem>>, vector<1x1x128xf32>,
    %1246 = arith.addf %14, %1188 : vector<128xf32>
    %1247 = arith.index_cast %c3_i32 : i32 to index
    %c5_221 = arith.constant 5 : index
    %c0_222 = arith.constant 0 : index
    %1248 = vector.load %arg4[%1247, %c5_221, %c0_222] : memref<8x10x128xf32, #tpu.memory_space<vmem>>, vector<1x1x128xf32>
    %1249 = vector.shape_cast %1248 : vector<1x1x128xf32> to vector<128xf32>
    %1250 = vector.shape_cast %1246 : vector<128xf32> to vector<1x1x128xf32>
    tpu.vector_store %arg4[%1247, %c5_221, %c0_222], %1250 {strides = array<i32>} : memref<8x10x128xf32, #tpu.memory_space<vmem>>, vector<1x1x128xf32>,
    %1251 = arith.addf %16, %1191 : vector<128xf32>
    %1252 = arith.index_cast %c3_i32 : i32 to index
    %c6_223 = arith.constant 6 : index
    %c0_224 = arith.constant 0 : index
    %1253 = vector.load %arg4[%1252, %c6_223, %c0_224] : memref<8x10x128xf32, #tpu.memory_space<vmem>>, vector<1x1x128xf32>
    %1254 = vector.shape_cast %1253 : vector<1x1x128xf32> to vector<128xf32>
    %1255 = vector.shape_cast %1251 : vector<128xf32> to vector<1x1x128xf32>
    tpu.vector_store %arg4[%1252, %c6_223, %c0_224], %1255 {strides = array<i32>} : memref<8x10x128xf32, #tpu.memory_space<vmem>>, vector<1x1x128xf32>,
    %1256 = arith.mulf %12, %1130 : vector<128xf32>
    %1257 = arith.addf %18, %1256 : vector<128xf32>
    %1258 = arith.addf %1257, %1218 : vector<128xf32>
    %1259 = arith.index_cast %c3_i32 : i32 to index
    %c7_225 = arith.constant 7 : index
    %c0_226 = arith.constant 0 : index
    %1260 = vector.load %arg4[%1259, %c7_225, %c0_226] : memref<8x10x128xf32, #tpu.memory_space<vmem>>, vector<1x1x128xf32>
    %1261 = vector.shape_cast %1260 : vector<1x1x128xf32> to vector<128xf32>
    %1262 = vector.shape_cast %1258 : vector<128xf32> to vector<1x1x128xf32>
    tpu.vector_store %arg4[%1259, %c7_225, %c0_226], %1262 {strides = array<i32>} : memref<8x10x128xf32, #tpu.memory_space<vmem>>, vector<1x1x128xf32>,
    %1263 = arith.mulf %14, %1130 : vector<128xf32>
    %1264 = arith.addf %20, %1263 : vector<128xf32>
    %1265 = arith.addf %1264, %1221 : vector<128xf32>
    %1266 = arith.index_cast %c3_i32 : i32 to index
    %c8_227 = arith.constant 8 : index
    %c0_228 = arith.constant 0 : index
    %1267 = vector.load %arg4[%1266, %c8_227, %c0_228] : memref<8x10x128xf32, #tpu.memory_space<vmem>>, vector<1x1x128xf32>
    %1268 = vector.shape_cast %1267 : vector<1x1x128xf32> to vector<128xf32>
    %1269 = vector.shape_cast %1265 : vector<128xf32> to vector<1x1x128xf32>
    tpu.vector_store %arg4[%1266, %c8_227, %c0_228], %1269 {strides = array<i32>} : memref<8x10x128xf32, #tpu.memory_space<vmem>>, vector<1x1x128xf32>,
    %1270 = arith.mulf %16, %1130 : vector<128xf32>
    %1271 = arith.addf %22, %1270 : vector<128xf32>
    %1272 = arith.addf %1271, %1224 : vector<128xf32>
    %1273 = arith.index_cast %c3_i32 : i32 to index
    %c9_229 = arith.constant 9 : index
    %c0_230 = arith.constant 0 : index
    %1274 = vector.load %arg4[%1273, %c9_229, %c0_230] : memref<8x10x128xf32, #tpu.memory_space<vmem>>, vector<1x1x128xf32>
    %1275 = vector.shape_cast %1274 : vector<1x1x128xf32> to vector<128xf32>
    %1276 = vector.shape_cast %1272 : vector<128xf32> to vector<1x1x128xf32>
    tpu.vector_store %arg4[%1273, %c9_229, %c0_230], %1276 {strides = array<i32>} : memref<8x10x128xf32, #tpu.memory_space<vmem>>, vector<1x1x128xf32>,
    %c4_i32 = arith.constant 4 : i32
    %1277 = arith.index_cast %c4_i32 : i32 to index
    %c0_231 = arith.constant 0 : index
    %c0_232 = arith.constant 0 : index
    %1278 = vector.load %arg2[%1277, %c0_231, %c0_232] : memref<8x8x128xf32, #tpu.memory_space<vmem>>, vector<1x8x128xf32>
    %1279 = vector.shape_cast %1278 : vector<1x8x128xf32> to vector<8x128xf32>
    %1280 = vector.extract_strided_slice %1279 {offsets = [0, 0], sizes = [1, 128], strides = [1, 1]} : vector<8x128xf32> to vector<1x128xf32>
    %1281 = vector.shape_cast %1280 : vector<1x128xf32> to vector<128xf32>
    %1282 = vector.extract_strided_slice %1279 {offsets = [1, 0], sizes = [1, 128], strides = [1, 1]} : vector<8x128xf32> to vector<1x128xf32>
    %1283 = vector.shape_cast %1282 : vector<1x128xf32> to vector<128xf32>
    %1284 = arith.mulf %1283, %1281 : vector<128xf32>
    %1285 = vector.extract_strided_slice %1279 {offsets = [2, 0], sizes = [1, 128], strides = [1, 1]} : vector<8x128xf32> to vector<1x128xf32>
    %1286 = vector.shape_cast %1285 : vector<1x128xf32> to vector<128xf32>
    %1287 = arith.mulf %1286, %1281 : vector<128xf32>
    %1288 = vector.extract_strided_slice %1279 {offsets = [3, 0], sizes = [1, 128], strides = [1, 1]} : vector<8x128xf32> to vector<1x128xf32>
    %1289 = vector.shape_cast %1288 : vector<1x128xf32> to vector<128xf32>
    %1290 = arith.mulf %1289, %1281 : vector<128xf32>
    %1291 = arith.mulf %1284, %1284 : vector<128xf32>
    %1292 = arith.mulf %1287, %1287 : vector<128xf32>
    %1293 = arith.addf %1291, %1292 : vector<128xf32>
    %1294 = arith.mulf %1290, %1290 : vector<128xf32>
    %1295 = arith.addf %1293, %1294 : vector<128xf32>
    %1296 = math.sqrt %1295 : vector<128xf32>
    %1297 = arith.mulf %1295, %1295 : vector<128xf32>
    %cst_233 = arith.constant 9.99999997E-7 : f32
    %1298 = vector.broadcast %cst_233 : f32 to vector<128xf32>
    %1299 = arith.cmpf ogt, %1296, %1298 : vector<128xf32>
    %cst_234 = arith.constant 1.000000e+00 : f32
    %1300 = vector.broadcast %cst_234 : f32 to vector<128xf32>
    %1301 = arith.select %1299, %1296, %1300 : vector<128xi1>, vector<128xf32>
    %cst_235 = arith.constant 9.99999997E-7 : f32
    %1302 = vector.broadcast %cst_235 : f32 to vector<128xf32>
    %1303 = arith.cmpf ogt, %1296, %1302 : vector<128xf32>
    %cst_236 = arith.constant 5.000000e-01 : f32
    %1304 = vector.broadcast %cst_236 : f32 to vector<128xf32>
    %1305 = arith.mulf %1304, %1296 : vector<128xf32>
    %1306 = math.sin %1305 : vector<128xf32>
    %1307 = arith.divf %1306, %1301 : vector<128xf32>
    %cst_237 = arith.constant 4.800000e+01 : f32
    %1308 = vector.broadcast %cst_237 : f32 to vector<128xf32>
    %1309 = arith.divf %1295, %1308 : vector<128xf32>
    %cst_238 = arith.constant 5.000000e-01 : f32
    %1310 = vector.broadcast %cst_238 : f32 to vector<128xf32>
    %1311 = arith.subf %1310, %1309 : vector<128xf32>
    %cst_239 = arith.constant 3.840000e+03 : f32
    %1312 = vector.broadcast %cst_239 : f32 to vector<128xf32>
    %1313 = arith.divf %1297, %1312 : vector<128xf32>
    %1314 = arith.addf %1311, %1313 : vector<128xf32>
    %1315 = arith.select %1303, %1307, %1314 : vector<128xi1>, vector<128xf32>
    %cst_240 = arith.constant 9.99999997E-7 : f32
    %1316 = vector.broadcast %cst_240 : f32 to vector<128xf32>
    %1317 = arith.cmpf ogt, %1296, %1316 : vector<128xf32>
    %cst_241 = arith.constant 5.000000e-01 : f32
    %1318 = vector.broadcast %cst_241 : f32 to vector<128xf32>
    %1319 = arith.mulf %1318, %1296 : vector<128xf32>
    %1320 = math.cos %1319 : vector<128xf32>
    %cst_242 = arith.constant 8.000000e+00 : f32
    %1321 = vector.broadcast %cst_242 : f32 to vector<128xf32>
    %1322 = arith.divf %1295, %1321 : vector<128xf32>
    %cst_243 = arith.constant 1.000000e+00 : f32
    %1323 = vector.broadcast %cst_243 : f32 to vector<128xf32>
    %1324 = arith.subf %1323, %1322 : vector<128xf32>
    %cst_244 = arith.constant 3.840000e+02 : f32
    %1325 = vector.broadcast %cst_244 : f32 to vector<128xf32>
    %1326 = arith.divf %1297, %1325 : vector<128xf32>
    %1327 = arith.addf %1324, %1326 : vector<128xf32>
    %1328 = arith.select %1317, %1320, %1327 : vector<128xi1>, vector<128xf32>
    %1329 = arith.mulf %1284, %1315 : vector<128xf32>
    %1330 = arith.mulf %1287, %1315 : vector<128xf32>
    %1331 = arith.mulf %1290, %1315 : vector<128xf32>
    %1332 = arith.mulf %1063, %1329 : vector<128xf32>
    %1333 = arith.mulf %1042, %1328 : vector<128xf32>
    %1334 = arith.addf %1332, %1333 : vector<128xf32>
    %1335 = arith.mulf %1049, %1331 : vector<128xf32>
    %1336 = arith.addf %1334, %1335 : vector<128xf32>
    %1337 = arith.mulf %1056, %1330 : vector<128xf32>
    %1338 = arith.subf %1336, %1337 : vector<128xf32>
    %1339 = arith.mulf %1063, %1330 : vector<128xf32>
    %1340 = arith.mulf %1042, %1331 : vector<128xf32>
    %1341 = arith.subf %1339, %1340 : vector<128xf32>
    %1342 = arith.mulf %1049, %1328 : vector<128xf32>
    %1343 = arith.addf %1341, %1342 : vector<128xf32>
    %1344 = arith.mulf %1056, %1329 : vector<128xf32>
    %1345 = arith.addf %1343, %1344 : vector<128xf32>
    %1346 = arith.mulf %1063, %1331 : vector<128xf32>
    %1347 = arith.mulf %1042, %1330 : vector<128xf32>
    %1348 = arith.addf %1346, %1347 : vector<128xf32>
    %1349 = arith.mulf %1049, %1329 : vector<128xf32>
    %1350 = arith.subf %1348, %1349 : vector<128xf32>
    %1351 = arith.mulf %1056, %1328 : vector<128xf32>
    %1352 = arith.addf %1350, %1351 : vector<128xf32>
    %1353 = arith.mulf %1063, %1328 : vector<128xf32>
    %1354 = arith.mulf %1042, %1329 : vector<128xf32>
    %1355 = arith.subf %1353, %1354 : vector<128xf32>
    %1356 = arith.mulf %1049, %1330 : vector<128xf32>
    %1357 = arith.subf %1355, %1356 : vector<128xf32>
    %1358 = arith.mulf %1056, %1331 : vector<128xf32>
    %1359 = arith.subf %1357, %1358 : vector<128xf32>
    %1360 = vector.extract_strided_slice %1279 {offsets = [4, 0], sizes = [1, 128], strides = [1, 1]} : vector<8x128xf32> to vector<1x128xf32>
    %1361 = vector.shape_cast %1360 : vector<1x128xf32> to vector<128xf32>
    %1362 = vector.extract_strided_slice %1279 {offsets = [5, 0], sizes = [1, 128], strides = [1, 1]} : vector<8x128xf32> to vector<1x128xf32>
    %1363 = vector.shape_cast %1362 : vector<1x128xf32> to vector<128xf32>
    %1364 = vector.extract_strided_slice %1279 {offsets = [6, 0], sizes = [1, 128], strides = [1, 1]} : vector<8x128xf32> to vector<1x128xf32>
    %1365 = vector.shape_cast %1364 : vector<1x128xf32> to vector<128xf32>
    %1366 = arith.mulf %1345, %1365 : vector<128xf32>
    %1367 = arith.mulf %1352, %1363 : vector<128xf32>
    %1368 = arith.subf %1366, %1367 : vector<128xf32>
    %1369 = arith.mulf %1352, %1361 : vector<128xf32>
    %1370 = arith.mulf %1338, %1365 : vector<128xf32>
    %1371 = arith.subf %1369, %1370 : vector<128xf32>
    %1372 = arith.mulf %1338, %1363 : vector<128xf32>
    %1373 = arith.mulf %1345, %1361 : vector<128xf32>
    %1374 = arith.subf %1372, %1373 : vector<128xf32>
    %cst_245 = arith.constant 2.000000e+00 : f32
    %1375 = vector.broadcast %cst_245 : f32 to vector<128xf32>
    %1376 = arith.mulf %1375, %1368 : vector<128xf32>
    %cst_246 = arith.constant 2.000000e+00 : f32
    %1377 = vector.broadcast %cst_246 : f32 to vector<128xf32>
    %1378 = arith.mulf %1377, %1371 : vector<128xf32>
    %cst_247 = arith.constant 2.000000e+00 : f32
    %1379 = vector.broadcast %cst_247 : f32 to vector<128xf32>
    %1380 = arith.mulf %1379, %1374 : vector<128xf32>
    %1381 = arith.mulf %1345, %1380 : vector<128xf32>
    %1382 = arith.mulf %1352, %1378 : vector<128xf32>
    %1383 = arith.subf %1381, %1382 : vector<128xf32>
    %1384 = arith.mulf %1352, %1376 : vector<128xf32>
    %1385 = arith.mulf %1338, %1380 : vector<128xf32>
    %1386 = arith.subf %1384, %1385 : vector<128xf32>
    %1387 = arith.mulf %1338, %1378 : vector<128xf32>
    %1388 = arith.mulf %1345, %1376 : vector<128xf32>
    %1389 = arith.subf %1387, %1388 : vector<128xf32>
    %1390 = arith.mulf %1359, %1376 : vector<128xf32>
    %1391 = arith.addf %1361, %1390 : vector<128xf32>
    %1392 = arith.addf %1391, %1383 : vector<128xf32>
    %1393 = arith.mulf %1359, %1378 : vector<128xf32>
    %1394 = arith.addf %1363, %1393 : vector<128xf32>
    %1395 = arith.addf %1394, %1386 : vector<128xf32>
    %1396 = arith.mulf %1359, %1380 : vector<128xf32>
    %1397 = arith.addf %1365, %1396 : vector<128xf32>
    %1398 = arith.addf %1397, %1389 : vector<128xf32>
    %1399 = arith.subf %1392, %62 : vector<128xf32>
    %1400 = arith.mulf %1399, %1281 : vector<128xf32>
    %1401 = arith.subf %1395, %66 : vector<128xf32>
    %1402 = arith.mulf %1401, %1281 : vector<128xf32>
    %1403 = arith.subf %1398, %70 : vector<128xf32>
    %1404 = arith.mulf %1403, %1281 : vector<128xf32>
    %1405 = arith.mulf %1127, %1281 : vector<128xf32>
    %1406 = arith.addf %1114, %1405 : vector<128xf32>
    %cst_248 = arith.constant 5.000000e-01 : f32
    %1407 = vector.broadcast %cst_248 : f32 to vector<128xf32>
    %1408 = arith.mulf %1407, %1400 : vector<128xf32>
    %1409 = arith.mulf %1408, %1281 : vector<128xf32>
    %1410 = arith.addf %1406, %1409 : vector<128xf32>
    %1411 = arith.mulf %1128, %1281 : vector<128xf32>
    %1412 = arith.addf %1120, %1411 : vector<128xf32>
    %cst_249 = arith.constant 5.000000e-01 : f32
    %1413 = vector.broadcast %cst_249 : f32 to vector<128xf32>
    %1414 = arith.mulf %1413, %1402 : vector<128xf32>
    %1415 = arith.mulf %1414, %1281 : vector<128xf32>
    %1416 = arith.addf %1412, %1415 : vector<128xf32>
    %1417 = arith.mulf %1129, %1281 : vector<128xf32>
    %1418 = arith.addf %1126, %1417 : vector<128xf32>
    %cst_250 = arith.constant 5.000000e-01 : f32
    %1419 = vector.broadcast %cst_250 : f32 to vector<128xf32>
    %1420 = arith.mulf %1419, %1404 : vector<128xf32>
    %1421 = arith.mulf %1420, %1281 : vector<128xf32>
    %1422 = arith.addf %1418, %1421 : vector<128xf32>
    %1423 = arith.addf %1127, %1400 : vector<128xf32>
    %1424 = arith.addf %1128, %1402 : vector<128xf32>
    %1425 = arith.addf %1129, %1404 : vector<128xf32>
    %1426 = arith.addf %1130, %1281 : vector<128xf32>
    %1427 = arith.mulf %10, %1338 : vector<128xf32>
    %1428 = arith.mulf %4, %1359 : vector<128xf32>
    %1429 = arith.addf %1427, %1428 : vector<128xf32>
    %1430 = arith.mulf %6, %1352 : vector<128xf32>
    %1431 = arith.addf %1429, %1430 : vector<128xf32>
    %1432 = arith.mulf %8, %1345 : vector<128xf32>
    %1433 = arith.subf %1431, %1432 : vector<128xf32>
    %1434 = arith.mulf %10, %1345 : vector<128xf32>
    %1435 = arith.mulf %4, %1352 : vector<128xf32>
    %1436 = arith.subf %1434, %1435 : vector<128xf32>
    %1437 = arith.mulf %6, %1359 : vector<128xf32>
    %1438 = arith.addf %1436, %1437 : vector<128xf32>
    %1439 = arith.mulf %8, %1338 : vector<128xf32>
    %1440 = arith.addf %1438, %1439 : vector<128xf32>
    %1441 = arith.mulf %10, %1352 : vector<128xf32>
    %1442 = arith.mulf %4, %1345 : vector<128xf32>
    %1443 = arith.addf %1441, %1442 : vector<128xf32>
    %1444 = arith.mulf %6, %1338 : vector<128xf32>
    %1445 = arith.subf %1443, %1444 : vector<128xf32>
    %1446 = arith.mulf %8, %1359 : vector<128xf32>
    %1447 = arith.addf %1445, %1446 : vector<128xf32>
    %1448 = arith.mulf %10, %1359 : vector<128xf32>
    %1449 = arith.mulf %4, %1338 : vector<128xf32>
    %1450 = arith.subf %1448, %1449 : vector<128xf32>
    %1451 = arith.mulf %6, %1345 : vector<128xf32>
    %1452 = arith.subf %1450, %1451 : vector<128xf32>
    %1453 = arith.mulf %8, %1352 : vector<128xf32>
    %1454 = arith.subf %1452, %1453 : vector<128xf32>
    %1455 = arith.mulf %6, %1425 : vector<128xf32>
    %1456 = arith.mulf %8, %1424 : vector<128xf32>
    %1457 = arith.subf %1455, %1456 : vector<128xf32>
    %1458 = arith.mulf %8, %1423 : vector<128xf32>
    %1459 = arith.mulf %4, %1425 : vector<128xf32>
    %1460 = arith.subf %1458, %1459 : vector<128xf32>
    %1461 = arith.mulf %4, %1424 : vector<128xf32>
    %1462 = arith.mulf %6, %1423 : vector<128xf32>
    %1463 = arith.subf %1461, %1462 : vector<128xf32>
    %cst_251 = arith.constant 2.000000e+00 : f32
    %1464 = vector.broadcast %cst_251 : f32 to vector<128xf32>
    %1465 = arith.mulf %1464, %1457 : vector<128xf32>
    %cst_252 = arith.constant 2.000000e+00 : f32
    %1466 = vector.broadcast %cst_252 : f32 to vector<128xf32>
    %1467 = arith.mulf %1466, %1460 : vector<128xf32>
    %cst_253 = arith.constant 2.000000e+00 : f32
    %1468 = vector.broadcast %cst_253 : f32 to vector<128xf32>
    %1469 = arith.mulf %1468, %1463 : vector<128xf32>
    %1470 = arith.mulf %6, %1469 : vector<128xf32>
    %1471 = arith.mulf %8, %1467 : vector<128xf32>
    %1472 = arith.subf %1470, %1471 : vector<128xf32>
    %1473 = arith.mulf %8, %1465 : vector<128xf32>
    %1474 = arith.mulf %4, %1469 : vector<128xf32>
    %1475 = arith.subf %1473, %1474 : vector<128xf32>
    %1476 = arith.mulf %4, %1467 : vector<128xf32>
    %1477 = arith.mulf %6, %1465 : vector<128xf32>
    %1478 = arith.subf %1476, %1477 : vector<128xf32>
    %1479 = arith.mulf %10, %1465 : vector<128xf32>
    %1480 = arith.addf %1423, %1479 : vector<128xf32>
    %1481 = arith.addf %1480, %1472 : vector<128xf32>
    %1482 = arith.mulf %10, %1467 : vector<128xf32>
    %1483 = arith.addf %1424, %1482 : vector<128xf32>
    %1484 = arith.addf %1483, %1475 : vector<128xf32>
    %1485 = arith.mulf %10, %1469 : vector<128xf32>
    %1486 = arith.addf %1425, %1485 : vector<128xf32>
    %1487 = arith.addf %1486, %1478 : vector<128xf32>
    %1488 = arith.mulf %6, %1422 : vector<128xf32>
    %1489 = arith.mulf %8, %1416 : vector<128xf32>
    %1490 = arith.subf %1488, %1489 : vector<128xf32>
    %1491 = arith.mulf %8, %1410 : vector<128xf32>
    %1492 = arith.mulf %4, %1422 : vector<128xf32>
    %1493 = arith.subf %1491, %1492 : vector<128xf32>
    %1494 = arith.mulf %4, %1416 : vector<128xf32>
    %1495 = arith.mulf %6, %1410 : vector<128xf32>
    %1496 = arith.subf %1494, %1495 : vector<128xf32>
    %cst_254 = arith.constant 2.000000e+00 : f32
    %1497 = vector.broadcast %cst_254 : f32 to vector<128xf32>
    %1498 = arith.mulf %1497, %1490 : vector<128xf32>
    %cst_255 = arith.constant 2.000000e+00 : f32
    %1499 = vector.broadcast %cst_255 : f32 to vector<128xf32>
    %1500 = arith.mulf %1499, %1493 : vector<128xf32>
    %cst_256 = arith.constant 2.000000e+00 : f32
    %1501 = vector.broadcast %cst_256 : f32 to vector<128xf32>
    %1502 = arith.mulf %1501, %1496 : vector<128xf32>
    %1503 = arith.mulf %6, %1502 : vector<128xf32>
    %1504 = arith.mulf %8, %1500 : vector<128xf32>
    %1505 = arith.subf %1503, %1504 : vector<128xf32>
    %1506 = arith.mulf %8, %1498 : vector<128xf32>
    %1507 = arith.mulf %4, %1502 : vector<128xf32>
    %1508 = arith.subf %1506, %1507 : vector<128xf32>
    %1509 = arith.mulf %4, %1500 : vector<128xf32>
    %1510 = arith.mulf %6, %1498 : vector<128xf32>
    %1511 = arith.subf %1509, %1510 : vector<128xf32>
    %1512 = arith.mulf %10, %1498 : vector<128xf32>
    %1513 = arith.addf %1410, %1512 : vector<128xf32>
    %1514 = arith.addf %1513, %1505 : vector<128xf32>
    %1515 = arith.mulf %10, %1500 : vector<128xf32>
    %1516 = arith.addf %1416, %1515 : vector<128xf32>
    %1517 = arith.addf %1516, %1508 : vector<128xf32>
    %1518 = arith.mulf %10, %1502 : vector<128xf32>
    %1519 = arith.addf %1422, %1518 : vector<128xf32>
    %1520 = arith.addf %1519, %1511 : vector<128xf32>
    %1521 = arith.index_cast %c4_i32 : i32 to index
    %c0_257 = arith.constant 0 : index
    %c0_258 = arith.constant 0 : index
    %1522 = vector.load %arg4[%1521, %c0_257, %c0_258] : memref<8x10x128xf32, #tpu.memory_space<vmem>>, vector<1x1x128xf32>
    %1523 = vector.shape_cast %1522 : vector<1x1x128xf32> to vector<128xf32>
    %1524 = vector.shape_cast %1433 : vector<128xf32> to vector<1x1x128xf32>
    tpu.vector_store %arg4[%1521, %c0_257, %c0_258], %1524 {strides = array<i32>} : memref<8x10x128xf32, #tpu.memory_space<vmem>>, vector<1x1x128xf32>,
    %1525 = arith.index_cast %c4_i32 : i32 to index
    %c1_259 = arith.constant 1 : index
    %c0_260 = arith.constant 0 : index
    %1526 = vector.load %arg4[%1525, %c1_259, %c0_260] : memref<8x10x128xf32, #tpu.memory_space<vmem>>, vector<1x1x128xf32>
    %1527 = vector.shape_cast %1526 : vector<1x1x128xf32> to vector<128xf32>
    %1528 = vector.shape_cast %1440 : vector<128xf32> to vector<1x1x128xf32>
    tpu.vector_store %arg4[%1525, %c1_259, %c0_260], %1528 {strides = array<i32>} : memref<8x10x128xf32, #tpu.memory_space<vmem>>, vector<1x1x128xf32>,
    %1529 = arith.index_cast %c4_i32 : i32 to index
    %c2_261 = arith.constant 2 : index
    %c0_262 = arith.constant 0 : index
    %1530 = vector.load %arg4[%1529, %c2_261, %c0_262] : memref<8x10x128xf32, #tpu.memory_space<vmem>>, vector<1x1x128xf32>
    %1531 = vector.shape_cast %1530 : vector<1x1x128xf32> to vector<128xf32>
    %1532 = vector.shape_cast %1447 : vector<128xf32> to vector<1x1x128xf32>
    tpu.vector_store %arg4[%1529, %c2_261, %c0_262], %1532 {strides = array<i32>} : memref<8x10x128xf32, #tpu.memory_space<vmem>>, vector<1x1x128xf32>,
    %1533 = arith.index_cast %c4_i32 : i32 to index
    %c3_263 = arith.constant 3 : index
    %c0_264 = arith.constant 0 : index
    %1534 = vector.load %arg4[%1533, %c3_263, %c0_264] : memref<8x10x128xf32, #tpu.memory_space<vmem>>, vector<1x1x128xf32>
    %1535 = vector.shape_cast %1534 : vector<1x1x128xf32> to vector<128xf32>
    %1536 = vector.shape_cast %1454 : vector<128xf32> to vector<1x1x128xf32>
    tpu.vector_store %arg4[%1533, %c3_263, %c0_264], %1536 {strides = array<i32>} : memref<8x10x128xf32, #tpu.memory_space<vmem>>, vector<1x1x128xf32>,
    %1537 = arith.addf %12, %1481 : vector<128xf32>
    %1538 = arith.index_cast %c4_i32 : i32 to index
    %c4_265 = arith.constant 4 : index
    %c0_266 = arith.constant 0 : index
    %1539 = vector.load %arg4[%1538, %c4_265, %c0_266] : memref<8x10x128xf32, #tpu.memory_space<vmem>>, vector<1x1x128xf32>
    %1540 = vector.shape_cast %1539 : vector<1x1x128xf32> to vector<128xf32>
    %1541 = vector.shape_cast %1537 : vector<128xf32> to vector<1x1x128xf32>
    tpu.vector_store %arg4[%1538, %c4_265, %c0_266], %1541 {strides = array<i32>} : memref<8x10x128xf32, #tpu.memory_space<vmem>>, vector<1x1x128xf32>,
    %1542 = arith.addf %14, %1484 : vector<128xf32>
    %1543 = arith.index_cast %c4_i32 : i32 to index
    %c5_267 = arith.constant 5 : index
    %c0_268 = arith.constant 0 : index
    %1544 = vector.load %arg4[%1543, %c5_267, %c0_268] : memref<8x10x128xf32, #tpu.memory_space<vmem>>, vector<1x1x128xf32>
    %1545 = vector.shape_cast %1544 : vector<1x1x128xf32> to vector<128xf32>
    %1546 = vector.shape_cast %1542 : vector<128xf32> to vector<1x1x128xf32>
    tpu.vector_store %arg4[%1543, %c5_267, %c0_268], %1546 {strides = array<i32>} : memref<8x10x128xf32, #tpu.memory_space<vmem>>, vector<1x1x128xf32>,
    %1547 = arith.addf %16, %1487 : vector<128xf32>
    %1548 = arith.index_cast %c4_i32 : i32 to index
    %c6_269 = arith.constant 6 : index
    %c0_270 = arith.constant 0 : index
    %1549 = vector.load %arg4[%1548, %c6_269, %c0_270] : memref<8x10x128xf32, #tpu.memory_space<vmem>>, vector<1x1x128xf32>
    %1550 = vector.shape_cast %1549 : vector<1x1x128xf32> to vector<128xf32>
    %1551 = vector.shape_cast %1547 : vector<128xf32> to vector<1x1x128xf32>
    tpu.vector_store %arg4[%1548, %c6_269, %c0_270], %1551 {strides = array<i32>} : memref<8x10x128xf32, #tpu.memory_space<vmem>>, vector<1x1x128xf32>,
    %1552 = arith.mulf %12, %1426 : vector<128xf32>
    %1553 = arith.addf %18, %1552 : vector<128xf32>
    %1554 = arith.addf %1553, %1514 : vector<128xf32>
    %1555 = arith.index_cast %c4_i32 : i32 to index
    %c7_271 = arith.constant 7 : index
    %c0_272 = arith.constant 0 : index
    %1556 = vector.load %arg4[%1555, %c7_271, %c0_272] : memref<8x10x128xf32, #tpu.memory_space<vmem>>, vector<1x1x128xf32>
    %1557 = vector.shape_cast %1556 : vector<1x1x128xf32> to vector<128xf32>
    %1558 = vector.shape_cast %1554 : vector<128xf32> to vector<1x1x128xf32>
    tpu.vector_store %arg4[%1555, %c7_271, %c0_272], %1558 {strides = array<i32>} : memref<8x10x128xf32, #tpu.memory_space<vmem>>, vector<1x1x128xf32>,
    %1559 = arith.mulf %14, %1426 : vector<128xf32>
    %1560 = arith.addf %20, %1559 : vector<128xf32>
    %1561 = arith.addf %1560, %1517 : vector<128xf32>
    %1562 = arith.index_cast %c4_i32 : i32 to index
    %c8_273 = arith.constant 8 : index
    %c0_274 = arith.constant 0 : index
    %1563 = vector.load %arg4[%1562, %c8_273, %c0_274] : memref<8x10x128xf32, #tpu.memory_space<vmem>>, vector<1x1x128xf32>
    %1564 = vector.shape_cast %1563 : vector<1x1x128xf32> to vector<128xf32>
    %1565 = vector.shape_cast %1561 : vector<128xf32> to vector<1x1x128xf32>
    tpu.vector_store %arg4[%1562, %c8_273, %c0_274], %1565 {strides = array<i32>} : memref<8x10x128xf32, #tpu.memory_space<vmem>>, vector<1x1x128xf32>,
    %1566 = arith.mulf %16, %1426 : vector<128xf32>
    %1567 = arith.addf %22, %1566 : vector<128xf32>
    %1568 = arith.addf %1567, %1520 : vector<128xf32>
    %1569 = arith.index_cast %c4_i32 : i32 to index
    %c9_275 = arith.constant 9 : index
    %c0_276 = arith.constant 0 : index
    %1570 = vector.load %arg4[%1569, %c9_275, %c0_276] : memref<8x10x128xf32, #tpu.memory_space<vmem>>, vector<1x1x128xf32>
    %1571 = vector.shape_cast %1570 : vector<1x1x128xf32> to vector<128xf32>
    %1572 = vector.shape_cast %1568 : vector<128xf32> to vector<1x1x128xf32>
    tpu.vector_store %arg4[%1569, %c9_275, %c0_276], %1572 {strides = array<i32>} : memref<8x10x128xf32, #tpu.memory_space<vmem>>, vector<1x1x128xf32>,
    %c5_i32 = arith.constant 5 : i32
    %1573 = arith.index_cast %c5_i32 : i32 to index
    %c0_277 = arith.constant 0 : index
    %c0_278 = arith.constant 0 : index
    %1574 = vector.load %arg2[%1573, %c0_277, %c0_278] : memref<8x8x128xf32, #tpu.memory_space<vmem>>, vector<1x8x128xf32>
    %1575 = vector.shape_cast %1574 : vector<1x8x128xf32> to vector<8x128xf32>
    %1576 = vector.extract_strided_slice %1575 {offsets = [0, 0], sizes = [1, 128], strides = [1, 1]} : vector<8x128xf32> to vector<1x128xf32>
    %1577 = vector.shape_cast %1576 : vector<1x128xf32> to vector<128xf32>
    %1578 = vector.extract_strided_slice %1575 {offsets = [1, 0], sizes = [1, 128], strides = [1, 1]} : vector<8x128xf32> to vector<1x128xf32>
    %1579 = vector.shape_cast %1578 : vector<1x128xf32> to vector<128xf32>
    %1580 = arith.mulf %1579, %1577 : vector<128xf32>
    %1581 = vector.extract_strided_slice %1575 {offsets = [2, 0], sizes = [1, 128], strides = [1, 1]} : vector<8x128xf32> to vector<1x128xf32>
    %1582 = vector.shape_cast %1581 : vector<1x128xf32> to vector<128xf32>
    %1583 = arith.mulf %1582, %1577 : vector<128xf32>
    %1584 = vector.extract_strided_slice %1575 {offsets = [3, 0], sizes = [1, 128], strides = [1, 1]} : vector<8x128xf32> to vector<1x128xf32>
    %1585 = vector.shape_cast %1584 : vector<1x128xf32> to vector<128xf32>
    %1586 = arith.mulf %1585, %1577 : vector<128xf32>
    %1587 = arith.mulf %1580, %1580 : vector<128xf32>
    %1588 = arith.mulf %1583, %1583 : vector<128xf32>
    %1589 = arith.addf %1587, %1588 : vector<128xf32>
    %1590 = arith.mulf %1586, %1586 : vector<128xf32>
    %1591 = arith.addf %1589, %1590 : vector<128xf32>
    %1592 = math.sqrt %1591 : vector<128xf32>
    %1593 = arith.mulf %1591, %1591 : vector<128xf32>
    %cst_279 = arith.constant 9.99999997E-7 : f32
    %1594 = vector.broadcast %cst_279 : f32 to vector<128xf32>
    %1595 = arith.cmpf ogt, %1592, %1594 : vector<128xf32>
    %cst_280 = arith.constant 1.000000e+00 : f32
    %1596 = vector.broadcast %cst_280 : f32 to vector<128xf32>
    %1597 = arith.select %1595, %1592, %1596 : vector<128xi1>, vector<128xf32>
    %cst_281 = arith.constant 9.99999997E-7 : f32
    %1598 = vector.broadcast %cst_281 : f32 to vector<128xf32>
    %1599 = arith.cmpf ogt, %1592, %1598 : vector<128xf32>
    %cst_282 = arith.constant 5.000000e-01 : f32
    %1600 = vector.broadcast %cst_282 : f32 to vector<128xf32>
    %1601 = arith.mulf %1600, %1592 : vector<128xf32>
    %1602 = math.sin %1601 : vector<128xf32>
    %1603 = arith.divf %1602, %1597 : vector<128xf32>
    %cst_283 = arith.constant 4.800000e+01 : f32
    %1604 = vector.broadcast %cst_283 : f32 to vector<128xf32>
    %1605 = arith.divf %1591, %1604 : vector<128xf32>
    %cst_284 = arith.constant 5.000000e-01 : f32
    %1606 = vector.broadcast %cst_284 : f32 to vector<128xf32>
    %1607 = arith.subf %1606, %1605 : vector<128xf32>
    %cst_285 = arith.constant 3.840000e+03 : f32
    %1608 = vector.broadcast %cst_285 : f32 to vector<128xf32>
    %1609 = arith.divf %1593, %1608 : vector<128xf32>
    %1610 = arith.addf %1607, %1609 : vector<128xf32>
    %1611 = arith.select %1599, %1603, %1610 : vector<128xi1>, vector<128xf32>
    %cst_286 = arith.constant 9.99999997E-7 : f32
    %1612 = vector.broadcast %cst_286 : f32 to vector<128xf32>
    %1613 = arith.cmpf ogt, %1592, %1612 : vector<128xf32>
    %cst_287 = arith.constant 5.000000e-01 : f32
    %1614 = vector.broadcast %cst_287 : f32 to vector<128xf32>
    %1615 = arith.mulf %1614, %1592 : vector<128xf32>
    %1616 = math.cos %1615 : vector<128xf32>
    %cst_288 = arith.constant 8.000000e+00 : f32
    %1617 = vector.broadcast %cst_288 : f32 to vector<128xf32>
    %1618 = arith.divf %1591, %1617 : vector<128xf32>
    %cst_289 = arith.constant 1.000000e+00 : f32
    %1619 = vector.broadcast %cst_289 : f32 to vector<128xf32>
    %1620 = arith.subf %1619, %1618 : vector<128xf32>
    %cst_290 = arith.constant 3.840000e+02 : f32
    %1621 = vector.broadcast %cst_290 : f32 to vector<128xf32>
    %1622 = arith.divf %1593, %1621 : vector<128xf32>
    %1623 = arith.addf %1620, %1622 : vector<128xf32>
    %1624 = arith.select %1613, %1616, %1623 : vector<128xi1>, vector<128xf32>
    %1625 = arith.mulf %1580, %1611 : vector<128xf32>
    %1626 = arith.mulf %1583, %1611 : vector<128xf32>
    %1627 = arith.mulf %1586, %1611 : vector<128xf32>
    %1628 = arith.mulf %1359, %1625 : vector<128xf32>
    %1629 = arith.mulf %1338, %1624 : vector<128xf32>
    %1630 = arith.addf %1628, %1629 : vector<128xf32>
    %1631 = arith.mulf %1345, %1627 : vector<128xf32>
    %1632 = arith.addf %1630, %1631 : vector<128xf32>
    %1633 = arith.mulf %1352, %1626 : vector<128xf32>
    %1634 = arith.subf %1632, %1633 : vector<128xf32>
    %1635 = arith.mulf %1359, %1626 : vector<128xf32>
    %1636 = arith.mulf %1338, %1627 : vector<128xf32>
    %1637 = arith.subf %1635, %1636 : vector<128xf32>
    %1638 = arith.mulf %1345, %1624 : vector<128xf32>
    %1639 = arith.addf %1637, %1638 : vector<128xf32>
    %1640 = arith.mulf %1352, %1625 : vector<128xf32>
    %1641 = arith.addf %1639, %1640 : vector<128xf32>
    %1642 = arith.mulf %1359, %1627 : vector<128xf32>
    %1643 = arith.mulf %1338, %1626 : vector<128xf32>
    %1644 = arith.addf %1642, %1643 : vector<128xf32>
    %1645 = arith.mulf %1345, %1625 : vector<128xf32>
    %1646 = arith.subf %1644, %1645 : vector<128xf32>
    %1647 = arith.mulf %1352, %1624 : vector<128xf32>
    %1648 = arith.addf %1646, %1647 : vector<128xf32>
    %1649 = arith.mulf %1359, %1624 : vector<128xf32>
    %1650 = arith.mulf %1338, %1625 : vector<128xf32>
    %1651 = arith.subf %1649, %1650 : vector<128xf32>
    %1652 = arith.mulf %1345, %1626 : vector<128xf32>
    %1653 = arith.subf %1651, %1652 : vector<128xf32>
    %1654 = arith.mulf %1352, %1627 : vector<128xf32>
    %1655 = arith.subf %1653, %1654 : vector<128xf32>
    %1656 = vector.extract_strided_slice %1575 {offsets = [4, 0], sizes = [1, 128], strides = [1, 1]} : vector<8x128xf32> to vector<1x128xf32>
    %1657 = vector.shape_cast %1656 : vector<1x128xf32> to vector<128xf32>
    %1658 = vector.extract_strided_slice %1575 {offsets = [5, 0], sizes = [1, 128], strides = [1, 1]} : vector<8x128xf32> to vector<1x128xf32>
    %1659 = vector.shape_cast %1658 : vector<1x128xf32> to vector<128xf32>
    %1660 = vector.extract_strided_slice %1575 {offsets = [6, 0], sizes = [1, 128], strides = [1, 1]} : vector<8x128xf32> to vector<1x128xf32>
    %1661 = vector.shape_cast %1660 : vector<1x128xf32> to vector<128xf32>
    %1662 = arith.mulf %1641, %1661 : vector<128xf32>
    %1663 = arith.mulf %1648, %1659 : vector<128xf32>
    %1664 = arith.subf %1662, %1663 : vector<128xf32>
    %1665 = arith.mulf %1648, %1657 : vector<128xf32>
    %1666 = arith.mulf %1634, %1661 : vector<128xf32>
    %1667 = arith.subf %1665, %1666 : vector<128xf32>
    %1668 = arith.mulf %1634, %1659 : vector<128xf32>
    %1669 = arith.mulf %1641, %1657 : vector<128xf32>
    %1670 = arith.subf %1668, %1669 : vector<128xf32>
    %cst_291 = arith.constant 2.000000e+00 : f32
    %1671 = vector.broadcast %cst_291 : f32 to vector<128xf32>
    %1672 = arith.mulf %1671, %1664 : vector<128xf32>
    %cst_292 = arith.constant 2.000000e+00 : f32
    %1673 = vector.broadcast %cst_292 : f32 to vector<128xf32>
    %1674 = arith.mulf %1673, %1667 : vector<128xf32>
    %cst_293 = arith.constant 2.000000e+00 : f32
    %1675 = vector.broadcast %cst_293 : f32 to vector<128xf32>
    %1676 = arith.mulf %1675, %1670 : vector<128xf32>
    %1677 = arith.mulf %1641, %1676 : vector<128xf32>
    %1678 = arith.mulf %1648, %1674 : vector<128xf32>
    %1679 = arith.subf %1677, %1678 : vector<128xf32>
    %1680 = arith.mulf %1648, %1672 : vector<128xf32>
    %1681 = arith.mulf %1634, %1676 : vector<128xf32>
    %1682 = arith.subf %1680, %1681 : vector<128xf32>
    %1683 = arith.mulf %1634, %1674 : vector<128xf32>
    %1684 = arith.mulf %1641, %1672 : vector<128xf32>
    %1685 = arith.subf %1683, %1684 : vector<128xf32>
    %1686 = arith.mulf %1655, %1672 : vector<128xf32>
    %1687 = arith.addf %1657, %1686 : vector<128xf32>
    %1688 = arith.addf %1687, %1679 : vector<128xf32>
    %1689 = arith.mulf %1655, %1674 : vector<128xf32>
    %1690 = arith.addf %1659, %1689 : vector<128xf32>
    %1691 = arith.addf %1690, %1682 : vector<128xf32>
    %1692 = arith.mulf %1655, %1676 : vector<128xf32>
    %1693 = arith.addf %1661, %1692 : vector<128xf32>
    %1694 = arith.addf %1693, %1685 : vector<128xf32>
    %1695 = arith.subf %1688, %62 : vector<128xf32>
    %1696 = arith.mulf %1695, %1577 : vector<128xf32>
    %1697 = arith.subf %1691, %66 : vector<128xf32>
    %1698 = arith.mulf %1697, %1577 : vector<128xf32>
    %1699 = arith.subf %1694, %70 : vector<128xf32>
    %1700 = arith.mulf %1699, %1577 : vector<128xf32>
    %1701 = arith.mulf %1423, %1577 : vector<128xf32>
    %1702 = arith.addf %1410, %1701 : vector<128xf32>
    %cst_294 = arith.constant 5.000000e-01 : f32
    %1703 = vector.broadcast %cst_294 : f32 to vector<128xf32>
    %1704 = arith.mulf %1703, %1696 : vector<128xf32>
    %1705 = arith.mulf %1704, %1577 : vector<128xf32>
    %1706 = arith.addf %1702, %1705 : vector<128xf32>
    %1707 = arith.mulf %1424, %1577 : vector<128xf32>
    %1708 = arith.addf %1416, %1707 : vector<128xf32>
    %cst_295 = arith.constant 5.000000e-01 : f32
    %1709 = vector.broadcast %cst_295 : f32 to vector<128xf32>
    %1710 = arith.mulf %1709, %1698 : vector<128xf32>
    %1711 = arith.mulf %1710, %1577 : vector<128xf32>
    %1712 = arith.addf %1708, %1711 : vector<128xf32>
    %1713 = arith.mulf %1425, %1577 : vector<128xf32>
    %1714 = arith.addf %1422, %1713 : vector<128xf32>
    %cst_296 = arith.constant 5.000000e-01 : f32
    %1715 = vector.broadcast %cst_296 : f32 to vector<128xf32>
    %1716 = arith.mulf %1715, %1700 : vector<128xf32>
    %1717 = arith.mulf %1716, %1577 : vector<128xf32>
    %1718 = arith.addf %1714, %1717 : vector<128xf32>
    %1719 = arith.addf %1423, %1696 : vector<128xf32>
    %1720 = arith.addf %1424, %1698 : vector<128xf32>
    %1721 = arith.addf %1425, %1700 : vector<128xf32>
    %1722 = arith.addf %1426, %1577 : vector<128xf32>
    %1723 = arith.mulf %10, %1634 : vector<128xf32>
    %1724 = arith.mulf %4, %1655 : vector<128xf32>
    %1725 = arith.addf %1723, %1724 : vector<128xf32>
    %1726 = arith.mulf %6, %1648 : vector<128xf32>
    %1727 = arith.addf %1725, %1726 : vector<128xf32>
    %1728 = arith.mulf %8, %1641 : vector<128xf32>
    %1729 = arith.subf %1727, %1728 : vector<128xf32>
    %1730 = arith.mulf %10, %1641 : vector<128xf32>
    %1731 = arith.mulf %4, %1648 : vector<128xf32>
    %1732 = arith.subf %1730, %1731 : vector<128xf32>
    %1733 = arith.mulf %6, %1655 : vector<128xf32>
    %1734 = arith.addf %1732, %1733 : vector<128xf32>
    %1735 = arith.mulf %8, %1634 : vector<128xf32>
    %1736 = arith.addf %1734, %1735 : vector<128xf32>
    %1737 = arith.mulf %10, %1648 : vector<128xf32>
    %1738 = arith.mulf %4, %1641 : vector<128xf32>
    %1739 = arith.addf %1737, %1738 : vector<128xf32>
    %1740 = arith.mulf %6, %1634 : vector<128xf32>
    %1741 = arith.subf %1739, %1740 : vector<128xf32>
    %1742 = arith.mulf %8, %1655 : vector<128xf32>
    %1743 = arith.addf %1741, %1742 : vector<128xf32>
    %1744 = arith.mulf %10, %1655 : vector<128xf32>
    %1745 = arith.mulf %4, %1634 : vector<128xf32>
    %1746 = arith.subf %1744, %1745 : vector<128xf32>
    %1747 = arith.mulf %6, %1641 : vector<128xf32>
    %1748 = arith.subf %1746, %1747 : vector<128xf32>
    %1749 = arith.mulf %8, %1648 : vector<128xf32>
    %1750 = arith.subf %1748, %1749 : vector<128xf32>
    %1751 = arith.mulf %6, %1721 : vector<128xf32>
    %1752 = arith.mulf %8, %1720 : vector<128xf32>
    %1753 = arith.subf %1751, %1752 : vector<128xf32>
    %1754 = arith.mulf %8, %1719 : vector<128xf32>
    %1755 = arith.mulf %4, %1721 : vector<128xf32>
    %1756 = arith.subf %1754, %1755 : vector<128xf32>
    %1757 = arith.mulf %4, %1720 : vector<128xf32>
    %1758 = arith.mulf %6, %1719 : vector<128xf32>
    %1759 = arith.subf %1757, %1758 : vector<128xf32>
    %cst_297 = arith.constant 2.000000e+00 : f32
    %1760 = vector.broadcast %cst_297 : f32 to vector<128xf32>
    %1761 = arith.mulf %1760, %1753 : vector<128xf32>
    %cst_298 = arith.constant 2.000000e+00 : f32
    %1762 = vector.broadcast %cst_298 : f32 to vector<128xf32>
    %1763 = arith.mulf %1762, %1756 : vector<128xf32>
    %cst_299 = arith.constant 2.000000e+00 : f32
    %1764 = vector.broadcast %cst_299 : f32 to vector<128xf32>
    %1765 = arith.mulf %1764, %1759 : vector<128xf32>
    %1766 = arith.mulf %6, %1765 : vector<128xf32>
    %1767 = arith.mulf %8, %1763 : vector<128xf32>
    %1768 = arith.subf %1766, %1767 : vector<128xf32>
    %1769 = arith.mulf %8, %1761 : vector<128xf32>
    %1770 = arith.mulf %4, %1765 : vector<128xf32>
    %1771 = arith.subf %1769, %1770 : vector<128xf32>
    %1772 = arith.mulf %4, %1763 : vector<128xf32>
    %1773 = arith.mulf %6, %1761 : vector<128xf32>
    %1774 = arith.subf %1772, %1773 : vector<128xf32>
    %1775 = arith.mulf %10, %1761 : vector<128xf32>
    %1776 = arith.addf %1719, %1775 : vector<128xf32>
    %1777 = arith.addf %1776, %1768 : vector<128xf32>
    %1778 = arith.mulf %10, %1763 : vector<128xf32>
    %1779 = arith.addf %1720, %1778 : vector<128xf32>
    %1780 = arith.addf %1779, %1771 : vector<128xf32>
    %1781 = arith.mulf %10, %1765 : vector<128xf32>
    %1782 = arith.addf %1721, %1781 : vector<128xf32>
    %1783 = arith.addf %1782, %1774 : vector<128xf32>
    %1784 = arith.mulf %6, %1718 : vector<128xf32>
    %1785 = arith.mulf %8, %1712 : vector<128xf32>
    %1786 = arith.subf %1784, %1785 : vector<128xf32>
    %1787 = arith.mulf %8, %1706 : vector<128xf32>
    %1788 = arith.mulf %4, %1718 : vector<128xf32>
    %1789 = arith.subf %1787, %1788 : vector<128xf32>
    %1790 = arith.mulf %4, %1712 : vector<128xf32>
    %1791 = arith.mulf %6, %1706 : vector<128xf32>
    %1792 = arith.subf %1790, %1791 : vector<128xf32>
    %cst_300 = arith.constant 2.000000e+00 : f32
    %1793 = vector.broadcast %cst_300 : f32 to vector<128xf32>
    %1794 = arith.mulf %1793, %1786 : vector<128xf32>
    %cst_301 = arith.constant 2.000000e+00 : f32
    %1795 = vector.broadcast %cst_301 : f32 to vector<128xf32>
    %1796 = arith.mulf %1795, %1789 : vector<128xf32>
    %cst_302 = arith.constant 2.000000e+00 : f32
    %1797 = vector.broadcast %cst_302 : f32 to vector<128xf32>
    %1798 = arith.mulf %1797, %1792 : vector<128xf32>
    %1799 = arith.mulf %6, %1798 : vector<128xf32>
    %1800 = arith.mulf %8, %1796 : vector<128xf32>
    %1801 = arith.subf %1799, %1800 : vector<128xf32>
    %1802 = arith.mulf %8, %1794 : vector<128xf32>
    %1803 = arith.mulf %4, %1798 : vector<128xf32>
    %1804 = arith.subf %1802, %1803 : vector<128xf32>
    %1805 = arith.mulf %4, %1796 : vector<128xf32>
    %1806 = arith.mulf %6, %1794 : vector<128xf32>
    %1807 = arith.subf %1805, %1806 : vector<128xf32>
    %1808 = arith.mulf %10, %1794 : vector<128xf32>
    %1809 = arith.addf %1706, %1808 : vector<128xf32>
    %1810 = arith.addf %1809, %1801 : vector<128xf32>
    %1811 = arith.mulf %10, %1796 : vector<128xf32>
    %1812 = arith.addf %1712, %1811 : vector<128xf32>
    %1813 = arith.addf %1812, %1804 : vector<128xf32>
    %1814 = arith.mulf %10, %1798 : vector<128xf32>
    %1815 = arith.addf %1718, %1814 : vector<128xf32>
    %1816 = arith.addf %1815, %1807 : vector<128xf32>
    %1817 = arith.index_cast %c5_i32 : i32 to index
    %c0_303 = arith.constant 0 : index
    %c0_304 = arith.constant 0 : index
    %1818 = vector.load %arg4[%1817, %c0_303, %c0_304] : memref<8x10x128xf32, #tpu.memory_space<vmem>>, vector<1x1x128xf32>
    %1819 = vector.shape_cast %1818 : vector<1x1x128xf32> to vector<128xf32>
    %1820 = vector.shape_cast %1729 : vector<128xf32> to vector<1x1x128xf32>
    tpu.vector_store %arg4[%1817, %c0_303, %c0_304], %1820 {strides = array<i32>} : memref<8x10x128xf32, #tpu.memory_space<vmem>>, vector<1x1x128xf32>,
    %1821 = arith.index_cast %c5_i32 : i32 to index
    %c1_305 = arith.constant 1 : index
    %c0_306 = arith.constant 0 : index
    %1822 = vector.load %arg4[%1821, %c1_305, %c0_306] : memref<8x10x128xf32, #tpu.memory_space<vmem>>, vector<1x1x128xf32>
    %1823 = vector.shape_cast %1822 : vector<1x1x128xf32> to vector<128xf32>
    %1824 = vector.shape_cast %1736 : vector<128xf32> to vector<1x1x128xf32>
    tpu.vector_store %arg4[%1821, %c1_305, %c0_306], %1824 {strides = array<i32>} : memref<8x10x128xf32, #tpu.memory_space<vmem>>, vector<1x1x128xf32>,
    %1825 = arith.index_cast %c5_i32 : i32 to index
    %c2_307 = arith.constant 2 : index
    %c0_308 = arith.constant 0 : index
    %1826 = vector.load %arg4[%1825, %c2_307, %c0_308] : memref<8x10x128xf32, #tpu.memory_space<vmem>>, vector<1x1x128xf32>
    %1827 = vector.shape_cast %1826 : vector<1x1x128xf32> to vector<128xf32>
    %1828 = vector.shape_cast %1743 : vector<128xf32> to vector<1x1x128xf32>
    tpu.vector_store %arg4[%1825, %c2_307, %c0_308], %1828 {strides = array<i32>} : memref<8x10x128xf32, #tpu.memory_space<vmem>>, vector<1x1x128xf32>,
    %1829 = arith.index_cast %c5_i32 : i32 to index
    %c3_309 = arith.constant 3 : index
    %c0_310 = arith.constant 0 : index
    %1830 = vector.load %arg4[%1829, %c3_309, %c0_310] : memref<8x10x128xf32, #tpu.memory_space<vmem>>, vector<1x1x128xf32>
    %1831 = vector.shape_cast %1830 : vector<1x1x128xf32> to vector<128xf32>
    %1832 = vector.shape_cast %1750 : vector<128xf32> to vector<1x1x128xf32>
    tpu.vector_store %arg4[%1829, %c3_309, %c0_310], %1832 {strides = array<i32>} : memref<8x10x128xf32, #tpu.memory_space<vmem>>, vector<1x1x128xf32>,
    %1833 = arith.addf %12, %1777 : vector<128xf32>
    %1834 = arith.index_cast %c5_i32 : i32 to index
    %c4_311 = arith.constant 4 : index
    %c0_312 = arith.constant 0 : index
    %1835 = vector.load %arg4[%1834, %c4_311, %c0_312] : memref<8x10x128xf32, #tpu.memory_space<vmem>>, vector<1x1x128xf32>
    %1836 = vector.shape_cast %1835 : vector<1x1x128xf32> to vector<128xf32>
    %1837 = vector.shape_cast %1833 : vector<128xf32> to vector<1x1x128xf32>
    tpu.vector_store %arg4[%1834, %c4_311, %c0_312], %1837 {strides = array<i32>} : memref<8x10x128xf32, #tpu.memory_space<vmem>>, vector<1x1x128xf32>,
    %1838 = arith.addf %14, %1780 : vector<128xf32>
    %1839 = arith.index_cast %c5_i32 : i32 to index
    %c5_313 = arith.constant 5 : index
    %c0_314 = arith.constant 0 : index
    %1840 = vector.load %arg4[%1839, %c5_313, %c0_314] : memref<8x10x128xf32, #tpu.memory_space<vmem>>, vector<1x1x128xf32>
    %1841 = vector.shape_cast %1840 : vector<1x1x128xf32> to vector<128xf32>
    %1842 = vector.shape_cast %1838 : vector<128xf32> to vector<1x1x128xf32>
    tpu.vector_store %arg4[%1839, %c5_313, %c0_314], %1842 {strides = array<i32>} : memref<8x10x128xf32, #tpu.memory_space<vmem>>, vector<1x1x128xf32>,
    %1843 = arith.addf %16, %1783 : vector<128xf32>
    %1844 = arith.index_cast %c5_i32 : i32 to index
    %c6_315 = arith.constant 6 : index
    %c0_316 = arith.constant 0 : index
    %1845 = vector.load %arg4[%1844, %c6_315, %c0_316] : memref<8x10x128xf32, #tpu.memory_space<vmem>>, vector<1x1x128xf32>
    %1846 = vector.shape_cast %1845 : vector<1x1x128xf32> to vector<128xf32>
    %1847 = vector.shape_cast %1843 : vector<128xf32> to vector<1x1x128xf32>
    tpu.vector_store %arg4[%1844, %c6_315, %c0_316], %1847 {strides = array<i32>} : memref<8x10x128xf32, #tpu.memory_space<vmem>>, vector<1x1x128xf32>,
    %1848 = arith.mulf %12, %1722 : vector<128xf32>
    %1849 = arith.addf %18, %1848 : vector<128xf32>
    %1850 = arith.addf %1849, %1810 : vector<128xf32>
    %1851 = arith.index_cast %c5_i32 : i32 to index
    %c7_317 = arith.constant 7 : index
    %c0_318 = arith.constant 0 : index
    %1852 = vector.load %arg4[%1851, %c7_317, %c0_318] : memref<8x10x128xf32, #tpu.memory_space<vmem>>, vector<1x1x128xf32>
    %1853 = vector.shape_cast %1852 : vector<1x1x128xf32> to vector<128xf32>
    %1854 = vector.shape_cast %1850 : vector<128xf32> to vector<1x1x128xf32>
    tpu.vector_store %arg4[%1851, %c7_317, %c0_318], %1854 {strides = array<i32>} : memref<8x10x128xf32, #tpu.memory_space<vmem>>, vector<1x1x128xf32>,
    %1855 = arith.mulf %14, %1722 : vector<128xf32>
    %1856 = arith.addf %20, %1855 : vector<128xf32>
    %1857 = arith.addf %1856, %1813 : vector<128xf32>
    %1858 = arith.index_cast %c5_i32 : i32 to index
    %c8_319 = arith.constant 8 : index
    %c0_320 = arith.constant 0 : index
    %1859 = vector.load %arg4[%1858, %c8_319, %c0_320] : memref<8x10x128xf32, #tpu.memory_space<vmem>>, vector<1x1x128xf32>
    %1860 = vector.shape_cast %1859 : vector<1x1x128xf32> to vector<128xf32>
    %1861 = vector.shape_cast %1857 : vector<128xf32> to vector<1x1x128xf32>
    tpu.vector_store %arg4[%1858, %c8_319, %c0_320], %1861 {strides = array<i32>} : memref<8x10x128xf32, #tpu.memory_space<vmem>>, vector<1x1x128xf32>,
    %1862 = arith.mulf %16, %1722 : vector<128xf32>
    %1863 = arith.addf %22, %1862 : vector<128xf32>
    %1864 = arith.addf %1863, %1816 : vector<128xf32>
    %1865 = arith.index_cast %c5_i32 : i32 to index
    %c9_321 = arith.constant 9 : index
    %c0_322 = arith.constant 0 : index
    %1866 = vector.load %arg4[%1865, %c9_321, %c0_322] : memref<8x10x128xf32, #tpu.memory_space<vmem>>, vector<1x1x128xf32>
    %1867 = vector.shape_cast %1866 : vector<1x1x128xf32> to vector<128xf32>
    %1868 = vector.shape_cast %1864 : vector<128xf32> to vector<1x1x128xf32>
    tpu.vector_store %arg4[%1865, %c9_321, %c0_322], %1868 {strides = array<i32>} : memref<8x10x128xf32, #tpu.memory_space<vmem>>, vector<1x1x128xf32>,
    %c6_i32 = arith.constant 6 : i32
    %1869 = arith.index_cast %c6_i32 : i32 to index
    %c0_323 = arith.constant 0 : index
    %c0_324 = arith.constant 0 : index
    %1870 = vector.load %arg2[%1869, %c0_323, %c0_324] : memref<8x8x128xf32, #tpu.memory_space<vmem>>, vector<1x8x128xf32>
    %1871 = vector.shape_cast %1870 : vector<1x8x128xf32> to vector<8x128xf32>
    %1872 = vector.extract_strided_slice %1871 {offsets = [0, 0], sizes = [1, 128], strides = [1, 1]} : vector<8x128xf32> to vector<1x128xf32>
    %1873 = vector.shape_cast %1872 : vector<1x128xf32> to vector<128xf32>
    %1874 = vector.extract_strided_slice %1871 {offsets = [1, 0], sizes = [1, 128], strides = [1, 1]} : vector<8x128xf32> to vector<1x128xf32>
    %1875 = vector.shape_cast %1874 : vector<1x128xf32> to vector<128xf32>
    %1876 = arith.mulf %1875, %1873 : vector<128xf32>
    %1877 = vector.extract_strided_slice %1871 {offsets = [2, 0], sizes = [1, 128], strides = [1, 1]} : vector<8x128xf32> to vector<1x128xf32>
    %1878 = vector.shape_cast %1877 : vector<1x128xf32> to vector<128xf32>
    %1879 = arith.mulf %1878, %1873 : vector<128xf32>
    %1880 = vector.extract_strided_slice %1871 {offsets = [3, 0], sizes = [1, 128], strides = [1, 1]} : vector<8x128xf32> to vector<1x128xf32>
    %1881 = vector.shape_cast %1880 : vector<1x128xf32> to vector<128xf32>
    %1882 = arith.mulf %1881, %1873 : vector<128xf32>
    %1883 = arith.mulf %1876, %1876 : vector<128xf32>
    %1884 = arith.mulf %1879, %1879 : vector<128xf32>
    %1885 = arith.addf %1883, %1884 : vector<128xf32>
    %1886 = arith.mulf %1882, %1882 : vector<128xf32>
    %1887 = arith.addf %1885, %1886 : vector<128xf32>
    %1888 = math.sqrt %1887 : vector<128xf32>
    %1889 = arith.mulf %1887, %1887 : vector<128xf32>
    %cst_325 = arith.constant 9.99999997E-7 : f32
    %1890 = vector.broadcast %cst_325 : f32 to vector<128xf32>
    %1891 = arith.cmpf ogt, %1888, %1890 : vector<128xf32>
    %cst_326 = arith.constant 1.000000e+00 : f32
    %1892 = vector.broadcast %cst_326 : f32 to vector<128xf32>
    %1893 = arith.select %1891, %1888, %1892 : vector<128xi1>, vector<128xf32>
    %cst_327 = arith.constant 9.99999997E-7 : f32
    %1894 = vector.broadcast %cst_327 : f32 to vector<128xf32>
    %1895 = arith.cmpf ogt, %1888, %1894 : vector<128xf32>
    %cst_328 = arith.constant 5.000000e-01 : f32
    %1896 = vector.broadcast %cst_328 : f32 to vector<128xf32>
    %1897 = arith.mulf %1896, %1888 : vector<128xf32>
    %1898 = math.sin %1897 : vector<128xf32>
    %1899 = arith.divf %1898, %1893 : vector<128xf32>
    %cst_329 = arith.constant 4.800000e+01 : f32
    %1900 = vector.broadcast %cst_329 : f32 to vector<128xf32>
    %1901 = arith.divf %1887, %1900 : vector<128xf32>
    %cst_330 = arith.constant 5.000000e-01 : f32
    %1902 = vector.broadcast %cst_330 : f32 to vector<128xf32>
    %1903 = arith.subf %1902, %1901 : vector<128xf32>
    %cst_331 = arith.constant 3.840000e+03 : f32
    %1904 = vector.broadcast %cst_331 : f32 to vector<128xf32>
    %1905 = arith.divf %1889, %1904 : vector<128xf32>
    %1906 = arith.addf %1903, %1905 : vector<128xf32>
    %1907 = arith.select %1895, %1899, %1906 : vector<128xi1>, vector<128xf32>
    %cst_332 = arith.constant 9.99999997E-7 : f32
    %1908 = vector.broadcast %cst_332 : f32 to vector<128xf32>
    %1909 = arith.cmpf ogt, %1888, %1908 : vector<128xf32>
    %cst_333 = arith.constant 5.000000e-01 : f32
    %1910 = vector.broadcast %cst_333 : f32 to vector<128xf32>
    %1911 = arith.mulf %1910, %1888 : vector<128xf32>
    %1912 = math.cos %1911 : vector<128xf32>
    %cst_334 = arith.constant 8.000000e+00 : f32
    %1913 = vector.broadcast %cst_334 : f32 to vector<128xf32>
    %1914 = arith.divf %1887, %1913 : vector<128xf32>
    %cst_335 = arith.constant 1.000000e+00 : f32
    %1915 = vector.broadcast %cst_335 : f32 to vector<128xf32>
    %1916 = arith.subf %1915, %1914 : vector<128xf32>
    %cst_336 = arith.constant 3.840000e+02 : f32
    %1917 = vector.broadcast %cst_336 : f32 to vector<128xf32>
    %1918 = arith.divf %1889, %1917 : vector<128xf32>
    %1919 = arith.addf %1916, %1918 : vector<128xf32>
    %1920 = arith.select %1909, %1912, %1919 : vector<128xi1>, vector<128xf32>
    %1921 = arith.mulf %1876, %1907 : vector<128xf32>
    %1922 = arith.mulf %1879, %1907 : vector<128xf32>
    %1923 = arith.mulf %1882, %1907 : vector<128xf32>
    %1924 = arith.mulf %1655, %1921 : vector<128xf32>
    %1925 = arith.mulf %1634, %1920 : vector<128xf32>
    %1926 = arith.addf %1924, %1925 : vector<128xf32>
    %1927 = arith.mulf %1641, %1923 : vector<128xf32>
    %1928 = arith.addf %1926, %1927 : vector<128xf32>
    %1929 = arith.mulf %1648, %1922 : vector<128xf32>
    %1930 = arith.subf %1928, %1929 : vector<128xf32>
    %1931 = arith.mulf %1655, %1922 : vector<128xf32>
    %1932 = arith.mulf %1634, %1923 : vector<128xf32>
    %1933 = arith.subf %1931, %1932 : vector<128xf32>
    %1934 = arith.mulf %1641, %1920 : vector<128xf32>
    %1935 = arith.addf %1933, %1934 : vector<128xf32>
    %1936 = arith.mulf %1648, %1921 : vector<128xf32>
    %1937 = arith.addf %1935, %1936 : vector<128xf32>
    %1938 = arith.mulf %1655, %1923 : vector<128xf32>
    %1939 = arith.mulf %1634, %1922 : vector<128xf32>
    %1940 = arith.addf %1938, %1939 : vector<128xf32>
    %1941 = arith.mulf %1641, %1921 : vector<128xf32>
    %1942 = arith.subf %1940, %1941 : vector<128xf32>
    %1943 = arith.mulf %1648, %1920 : vector<128xf32>
    %1944 = arith.addf %1942, %1943 : vector<128xf32>
    %1945 = arith.mulf %1655, %1920 : vector<128xf32>
    %1946 = arith.mulf %1634, %1921 : vector<128xf32>
    %1947 = arith.subf %1945, %1946 : vector<128xf32>
    %1948 = arith.mulf %1641, %1922 : vector<128xf32>
    %1949 = arith.subf %1947, %1948 : vector<128xf32>
    %1950 = arith.mulf %1648, %1923 : vector<128xf32>
    %1951 = arith.subf %1949, %1950 : vector<128xf32>
    %1952 = vector.extract_strided_slice %1871 {offsets = [4, 0], sizes = [1, 128], strides = [1, 1]} : vector<8x128xf32> to vector<1x128xf32>
    %1953 = vector.shape_cast %1952 : vector<1x128xf32> to vector<128xf32>
    %1954 = vector.extract_strided_slice %1871 {offsets = [5, 0], sizes = [1, 128], strides = [1, 1]} : vector<8x128xf32> to vector<1x128xf32>
    %1955 = vector.shape_cast %1954 : vector<1x128xf32> to vector<128xf32>
    %1956 = vector.extract_strided_slice %1871 {offsets = [6, 0], sizes = [1, 128], strides = [1, 1]} : vector<8x128xf32> to vector<1x128xf32>
    %1957 = vector.shape_cast %1956 : vector<1x128xf32> to vector<128xf32>
    %1958 = arith.mulf %1937, %1957 : vector<128xf32>
    %1959 = arith.mulf %1944, %1955 : vector<128xf32>
    %1960 = arith.subf %1958, %1959 : vector<128xf32>
    %1961 = arith.mulf %1944, %1953 : vector<128xf32>
    %1962 = arith.mulf %1930, %1957 : vector<128xf32>
    %1963 = arith.subf %1961, %1962 : vector<128xf32>
    %1964 = arith.mulf %1930, %1955 : vector<128xf32>
    %1965 = arith.mulf %1937, %1953 : vector<128xf32>
    %1966 = arith.subf %1964, %1965 : vector<128xf32>
    %cst_337 = arith.constant 2.000000e+00 : f32
    %1967 = vector.broadcast %cst_337 : f32 to vector<128xf32>
    %1968 = arith.mulf %1967, %1960 : vector<128xf32>
    %cst_338 = arith.constant 2.000000e+00 : f32
    %1969 = vector.broadcast %cst_338 : f32 to vector<128xf32>
    %1970 = arith.mulf %1969, %1963 : vector<128xf32>
    %cst_339 = arith.constant 2.000000e+00 : f32
    %1971 = vector.broadcast %cst_339 : f32 to vector<128xf32>
    %1972 = arith.mulf %1971, %1966 : vector<128xf32>
    %1973 = arith.mulf %1937, %1972 : vector<128xf32>
    %1974 = arith.mulf %1944, %1970 : vector<128xf32>
    %1975 = arith.subf %1973, %1974 : vector<128xf32>
    %1976 = arith.mulf %1944, %1968 : vector<128xf32>
    %1977 = arith.mulf %1930, %1972 : vector<128xf32>
    %1978 = arith.subf %1976, %1977 : vector<128xf32>
    %1979 = arith.mulf %1930, %1970 : vector<128xf32>
    %1980 = arith.mulf %1937, %1968 : vector<128xf32>
    %1981 = arith.subf %1979, %1980 : vector<128xf32>
    %1982 = arith.mulf %1951, %1968 : vector<128xf32>
    %1983 = arith.addf %1953, %1982 : vector<128xf32>
    %1984 = arith.addf %1983, %1975 : vector<128xf32>
    %1985 = arith.mulf %1951, %1970 : vector<128xf32>
    %1986 = arith.addf %1955, %1985 : vector<128xf32>
    %1987 = arith.addf %1986, %1978 : vector<128xf32>
    %1988 = arith.mulf %1951, %1972 : vector<128xf32>
    %1989 = arith.addf %1957, %1988 : vector<128xf32>
    %1990 = arith.addf %1989, %1981 : vector<128xf32>
    %1991 = arith.subf %1984, %62 : vector<128xf32>
    %1992 = arith.mulf %1991, %1873 : vector<128xf32>
    %1993 = arith.subf %1987, %66 : vector<128xf32>
    %1994 = arith.mulf %1993, %1873 : vector<128xf32>
    %1995 = arith.subf %1990, %70 : vector<128xf32>
    %1996 = arith.mulf %1995, %1873 : vector<128xf32>
    %1997 = arith.mulf %1719, %1873 : vector<128xf32>
    %1998 = arith.addf %1706, %1997 : vector<128xf32>
    %cst_340 = arith.constant 5.000000e-01 : f32
    %1999 = vector.broadcast %cst_340 : f32 to vector<128xf32>
    %2000 = arith.mulf %1999, %1992 : vector<128xf32>
    %2001 = arith.mulf %2000, %1873 : vector<128xf32>
    %2002 = arith.addf %1998, %2001 : vector<128xf32>
    %2003 = arith.mulf %1720, %1873 : vector<128xf32>
    %2004 = arith.addf %1712, %2003 : vector<128xf32>
    %cst_341 = arith.constant 5.000000e-01 : f32
    %2005 = vector.broadcast %cst_341 : f32 to vector<128xf32>
    %2006 = arith.mulf %2005, %1994 : vector<128xf32>
    %2007 = arith.mulf %2006, %1873 : vector<128xf32>
    %2008 = arith.addf %2004, %2007 : vector<128xf32>
    %2009 = arith.mulf %1721, %1873 : vector<128xf32>
    %2010 = arith.addf %1718, %2009 : vector<128xf32>
    %cst_342 = arith.constant 5.000000e-01 : f32
    %2011 = vector.broadcast %cst_342 : f32 to vector<128xf32>
    %2012 = arith.mulf %2011, %1996 : vector<128xf32>
    %2013 = arith.mulf %2012, %1873 : vector<128xf32>
    %2014 = arith.addf %2010, %2013 : vector<128xf32>
    %2015 = arith.addf %1719, %1992 : vector<128xf32>
    %2016 = arith.addf %1720, %1994 : vector<128xf32>
    %2017 = arith.addf %1721, %1996 : vector<128xf32>
    %2018 = arith.addf %1722, %1873 : vector<128xf32>
    %2019 = arith.mulf %10, %1930 : vector<128xf32>
    %2020 = arith.mulf %4, %1951 : vector<128xf32>
    %2021 = arith.addf %2019, %2020 : vector<128xf32>
    %2022 = arith.mulf %6, %1944 : vector<128xf32>
    %2023 = arith.addf %2021, %2022 : vector<128xf32>
    %2024 = arith.mulf %8, %1937 : vector<128xf32>
    %2025 = arith.subf %2023, %2024 : vector<128xf32>
    %2026 = arith.mulf %10, %1937 : vector<128xf32>
    %2027 = arith.mulf %4, %1944 : vector<128xf32>
    %2028 = arith.subf %2026, %2027 : vector<128xf32>
    %2029 = arith.mulf %6, %1951 : vector<128xf32>
    %2030 = arith.addf %2028, %2029 : vector<128xf32>
    %2031 = arith.mulf %8, %1930 : vector<128xf32>
    %2032 = arith.addf %2030, %2031 : vector<128xf32>
    %2033 = arith.mulf %10, %1944 : vector<128xf32>
    %2034 = arith.mulf %4, %1937 : vector<128xf32>
    %2035 = arith.addf %2033, %2034 : vector<128xf32>
    %2036 = arith.mulf %6, %1930 : vector<128xf32>
    %2037 = arith.subf %2035, %2036 : vector<128xf32>
    %2038 = arith.mulf %8, %1951 : vector<128xf32>
    %2039 = arith.addf %2037, %2038 : vector<128xf32>
    %2040 = arith.mulf %10, %1951 : vector<128xf32>
    %2041 = arith.mulf %4, %1930 : vector<128xf32>
    %2042 = arith.subf %2040, %2041 : vector<128xf32>
    %2043 = arith.mulf %6, %1937 : vector<128xf32>
    %2044 = arith.subf %2042, %2043 : vector<128xf32>
    %2045 = arith.mulf %8, %1944 : vector<128xf32>
    %2046 = arith.subf %2044, %2045 : vector<128xf32>
    %2047 = arith.mulf %6, %2017 : vector<128xf32>
    %2048 = arith.mulf %8, %2016 : vector<128xf32>
    %2049 = arith.subf %2047, %2048 : vector<128xf32>
    %2050 = arith.mulf %8, %2015 : vector<128xf32>
    %2051 = arith.mulf %4, %2017 : vector<128xf32>
    %2052 = arith.subf %2050, %2051 : vector<128xf32>
    %2053 = arith.mulf %4, %2016 : vector<128xf32>
    %2054 = arith.mulf %6, %2015 : vector<128xf32>
    %2055 = arith.subf %2053, %2054 : vector<128xf32>
    %cst_343 = arith.constant 2.000000e+00 : f32
    %2056 = vector.broadcast %cst_343 : f32 to vector<128xf32>
    %2057 = arith.mulf %2056, %2049 : vector<128xf32>
    %cst_344 = arith.constant 2.000000e+00 : f32
    %2058 = vector.broadcast %cst_344 : f32 to vector<128xf32>
    %2059 = arith.mulf %2058, %2052 : vector<128xf32>
    %cst_345 = arith.constant 2.000000e+00 : f32
    %2060 = vector.broadcast %cst_345 : f32 to vector<128xf32>
    %2061 = arith.mulf %2060, %2055 : vector<128xf32>
    %2062 = arith.mulf %6, %2061 : vector<128xf32>
    %2063 = arith.mulf %8, %2059 : vector<128xf32>
    %2064 = arith.subf %2062, %2063 : vector<128xf32>
    %2065 = arith.mulf %8, %2057 : vector<128xf32>
    %2066 = arith.mulf %4, %2061 : vector<128xf32>
    %2067 = arith.subf %2065, %2066 : vector<128xf32>
    %2068 = arith.mulf %4, %2059 : vector<128xf32>
    %2069 = arith.mulf %6, %2057 : vector<128xf32>
    %2070 = arith.subf %2068, %2069 : vector<128xf32>
    %2071 = arith.mulf %10, %2057 : vector<128xf32>
    %2072 = arith.addf %2015, %2071 : vector<128xf32>
    %2073 = arith.addf %2072, %2064 : vector<128xf32>
    %2074 = arith.mulf %10, %2059 : vector<128xf32>
    %2075 = arith.addf %2016, %2074 : vector<128xf32>
    %2076 = arith.addf %2075, %2067 : vector<128xf32>
    %2077 = arith.mulf %10, %2061 : vector<128xf32>
    %2078 = arith.addf %2017, %2077 : vector<128xf32>
    %2079 = arith.addf %2078, %2070 : vector<128xf32>
    %2080 = arith.mulf %6, %2014 : vector<128xf32>
    %2081 = arith.mulf %8, %2008 : vector<128xf32>
    %2082 = arith.subf %2080, %2081 : vector<128xf32>
    %2083 = arith.mulf %8, %2002 : vector<128xf32>
    %2084 = arith.mulf %4, %2014 : vector<128xf32>
    %2085 = arith.subf %2083, %2084 : vector<128xf32>
    %2086 = arith.mulf %4, %2008 : vector<128xf32>
    %2087 = arith.mulf %6, %2002 : vector<128xf32>
    %2088 = arith.subf %2086, %2087 : vector<128xf32>
    %cst_346 = arith.constant 2.000000e+00 : f32
    %2089 = vector.broadcast %cst_346 : f32 to vector<128xf32>
    %2090 = arith.mulf %2089, %2082 : vector<128xf32>
    %cst_347 = arith.constant 2.000000e+00 : f32
    %2091 = vector.broadcast %cst_347 : f32 to vector<128xf32>
    %2092 = arith.mulf %2091, %2085 : vector<128xf32>
    %cst_348 = arith.constant 2.000000e+00 : f32
    %2093 = vector.broadcast %cst_348 : f32 to vector<128xf32>
    %2094 = arith.mulf %2093, %2088 : vector<128xf32>
    %2095 = arith.mulf %6, %2094 : vector<128xf32>
    %2096 = arith.mulf %8, %2092 : vector<128xf32>
    %2097 = arith.subf %2095, %2096 : vector<128xf32>
    %2098 = arith.mulf %8, %2090 : vector<128xf32>
    %2099 = arith.mulf %4, %2094 : vector<128xf32>
    %2100 = arith.subf %2098, %2099 : vector<128xf32>
    %2101 = arith.mulf %4, %2092 : vector<128xf32>
    %2102 = arith.mulf %6, %2090 : vector<128xf32>
    %2103 = arith.subf %2101, %2102 : vector<128xf32>
    %2104 = arith.mulf %10, %2090 : vector<128xf32>
    %2105 = arith.addf %2002, %2104 : vector<128xf32>
    %2106 = arith.addf %2105, %2097 : vector<128xf32>
    %2107 = arith.mulf %10, %2092 : vector<128xf32>
    %2108 = arith.addf %2008, %2107 : vector<128xf32>
    %2109 = arith.addf %2108, %2100 : vector<128xf32>
    %2110 = arith.mulf %10, %2094 : vector<128xf32>
    %2111 = arith.addf %2014, %2110 : vector<128xf32>
    %2112 = arith.addf %2111, %2103 : vector<128xf32>
    %2113 = arith.index_cast %c6_i32 : i32 to index
    %c0_349 = arith.constant 0 : index
    %c0_350 = arith.constant 0 : index
    %2114 = vector.load %arg4[%2113, %c0_349, %c0_350] : memref<8x10x128xf32, #tpu.memory_space<vmem>>, vector<1x1x128xf32>
    %2115 = vector.shape_cast %2114 : vector<1x1x128xf32> to vector<128xf32>
    %2116 = vector.shape_cast %2025 : vector<128xf32> to vector<1x1x128xf32>
    tpu.vector_store %arg4[%2113, %c0_349, %c0_350], %2116 {strides = array<i32>} : memref<8x10x128xf32, #tpu.memory_space<vmem>>, vector<1x1x128xf32>,
    %2117 = arith.index_cast %c6_i32 : i32 to index
    %c1_351 = arith.constant 1 : index
    %c0_352 = arith.constant 0 : index
    %2118 = vector.load %arg4[%2117, %c1_351, %c0_352] : memref<8x10x128xf32, #tpu.memory_space<vmem>>, vector<1x1x128xf32>
    %2119 = vector.shape_cast %2118 : vector<1x1x128xf32> to vector<128xf32>
    %2120 = vector.shape_cast %2032 : vector<128xf32> to vector<1x1x128xf32>
    tpu.vector_store %arg4[%2117, %c1_351, %c0_352], %2120 {strides = array<i32>} : memref<8x10x128xf32, #tpu.memory_space<vmem>>, vector<1x1x128xf32>,
    %2121 = arith.index_cast %c6_i32 : i32 to index
    %c2_353 = arith.constant 2 : index
    %c0_354 = arith.constant 0 : index
    %2122 = vector.load %arg4[%2121, %c2_353, %c0_354] : memref<8x10x128xf32, #tpu.memory_space<vmem>>, vector<1x1x128xf32>
    %2123 = vector.shape_cast %2122 : vector<1x1x128xf32> to vector<128xf32>
    %2124 = vector.shape_cast %2039 : vector<128xf32> to vector<1x1x128xf32>
    tpu.vector_store %arg4[%2121, %c2_353, %c0_354], %2124 {strides = array<i32>} : memref<8x10x128xf32, #tpu.memory_space<vmem>>, vector<1x1x128xf32>,
    %2125 = arith.index_cast %c6_i32 : i32 to index
    %c3_355 = arith.constant 3 : index
    %c0_356 = arith.constant 0 : index
    %2126 = vector.load %arg4[%2125, %c3_355, %c0_356] : memref<8x10x128xf32, #tpu.memory_space<vmem>>, vector<1x1x128xf32>
    %2127 = vector.shape_cast %2126 : vector<1x1x128xf32> to vector<128xf32>
    %2128 = vector.shape_cast %2046 : vector<128xf32> to vector<1x1x128xf32>
    tpu.vector_store %arg4[%2125, %c3_355, %c0_356], %2128 {strides = array<i32>} : memref<8x10x128xf32, #tpu.memory_space<vmem>>, vector<1x1x128xf32>,
    %2129 = arith.addf %12, %2073 : vector<128xf32>
    %2130 = arith.index_cast %c6_i32 : i32 to index
    %c4_357 = arith.constant 4 : index
    %c0_358 = arith.constant 0 : index
    %2131 = vector.load %arg4[%2130, %c4_357, %c0_358] : memref<8x10x128xf32, #tpu.memory_space<vmem>>, vector<1x1x128xf32>
    %2132 = vector.shape_cast %2131 : vector<1x1x128xf32> to vector<128xf32>
    %2133 = vector.shape_cast %2129 : vector<128xf32> to vector<1x1x128xf32>
    tpu.vector_store %arg4[%2130, %c4_357, %c0_358], %2133 {strides = array<i32>} : memref<8x10x128xf32, #tpu.memory_space<vmem>>, vector<1x1x128xf32>,
    %2134 = arith.addf %14, %2076 : vector<128xf32>
    %2135 = arith.index_cast %c6_i32 : i32 to index
    %c5_359 = arith.constant 5 : index
    %c0_360 = arith.constant 0 : index
    %2136 = vector.load %arg4[%2135, %c5_359, %c0_360] : memref<8x10x128xf32, #tpu.memory_space<vmem>>, vector<1x1x128xf32>
    %2137 = vector.shape_cast %2136 : vector<1x1x128xf32> to vector<128xf32>
    %2138 = vector.shape_cast %2134 : vector<128xf32> to vector<1x1x128xf32>
    tpu.vector_store %arg4[%2135, %c5_359, %c0_360], %2138 {strides = array<i32>} : memref<8x10x128xf32, #tpu.memory_space<vmem>>, vector<1x1x128xf32>,
    %2139 = arith.addf %16, %2079 : vector<128xf32>
    %2140 = arith.index_cast %c6_i32 : i32 to index
    %c6_361 = arith.constant 6 : index
    %c0_362 = arith.constant 0 : index
    %2141 = vector.load %arg4[%2140, %c6_361, %c0_362] : memref<8x10x128xf32, #tpu.memory_space<vmem>>, vector<1x1x128xf32>
    %2142 = vector.shape_cast %2141 : vector<1x1x128xf32> to vector<128xf32>
    %2143 = vector.shape_cast %2139 : vector<128xf32> to vector<1x1x128xf32>
    tpu.vector_store %arg4[%2140, %c6_361, %c0_362], %2143 {strides = array<i32>} : memref<8x10x128xf32, #tpu.memory_space<vmem>>, vector<1x1x128xf32>,
    %2144 = arith.mulf %12, %2018 : vector<128xf32>
    %2145 = arith.addf %18, %2144 : vector<128xf32>
    %2146 = arith.addf %2145, %2106 : vector<128xf32>
    %2147 = arith.index_cast %c6_i32 : i32 to index
    %c7_363 = arith.constant 7 : index
    %c0_364 = arith.constant 0 : index
    %2148 = vector.load %arg4[%2147, %c7_363, %c0_364] : memref<8x10x128xf32, #tpu.memory_space<vmem>>, vector<1x1x128xf32>
    %2149 = vector.shape_cast %2148 : vector<1x1x128xf32> to vector<128xf32>
    %2150 = vector.shape_cast %2146 : vector<128xf32> to vector<1x1x128xf32>
    tpu.vector_store %arg4[%2147, %c7_363, %c0_364], %2150 {strides = array<i32>} : memref<8x10x128xf32, #tpu.memory_space<vmem>>, vector<1x1x128xf32>,
    %2151 = arith.mulf %14, %2018 : vector<128xf32>
    %2152 = arith.addf %20, %2151 : vector<128xf32>
    %2153 = arith.addf %2152, %2109 : vector<128xf32>
    %2154 = arith.index_cast %c6_i32 : i32 to index
    %c8_365 = arith.constant 8 : index
    %c0_366 = arith.constant 0 : index
    %2155 = vector.load %arg4[%2154, %c8_365, %c0_366] : memref<8x10x128xf32, #tpu.memory_space<vmem>>, vector<1x1x128xf32>
    %2156 = vector.shape_cast %2155 : vector<1x1x128xf32> to vector<128xf32>
    %2157 = vector.shape_cast %2153 : vector<128xf32> to vector<1x1x128xf32>
    tpu.vector_store %arg4[%2154, %c8_365, %c0_366], %2157 {strides = array<i32>} : memref<8x10x128xf32, #tpu.memory_space<vmem>>, vector<1x1x128xf32>,
    %2158 = arith.mulf %16, %2018 : vector<128xf32>
    %2159 = arith.addf %22, %2158 : vector<128xf32>
    %2160 = arith.addf %2159, %2112 : vector<128xf32>
    %2161 = arith.index_cast %c6_i32 : i32 to index
    %c9_367 = arith.constant 9 : index
    %c0_368 = arith.constant 0 : index
    %2162 = vector.load %arg4[%2161, %c9_367, %c0_368] : memref<8x10x128xf32, #tpu.memory_space<vmem>>, vector<1x1x128xf32>
    %2163 = vector.shape_cast %2162 : vector<1x1x128xf32> to vector<128xf32>
    %2164 = vector.shape_cast %2160 : vector<128xf32> to vector<1x1x128xf32>
    tpu.vector_store %arg4[%2161, %c9_367, %c0_368], %2164 {strides = array<i32>} : memref<8x10x128xf32, #tpu.memory_space<vmem>>, vector<1x1x128xf32>,
    %c7_i32 = arith.constant 7 : i32
    %2165 = arith.index_cast %c7_i32 : i32 to index
    %c0_369 = arith.constant 0 : index
    %c0_370 = arith.constant 0 : index
    %2166 = vector.load %arg2[%2165, %c0_369, %c0_370] : memref<8x8x128xf32, #tpu.memory_space<vmem>>, vector<1x8x128xf32>
    %2167 = vector.shape_cast %2166 : vector<1x8x128xf32> to vector<8x128xf32>
    %2168 = vector.extract_strided_slice %2167 {offsets = [0, 0], sizes = [1, 128], strides = [1, 1]} : vector<8x128xf32> to vector<1x128xf32>
    %2169 = vector.shape_cast %2168 : vector<1x128xf32> to vector<128xf32>
    %2170 = vector.extract_strided_slice %2167 {offsets = [1, 0], sizes = [1, 128], strides = [1, 1]} : vector<8x128xf32> to vector<1x128xf32>
    %2171 = vector.shape_cast %2170 : vector<1x128xf32> to vector<128xf32>
    %2172 = arith.mulf %2171, %2169 : vector<128xf32>
    %2173 = vector.extract_strided_slice %2167 {offsets = [2, 0], sizes = [1, 128], strides = [1, 1]} : vector<8x128xf32> to vector<1x128xf32>
    %2174 = vector.shape_cast %2173 : vector<1x128xf32> to vector<128xf32>
    %2175 = arith.mulf %2174, %2169 : vector<128xf32>
    %2176 = vector.extract_strided_slice %2167 {offsets = [3, 0], sizes = [1, 128], strides = [1, 1]} : vector<8x128xf32> to vector<1x128xf32>
    %2177 = vector.shape_cast %2176 : vector<1x128xf32> to vector<128xf32>
    %2178 = arith.mulf %2177, %2169 : vector<128xf32>
    %2179 = arith.mulf %2172, %2172 : vector<128xf32>
    %2180 = arith.mulf %2175, %2175 : vector<128xf32>
    %2181 = arith.addf %2179, %2180 : vector<128xf32>
    %2182 = arith.mulf %2178, %2178 : vector<128xf32>
    %2183 = arith.addf %2181, %2182 : vector<128xf32>
    %2184 = math.sqrt %2183 : vector<128xf32>
    %2185 = arith.mulf %2183, %2183 : vector<128xf32>
    %cst_371 = arith.constant 9.99999997E-7 : f32
    %2186 = vector.broadcast %cst_371 : f32 to vector<128xf32>
    %2187 = arith.cmpf ogt, %2184, %2186 : vector<128xf32>
    %cst_372 = arith.constant 1.000000e+00 : f32
    %2188 = vector.broadcast %cst_372 : f32 to vector<128xf32>
    %2189 = arith.select %2187, %2184, %2188 : vector<128xi1>, vector<128xf32>
    %cst_373 = arith.constant 9.99999997E-7 : f32
    %2190 = vector.broadcast %cst_373 : f32 to vector<128xf32>
    %2191 = arith.cmpf ogt, %2184, %2190 : vector<128xf32>
    %cst_374 = arith.constant 5.000000e-01 : f32
    %2192 = vector.broadcast %cst_374 : f32 to vector<128xf32>
    %2193 = arith.mulf %2192, %2184 : vector<128xf32>
    %2194 = math.sin %2193 : vector<128xf32>
    %2195 = arith.divf %2194, %2189 : vector<128xf32>
    %cst_375 = arith.constant 4.800000e+01 : f32
    %2196 = vector.broadcast %cst_375 : f32 to vector<128xf32>
    %2197 = arith.divf %2183, %2196 : vector<128xf32>
    %cst_376 = arith.constant 5.000000e-01 : f32
    %2198 = vector.broadcast %cst_376 : f32 to vector<128xf32>
    %2199 = arith.subf %2198, %2197 : vector<128xf32>
    %cst_377 = arith.constant 3.840000e+03 : f32
    %2200 = vector.broadcast %cst_377 : f32 to vector<128xf32>
    %2201 = arith.divf %2185, %2200 : vector<128xf32>
    %2202 = arith.addf %2199, %2201 : vector<128xf32>
    %2203 = arith.select %2191, %2195, %2202 : vector<128xi1>, vector<128xf32>
    %cst_378 = arith.constant 9.99999997E-7 : f32
    %2204 = vector.broadcast %cst_378 : f32 to vector<128xf32>
    %2205 = arith.cmpf ogt, %2184, %2204 : vector<128xf32>
    %cst_379 = arith.constant 5.000000e-01 : f32
    %2206 = vector.broadcast %cst_379 : f32 to vector<128xf32>
    %2207 = arith.mulf %2206, %2184 : vector<128xf32>
    %2208 = math.cos %2207 : vector<128xf32>
    %cst_380 = arith.constant 8.000000e+00 : f32
    %2209 = vector.broadcast %cst_380 : f32 to vector<128xf32>
    %2210 = arith.divf %2183, %2209 : vector<128xf32>
    %cst_381 = arith.constant 1.000000e+00 : f32
    %2211 = vector.broadcast %cst_381 : f32 to vector<128xf32>
    %2212 = arith.subf %2211, %2210 : vector<128xf32>
    %cst_382 = arith.constant 3.840000e+02 : f32
    %2213 = vector.broadcast %cst_382 : f32 to vector<128xf32>
    %2214 = arith.divf %2185, %2213 : vector<128xf32>
    %2215 = arith.addf %2212, %2214 : vector<128xf32>
    %2216 = arith.select %2205, %2208, %2215 : vector<128xi1>, vector<128xf32>
    %2217 = arith.mulf %2172, %2203 : vector<128xf32>
    %2218 = arith.mulf %2175, %2203 : vector<128xf32>
    %2219 = arith.mulf %2178, %2203 : vector<128xf32>
    %2220 = arith.mulf %1951, %2217 : vector<128xf32>
    %2221 = arith.mulf %1930, %2216 : vector<128xf32>
    %2222 = arith.addf %2220, %2221 : vector<128xf32>
    %2223 = arith.mulf %1937, %2219 : vector<128xf32>
    %2224 = arith.addf %2222, %2223 : vector<128xf32>
    %2225 = arith.mulf %1944, %2218 : vector<128xf32>
    %2226 = arith.subf %2224, %2225 : vector<128xf32>
    %2227 = arith.mulf %1951, %2218 : vector<128xf32>
    %2228 = arith.mulf %1930, %2219 : vector<128xf32>
    %2229 = arith.subf %2227, %2228 : vector<128xf32>
    %2230 = arith.mulf %1937, %2216 : vector<128xf32>
    %2231 = arith.addf %2229, %2230 : vector<128xf32>
    %2232 = arith.mulf %1944, %2217 : vector<128xf32>
    %2233 = arith.addf %2231, %2232 : vector<128xf32>
    %2234 = arith.mulf %1951, %2219 : vector<128xf32>
    %2235 = arith.mulf %1930, %2218 : vector<128xf32>
    %2236 = arith.addf %2234, %2235 : vector<128xf32>
    %2237 = arith.mulf %1937, %2217 : vector<128xf32>
    %2238 = arith.subf %2236, %2237 : vector<128xf32>
    %2239 = arith.mulf %1944, %2216 : vector<128xf32>
    %2240 = arith.addf %2238, %2239 : vector<128xf32>
    %2241 = arith.mulf %1951, %2216 : vector<128xf32>
    %2242 = arith.mulf %1930, %2217 : vector<128xf32>
    %2243 = arith.subf %2241, %2242 : vector<128xf32>
    %2244 = arith.mulf %1937, %2218 : vector<128xf32>
    %2245 = arith.subf %2243, %2244 : vector<128xf32>
    %2246 = arith.mulf %1944, %2219 : vector<128xf32>
    %2247 = arith.subf %2245, %2246 : vector<128xf32>
    %2248 = vector.extract_strided_slice %2167 {offsets = [4, 0], sizes = [1, 128], strides = [1, 1]} : vector<8x128xf32> to vector<1x128xf32>
    %2249 = vector.shape_cast %2248 : vector<1x128xf32> to vector<128xf32>
    %2250 = vector.extract_strided_slice %2167 {offsets = [5, 0], sizes = [1, 128], strides = [1, 1]} : vector<8x128xf32> to vector<1x128xf32>
    %2251 = vector.shape_cast %2250 : vector<1x128xf32> to vector<128xf32>
    %2252 = vector.extract_strided_slice %2167 {offsets = [6, 0], sizes = [1, 128], strides = [1, 1]} : vector<8x128xf32> to vector<1x128xf32>
    %2253 = vector.shape_cast %2252 : vector<1x128xf32> to vector<128xf32>
    %2254 = arith.mulf %2233, %2253 : vector<128xf32>
    %2255 = arith.mulf %2240, %2251 : vector<128xf32>
    %2256 = arith.subf %2254, %2255 : vector<128xf32>
    %2257 = arith.mulf %2240, %2249 : vector<128xf32>
    %2258 = arith.mulf %2226, %2253 : vector<128xf32>
    %2259 = arith.subf %2257, %2258 : vector<128xf32>
    %2260 = arith.mulf %2226, %2251 : vector<128xf32>
    %2261 = arith.mulf %2233, %2249 : vector<128xf32>
    %2262 = arith.subf %2260, %2261 : vector<128xf32>
    %cst_383 = arith.constant 2.000000e+00 : f32
    %2263 = vector.broadcast %cst_383 : f32 to vector<128xf32>
    %2264 = arith.mulf %2263, %2256 : vector<128xf32>
    %cst_384 = arith.constant 2.000000e+00 : f32
    %2265 = vector.broadcast %cst_384 : f32 to vector<128xf32>
    %2266 = arith.mulf %2265, %2259 : vector<128xf32>
    %cst_385 = arith.constant 2.000000e+00 : f32
    %2267 = vector.broadcast %cst_385 : f32 to vector<128xf32>
    %2268 = arith.mulf %2267, %2262 : vector<128xf32>
    %2269 = arith.mulf %2233, %2268 : vector<128xf32>
    %2270 = arith.mulf %2240, %2266 : vector<128xf32>
    %2271 = arith.subf %2269, %2270 : vector<128xf32>
    %2272 = arith.mulf %2240, %2264 : vector<128xf32>
    %2273 = arith.mulf %2226, %2268 : vector<128xf32>
    %2274 = arith.subf %2272, %2273 : vector<128xf32>
    %2275 = arith.mulf %2226, %2266 : vector<128xf32>
    %2276 = arith.mulf %2233, %2264 : vector<128xf32>
    %2277 = arith.subf %2275, %2276 : vector<128xf32>
    %2278 = arith.mulf %2247, %2264 : vector<128xf32>
    %2279 = arith.addf %2249, %2278 : vector<128xf32>
    %2280 = arith.addf %2279, %2271 : vector<128xf32>
    %2281 = arith.mulf %2247, %2266 : vector<128xf32>
    %2282 = arith.addf %2251, %2281 : vector<128xf32>
    %2283 = arith.addf %2282, %2274 : vector<128xf32>
    %2284 = arith.mulf %2247, %2268 : vector<128xf32>
    %2285 = arith.addf %2253, %2284 : vector<128xf32>
    %2286 = arith.addf %2285, %2277 : vector<128xf32>
    %2287 = arith.subf %2280, %62 : vector<128xf32>
    %2288 = arith.mulf %2287, %2169 : vector<128xf32>
    %2289 = arith.subf %2283, %66 : vector<128xf32>
    %2290 = arith.mulf %2289, %2169 : vector<128xf32>
    %2291 = arith.subf %2286, %70 : vector<128xf32>
    %2292 = arith.mulf %2291, %2169 : vector<128xf32>
    %2293 = arith.mulf %2015, %2169 : vector<128xf32>
    %2294 = arith.addf %2002, %2293 : vector<128xf32>
    %cst_386 = arith.constant 5.000000e-01 : f32
    %2295 = vector.broadcast %cst_386 : f32 to vector<128xf32>
    %2296 = arith.mulf %2295, %2288 : vector<128xf32>
    %2297 = arith.mulf %2296, %2169 : vector<128xf32>
    %2298 = arith.addf %2294, %2297 : vector<128xf32>
    %2299 = arith.mulf %2016, %2169 : vector<128xf32>
    %2300 = arith.addf %2008, %2299 : vector<128xf32>
    %cst_387 = arith.constant 5.000000e-01 : f32
    %2301 = vector.broadcast %cst_387 : f32 to vector<128xf32>
    %2302 = arith.mulf %2301, %2290 : vector<128xf32>
    %2303 = arith.mulf %2302, %2169 : vector<128xf32>
    %2304 = arith.addf %2300, %2303 : vector<128xf32>
    %2305 = arith.mulf %2017, %2169 : vector<128xf32>
    %2306 = arith.addf %2014, %2305 : vector<128xf32>
    %cst_388 = arith.constant 5.000000e-01 : f32
    %2307 = vector.broadcast %cst_388 : f32 to vector<128xf32>
    %2308 = arith.mulf %2307, %2292 : vector<128xf32>
    %2309 = arith.mulf %2308, %2169 : vector<128xf32>
    %2310 = arith.addf %2306, %2309 : vector<128xf32>
    %2311 = arith.addf %2015, %2288 : vector<128xf32>
    %2312 = arith.addf %2016, %2290 : vector<128xf32>
    %2313 = arith.addf %2017, %2292 : vector<128xf32>
    %2314 = arith.addf %2018, %2169 : vector<128xf32>
    %2315 = arith.mulf %10, %2226 : vector<128xf32>
    %2316 = arith.mulf %4, %2247 : vector<128xf32>
    %2317 = arith.addf %2315, %2316 : vector<128xf32>
    %2318 = arith.mulf %6, %2240 : vector<128xf32>
    %2319 = arith.addf %2317, %2318 : vector<128xf32>
    %2320 = arith.mulf %8, %2233 : vector<128xf32>
    %2321 = arith.subf %2319, %2320 : vector<128xf32>
    %2322 = arith.mulf %10, %2233 : vector<128xf32>
    %2323 = arith.mulf %4, %2240 : vector<128xf32>
    %2324 = arith.subf %2322, %2323 : vector<128xf32>
    %2325 = arith.mulf %6, %2247 : vector<128xf32>
    %2326 = arith.addf %2324, %2325 : vector<128xf32>
    %2327 = arith.mulf %8, %2226 : vector<128xf32>
    %2328 = arith.addf %2326, %2327 : vector<128xf32>
    %2329 = arith.mulf %10, %2240 : vector<128xf32>
    %2330 = arith.mulf %4, %2233 : vector<128xf32>
    %2331 = arith.addf %2329, %2330 : vector<128xf32>
    %2332 = arith.mulf %6, %2226 : vector<128xf32>
    %2333 = arith.subf %2331, %2332 : vector<128xf32>
    %2334 = arith.mulf %8, %2247 : vector<128xf32>
    %2335 = arith.addf %2333, %2334 : vector<128xf32>
    %2336 = arith.mulf %10, %2247 : vector<128xf32>
    %2337 = arith.mulf %4, %2226 : vector<128xf32>
    %2338 = arith.subf %2336, %2337 : vector<128xf32>
    %2339 = arith.mulf %6, %2233 : vector<128xf32>
    %2340 = arith.subf %2338, %2339 : vector<128xf32>
    %2341 = arith.mulf %8, %2240 : vector<128xf32>
    %2342 = arith.subf %2340, %2341 : vector<128xf32>
    %2343 = arith.mulf %6, %2313 : vector<128xf32>
    %2344 = arith.mulf %8, %2312 : vector<128xf32>
    %2345 = arith.subf %2343, %2344 : vector<128xf32>
    %2346 = arith.mulf %8, %2311 : vector<128xf32>
    %2347 = arith.mulf %4, %2313 : vector<128xf32>
    %2348 = arith.subf %2346, %2347 : vector<128xf32>
    %2349 = arith.mulf %4, %2312 : vector<128xf32>
    %2350 = arith.mulf %6, %2311 : vector<128xf32>
    %2351 = arith.subf %2349, %2350 : vector<128xf32>
    %cst_389 = arith.constant 2.000000e+00 : f32
    %2352 = vector.broadcast %cst_389 : f32 to vector<128xf32>
    %2353 = arith.mulf %2352, %2345 : vector<128xf32>
    %cst_390 = arith.constant 2.000000e+00 : f32
    %2354 = vector.broadcast %cst_390 : f32 to vector<128xf32>
    %2355 = arith.mulf %2354, %2348 : vector<128xf32>
    %cst_391 = arith.constant 2.000000e+00 : f32
    %2356 = vector.broadcast %cst_391 : f32 to vector<128xf32>
    %2357 = arith.mulf %2356, %2351 : vector<128xf32>
    %2358 = arith.mulf %6, %2357 : vector<128xf32>
    %2359 = arith.mulf %8, %2355 : vector<128xf32>
    %2360 = arith.subf %2358, %2359 : vector<128xf32>
    %2361 = arith.mulf %8, %2353 : vector<128xf32>
    %2362 = arith.mulf %4, %2357 : vector<128xf32>
    %2363 = arith.subf %2361, %2362 : vector<128xf32>
    %2364 = arith.mulf %4, %2355 : vector<128xf32>
    %2365 = arith.mulf %6, %2353 : vector<128xf32>
    %2366 = arith.subf %2364, %2365 : vector<128xf32>
    %2367 = arith.mulf %10, %2353 : vector<128xf32>
    %2368 = arith.addf %2311, %2367 : vector<128xf32>
    %2369 = arith.addf %2368, %2360 : vector<128xf32>
    %2370 = arith.mulf %10, %2355 : vector<128xf32>
    %2371 = arith.addf %2312, %2370 : vector<128xf32>
    %2372 = arith.addf %2371, %2363 : vector<128xf32>
    %2373 = arith.mulf %10, %2357 : vector<128xf32>
    %2374 = arith.addf %2313, %2373 : vector<128xf32>
    %2375 = arith.addf %2374, %2366 : vector<128xf32>
    %2376 = arith.mulf %6, %2310 : vector<128xf32>
    %2377 = arith.mulf %8, %2304 : vector<128xf32>
    %2378 = arith.subf %2376, %2377 : vector<128xf32>
    %2379 = arith.mulf %8, %2298 : vector<128xf32>
    %2380 = arith.mulf %4, %2310 : vector<128xf32>
    %2381 = arith.subf %2379, %2380 : vector<128xf32>
    %2382 = arith.mulf %4, %2304 : vector<128xf32>
    %2383 = arith.mulf %6, %2298 : vector<128xf32>
    %2384 = arith.subf %2382, %2383 : vector<128xf32>
    %cst_392 = arith.constant 2.000000e+00 : f32
    %2385 = vector.broadcast %cst_392 : f32 to vector<128xf32>
    %2386 = arith.mulf %2385, %2378 : vector<128xf32>
    %cst_393 = arith.constant 2.000000e+00 : f32
    %2387 = vector.broadcast %cst_393 : f32 to vector<128xf32>
    %2388 = arith.mulf %2387, %2381 : vector<128xf32>
    %cst_394 = arith.constant 2.000000e+00 : f32
    %2389 = vector.broadcast %cst_394 : f32 to vector<128xf32>
    %2390 = arith.mulf %2389, %2384 : vector<128xf32>
    %2391 = arith.mulf %6, %2390 : vector<128xf32>
    %2392 = arith.mulf %8, %2388 : vector<128xf32>
    %2393 = arith.subf %2391, %2392 : vector<128xf32>
    %2394 = arith.mulf %8, %2386 : vector<128xf32>
    %2395 = arith.mulf %4, %2390 : vector<128xf32>
    %2396 = arith.subf %2394, %2395 : vector<128xf32>
    %2397 = arith.mulf %4, %2388 : vector<128xf32>
    %2398 = arith.mulf %6, %2386 : vector<128xf32>
    %2399 = arith.subf %2397, %2398 : vector<128xf32>
    %2400 = arith.mulf %10, %2386 : vector<128xf32>
    %2401 = arith.addf %2298, %2400 : vector<128xf32>
    %2402 = arith.addf %2401, %2393 : vector<128xf32>
    %2403 = arith.mulf %10, %2388 : vector<128xf32>
    %2404 = arith.addf %2304, %2403 : vector<128xf32>
    %2405 = arith.addf %2404, %2396 : vector<128xf32>
    %2406 = arith.mulf %10, %2390 : vector<128xf32>
    %2407 = arith.addf %2310, %2406 : vector<128xf32>
    %2408 = arith.addf %2407, %2399 : vector<128xf32>
    %2409 = arith.index_cast %c7_i32 : i32 to index
    %c0_395 = arith.constant 0 : index
    %c0_396 = arith.constant 0 : index
    %2410 = vector.load %arg4[%2409, %c0_395, %c0_396] : memref<8x10x128xf32, #tpu.memory_space<vmem>>, vector<1x1x128xf32>
    %2411 = vector.shape_cast %2410 : vector<1x1x128xf32> to vector<128xf32>
    %2412 = vector.shape_cast %2321 : vector<128xf32> to vector<1x1x128xf32>
    tpu.vector_store %arg4[%2409, %c0_395, %c0_396], %2412 {strides = array<i32>} : memref<8x10x128xf32, #tpu.memory_space<vmem>>, vector<1x1x128xf32>,
    %2413 = arith.index_cast %c7_i32 : i32 to index
    %c1_397 = arith.constant 1 : index
    %c0_398 = arith.constant 0 : index
    %2414 = vector.load %arg4[%2413, %c1_397, %c0_398] : memref<8x10x128xf32, #tpu.memory_space<vmem>>, vector<1x1x128xf32>
    %2415 = vector.shape_cast %2414 : vector<1x1x128xf32> to vector<128xf32>
    %2416 = vector.shape_cast %2328 : vector<128xf32> to vector<1x1x128xf32>
    tpu.vector_store %arg4[%2413, %c1_397, %c0_398], %2416 {strides = array<i32>} : memref<8x10x128xf32, #tpu.memory_space<vmem>>, vector<1x1x128xf32>,
    %2417 = arith.index_cast %c7_i32 : i32 to index
    %c2_399 = arith.constant 2 : index
    %c0_400 = arith.constant 0 : index
    %2418 = vector.load %arg4[%2417, %c2_399, %c0_400] : memref<8x10x128xf32, #tpu.memory_space<vmem>>, vector<1x1x128xf32>
    %2419 = vector.shape_cast %2418 : vector<1x1x128xf32> to vector<128xf32>
    %2420 = vector.shape_cast %2335 : vector<128xf32> to vector<1x1x128xf32>
    tpu.vector_store %arg4[%2417, %c2_399, %c0_400], %2420 {strides = array<i32>} : memref<8x10x128xf32, #tpu.memory_space<vmem>>, vector<1x1x128xf32>,
    %2421 = arith.index_cast %c7_i32 : i32 to index
    %c3_401 = arith.constant 3 : index
    %c0_402 = arith.constant 0 : index
    %2422 = vector.load %arg4[%2421, %c3_401, %c0_402] : memref<8x10x128xf32, #tpu.memory_space<vmem>>, vector<1x1x128xf32>
    %2423 = vector.shape_cast %2422 : vector<1x1x128xf32> to vector<128xf32>
    %2424 = vector.shape_cast %2342 : vector<128xf32> to vector<1x1x128xf32>
    tpu.vector_store %arg4[%2421, %c3_401, %c0_402], %2424 {strides = array<i32>} : memref<8x10x128xf32, #tpu.memory_space<vmem>>, vector<1x1x128xf32>,
    %2425 = arith.addf %12, %2369 : vector<128xf32>
    %2426 = arith.index_cast %c7_i32 : i32 to index
    %c4_403 = arith.constant 4 : index
    %c0_404 = arith.constant 0 : index
    %2427 = vector.load %arg4[%2426, %c4_403, %c0_404] : memref<8x10x128xf32, #tpu.memory_space<vmem>>, vector<1x1x128xf32>
    %2428 = vector.shape_cast %2427 : vector<1x1x128xf32> to vector<128xf32>
    %2429 = vector.shape_cast %2425 : vector<128xf32> to vector<1x1x128xf32>
    tpu.vector_store %arg4[%2426, %c4_403, %c0_404], %2429 {strides = array<i32>} : memref<8x10x128xf32, #tpu.memory_space<vmem>>, vector<1x1x128xf32>,
    %2430 = arith.addf %14, %2372 : vector<128xf32>
    %2431 = arith.index_cast %c7_i32 : i32 to index
    %c5_405 = arith.constant 5 : index
    %c0_406 = arith.constant 0 : index
    %2432 = vector.load %arg4[%2431, %c5_405, %c0_406] : memref<8x10x128xf32, #tpu.memory_space<vmem>>, vector<1x1x128xf32>
    %2433 = vector.shape_cast %2432 : vector<1x1x128xf32> to vector<128xf32>
    %2434 = vector.shape_cast %2430 : vector<128xf32> to vector<1x1x128xf32>
    tpu.vector_store %arg4[%2431, %c5_405, %c0_406], %2434 {strides = array<i32>} : memref<8x10x128xf32, #tpu.memory_space<vmem>>, vector<1x1x128xf32>,
    %2435 = arith.addf %16, %2375 : vector<128xf32>
    %2436 = arith.index_cast %c7_i32 : i32 to index
    %c6_407 = arith.constant 6 : index
    %c0_408 = arith.constant 0 : index
    %2437 = vector.load %arg4[%2436, %c6_407, %c0_408] : memref<8x10x128xf32, #tpu.memory_space<vmem>>, vector<1x1x128xf32>
    %2438 = vector.shape_cast %2437 : vector<1x1x128xf32> to vector<128xf32>
    %2439 = vector.shape_cast %2435 : vector<128xf32> to vector<1x1x128xf32>
    tpu.vector_store %arg4[%2436, %c6_407, %c0_408], %2439 {strides = array<i32>} : memref<8x10x128xf32, #tpu.memory_space<vmem>>, vector<1x1x128xf32>,
    %2440 = arith.mulf %12, %2314 : vector<128xf32>
    %2441 = arith.addf %18, %2440 : vector<128xf32>
    %2442 = arith.addf %2441, %2402 : vector<128xf32>
    %2443 = arith.index_cast %c7_i32 : i32 to index
    %c7_409 = arith.constant 7 : index
    %c0_410 = arith.constant 0 : index
    %2444 = vector.load %arg4[%2443, %c7_409, %c0_410] : memref<8x10x128xf32, #tpu.memory_space<vmem>>, vector<1x1x128xf32>
    %2445 = vector.shape_cast %2444 : vector<1x1x128xf32> to vector<128xf32>
    %2446 = vector.shape_cast %2442 : vector<128xf32> to vector<1x1x128xf32>
    tpu.vector_store %arg4[%2443, %c7_409, %c0_410], %2446 {strides = array<i32>} : memref<8x10x128xf32, #tpu.memory_space<vmem>>, vector<1x1x128xf32>,
    %2447 = arith.mulf %14, %2314 : vector<128xf32>
    %2448 = arith.addf %20, %2447 : vector<128xf32>
    %2449 = arith.addf %2448, %2405 : vector<128xf32>
    %2450 = arith.index_cast %c7_i32 : i32 to index
    %c8_411 = arith.constant 8 : index
    %c0_412 = arith.constant 0 : index
    %2451 = vector.load %arg4[%2450, %c8_411, %c0_412] : memref<8x10x128xf32, #tpu.memory_space<vmem>>, vector<1x1x128xf32>
    %2452 = vector.shape_cast %2451 : vector<1x1x128xf32> to vector<128xf32>
    %2453 = vector.shape_cast %2449 : vector<128xf32> to vector<1x1x128xf32>
    tpu.vector_store %arg4[%2450, %c8_411, %c0_412], %2453 {strides = array<i32>} : memref<8x10x128xf32, #tpu.memory_space<vmem>>, vector<1x1x128xf32>,
    %2454 = arith.mulf %16, %2314 : vector<128xf32>
    %2455 = arith.addf %22, %2454 : vector<128xf32>
    %2456 = arith.addf %2455, %2408 : vector<128xf32>
    %2457 = arith.index_cast %c7_i32 : i32 to index
    %c9_413 = arith.constant 9 : index
    %c0_414 = arith.constant 0 : index
    %2458 = vector.load %arg4[%2457, %c9_413, %c0_414] : memref<8x10x128xf32, #tpu.memory_space<vmem>>, vector<1x1x128xf32>
    %2459 = vector.shape_cast %2458 : vector<1x1x128xf32> to vector<128xf32>
    %2460 = vector.shape_cast %2456 : vector<128xf32> to vector<1x1x128xf32>
    tpu.vector_store %arg4[%2457, %c9_413, %c0_414], %2460 {strides = array<i32>} : memref<8x10x128xf32, #tpu.memory_space<vmem>>, vector<1x1x128xf32>,
    %c8_i32 = arith.constant 8 : i32
    %c0_415 = arith.constant 0 : index
    %c0_416 = arith.constant 0 : index
    %2461 = vector.load %arg5[%c0_415, %c0_416] : memref<16x128xf32, #tpu.memory_space<vmem>>, vector<1x128xf32>
    %2462 = vector.shape_cast %2461 : vector<1x128xf32> to vector<128xf32>
    %2463 = vector.shape_cast %2226 : vector<128xf32> to vector<1x128xf32>
    tpu.vector_store %arg5[%c0_415, %c0_416], %2463 {strides = array<i32>} : memref<16x128xf32, #tpu.memory_space<vmem>>, vector<1x128xf32>,
    %c1_417 = arith.constant 1 : index
    %c0_418 = arith.constant 0 : index
    %2464 = vector.load %arg5[%c1_417, %c0_418] : memref<16x128xf32, #tpu.memory_space<vmem>>, vector<1x128xf32>
    %2465 = vector.shape_cast %2464 : vector<1x128xf32> to vector<128xf32>
    %2466 = vector.shape_cast %2233 : vector<128xf32> to vector<1x128xf32>
    tpu.vector_store %arg5[%c1_417, %c0_418], %2466 {strides = array<i32>} : memref<16x128xf32, #tpu.memory_space<vmem>>, vector<1x128xf32>,
    %c2_419 = arith.constant 2 : index
    %c0_420 = arith.constant 0 : index
    %2467 = vector.load %arg5[%c2_419, %c0_420] : memref<16x128xf32, #tpu.memory_space<vmem>>, vector<1x128xf32>
    %2468 = vector.shape_cast %2467 : vector<1x128xf32> to vector<128xf32>
    %2469 = vector.shape_cast %2240 : vector<128xf32> to vector<1x128xf32>
    tpu.vector_store %arg5[%c2_419, %c0_420], %2469 {strides = array<i32>} : memref<16x128xf32, #tpu.memory_space<vmem>>, vector<1x128xf32>,
    %c3_421 = arith.constant 3 : index
    %c0_422 = arith.constant 0 : index
    %2470 = vector.load %arg5[%c3_421, %c0_422] : memref<16x128xf32, #tpu.memory_space<vmem>>, vector<1x128xf32>
    %2471 = vector.shape_cast %2470 : vector<1x128xf32> to vector<128xf32>
    %2472 = vector.shape_cast %2247 : vector<128xf32> to vector<1x128xf32>
    tpu.vector_store %arg5[%c3_421, %c0_422], %2472 {strides = array<i32>} : memref<16x128xf32, #tpu.memory_space<vmem>>, vector<1x128xf32>,
    %c4_423 = arith.constant 4 : index
    %c0_424 = arith.constant 0 : index
    %2473 = vector.load %arg5[%c4_423, %c0_424] : memref<16x128xf32, #tpu.memory_space<vmem>>, vector<1x128xf32>
    %2474 = vector.shape_cast %2473 : vector<1x128xf32> to vector<128xf32>
    %2475 = vector.shape_cast %2311 : vector<128xf32> to vector<1x128xf32>
    tpu.vector_store %arg5[%c4_423, %c0_424], %2475 {strides = array<i32>} : memref<16x128xf32, #tpu.memory_space<vmem>>, vector<1x128xf32>,
    %c5_425 = arith.constant 5 : index
    %c0_426 = arith.constant 0 : index
    %2476 = vector.load %arg5[%c5_425, %c0_426] : memref<16x128xf32, #tpu.memory_space<vmem>>, vector<1x128xf32>
    %2477 = vector.shape_cast %2476 : vector<1x128xf32> to vector<128xf32>
    %2478 = vector.shape_cast %2312 : vector<128xf32> to vector<1x128xf32>
    tpu.vector_store %arg5[%c5_425, %c0_426], %2478 {strides = array<i32>} : memref<16x128xf32, #tpu.memory_space<vmem>>, vector<1x128xf32>,
    %c6_427 = arith.constant 6 : index
    %c0_428 = arith.constant 0 : index
    %2479 = vector.load %arg5[%c6_427, %c0_428] : memref<16x128xf32, #tpu.memory_space<vmem>>, vector<1x128xf32>
    %2480 = vector.shape_cast %2479 : vector<1x128xf32> to vector<128xf32>
    %2481 = vector.shape_cast %2313 : vector<128xf32> to vector<1x128xf32>
    tpu.vector_store %arg5[%c6_427, %c0_428], %2481 {strides = array<i32>} : memref<16x128xf32, #tpu.memory_space<vmem>>, vector<1x128xf32>,
    %c7_429 = arith.constant 7 : index
    %c0_430 = arith.constant 0 : index
    %2482 = vector.load %arg5[%c7_429, %c0_430] : memref<16x128xf32, #tpu.memory_space<vmem>>, vector<1x128xf32>
    %2483 = vector.shape_cast %2482 : vector<1x128xf32> to vector<128xf32>
    %2484 = vector.shape_cast %2298 : vector<128xf32> to vector<1x128xf32>
    tpu.vector_store %arg5[%c7_429, %c0_430], %2484 {strides = array<i32>} : memref<16x128xf32, #tpu.memory_space<vmem>>, vector<1x128xf32>,
    %c8_431 = arith.constant 8 : index
    %c0_432 = arith.constant 0 : index
    %2485 = vector.load %arg5[%c8_431, %c0_432] : memref<16x128xf32, #tpu.memory_space<vmem>>, vector<1x128xf32>
    %2486 = vector.shape_cast %2485 : vector<1x128xf32> to vector<128xf32>
    %2487 = vector.shape_cast %2304 : vector<128xf32> to vector<1x128xf32>
    tpu.vector_store %arg5[%c8_431, %c0_432], %2487 {strides = array<i32>} : memref<16x128xf32, #tpu.memory_space<vmem>>, vector<1x128xf32>,
    %c9_433 = arith.constant 9 : index
    %c0_434 = arith.constant 0 : index
    %2488 = vector.load %arg5[%c9_433, %c0_434] : memref<16x128xf32, #tpu.memory_space<vmem>>, vector<1x128xf32>
    %2489 = vector.shape_cast %2488 : vector<1x128xf32> to vector<128xf32>
    %2490 = vector.shape_cast %2310 : vector<128xf32> to vector<1x128xf32>
    tpu.vector_store %arg5[%c9_433, %c0_434], %2490 {strides = array<i32>} : memref<16x128xf32, #tpu.memory_space<vmem>>, vector<1x128xf32>,
    %c10_435 = arith.constant 10 : index
    %c0_436 = arith.constant 0 : index
    %2491 = vector.load %arg5[%c10_435, %c0_436] : memref<16x128xf32, #tpu.memory_space<vmem>>, vector<1x128xf32>
    %2492 = vector.shape_cast %2491 : vector<1x128xf32> to vector<128xf32>
    %2493 = vector.shape_cast %2314 : vector<128xf32> to vector<1x128xf32>
    tpu.vector_store %arg5[%c10_435, %c0_436], %2493 {strides = array<i32>} : memref<16x128xf32, #tpu.memory_space<vmem>>, vector<1x128xf32>,
    return
  }
  func.func @transform_0(%arg0: i32, %arg1: i32) -> (i32, i32, i32) {
    %c0_i32 = arith.constant 0 : i32
    %c0_i32_0 = arith.constant 0 : i32
    return %arg1, %c0_i32, %arg0 : i32, i32, i32
  }
  func.func @transform_1(%arg0: i32, %arg1: i32) -> (i32, i32) {
    %c0_i32 = arith.constant 0 : i32
    %c0_i32_0 = arith.constant 0 : i32
    return %c0_i32, %arg0 : i32, i32
  }
  func.func @transform_2(%arg0: i32, %arg1: i32) -> (i32, i32, i32) {
    %c0_i32 = arith.constant 0 : i32
    %c0_i32_0 = arith.constant 0 : i32
    return %arg1, %c0_i32, %arg0 : i32, i32, i32
  }
}

</mosaic_0001>

<bundles_post_ra>
// kernel: tpu_custom_call.1
= control target key start
LH: loop header
LB: loop body
LE: loop exit
PB: predicated region body
PF: predicated region fallthrough
CT: control target
= control target key end

     0   :  { %7 = vsyncpa [#allocation4], 0  ;;  %s9659_s0 = inlined_call_operand.hbm [shape: f32[24,8,128], index: 0, kind: input, shape index: {}]   ;;  %s9660_s1 = inlined_call_operand.hbm [shape: f32[10,128], index: 1, kind: input, shape index: {}]   ;;  %s9661_s2 = inlined_call_operand.vmem [shape: f32[24,10,128], index: 2, kind: output, shape index: {}]  }
   0x1   :  { %9 = vsyncpa [#allocation4 + $0x1], 0 }
   0x2   :  { %10 = vsyncpa [#allocation6], 0  ;;  %s5923_s9 = smov 0   ;;  %s5925_s10 = smov 0  }
   0x3   :  { %s5927_s11 = smov 0   ;;  %s5929_s12 = smov 0  }
   0x4   :  { %s5931_s13 = smov 0   ;;  %s5933_s14 = smov 0  }
   0x5 LB: > { %s5461_s15 = sadd.s32 4294967295, %s5890_s14   ;;  %p50_p0 = scmp.ne.s32.totalorder %s5874_s10, %s5870_s9  ;;  %s5890_s14 = sphi %s5933_s14, %s16_s14   ;;  %s5886_s13 = sphi %s5931_s13, %s10064_s13   ;;  %s5882_s12 = sphi %s5929_s12, %s10063_s12   ;;  %s5878_s11 = sphi %s5927_s11, %s10062_s11   ;;  %s5874_s10 = sphi %s5925_s10, %s10061_s10   ;;  %s5870_s9 = sphi %s5923_s9, %s10060_s9  }
   0x6   : > { %p5953_p1 = scmp.eq.s32.totalorder %s5461_s15, 0  ;;  %p5463_p2 = scmp.ge.s32.totalorder %s5890_s14, 1 }
   0x7   : > { %p115_p3 = scmp.lt.s32.totalorder %s5890_s14, 4  ;;  %s128_s20 = sshll.u32 %s9660_s1, 4  ;;  %s129_s20 = int_to_ptr.hbm [resolvable:$true] %s128_s20 }
   0x8   : > { %p5961_p4 = por %p5953_p1, %p50_p0  ;;  %s5892_s22 = smov [#allocation5]  }
   0x9   : > { %p5968_p5 = pnand %p5463_p2, %p115_p3  ;;  %s130_s23 = sshll.u32 %s5892_s22, 4  ;;  %s131_s23 = int_to_ptr.vmem [resolvable:$true] %s130_s23 }
   0xa   : > { %s5893_s24 = smov 128   ;;  %s5894_s25 = smov 8  }
   0xb   : > { %p5611_p6 = pneg %p5968_p5  ;;  %s25_s26 = sadd.s32 1, %s5886_s13 }
   0xc   : > { %p26_p8 = scmp.ge.s32.totalorder %s25_s26, 3  ;;  %p44_p9 = scmp.ne.s32.totalorder %s5878_s11, %s5874_s10 }
   0xd   : > { %p5612_p7 = pnand %p5611_p6, %p5953_p1  ;;  %p45_p10 = scmp.eq.s32.totalorder %s5890_s14, 0 }
   0xe   : > { %s10066_s26 = smov (%p26_p8, %s25_s26), 0  ;;  %s37_s27 = sadd.s32 1, %s5878_s11 }
   0xf   : > { %5614 = dma.hbm_to_vmem [thread:$0]  (!%p5612_p7), %s129_s20, 256, %s131_s23, [#allocation6], %s5893_s24, %s5893_s24, %s5894_s25  }
  0x10   : > { %p5983_p11 = por %p45_p10, %p44_p9  ;;  %s32_s29 = ssub.s32 %s5886_s13, %s10066_s26 }
  0x11   : > { %s144_s30 = sand.u32 1, %s5878_s11   ;;  %p35_p12 = scmp.eq.s32.totalorder %s32_s29, 0 }
  0x12   : > { %p5620_p13 = scmp.lt.s32.totalorder %s5890_s14, 3  ;;  %s5466_s3 = sshll.u32 %s144_s30, 6 }
  0x13   : > { %s5603_s4 = sshll.u32 %s5886_s13, 6  ;;  %s148_s15 = scalar_lea.vmem [#allocation3], %s5466_s3 }
  0x14   : > { %s5993_s5 = scalar_select %p35_p12, %s5878_s11, %s37_s27  }
  0x15   : > { %s154_s8 = scalar_lea.hbm %s9659_s0, %s5603_s4  ;;  %s157_s18 = sshll.u32 %s148_s15, 4  ;;  %s158_s18 = int_to_ptr.vmem [resolvable:$true] %s157_s18 }
  0x16   : > { %s155_s9 = sshll.u32 %s154_s8, 4  ;;  %p5616_p0 = pnand %p5620_p13, %p5983_p11  ;;  %s156_s9 = int_to_ptr.hbm [resolvable:$true] %s155_s9 }
  0x17   : > { %s145_s19 = scalar_lea.sflag [#allocation4], %s144_s30  ;;  %169 = sbr.rel (%p5968_p5) target bundleno = 1039 (0x40f), region = 28 }
  0x18   : > { %5618 = dma.hbm_to_vmem [thread:$0]  (!%p5616_p0), %s156_s9, 1024, %s158_s18, %s145_s19, %s5893_s24, %s5893_s24, %s5894_s25  }
  0x1c   : > { %s171_s20 = sand.u32 1, %s5874_s10  }
  0x1d   : > { %s5470_s22 = sshll.u32 %s171_s20, 6  ;;  %s172_s23 = scalar_lea.sflag [#allocation4], %s171_s20 }
  0x1e   : > { %s6003_s27 = scalar_lea.vmem [#allocation3], %s5470_s22 }
  0x1f   : > { %5861 = dma.done.wait (%p5961_p4), %s172_s23, 1024  }
  0x20   : > { %5863 = vsyncadd (%p5961_p4), %s172_s23, 4294966272 }
  0x21   : > { %5865 = dma.done.wait (%p5953_p1), [#allocation6], 256  }
  0x22   : > { %5867 = vsyncadd (%p5953_p1), [#allocation6], 4294967040  ;;  %s5472_s21 = sshll.u32 %s5882_s12, 3  ;;  %p5475_p3 = scmp.ne.s32.totalorder %s5882_s12, 0 }
  0x23   : > { %p208_p2 = scmp.lt.s32.totalorder %s5472_s21, 23 }
  0x24   : > { %220 = sbr.rel (%p5475_p3) target bundleno = 45 (0x2d), region = 40 }
  0x25   : > { %s10068_s21 = smov (!%p208_p2, %s5472_s21), 23 }
  0x26   : > { %s5604_s24 = sshll.u32 %s10068_s21, 4 }
  0x27   : > { %s6017_s29 = scalar_lea.vmem %s9661_s2, %s5604_s24 }
  0x29   : > { %v5895_v0 = vmov 0.0   ;;  %v5896_v1 = vmov 1.0  }
  0x2a   : > { %221 = vst [vmem:[#allocation2] sm:$0xff] %v5895_v0 }
  0x2b   : > { %222 = vst [vmem:[#allocation2 + $0x8] sm:$0xff] %v5895_v0 }
  0x2c   : > { %223 = vst [vmem:[#allocation2 + $0x3] sm:$0x1] %v5896_v1 }
  0x2d PF: > { %v6021_v2 = vld [vmem:[%s6003_s27] sm:$0xff]  ;;  %v5482_v6 = vld [vmem:[%s6003_s27 + $0x8] sm:$0xff] }
  0x2e   : > { %v279_v3 = vrot.slane %v6021_v2, 7  ;;  %v6025_v4 = vrot.slane %v6021_v2, 6  ;;  %v6028_v5 = vrot.slane %v6021_v2, 5  ;;  %v944_v7 = vrot.slane %v5482_v6, 7 }
  0x2f   : > { %v6031_v8 = vrot.slane %v5482_v6, 6  ;;  %v6033_v9 = vrot.slane %v5482_v6, 5 }
  0x30   : > { %v6036_v10 = vmul.f32 %v279_v3, %v6021_v2  ;;  %v6040_v11 = vmul.f32 %v6025_v4, %v6021_v2  ;;  %v6044_v12 = vmul.f32 %v6028_v5, %v6021_v2  ;;  %v6046_v13 = vmul.f32 %v5482_v6, %v944_v7 }
  0x31   : > { %9803 = vst [vmem:[#allocation9_spill] sm:$0xff] %v6031_v8  ;;  %v6049_v14 = vmul.f32 %v5482_v6, %v6031_v8  ;;  %v6052_v15 = vmul.f32 %v5482_v6, %v6033_v9 }
  0x32   : > { %9804 = vst [vmem:[#allocation10_spill] sm:$0xff] %v6033_v9  ;;  %v288_v16 = vmul.f32 %v6036_v10, %v6036_v10  ;;  %v289_v17 = vmul.f32 %v6040_v11, %v6040_v11  ;;  %v294_v18 = vmul.f32 %v6044_v12, %v6044_v12  ;;  %v953_v19 = vmul.f32 %v6046_v13, %v6046_v13  ;;  %v6488_v9 = vld [vmem:[#allocation5 + $0x3] sm:$0x1] }
  0x33   : > { %9805 = vst [vmem:[#allocation11_spill] sm:$0xff] %v6049_v14  ;;  %v954_v20 = vmul.f32 %v6049_v14, %v6049_v14  ;;  %v959_v21 = vmul.f32 %v6052_v15, %v6052_v15 }
  0x34   : > { %9806 = vst [vmem:[#allocation12_spill] sm:$0xff] %v6052_v15  ;;  %v291_v22 = vrot.slane %v289_v17, 1  ;;  %v296_v23 = vrot.slane %v294_v18, 2 }
  0x35   : > { %v956_v24 = vrot.slane %v954_v20, 1  ;;  %v961_v25 = vrot.slane %v959_v21, 2  ;;  %v9674_v20 = vmov 683565275  }
  0x36   : > { %v293_v26 = vadd.f32 %v291_v22, %v288_v16  ;;  %v9672_v22 = vmov 2475754826  }
  0x37   : > { %v958_v27 = vadd.f32 %v956_v24, %v953_v19  ;;  %v9670_v24 = vmov 2131351028  }
  0x38   : > { %v6066_v28 = vadd.f32 %v296_v23, %v293_v26  ;;  %v9668_v26 = vmov 2102212464  }
  0x39   : > { %v6068_v29 = vadd.f32 %v961_v25, %v958_v27 }
  0x3a   : > { %5686 = vrsqrt.f32 %v6066_v28  ;;  %vm306_vm0 = vcmp.eq.f32.partialorder %v6066_v28, inf  ;;  %v309_v41 = vand.u32 2147483648, %v6066_v28  ;;  %vm308_vm1 = vcmp.eq.f32.partialorder %v6066_v28, 0.0 }
  0x3b   : > { %5688 = vrsqrt.f32 %v6068_v29  ;;  %vm971_vm2 = vcmp.eq.f32.partialorder %v6068_v29, inf  ;;  %v974_v44 = vand.u32 2147483648, %v6068_v29  ;;  %vm973_vm3 = vcmp.eq.f32.partialorder %v6068_v29, 0.0 }
  0x40   : > { %v5687_v30 = vpop.eup %5686 }
  0x41   : > { %v5689_v31 = vpop.eup %5688  ;;  %v300_v32 = vmul.f32 %v5687_v30, %v6066_v28 }
  0x42   : > { %v965_v33 = vmul.f32 %v5689_v31, %v6068_v29 }
  0x43   : > { %v301_v34 = vmul.f32 %v5687_v30, %v300_v32 }
  0x44   : > { %v966_v35 = vmul.f32 %v5689_v31, %v965_v33 }
  0x45   : > { %v302_v36 = vmul.f32 0.5, %v301_v34 }
  0x46   : > { %v967_v37 = vmul.f32 0.5, %v966_v35 }
  0x47   : > { %v303_v38 = vsub.f32 1.5, %v302_v36 }
  0x48   : > { %v968_v39 = vsub.f32 1.5, %v967_v37 }
  0x49   : > { %v304_v40 = vmul.f32 %v5687_v30, %v303_v38  ;;  %v9666_v30 = vmov 920167782  }
  0x4a   : > { %v969_v42 = vmul.f32 %v5689_v31, %v968_v39  ;;  %v9664_v39 = vmov 1326507024  }
  0x4b   : > { %v305_v43 = vmul.f32 %v304_v40, %v6066_v28 }
  0x4c   : > { %v970_v45 = vmul.f32 %v969_v42, %v6068_v29 }
  0x4d   : > { %v307_v46 = vsel %vm306_vm0, %v6066_v28, %v305_v43 }
  0x4e   : > { %v6083_v47 = vsel %vm308_vm1, %v309_v41, %v307_v46  ;;  %v972_v48 = vsel %vm971_vm2, %v6068_v29, %v970_v45 }
  0x4f   : > { %v6087_v49 = vmul.f32 0.5, %v6083_v47  ;;  %v6089_v50 = vsel %vm973_vm3, %v974_v44, %v972_v48  ;;  %vm312_vm3 = vcmp.gt.f32.partialorder %v6083_v47, 1e-06 }
  0x50   : > { %v6092_v51 = vmul.f32 0.5, %v6089_v50 }
  0x51   : > { %v315_v52 = vand.u32 2147483647, %v6087_v49  ;;  %v318_v53 = vand.u32 2139095040, %v6087_v49 }
  0x52   : > { %v9676_v54 = vand.u32 2147483647, %v6092_v51  ;;  %v983_v55 = vand.u32 2139095040, %v6092_v51 }
  0x53   : > { %v319_v56 = vshrl.u32 %v318_v53, 23  ;;  %v322_v57 = vand.u32 8388607, %v315_v52 }
  0x54   : > { %v984_v58 = vshrl.u32 %v983_v55, 23  ;;  %v987_v62 = vand.u32 8388607, %v9676_v54 }
  0x55   : > { %v5476_v59 = vadd.s32 4294967169, %v319_v56  ;;  %v323_v60 = vor.u32 8388608, %v322_v57 }
  0x56   : > { %v5483_v61 = vadd.s32 4294967169, %v984_v58  ;;  %v988_v6 = vor.u32 8388608, %v987_v62 }
  0x57   : > { %v325_v63 = vadd.s32 1, %v5476_v59  ;;  %v6102_v3 = vshll.u32 %v323_v60, 8 }
  0x58   : > { %v990_v0 = vadd.s32 1, %v5483_v61  ;;  %v6114_v33 = vshll.u32 %v988_v6, 8 }
  0x59   : > { %vm326_vm4 = vcmp.gt.s32.totalorder %v325_v63, 0  ;;  %v364_v32 = vand.u32 65535, %v6102_v3  ;;  %v365_v37 = vshrl.u32 %v6102_v3, 16 }
  0x5a   : > { %v327_v1 = vsel %vm326_vm4, %v325_v63, 0  ;;  %vm991_vm5 = vcmp.gt.s32.totalorder %v990_v0, 0 }
  0x5b   : > { %v329_v7 = vand.u32 31, %v327_v1  ;;  %v992_v16 = vsel %vm991_vm5, %v990_v0, 0  ;;  %v6104_v17 = vshrl.u32 %v327_v1, 5 }
  0x5c   : > { %v6106_v18 = vand.u32 31, %v992_v16  ;;  %v6134_v56 = vshrl.u32 %v992_v16, 5 }
  0x5d   : > { %v330_v19 = vsub.s32 32, %v329_v7  ;;  %v332_v21 = vshll.u32 %v9674_v20, %v329_v7  ;;  %v335_v23 = vshll.u32 %v9672_v22, %v329_v7  ;;  %v338_v25 = vshll.u32 %v9670_v24, %v329_v7 }
  0x5e   : > { %v341_v27 = vshll.u32 %v9668_v26, %v329_v7  ;;  %v344_v31 = vshll.u32 %v9666_v30, %v329_v7  ;;  %vm347_vm6 = vcmp.lt.s32.totalorder %v6104_v17, 1  ;;  %vm350_vm7 = vcmp.lt.s32.totalorder %v6104_v17, 4 }
  0x5f   : > { %v333_v34 = vshrl.u32 %v9672_v22, %v330_v19  ;;  %v336_v35 = vshrl.u32 %v9670_v24, %v330_v19  ;;  %v339_v36 = vshrl.u32 %v9668_v26, %v330_v19  ;;  %v342_v38 = vshrl.u32 %v9666_v30, %v330_v19 }
  0x60   : > { %v345_v40 = vshrl.u32 %v9664_v39, %v330_v19  ;;  %v6125_v44 = vsub.s32 32, %v6106_v18  ;;  %v331_v45 = vshrl.u32 %v9674_v20, %v330_v19  ;;  %vm349_vm8 = vcmp.lt.s32.totalorder %v6104_v17, 3 }
  0x61   : > { %v334_v41 = vor.u32 %v333_v34, %v332_v21  ;;  %v337_v42 = vor.u32 %v336_v35, %v335_v23  ;;  %v340_v43 = vor.u32 %v339_v36, %v338_v25  ;;  %v343_v46 = vor.u32 %v342_v38, %v341_v27 }
  0x62   : > { %v346_v48 = vor.u32 %v345_v40, %v344_v31  ;;  %vm348_vm9 = vcmp.lt.s32.totalorder %v6104_v17, 2  ;;  %v997_v59 = vshll.u32 %v9674_v20, %v6106_v18  ;;  %v1000_v60 = vshll.u32 %v9672_v22, %v6106_v18 }
  0x63   : > { %v355_v53 = vsel %vm347_vm6, %v334_v41, %v337_v42  ;;  %v359_v55 = vsel %vm347_vm6, %v337_v42, %v340_v43  ;;  %v356_v57 = vsel %vm350_vm7, %v343_v46, 920167782  ;;  %v352_v61 = vsel %vm350_vm7, %v340_v43, 2102212464 }
  0x64   : > { %v360_v58 = vsel %vm350_vm7, %v346_v48, 1326507024  ;;  %v357_v62 = vsel %vm349_vm8, %v340_v43, %v356_v57  ;;  %v998_v0 = vshrl.u32 %v9672_v22, %v6125_v44  ;;  %v351_v1 = vsel %vm347_vm6, %v331_v45, %v334_v41 }
  0x65   : > { %v361_v63 = vsel %vm349_vm8, %v343_v46, %v360_v58  ;;  %v358_v6 = vsel %vm348_vm9, %v355_v53, %v357_v62  ;;  %v1001_v16 = vshrl.u32 %v9670_v24, %v6125_v44  ;;  %v353_v27 = vsel %vm349_vm8, %v337_v42, %v352_v61 }
  0x66   : > { %v362_v7 = vsel %vm348_vm9, %v359_v55, %v361_v63  ;;  %v388_v23 = vand.u32 65535, %v358_v6  ;;  %v389_v25 = vshrl.u32 %v358_v6, 16  ;;  %v6162_v31 = vor.u32 %v998_v0, %v997_v59 }
  0x67   : > { %v366_v19 = vand.u32 65535, %v362_v7  ;;  %v367_v21 = vshrl.u32 %v362_v7, 16  ;;  %v6164_v34 = vor.u32 %v1001_v16, %v1000_v60  ;;  %v1003_v35 = vshll.u32 %v9670_v24, %v6106_v18 }
  0x68   : > { %v1004_v41 = vshrl.u32 %v9668_v26, %v6125_v44  ;;  %v390_v45 = vmul.u32 %v388_v23, %v364_v32  ;;  %v391_v46 = vmul.u32 %v389_v25, %v364_v32  ;;  %v392_v48 = vmul.u32 %v388_v23, %v365_v37 }
  0x69   : > { %v368_v36 = vmul.u32 %v366_v19, %v364_v32  ;;  %v369_v38 = vmul.u32 %v367_v21, %v364_v32  ;;  %v370_v40 = vmul.u32 %v366_v19, %v365_v37  ;;  %v371_v43 = vmul.u32 %v367_v21, %v365_v37 }
  0x6a   : > { %v393_v57 = vmul.u32 %v389_v25, %v365_v37  ;;  %v394_v59 = vshll.u32 %v391_v46, 16  ;;  %v395_v60 = vshrl.u32 %v391_v46, 16  ;;  %v396_v61 = vshll.u32 %v392_v48, 16 }
  0x6b   : > { %v372_v53 = vshll.u32 %v369_v38, 16  ;;  %v373_v55 = vshrl.u32 %v369_v38, 16  ;;  %v374_v42 = vshll.u32 %v370_v40, 16  ;;  %v375_v58 = vshrl.u32 %v370_v40, 16 }
  0x6c   : > { %v397_v63 = vshrl.u32 %v392_v48, 16  ;;  %v1006_v0 = vshll.u32 %v9668_v26, %v6106_v18  ;;  %v9662_v6 = vmov 0   ;;  %vm398_vm11 = vc.u32 %v390_v45, %v394_v59 }
  0x6d   : > { %vm376_vm10 = vc.u32 %v368_v36, %v372_v53  ;;  %v378_v62 = vadd.s32 %v372_v53, %v368_v36  ;;  %v400_v32 = vadd.s32 %v394_v59, %v390_v45  ;;  %v1007_v16 = vshrl.u32 %v9666_v30, %v6125_v44 }
  0x6e   : > { %v377_v7 = vsel %vm376_vm10, 1, %v9662_v6  ;;  %v399_v37 = vsel %vm398_vm11, 1, %v9662_v6  ;;  %v1009_v21 = vshll.u32 %v9666_v30, %v6106_v18  ;;  %v6179_v36 = vor.u32 %v1004_v41, %v1003_v35 }
  0x6f   : > { %v379_v19 = vadd.s32 %v377_v7, %v371_v43  ;;  %vm380_vm12 = vc.u32 %v378_v62, %v374_v42  ;;  %v401_v25 = vadd.s32 %v399_v37, %v393_v57  ;;  %vm402_vm13 = vc.u32 %v400_v32, %v396_v61 }
  0x70   : > { %v381_v23 = vsel %vm380_vm12, 1, %v9662_v6  ;;  %v403_v40 = vsel %vm402_vm13, 1, %v9662_v6  ;;  %v1008_v45 = vor.u32 %v1007_v16, %v1006_v0  ;;  %v1010_v46 = vshrl.u32 %v9664_v39, %v6125_v44 }
  0x71   : > { %v383_v38 = vadd.s32 %v381_v23, %v379_v19  ;;  %v6184_v43 = vadd.s32 %v400_v32, %v396_v61  ;;  %v405_v48 = vadd.s32 %v403_v40, %v401_v25  ;;  %vm1012_vm14 = vcmp.lt.s32.totalorder %v6134_v56, 1 }
  0x72   : > { %vm1014_vm15 = vcmp.lt.s32.totalorder %v6134_v56, 3  ;;  %v1011_v53 = vor.u32 %v1010_v46, %v1009_v21  ;;  %vm1013_vm0 = vcmp.lt.s32.totalorder %v6134_v56, 2  ;;  %vm1015_vm1 = vcmp.lt.s32.totalorder %v6134_v56, 4 }
  0x73   : > { %v384_v18 = vadd.s32 %v383_v38, %v373_v55  ;;  %v354_v35 = vsel %vm348_vm9, %v351_v1, %v353_v27  ;;  %v406_v41 = vadd.s32 %v405_v48, %v395_v60  ;;  %v1020_v42 = vsel %vm1012_vm14, %v6162_v31, %v6164_v34 }
  0x74   : > { %v1021_v57 = vsel %vm1015_vm1, %v1008_v45, 920167782  ;;  %v1024_v17 = vsel %vm1012_vm14, %v6164_v34, %v6179_v36  ;;  %v1025_v60 = vsel %vm1015_vm1, %v1011_v53, 1326507024  ;;  %v408_v61 = vmul.u32 %v6102_v3, %v354_v35 }
  0x75   : > { %v6198_v59 = vadd.s32 %v384_v18, %v375_v58  ;;  %v1022_v55 = vsel %vm1014_vm15, %v6179_v36, %v1021_v57  ;;  %v407_v1 = vadd.s32 %v406_v41, %v397_v63  ;;  %v1026_v58 = vsel %vm1014_vm15, %v1008_v45, %v1025_v60 }
  0x76   : > { %v1023_v27 = vsel %vm1013_vm0, %v1020_v42, %v1022_v55  ;;  %v1029_v62 = vand.u32 65535, %v6114_v33  ;;  %v1027_v63 = vsel %vm1013_vm0, %v1024_v17, %v1026_v58  ;;  %v1030_v37 = vshrl.u32 %v6114_v33, 16 }
  0x77   : > { %vm410_vm2 = vc.u32 %v6198_v59, %v6184_v43  ;;  %v411_v0 = vadd.s32 1, %v407_v1  ;;  %v1054_v7 = vshrl.u32 %v1023_v27, 16  ;;  %v1032_v32 = vshrl.u32 %v1027_v63, 16 }
  0x78   : > { %v1031_v21 = vand.u32 65535, %v1027_v63  ;;  %v1053_v23 = vand.u32 65535, %v1023_v27  ;;  %v5904_v17 = vmov 48.0   ;;  %v6241_v58 = vsel %vm312_vm3, %v6083_v47, 1.0 }
  0x79   : > { %v412_v16 = vsel %vm410_vm2, %v411_v0, %v407_v1  ;;  %v6220_v3 = vmul.u32 %v1032_v32, %v1029_v62  ;;  %v6222_v25 = vmul.u32 %v1054_v7, %v1029_v62  ;;  %5690 = vrcp.f32 %v5904_v17 }
  0x7a   : > { %v413_v19 = vadd.s32 %v412_v16, %v408_v61  ;;  %v1033_v45 = vmul.u32 %v1031_v21, %v1029_v62  ;;  %v6226_v46 = vmul.u32 %v1031_v21, %v1030_v37  ;;  %v1055_v18 = vmul.u32 %v1053_v23, %v1029_v62 }
  0x7b   : > { %v1037_v48 = vshll.u32 %v6220_v3, 16  ;;  %v6229_v53 = vmul.u32 %v1053_v23, %v1030_v37  ;;  %v1059_v35 = vshll.u32 %v6222_v25, 16  ;;  %v1036_v1 = vmul.u32 %v1032_v32, %v1030_v37 }
  0x7c   : > { %v414_v38 = vadd.s32 536870912, %v413_v19  ;;  %v1039_v57 = vshll.u32 %v6226_v46, 16  ;;  %v1058_v63 = vmul.u32 %v1054_v7, %v1030_v37  ;;  %v996_v7 = vshrl.u32 %v9674_v20, %v6125_v44 }
  0x7d   : > { %vm1041_vm4 = vc.u32 %v1033_v45, %v1037_v48  ;;  %v1043_v55 = vadd.s32 %v1037_v48, %v1033_v45  ;;  %v1061_v27 = vshll.u32 %v6229_v53, 16  ;;  %vm1063_vm5 = vc.u32 %v1055_v18, %v1059_v35 }
  0x7e   : > { %v6224_v40 = vshrl.u32 %v414_v38, 30  ;;  %v6236_v61 = vadd.s32 %v1059_v35, %v1055_v18  ;;  %v1042_v62 = vsel %vm1041_vm4, 1, %v9662_v6  ;;  %v1064_v32 = vsel %vm1063_vm5, 1, %v9662_v6 }
  0x7f   : > { %vm1045_vm7 = vc.u32 %v1043_v55, %v1039_v57  ;;  %v1044_v21 = vadd.s32 %v1042_v62, %v1036_v1  ;;  %v6249_v23 = vpop.eup %5690  ;;  %v5906_v45 = vmov 8.0   ;;  %v1017_v37 = vsel %vm1015_vm1, %v6179_v36, 2102212464 }
  0x80   : > { %v416_v41 = vshll.u32 %v6224_v40, 30  ;;  %vm1067_vm8 = vc.u32 %v6236_v61, %v1061_v27  ;;  %v1046_v48 = vsel %vm1045_vm7, 1, %v9662_v6  ;;  %v1066_v18 = vadd.s32 %v1064_v32, %v1058_v63 }
  0x81   : > { %v409_v35 = vadd.s32 %v6184_v43, %v6198_v59  ;;  %v1068_v57 = vsel %vm1067_vm8, 1, %v9662_v6  ;;  %v486_v17 = vmul.f32 48.0, %v6249_v23  ;;  %v1038_v1 = vshrl.u32 %v6220_v3, 16 }
  0x82   : > { %v417_v42 = vsub.s32 %v413_v19, %v416_v41  ;;  %v5905_v19 = vmov 3840.0   ;;  %v439_v41 = vsub.s32 4, %v6224_v40  ;;  %v5907_v63 = vmov 384.0  }
  0x83   : > { %5692 = vrcp.f32 %v5905_v19  ;;  %vm317_vm10 = vcmp.lt.s32.totalorder %v6087_v49, 0  ;;  %v1016_v43 = vsel %vm1012_vm14, %v996_v7, %v6162_v31  ;;  %v1060_v59 = vshrl.u32 %v6222_v25, 16 }
  0x84   : > { %vm418_vm6 = vcmp.lt.s32.totalorder %v417_v42, 0  ;;  %v419_v60 = vsub.s32 0, %v417_v42  ;;  %5694 = vrcp.f32 %v6241_v58  ;;  %v1070_v19 = vadd.s32 %v1068_v57, %v1066_v18  ;;  %v5499_v57 = vld [vmem:[%s6003_s27 + $0x10] sm:$0xff] }
  0x85   : > { %5696 = vrcp.f32 %v5906_v45  ;;  %v487_v45 = vsub.f32 1.0, %v486_v17  ;;  %v1040_v31 = vshrl.u32 %v6226_v46, 16  ;;  %vm6284_vm11 = vcmp.le.f32.partialorder %v315_v52, 0.7853982 }
  0x86   : > { %v420_v0 = vsel %vm418_vm6, %v419_v60, %v417_v42  ;;  %v1048_v60 = vadd.s32 %v1046_v48, %v1044_v21  ;;  %5698 = vrcp.f32 %v5907_v63  ;;  %v6307_v63 = vadd.s32 %v6236_v61, %v1061_v27 }
  0x87   : > { %v421_v16 = vclz %v420_v0  ;;  %vm490_vm13 = vweird.f32 %v6249_v23  ;;  %vm475_vm14 = vweird.f32 %v6241_v58  ;;  %vm977_vm4 = vcmp.gt.f32.partialorder %v6089_v50, 1e-06 }
  0x88   : > { %v1049_v25 = vadd.s32 %v1048_v60, %v1038_v1  ;;  %v1573_v60 = vrot.slane %v5499_v57, 7  ;;  %vm458_vm7 = vweird.f32 %v6087_v49 }
  0x89   : > { %v5477_v38 = vadd.s32 4294967294, %v421_v16  ;;  %v6263_v44 = vpop.eup %5692 }
  0x8a   : > { %v6265_v16 = vpop.eup %5694  ;;  %v495_v48 = vmul.f32 3840.0, %v6263_v44  ;;  %v6320_v61 = vmul.f32 %v5499_v57, %v1573_v60  ;;  %vm499_vm2 = vweird.f32 %v6263_v44 }
  0x8b   : > { %vm5478_vm9 = vcmp.lt.s32.totalorder %v5477_v38, 0  ;;  %v6272_v3 = vpop.eup %5696 }
  0x8c   : > { %v424_v55 = vsel %vm5478_vm9, 0, %v5477_v38  ;;  %v1018_v38 = vsel %vm1014_vm15, %v6164_v34, %v1017_v37  ;;  %v471_v34 = vmul.f32 %v6265_v16, %v6241_v58  ;;  %v659_v46 = vmul.f32 8.0, %v6272_v3  ;;  %9811 = vst [vmem:[#allocation15_spill] sm:$0xff] %v6320_v61 }
  0x8d   : > { %v425_v62 = vsub.s32 32, %v424_v55  ;;  %v426_v0 = vshll.u32 %v417_v42, %v424_v55  ;;  %v429_v36 = vsub.s32 4294967266, %v424_v55  ;;  %v440_v42 = vsel %vm317_vm10, %v439_v41, %v6224_v40  ;;  %v6297_v55 = vpop.eup %5698 }
  0x8e   : > { %v1062_v40 = vshrl.u32 %v6229_v53, 16  ;;  %v6291_v41 = vsel %vm6284_vm11, 0, %v440_v42  ;;  %v1071_v37 = vadd.s32 %v1070_v19, %v1060_v59  ;;  %v1019_v1 = vsel %vm1013_vm0, %v1016_v43, %v1018_v38 }
  0x8f   : > { %v427_v32 = vshrl.u32 %v409_v35, %v425_v62  ;;  %v430_v21 = vadd.s32 127, %v429_v36  ;;  %v488_v62 = vmul.f32 %v6249_v23, %v487_v45  ;;  %v6302_v36 = vadd.s32 %v1049_v25, %v1040_v31 }
  0x90   : > { %v459_v19 = vadd.s32 3, %v6291_v41  ;;  %v472_v56 = vsub.f32 1.0, %v471_v34  ;;  %v660_v43 = vsub.f32 1.0, %v659_v46  ;;  %v668_v42 = vmul.f32 384.0, %v6297_v55 }
  0x91   : > { %v428_v18 = vor.u32 %v427_v32, %v426_v0  ;;  %v431_v35 = vshll.u32 %v430_v21, 23  ;;  %v496_v0 = vsub.f32 1.0, %v495_v48  ;;  %v6310_v32 = vrot.slane %v5499_v57, 6 }
  0x92   : > { %v6312_v21 = vrot.slane %v5499_v57, 5  ;;  %v1072_v38 = vadd.s32 %v1071_v37, %v1062_v40  ;;  %v6317_v45 = vmul.f32 %v6066_v28, %v6066_v28  ;;  %v1073_v27 = vmul.u32 %v6114_v33, %v1019_v1 }
  0x93   : > { %v432_v52 = vor.u32 4788187, %v431_v35  ;;  %v435_v17 = vcvt.s32.f32 %v428_v18  ;;  %9809 = vst [vmem:[#allocation13_spill] sm:$0xff] %v6310_v32  ;;  %v489_v48 = vadd.f32 %v6249_v23, %v488_v62  ;;  %v497_v31 = vmul.f32 %v6263_v44, %v496_v0 }
  0x94   : > { %9810 = vst [vmem:[#allocation14_spill] sm:$0xff] %v6312_v21  ;;  %vm1075_vm12 = vc.u32 %v6302_v36, %v6307_v63  ;;  %v1076_v25 = vadd.s32 1, %v1072_v38  ;;  %v6326_v35 = vand.u32 3, %v459_v19  ;;  %v6329_v40 = vmul.f32 %v5499_v57, %v6310_v32 }
  0x95   : > { %v433_v59 = vand.u32 2147483647, %v432_v52  ;;  %v6332_v34 = vmul.f32 %v5499_v57, %v6312_v21  ;;  %v473_v33 = vmul.f32 %v6265_v16, %v472_v56  ;;  %v661_v46 = vmul.f32 %v6272_v3, %v660_v43 }
  0x96   : > { %9812 = vst [vmem:[#allocation16_spill] sm:$0xff] %v6329_v40  ;;  %v669_v37 = vsub.f32 1.0, %v668_v42  ;;  %v1077_v52 = vsel %vm1075_vm12, %v1076_v25, %v1072_v38  ;;  %v1583_v60 = vmul.f32 %v6329_v40, %v6329_v40  ;;  %v481_v0 = vand.u32 2147483648, %v6241_v58 }
  0x97   : > { %v436_v53 = vmul.f32 %v435_v17, %v433_v59  ;;  %9813 = vst [vmem:[#allocation17_spill] sm:$0xff] %v6332_v34  ;;  %v1078_v1 = vadd.s32 %v1077_v52, %v1073_v27  ;;  %v1588_v62 = vmul.f32 %v6332_v34, %v6332_v34  ;;  %v1582_v59 = vmul.f32 %v6320_v61, %v6320_v61 }
  0x98   : > { %v1585_v43 = vrot.slane %v1583_v60, 1  ;;  %vm476_vm15 = vweird.f32 %v6265_v16  ;;  %v662_v7 = vadd.f32 %v6272_v3, %v661_v46  ;;  %vm663_vm0 = vweird.f32 %v6272_v3 }
  0x99   : > { %v437_v18 = vxor.u32 2147483648, %v436_v53  ;;  %v1079_v56 = vadd.s32 536870912, %v1078_v1  ;;  %v1590_v42 = vrot.slane %v1588_v62, 2  ;;  %v670_v27 = vmul.f32 %v6297_v55, %v669_v37  ;;  %vm6367_vm1 = vmor %vm475_vm14, %vm476_vm15 }
  0x9a   : > { %v6362_v52 = vsel %vm490_vm13, %v6249_v23, %v489_v48  ;;  %v1587_v60 = vadd.f32 %v1585_v43, %v1582_v59  ;;  %v479_v23 = vand.u32 2147483647, %v6241_v58  ;;  %v482_v48 = vor.u32 1.1754944e-38, %v481_v0 }
  0x9b   : > { %v438_v17 = vsel %vm317_vm10, %v437_v18, %v436_v53  ;;  %v6358_v25 = vshrl.u32 %v1079_v56, 30  ;;  %v474_v18 = vadd.f32 %v6265_v16, %v473_v33  ;;  %9814 = vst [vmem:[#allocation18_spill] sm:$0xff] %v6362_v52  ;;  %v671_v56 = vadd.f32 %v6297_v55, %v670_v27 }
  0x9c   : > { %v6345_v57 = vsel %vm6284_vm11, %v6087_v49, %v438_v17  ;;  %v498_v17 = vadd.f32 %v6263_v44, %v497_v31  ;;  %v6378_v31 = vsel %vm663_vm0, %v6272_v3, %v662_v7  ;;  %v6380_v37 = vadd.f32 %v1590_v42, %v1587_v60 }
  0x9d   : > { %v443_v19 = vmul.f32 %v6345_v57, %v6345_v57  ;;  %v1081_v33 = vshll.u32 %v6358_v25, 30  ;;  %9817 = vst [vmem:[#allocation19_spill] sm:$0xff] %v6378_v31  ;;  %v492_v58 = vmul.f32 %v6362_v52, %v6066_v28  ;;  %vm672_vm5 = vweird.f32 %v6297_v55 }
  0x9e   : > { %v6391_v0 = vsel %vm499_vm2, %v6263_v44, %v498_v17  ;;  %vm6397_vm8 = vcmp.eq.f32.partialorder %v479_v23, 8.507059e+37  ;;  %v665_v44 = vmul.f32 %v6378_v31, %v6066_v28  ;;  %5700 = vrsqrt.f32 %v6380_v37  ;;  %v6414_v28 = vld [vmem:[#allocation5] sm:$0x1] }
  0x9f   : > { %v444_v38 = vmul.f32 -0.001358992, %v443_v19  ;;  %v451_v53 = vmul.f32 -0.00019511016, %v443_v19  ;;  %v6383_v43 = vsub.s32 %v1078_v1, %v1081_v33  ;;  %9818 = vst [vmem:[#allocation20_spill] sm:$0xff] %v6391_v0  ;;  %vm461_vm9 = vcmp.lt.s32.totalorder %v6326_v35, 2 }
  0xa0   : > { %v501_v17 = vmul.f32 %v6391_v0, %v6317_v45  ;;  %vm462_vm10 = vcmp.eq.s32.totalorder %v6326_v35, 0  ;;  %vm465_vm11 = vcmp.eq.s32.totalorder %v6326_v35, 2  ;;  %v666_v33 = vsub.f32 1.0, %v665_v44  ;;  %v266_v35 = vld [vmem:[#allocation2] sm:$0x1] }
  0xa1   : > { %v445_v6 = vadd.f32 0.041655596, %v444_v38  ;;  %v452_v39 = vadd.f32 0.008332121, %v451_v53  ;;  %v478_v38 = vsel %vm6367_vm1, %v6265_v16, %v474_v18  ;;  %vm1083_vm6 = vcmp.lt.s32.totalorder %v6383_v43, 0 }
  0xa2   : > { %v648_v16 = vand.u32 3, %v6291_v41  ;;  %v6406_v53 = vsel %vm672_vm5, %v6297_v55, %v671_v56  ;;  %v493_v18 = vsub.f32 0.5, %v492_v58  ;;  %v483_v55 = vsel %vm6397_vm8, %v482_v48, %v478_v38 }
  0xa3   : > { %v446_v62 = vmul.f32 %v445_v6, %v443_v19  ;;  %v453_v59 = vmul.f32 %v452_v39, %v443_v19  ;;  %v1084_v39 = vsub.s32 0, %v6383_v43  ;;  %9821 = vst [vmem:[#allocation21_spill] sm:$0xff] %v6406_v53  ;;  %v674_v23 = vmul.f32 %v6406_v53, %v6317_v45 }
  0xa4   : > { %vm653_vm12 = vcmp.eq.s32.totalorder %v648_v16, 2  ;;  %vm649_vm13 = vcmp.lt.s32.totalorder %v648_v16, 2  ;;  %vm650_vm14 = vcmp.eq.s32.totalorder %v648_v16, 0  ;;  %v6430_v48 = vsel %vm977_vm4, %v6089_v50, 1.0 }
  0xa5   : > { %v447_v3 = vadd.f32 -0.4999988, %v446_v62  ;;  %v454_v7 = vadd.f32 -0.16666654, %v453_v59  ;;  %v1085_v27 = vsel %vm1083_vm6, %v1084_v39, %v6383_v43  ;;  %v6422_v62 = vld [vmem:[#allocation5 + $0x2] sm:$0x1]  ;;  %v6434_v38 = vadd.s32 %v6307_v63, %v6302_v36 }
  0xa6   : > { %v1086_v60 = vclz %v1085_v27  ;;  %v6440_v6 = vmul.f32 %v6068_v29, %v6068_v29  ;;  %v675_v44 = vadd.f32 %v674_v23, %v666_v33  ;;  %v236_v27 = vsub.f32 0.0, %v6422_v62 }
  0xa7   : > { %v448_v1 = vmul.f32 %v447_v3, %v443_v19  ;;  %v455_v42 = vmul.f32 %v454_v7, %v443_v19  ;;  %v6416_v19 = vld [vmem:[#allocation5 + $0x1] sm:$0x1]  ;;  %v6425_v3 = vpop.eup %5700  ;;  %v502_v7 = vadd.f32 %v501_v17, %v493_v18  ;;  %5702 = vrcp.f32 %v6430_v48 }
  0xa8   : > { %v5484_v58 = vadd.s32 4294967294, %v1086_v60  ;;  %v1594_v18 = vmul.f32 %v6425_v3, %v6380_v37  ;;  %v238_v33 = vmul.f32 0.0, %v236_v27  ;;  %vm1140_vm6 = vweird.f32 %v6430_v48 }
  0xa9   : > { %v449_v41 = vadd.f32 1.0, %v448_v1  ;;  %v456_v46 = vadd.f32 1.0, %v455_v42  ;;  %v234_v1 = vsub.f32 0.0, %v6414_v28  ;;  %v235_v42 = vsub.f32 0.0, %v6416_v19 }
  0xaa   : > { %vm5485_vm15 = vcmp.lt.s32.totalorder %v5484_v58, 0 }
  0xab   : > { %v457_v59 = vmul.f32 %v456_v46, %v6345_v57  ;;  %v466_v56 = vxor.u32 2147483648, %v449_v41  ;;  %v237_v46 = vmul.f32 9.81007, %v235_v42  ;;  %v242_v30 = vmul.f32 0.0, %v234_v1 }
  0xac   : > { %v243_v24 = vmul.f32 0.0, %v235_v42 }
  0xad   : > { %v463_v45 = vxor.u32 2147483648, %v457_v59  ;;  %v467_v57 = vsel %vm465_vm11, %v466_v56, %v457_v59  ;;  %v655_v39 = vsel %vm653_vm12, %v466_v56, %v457_v59  ;;  %v240_v56 = vmul.f32 9.81007, %v234_v1 }
  0xae   : > { %v239_v26 = vsub.f32 %v237_v46, %v238_v33 }
  0xaf   : > { %v464_v36 = vsel %vm462_vm10, %v449_v41, %v463_v45  ;;  %v652_v63 = vsel %vm650_vm14, %v449_v41, %v463_v45  ;;  %v241_v16 = vsub.f32 %v238_v33, %v240_v56  ;;  %vm1123_vm10 = vweird.f32 %v6092_v51 }
  0xb0   : > { %v468_v17 = vsel %vm461_vm9, %v464_v36, %v467_v57  ;;  %v656_v60 = vsel %vm649_vm13, %v652_v63, %v655_v39  ;;  %v6459_v39 = vrot.slane %v6021_v2, 4  ;;  %v6462_v36 = vsel %vm5485_vm15, 0, %v5484_v58 }
  0xb1   : > { %v469_v23 = vsel %vm458_vm7, nan, %v468_v17  ;;  %v657_v59 = vsel %vm458_vm7, nan, %v656_v60  ;;  %v244_v63 = vsub.f32 %v242_v30, %v243_v24  ;;  %v245_v17 = vmul.f32 2.0, %v239_v26  ;;  %v269_v60 = vld [vmem:[#allocation2 + $0x3] sm:$0x1] }
  0xb2   : > { %v484_v41 = vmul.f32 %v483_v55, %v469_v23  ;;  %v676_v45 = vsel %vm312_vm3, %v657_v59, %v675_v44  ;;  %v267_v44 = vld [vmem:[#allocation2 + $0x1] sm:$0x1]  ;;  %v6470_v2 = vmul.f32 %v6425_v3, %v1594_v18  ;;  %v246_v56 = vmul.f32 2.0, %v241_v16 }
  0xb3   : > { %v690_v57 = vrot.slane %v676_v45, 1  ;;  %v6481_v16 = vmul.f32 %v245_v17, %v235_v42  ;;  %vm1600_vm14 = vcmp.eq.f32.partialorder %v6380_v37, inf  ;;  %vm1602_vm15 = vcmp.eq.f32.partialorder %v6380_v37, 0.0 }
  0xb4   : > { %v503_v49 = vsel %vm312_vm3, %v484_v41, %v502_v7  ;;  %v247_v7 = vmul.f32 2.0, %v244_v63  ;;  %v268_v41 = vld [vmem:[#allocation2 + $0x2] sm:$0x1]  ;;  %v6475_v22 = vmul.f32 %v246_v56, %v236_v27  ;;  %vm982_vm3 = vcmp.lt.s32.totalorder %v6092_v51, 0 }
  0xb5   : > { %v677_v46 = vmul.f32 %v503_v49, %v6036_v10  ;;  %v679_v23 = vrot.slane %v503_v49, 7  ;;  %v682_v33 = vrot.slane %v503_v49, 6  ;;  %v692_v59 = vmul.f32 %v690_v57, %v266_v35 }
  0xb6   : > { %v707_v58 = vmul.f32 %v690_v57, %v267_v44  ;;  %v718_v45 = vmul.f32 %v690_v57, %v269_v60  ;;  %v6477_v10 = vmul.f32 %v245_v17, %v236_v27  ;;  %v6479_v49 = vmul.f32 %v246_v56, %v234_v1 }
  0xb7   : > { %v681_v24 = vmul.f32 %v679_v23, %v6040_v11  ;;  %v684_v26 = vmul.f32 %v682_v33, %v6044_v12  ;;  %v686_v30 = vrot.slane %v677_v46, 1  ;;  %v6483_v11 = vmul.f32 %v247_v7, %v235_v42 }
  0xb8   : > { %v6485_v12 = vmul.f32 %v247_v7, %v234_v1  ;;  %v716_v1 = vmul.f32 %v690_v57, %v268_v41 }
  0xb9   : > { %v688_v18 = vmul.f32 %v686_v30, %v269_v60  ;;  %v695_v20 = vrot.slane %v684_v26, 3  ;;  %v700_v55 = vrot.slane %v681_v24, 2  ;;  %v714_v47 = vmul.f32 %v686_v30, %v267_v44 }
  0xba   : > { %v719_v54 = vmul.f32 %v686_v30, %v266_v35  ;;  %v1094_v24 = vsub.s32 4294967266, %v6462_v36  ;;  %v709_v42 = vmul.f32 %v686_v30, %v268_v41 }
  0xbb   : > { %v693_v63 = vadd.f32 %v692_v59, %v688_v18  ;;  %v697_v46 = vmul.f32 %v695_v20, %v267_v44  ;;  %v702_v23 = vmul.f32 %v700_v55, %v268_v41  ;;  %v704_v33 = vmul.f32 %v700_v55, %v269_v60 }
  0xbc   : > { %v705_v21 = vmul.f32 %v695_v20, %v266_v35  ;;  %v711_v27 = vmul.f32 %v695_v20, %v269_v60  ;;  %v712_v32 = vmul.f32 %v700_v55, %v266_v35  ;;  %v720_v34 = vsub.f32 %v718_v45, %v719_v54 }
  0xbd   : > { %v698_v40 = vadd.f32 %v697_v46, %v693_v63  ;;  %v721_v61 = vmul.f32 %v700_v55, %v267_v44  ;;  %v723_v26 = vmul.f32 %v695_v20, %v268_v41  ;;  %v250_v18 = vsub.f32 %v6483_v11, %v6475_v22 }
  0xbe   : > { %v706_v8 = vsub.f32 %v704_v33, %v705_v21  ;;  %v713_v15 = vadd.f32 %v712_v32, %v711_v27  ;;  %v253_v54 = vsub.f32 %v6477_v10, %v6485_v12  ;;  %v256_v20 = vsub.f32 %v6479_v49, %v6481_v16 }
  0xbf   : > { %v6490_v14 = vsub.f32 %v698_v40, %v702_v23  ;;  %v722_v59 = vsub.f32 %v720_v34, %v721_v61  ;;  %v257_v44 = vmul.f32 %v245_v17, %v6488_v9  ;;  %v260_v61 = vmul.f32 %v246_v56, %v6488_v9 }
  0xc0   : > { %v708_v35 = vadd.f32 %v707_v58, %v706_v8  ;;  %v715_v55 = vsub.f32 %v713_v15, %v714_v47  ;;  %v263_v40 = vmul.f32 %v247_v7, %v6488_v9 }
  0xc1   : > { %v6499_v21 = vsub.f32 %v722_v59, %v723_v26  ;;  %v831_v32 = vmul.f32 %v6490_v14, %v6488_v9  ;;  %v843_v8 = vmul.f32 %v6490_v14, %v6422_v62  ;;  %v853_v15 = vmul.f32 %v6490_v14, %v6414_v28 }
  0xc2   : > { %v6505_v22 = vadd.f32 %v709_v42, %v708_v35  ;;  %v6507_v34 = vadd.f32 %v716_v1, %v715_v55  ;;  %v848_v60 = vmul.f32 %v6490_v14, %v6416_v19  ;;  %v264_v33 = vadd.f32 9.81007, %v263_v40 }
  0xc3   : > { %v832_v57 = vmul.f32 %v6499_v21, %v6414_v28  ;;  %v841_v17 = vmul.f32 %v6499_v21, %v6416_v19  ;;  %v852_v58 = vmul.f32 %v6499_v21, %v6488_v9  ;;  %v850_v11 = vmul.f32 %v6499_v21, %v6422_v62 }
  0xc4   : > { %9822 = vst [vmem:[#allocation22_spill] sm:$0xff] %v6507_v34  ;;  %v834_v56 = vmul.f32 %v6507_v34, %v6416_v19  ;;  %v836_v47 = vmul.f32 %v6505_v22, %v6422_v62  ;;  %v838_v30 = vmul.f32 %v6505_v22, %v6488_v9  ;;  %v839_v7 = vmul.f32 %v6507_v34, %v6414_v28 }
  0xc5   : > { %v833_v41 = vadd.f32 %v832_v57, %v831_v32  ;;  %v845_v45 = vmul.f32 %v6507_v34, %v6488_v9  ;;  %v846_v10 = vmul.f32 %v6505_v22, %v6414_v28  ;;  %v854_v49 = vsub.f32 %v852_v58, %v853_v15 }
  0xc6   : > { %v840_v16 = vsub.f32 %v838_v30, %v839_v7  ;;  %v855_v12 = vmul.f32 %v6505_v22, %v6416_v19  ;;  %v857_v63 = vmul.f32 %v6507_v34, %v6422_v62  ;;  %v725_v27 = vmul.f32 %v6505_v22, %v6025_v4 }
  0xc7   : > { %v835_v46 = vadd.f32 %v834_v56, %v833_v41  ;;  %v847_v23 = vadd.f32 %v846_v10, %v845_v45  ;;  %v726_v1 = vmul.f32 %v6507_v34, %v6028_v5  ;;  %v730_v59 = vmul.f32 %v6459_v39, %v6507_v34 }
  0xc8   : > { %v842_v26 = vadd.f32 %v841_v17, %v840_v16  ;;  %v856_v42 = vsub.f32 %v854_v49, %v855_v12  ;;  %v731_v32 = vmul.f32 %v6490_v14, %v6025_v4  ;;  %v6549_v40 = vmul.f32 0.5, %v6470_v2  ;;  %v6557_v4 = vld [vmem:[%s6003_s27] sm:$0xff] }
  0xc9   : > { %v837_v35 = vsub.f32 %v835_v46, %v836_v47  ;;  %v849_v55 = vsub.f32 %v847_v23, %v848_v60  ;;  %v727_v17 = vsub.f32 %v725_v27, %v726_v1  ;;  %v733_v58 = vmul.f32 %v6490_v14, %v6028_v5  ;;  %v6589_v1 = vld [vmem:[#allocation2 + $0x6] sm:$0x1] }
  0xca   : > { %v844_v15 = vadd.f32 %v843_v8, %v842_v26  ;;  %v858_v57 = vsub.f32 %v856_v42, %v857_v63  ;;  %v732_v47 = vsub.f32 %v730_v59, %v731_v32  ;;  %v734_v60 = vmul.f32 %v6459_v39, %v6505_v22  ;;  %v6587_v42 = vld [vmem:[#allocation2 + $0x5] sm:$0x1] }
  0xcb   : > { %919 = vst [vmem:[%s6017_s29] sm:$0x1] %v837_v35  ;;  %v851_v56 = vadd.f32 %v850_v11, %v849_v55  ;;  %v784_v30 = vrot.slane %v6557_v4, 3  ;;  %v259_v2 = vadd.f32 %v257_v44, %v250_v18  ;;  %v262_v7 = vadd.f32 %v260_v61, %v253_v54 }
  0xcc   : > { %920 = vst [vmem:[%s6017_s29 + $0x1] sm:$0x1] %v844_v15  ;;  %v265_v8 = vadd.f32 %v264_v33, %v256_v20  ;;  %v736_v41 = vmul.f32 2.0, %v727_v17  ;;  %v735_v45 = vsub.f32 %v733_v58, %v734_v60  ;;  %v737_v10 = vmul.f32 2.0, %v732_v47 }
  0xcd   : > { %921 = vst [vmem:[%s6017_s29 + $0x2] sm:$0x1] %v851_v56  ;;  %v9823_v5 = vand.u32 2147483647, %v6092_v51  ;;  %v9826_v16 = vsub.s32 32, %v6462_v36  ;;  %v1095_v12 = vadd.s32 127, %v1094_v24  ;;  %v9829_v17 = vshll.u32 %v6383_v43, %v6462_v36 }
  0xce   : > { %922 = vst [vmem:[%s6017_s29 + $0x3] sm:$0x1] %v858_v57  ;;  %v742_v18 = vmul.f32 %v736_v41, %v6507_v34  ;;  %v746_v54 = vmul.f32 %v736_v41, %v6505_v22  ;;  %v748_v20 = vmul.f32 %v736_v41, %v6499_v21  ;;  %v1104_v44 = vsub.s32 4, %v6358_v25 }
  0xcf   : > { %vm6564_vm0 = vcmp.le.f32.partialorder %v9823_v5, 0.7853982  ;;  %v1092_v11 = vshrl.u32 %v6434_v38, %v9826_v16  ;;  %v738_v61 = vmul.f32 2.0, %v735_v45  ;;  %v740_v63 = vmul.f32 %v737_v10, %v6507_v34  ;;  %v6581_v38 = vld [vmem:[#allocation2 + $0x4] sm:$0x1] }
  0xd0   : > { %v745_v46 = vmul.f32 %v737_v10, %v6490_v14  ;;  %v757_v23 = vmul.f32 %v737_v10, %v6499_v21  ;;  %v750_v33 = vrot.slane %v748_v20, 4  ;;  %v6583_v24 = vrot.slane %v259_v2, 4  ;;  %v6604_v45 = vld [vmem:[#allocation5 + $0x4] sm:$0x1] }
  0xd1   : > { %v6585_v27 = vrot.slane %v262_v7, 3  ;;  %v1096_v26 = vshll.u32 %v1095_v12, 23  ;;  %v739_v59 = vmul.f32 %v738_v61, %v6505_v22  ;;  %v743_v35 = vmul.f32 %v738_v61, %v6490_v14  ;;  %v276_v7 = vld [vmem:[#allocation2 + $0xa] sm:$0x1] }
  0xd2   : > { %9827 = vst [vmem:[#allocation23_spill] sm:$0xff] %v6583_v24  ;;  %v747_v55 = vsub.f32 %v745_v46, %v746_v54  ;;  %v759_v32 = vrot.slane %v757_v23, 3  ;;  %v752_v15 = vadd.f32 %v6557_v4, %v750_v33  ;;  %v766_v57 = vmul.f32 %v738_v61, %v6499_v21  ;;  %v275_v61 = vld [vmem:[#allocation2 + $0x9] sm:$0x1] }
  0xd3   : > { %9828 = vst [vmem:[#allocation24_spill] sm:$0xff] %v6585_v27  ;;  %v1093_v58 = vor.u32 %v1092_v11, %v9829_v17  ;;  %v1105_v56 = vsel %vm982_vm3, %v1104_v44, %v6358_v25  ;;  %v741_v47 = vsub.f32 %v739_v59, %v740_v63  ;;  %v744_v60 = vsub.f32 %v742_v18, %v743_v35  ;;  %v273_v11 = vld [vmem:[#allocation2 + $0x7] sm:$0x1]  ;;  %v274_v44 = vld [vmem:[#allocation2 + $0x8] sm:$0x1] }
  0xd4   : > { %v761_v2 = vadd.f32 %v6557_v4, %v759_v32  ;;  %v794_v41 = vmul.f32 %v6557_v4, %v6581_v38  ;;  %v768_v10 = vrot.slane %v766_v57, 2  ;;  %v772_v5 = vrot.slane %v747_v55, 2  ;;  %v6620_v59 = vld [vmem:[#allocation5 + $0x5] sm:$0x1] }
  0xd5   : > { %v802_v43 = vmul.f32 %v6557_v4, %v6587_v42  ;;  %v810_v36 = vmul.f32 %v6557_v4, %v6589_v1  ;;  %v754_v16 = vrot.slane %v741_v47, 4  ;;  %v763_v25 = vrot.slane %v744_v60, 3 }
  0xd6   : > { %v6611_v12 = vadd.f32 %v6557_v4, %v276_v7  ;;  %v1097_v18 = vor.u32 4788187, %v1096_v26  ;;  %v770_v54 = vadd.f32 %v6557_v4, %v768_v10  ;;  %v6614_v20 = vrot.slane %v265_v8, 2  ;;  %v6625_v8 = vld [vmem:[#allocation5 + $0x7] sm:$0x1] }
  0xd7   : > { %v1100_v63 = vcvt.s32.f32 %v1093_v58  ;;  %v6618_v46 = vsel %vm6564_vm0, 0, %v1105_v56  ;;  %v756_v23 = vadd.f32 %v754_v16, %v752_v15  ;;  %v765_v33 = vadd.f32 %v763_v25, %v761_v2  ;;  %9832 = vst [vmem:[#allocation27_spill] sm:$0xff] %v6625_v8  ;;  %v6630_v15 = vld [vmem:[#allocation5 + $0x6] sm:$0x1]  ;;  %v6642_v25 = vld [vmem:[#allocation5 + $0x8] sm:$0x1] }
  0xd8   : > { %9830 = vst [vmem:[#allocation25_spill] sm:$0xff] %v6611_v12  ;;  %v929_v35 = vmul.f32 %v6611_v12, %v6604_v45  ;;  %v1098_v55 = vand.u32 2147483647, %v1097_v18  ;;  %v774_v26 = vadd.f32 %v772_v5, %v770_v54  ;;  %v791_v32 = vrot.slane %v6557_v4, 2 }
  0xd9   : > { %9831 = vst [vmem:[#allocation26_spill] sm:$0xff] %v6614_v20  ;;  %v795_v57 = vadd.f32 %v794_v41, %v273_v11  ;;  %v1124_v17 = vadd.s32 3, %v6618_v46  ;;  %v778_v58 = vsub.f32 %v756_v23, %v6583_v24  ;;  %v783_v56 = vsub.f32 %v765_v33, %v6585_v27  ;;  %v6649_v33 = vld [vmem:[#allocation5 + $0x9] sm:$0x1] }
  0xda   : > { %v803_v47 = vadd.f32 %v802_v43, %v274_v44  ;;  %v811_v60 = vadd.f32 %v810_v36, %v275_v61  ;;  %v790_v2 = vsub.f32 %v774_v26, %v6614_v20  ;;  %v933_v7 = vmul.f32 %v6611_v12, %v6620_v59  ;;  %9833 = vst [vmem:[#allocation28_spill] sm:$0xff] %v6642_v25 }
  0xdb   : > { %v1101_v10 = vmul.f32 %v1100_v63, %v1098_v55  ;;  %v779_v41 = vmul.f32 %v778_v58, %v6459_v39  ;;  %v786_v5 = vmul.f32 %v784_v30, %v783_v56  ;;  %v6640_v16 = vadd.f32 %v929_v35, %v6625_v8  ;;  %9834 = vst [vmem:[#allocation29_spill] sm:$0xff] %v6649_v33 }
  0xdc   : > { %v793_v36 = vmul.f32 %v791_v32, %v790_v2  ;;  %v937_v11 = vmul.f32 %v6611_v12, %v6630_v15  ;;  %v6647_v54 = vand.u32 3, %v1124_v17  ;;  %v6652_v26 = vadd.f32 %v933_v7, %v6642_v25 }
  0xdd   : > { %v1102_v18 = vxor.u32 2147483648, %v1101_v10  ;;  %v819_v44 = vrot.slane %v779_v41, 4  ;;  %v823_v61 = vrot.slane %v786_v5, 5  ;;  %v796_v63 = vmul.f32 0.5, %v779_v41 }
  0xde   : > { %v804_v23 = vmul.f32 0.5, %v786_v5  ;;  %v827_v55 = vrot.slane %v793_v36, 6  ;;  %v812_v35 = vmul.f32 0.5, %v793_v36  ;;  %v6665_v5 = vpop.eup %5702  ;;  %v6671_v43 = vadd.f32 %v937_v11, %v6649_v33 }
  0xdf   : > { %v1103_v58 = vsel %vm982_vm3, %v1102_v18, %v1101_v10  ;;  %v6657_v56 = vadd.f32 %v819_v44, %v6581_v38  ;;  %v6660_v17 = vadd.f32 %v823_v61, %v6587_v42  ;;  %v797_v2 = vmul.f32 %v796_v63, %v6459_v39 }
  0xe0   : > { %v805_v41 = vmul.f32 %v804_v23, %v784_v30  ;;  %v6668_v36 = vadd.f32 %v827_v55, %v6589_v1  ;;  %v813_v7 = vmul.f32 %v812_v35, %v791_v32  ;;  %v6676_v38 = vsel %vm6564_vm0, %v6092_v51, %v1103_v58 }
  0xe1   : > { %v860_v39 = vmul.f32 %v6660_v17, %v6422_v62  ;;  %v862_v4 = vmul.f32 %v6657_v56, %v6422_v62  ;;  %v865_v30 = vmul.f32 %v6660_v17, %v6414_v28  ;;  %v866_v42 = vmul.f32 %v6657_v56, %v6416_v19 }
  0xe2   : > { %v859_v1 = vmul.f32 %v6668_v36, %v6416_v19  ;;  %v863_v49 = vmul.f32 %v6668_v36, %v6414_v28  ;;  %v799_v32 = vrot.slane %v797_v2, 4  ;;  %v807_v10 = vrot.slane %v805_v41, 5 }
  0xe3   : > { %v867_v11 = vsub.f32 %v865_v30, %v866_v42  ;;  %v815_v18 = vrot.slane %v813_v7, 6  ;;  %v6692_v44 = vmul.f32 %v6676_v38, %v6676_v38  ;;  %v6696_v61 = vmul.f32 %v6665_v5, %v6430_v48 }
  0xe4   : > { %v861_v63 = vsub.f32 %v859_v1, %v860_v39  ;;  %v864_v23 = vsub.f32 %v862_v4, %v863_v49  ;;  %v6698_v55 = vadd.f32 %v799_v32, %v795_v57  ;;  %v6700_v35 = vadd.f32 %v807_v10, %v803_v47 }
  0xe5   : > { %v870_v58 = vmul.f32 2.0, %v867_v11  ;;  %v6702_v33 = vadd.f32 %v815_v18, %v811_v60  ;;  %v1109_v2 = vmul.f32 -0.001358992, %v6692_v44  ;;  %v1116_v41 = vmul.f32 -0.00019511016, %v6692_v44 }
  0xe6   : > { %v868_v7 = vmul.f32 2.0, %v861_v63  ;;  %v869_v30 = vmul.f32 2.0, %v864_v23  ;;  %v890_v42 = vmul.f32 %v6700_v35, %v6422_v62  ;;  %v892_v39 = vmul.f32 %v6698_v55, %v6422_v62 }
  0xe7   : > { %v871_v57 = vmul.f32 %v870_v58, %v6416_v19  ;;  %v875_v47 = vmul.f32 %v870_v58, %v6414_v28  ;;  %v886_v4 = vmul.f32 %v870_v58, %v6488_v9  ;;  %v889_v60 = vmul.f32 %v6702_v33, %v6416_v19 }
  0xe8   : > { %v872_v1 = vmul.f32 %v869_v30, %v6422_v62  ;;  %v880_v49 = vmul.f32 %v868_v7, %v6488_v9  ;;  %v874_v32 = vmul.f32 %v868_v7, %v6422_v62  ;;  %v883_v10 = vmul.f32 %v869_v30, %v6488_v9 }
  0xe9   : > { %v877_v11 = vmul.f32 %v869_v30, %v6414_v28  ;;  %v878_v18 = vmul.f32 %v868_v7, %v6416_v19  ;;  %v887_v63 = vadd.f32 %v886_v4, %v6668_v36  ;;  %v891_v23 = vsub.f32 %v889_v60, %v890_v42 }
  0xea   : > { %v873_v25 = vsub.f32 %v871_v57, %v872_v1  ;;  %v881_v58 = vadd.f32 %v880_v49, %v6657_v56  ;;  %v876_v8 = vsub.f32 %v874_v32, %v875_v47  ;;  %v884_v20 = vadd.f32 %v883_v10, %v6660_v17 }
  0xeb   : > { %v879_v27 = vsub.f32 %v877_v11, %v878_v18  ;;  %v893_v24 = vmul.f32 %v6702_v33, %v6414_v28  ;;  %v895_v12 = vmul.f32 %v6700_v35, %v6414_v28  ;;  %v896_v30 = vmul.f32 %v6698_v55, %v6416_v19 }
  0xec   : > { %v882_v7 = vadd.f32 %v881_v58, %v873_v25  ;;  %v885_v34 = vadd.f32 %v884_v20, %v876_v8  ;;  %v898_v42 = vmul.f32 2.0, %v891_v23  ;;  %v1110_v57 = vadd.f32 0.041655596, %v1109_v2 }
  0xed   : > { %v888_v4 = vadd.f32 %v887_v63, %v879_v27  ;;  %v894_v60 = vsub.f32 %v892_v39, %v893_v24  ;;  %v897_v47 = vsub.f32 %v895_v12, %v896_v30  ;;  %v1117_v1 = vadd.f32 0.008332121, %v1116_v41 }
  0xee   : > { %v923_v49 = vadd.f32 %v882_v7, %v6604_v45  ;;  %v925_v32 = vadd.f32 %v885_v34, %v6620_v59  ;;  %v910_v10 = vmul.f32 %v898_v42, %v6488_v9  ;;  %v904_v11 = vmul.f32 %v898_v42, %v6422_v62 }
  0xef   : > { %v927_v18 = vadd.f32 %v888_v4, %v6630_v15  ;;  %v899_v20 = vmul.f32 2.0, %v894_v60  ;;  %v900_v8 = vmul.f32 2.0, %v897_v47  ;;  %v908_v25 = vmul.f32 %v898_v42, %v6416_v19 }
  0xf0   : > { %vm1130_vm1 = vcmp.eq.s32.totalorder %v6647_v54, 2  ;;  %924 = vst [vmem:[%s6017_s29 + $0x4] sm:$0x1] %v923_v49  ;;  %v911_v24 = vadd.f32 %v910_v10, %v6698_v55  ;;  %v1111_v27 = vmul.f32 %v1110_v57, %v6692_v44  ;;  %v1118_v34 = vmul.f32 %v1117_v1, %v6692_v44 }
  0xf1   : > { %v1137_v12 = vsub.f32 1.0, %v6696_v61  ;;  %926 = vst [vmem:[%s6017_s29 + $0x5] sm:$0x1] %v925_v32  ;;  %v901_v2 = vmul.f32 %v900_v8, %v6416_v19  ;;  %v902_v41 = vmul.f32 %v899_v20, %v6422_v62  ;;  %v905_v39 = vmul.f32 %v900_v8, %v6414_v28 }
  0xf2   : > { %v913_v63 = vmul.f32 %v899_v20, %v6488_v9  ;;  %vm1127_vm2 = vcmp.eq.s32.totalorder %v6647_v54, 0  ;;  %928 = vst [vmem:[%s6017_s29 + $0x6] sm:$0x1] %v927_v18  ;;  %v907_v23 = vmul.f32 %v899_v20, %v6414_v28  ;;  %v916_v58 = vmul.f32 %v900_v8, %v6488_v9 }
  0xf3   : > { %v1112_v30 = vadd.f32 -0.4999988, %v1111_v27  ;;  %v1119_v7 = vadd.f32 -0.16666654, %v1118_v34  ;;  %vm1126_vm5 = vcmp.lt.s32.totalorder %v6647_v54, 2  ;;  %v903_v61 = vsub.f32 %v901_v2, %v902_v41 }
  0xf4   : > { %v906_v42 = vsub.f32 %v904_v11, %v905_v39  ;;  %v914_v57 = vadd.f32 %v913_v63, %v6700_v35  ;;  %v1138_v4 = vmul.f32 %v6665_v5, %v1137_v12  ;;  %v909_v60 = vsub.f32 %v907_v23, %v908_v25 }
  0xf5   : > { %v917_v47 = vadd.f32 %v916_v58, %v6702_v33  ;;  %v1113_v1 = vmul.f32 %v1112_v30, %v6692_v44  ;;  %v1120_v49 = vmul.f32 %v1119_v7, %v6692_v44  ;;  %v912_v32 = vadd.f32 %v911_v24, %v903_v61 }
  0xf6   : > { %v915_v10 = vadd.f32 %v914_v57, %v906_v42  ;;  %v1139_v18 = vadd.f32 %v6665_v5, %v1138_v4  ;;  %vm1141_vm7 = vweird.f32 %v6665_v5  ;;  %v1144_v44 = vand.u32 2147483647, %v6430_v48 }
  0xf7   : > { %v918_v20 = vadd.f32 %v917_v47, %v909_v60  ;;  %v1114_v11 = vadd.f32 1.0, %v1113_v1  ;;  %v1121_v8 = vadd.f32 1.0, %v1120_v49  ;;  %v931_v25 = vadd.f32 %v6640_v16, %v912_v32  ;;  %vm6762_vm8 = vmor %vm1140_vm6, %vm1141_vm7 }
  0xf8   : > { %v935_v27 = vadd.f32 %v6652_v26, %v915_v10  ;;  %v1146_v24 = vand.u32 2147483648, %v6430_v48  ;;  %v1143_v16 = vsel %vm6762_vm8, %v6665_v5, %v1139_v18  ;;  %vm1145_vm9 = vcmp.eq.f32.partialorder %v1144_v44, 8.507059e+37 }
  0xf9   : > { %v939_v12 = vadd.f32 %v6671_v43, %v918_v20  ;;  %v1122_v2 = vmul.f32 %v1121_v8, %v6676_v38  ;;  %v1131_v41 = vxor.u32 2147483648, %v1114_v11  ;;  %932 = vst [vmem:[%s6017_s29 + $0x7] sm:$0x1] %v931_v25  ;;  %v1150_v39 = vmul.f32 %v6068_v29, %v6362_v52  ;;  %v9838_v8 = vld [vmem:[#allocation11_spill] sm:$0xff] }
  0xfa   : > { %v1147_v26 = vor.u32 1.1754944e-38, %v1146_v24  ;;  %v1152_v63 = vmul.f32 %v6440_v6, %v6391_v0  ;;  %936 = vst [vmem:[%s6017_s29 + $0x8] sm:$0x1] %v935_v27  ;;  %v1299_v38 = vand.u32 3, %v6618_v46  ;;  %v1309_v23 = vmul.f32 %v6068_v29, %v6378_v31  ;;  %v9839_v27 = vld [vmem:[#allocation12_spill] sm:$0xff] }
  0xfb   : > { %v1128_v48 = vxor.u32 2147483648, %v1122_v2  ;;  %v1132_v43 = vsel %vm1130_vm1, %v1131_v41, %v1122_v2  ;;  %940 = vst [vmem:[%s6017_s29 + $0x9] sm:$0x1] %v939_v12  ;;  %v1151_v58 = vsub.f32 0.5, %v1150_v39  ;;  %v1311_v30 = vmul.f32 %v6440_v6, %v6406_v53 }
  0xfc   : > { %v1148_v5 = vsel %vm1145_vm9, %v1147_v26, %v1143_v16  ;;  %vm1300_vm11 = vcmp.lt.s32.totalorder %v1299_v38, 2  ;;  %vm1301_vm12 = vcmp.eq.s32.totalorder %v1299_v38, 0  ;;  %vm1304_vm13 = vcmp.eq.s32.totalorder %v1299_v38, 2 }
  0xfd   : > { %v1129_v7 = vsel %vm1127_vm2, %v1114_v11, %v1128_v48  ;;  %v1153_v61 = vadd.f32 %v1152_v63, %v1151_v58  ;;  %v1303_v42 = vsel %vm1301_vm12, %v1114_v11, %v1128_v48  ;;  %v1306_v29 = vsel %vm1304_vm13, %v1131_v41, %v1122_v2  ;;  %v6814_v2 = vld [vmem:[%s6003_s27 + $0x8] sm:$0xff]  ;;  %v6820_v41 = vld [vmem:[%s6003_s27 + $0x18] sm:$0xff] }
  0xfe   : > { %v1133_v46 = vsel %vm1126_vm5, %v1129_v7, %v1132_v43  ;;  %v1307_v4 = vsel %vm1300_vm11, %v1303_v42, %v1306_v29  ;;  %v1310_v60 = vsub.f32 1.0, %v1309_v23  ;;  %v9837_v47 = vsub.f32 1.5, %v6549_v40 }
  0xff   : > { %v1134_v57 = vsel %vm1123_vm10, nan, %v1133_v46  ;;  %v1308_v49 = vsel %vm1123_vm10, nan, %v1307_v4  ;;  %v1603_v51 = vand.u32 2147483648, %v6380_v37  ;;  %v2202_v63 = vrot.slane %v6820_v41, 7 }
 0x100   : > { %v1598_v6 = vmul.f32 %v6425_v3, %v9837_v47  ;;  %v1149_v1 = vmul.f32 %v1148_v5, %v1134_v57  ;;  %v1312_v32 = vadd.f32 %v1311_v30, %v1310_v60  ;;  %v9840_v30 = vld [vmem:[#allocation22_spill] sm:$0xff] }
 0x102   : > { %v1599_v54 = vmul.f32 %v1598_v6, %v6380_v37  ;;  %v1154_v10 = vsel %vm977_vm4, %v1149_v1, %v1153_v61  ;;  %v1313_v18 = vsel %vm977_vm4, %v1308_v49, %v1312_v32 }
 0x103   : > { %v1314_v40 = vmul.f32 %v1154_v10, %v6046_v13  ;;  %v1316_v3 = vrot.slane %v1154_v10, 7  ;;  %v1319_v20 = vrot.slane %v1154_v10, 6  ;;  %v1327_v11 = vrot.slane %v1313_v18, 1 }
 0x104   : > { %v1601_v24 = vsel %vm1600_vm14, %v6380_v37, %v1599_v54  ;;  %v6817_v13 = vrot.slane %v6814_v2, 4  ;;  %v6850_v18 = vrot.slane %v6820_v41, 5 }
 0x105   : > { %v1318_v25 = vmul.f32 %v1316_v3, %v9838_v8  ;;  %v1321_v34 = vmul.f32 %v1319_v20, %v9839_v27  ;;  %v1323_v44 = vrot.slane %v1314_v40, 1  ;;  %v1329_v50 = vmul.f32 %v1327_v11, %v6490_v14 }
 0x106   : > { %v1355_v12 = vmul.f32 %v1327_v11, %v6499_v21  ;;  %v1344_v48 = vmul.f32 %v1327_v11, %v6505_v22  ;;  %v6829_v23 = vsel %vm1602_vm15, %v1603_v51, %v1601_v24  ;;  %v1353_v54 = vmul.f32 %v1327_v11, %v9840_v30  ;;  %9842 = vst [vmem:[#allocation12_spill] sm:$0xff] %v6850_v18  ;;  %v9844_v24 = vld [vmem:[#allocation9_spill] sm:$0xff] }
 0x107   : > { %v1325_v16 = vmul.f32 %v1323_v44, %v6499_v21  ;;  %v1332_v26 = vrot.slane %v1321_v34, 3  ;;  %v1337_v39 = vrot.slane %v1318_v25, 2  ;;  %v1351_v43 = vmul.f32 %v1323_v44, %v6505_v22 }
 0x108   : > { %v1356_v38 = vmul.f32 %v1323_v44, %v6490_v14  ;;  %v6840_v6 = vmul.f32 0.5, %v6829_v23  ;;  %v1346_v49 = vmul.f32 %v1323_v44, %v9840_v30  ;;  %v6854_v20 = vmul.f32 %v6820_v41, %v2202_v63 }
 0x109   : > { %v1330_v5 = vadd.f32 %v1329_v50, %v1325_v16  ;;  %v1334_v58 = vmul.f32 %v1332_v26, %v6505_v22  ;;  %v1339_v7 = vmul.f32 %v1337_v39, %v9840_v30  ;;  %v1341_v46 = vmul.f32 %v1337_v39, %v6499_v21 }
 0x10a   : > { %v1342_v61 = vmul.f32 %v1332_v26, %v6490_v14  ;;  %v1348_v42 = vmul.f32 %v1332_v26, %v6499_v21  ;;  %v1349_v29 = vmul.f32 %v1337_v39, %v6490_v14  ;;  %v1357_v57 = vsub.f32 %v1355_v12, %v1356_v38  ;;  %9843 = vst [vmem:[#allocation22_spill] sm:$0xff] %v6854_v20 }
 0x10b   : > { %v1335_v4 = vadd.f32 %v1334_v58, %v1330_v5  ;;  %v1358_v60 = vmul.f32 %v1337_v39, %v6505_v22  ;;  %v1360_v47 = vmul.f32 %v1332_v26, %v9840_v30  ;;  %v6847_v14 = vrot.slane %v6820_v41, 6 }
 0x10c   : > { %v1343_v1 = vsub.f32 %v1341_v46, %v1342_v61  ;;  %v1350_v32 = vadd.f32 %v1349_v29, %v1348_v42  ;;  %v1612_v3 = vand.u32 2139095040, %v6840_v6  ;;  %vm1606_vm12 = vcmp.gt.f32.partialorder %v6829_v23, 1e-06 }
 0x10d   : > { %v6844_v10 = vsub.f32 %v1335_v4, %v1339_v7  ;;  %v1359_v21 = vsub.f32 %v1357_v57, %v1358_v60  ;;  %9841 = vst [vmem:[#allocation11_spill] sm:$0xff] %v6847_v14  ;;  %v9845_v60 = vld [vmem:[#allocation10_spill] sm:$0xff]  ;;  %vm1611_vm15 = vcmp.lt.s32.totalorder %v6840_v6, 0 }
 0x10e   : > { %v1345_v22 = vadd.f32 %v1344_v48, %v1343_v1  ;;  %v1352_v40 = vsub.f32 %v1350_v32, %v1351_v43 }
 0x10f   : > { %v6856_v51 = vsub.f32 %v1359_v21, %v1360_v47  ;;  %v1459_v11 = vmul.f32 %v6844_v10, %v6488_v9  ;;  %v1471_v8 = vmul.f32 %v6844_v10, %v6422_v62  ;;  %v1476_v25 = vmul.f32 %v6844_v10, %v6416_v19 }
 0x110   : > { %v6864_v27 = vadd.f32 %v1346_v49, %v1345_v22  ;;  %v6866_v34 = vadd.f32 %v1353_v54, %v1352_v40  ;;  %v1481_v44 = vmul.f32 %v6844_v10, %v6414_v28  ;;  %v1368_v50 = vmul.f32 %v6844_v10, %v9844_v24 }
 0x111   : > { %v1460_v12 = vmul.f32 %v6856_v51, %v6414_v28  ;;  %v1469_v16 = vmul.f32 %v6856_v51, %v6416_v19  ;;  %v1478_v26 = vmul.f32 %v6856_v51, %v6422_v62  ;;  %v1480_v39 = vmul.f32 %v6856_v51, %v6488_v9 }
 0x112   : > { %v1462_v63 = vmul.f32 %v6866_v34, %v6416_v19  ;;  %v1464_v48 = vmul.f32 %v6864_v27, %v6422_v62  ;;  %v1466_v43 = vmul.f32 %v6864_v27, %v6488_v9  ;;  %v1467_v38 = vmul.f32 %v6866_v34, %v6414_v28 }
 0x113   : > { %v1461_v5 = vadd.f32 %v1460_v12, %v1459_v11  ;;  %v1473_v58 = vmul.f32 %v6866_v34, %v6488_v9  ;;  %v1474_v30 = vmul.f32 %v6864_v27, %v6414_v28  ;;  %v1482_v7 = vsub.f32 %v1480_v39, %v1481_v44 }
 0x114   : > { %v1468_v46 = vsub.f32 %v1466_v43, %v1467_v38  ;;  %v1483_v61 = vmul.f32 %v6864_v27, %v6416_v19  ;;  %v1485_v42 = vmul.f32 %v6866_v34, %v6422_v62  ;;  %v1362_v29 = vmul.f32 %v6864_v27, %v9844_v24 }
 0x115   : > { %v1463_v57 = vadd.f32 %v1462_v63, %v1461_v5  ;;  %v1475_v4 = vadd.f32 %v1474_v30, %v1473_v58  ;;  %v1363_v47 = vmul.f32 %v6866_v34, %v9845_v60  ;;  %v1367_v28 = vmul.f32 %v6817_v13, %v6866_v34 }
 0x116   : > { %v1470_v1 = vadd.f32 %v1469_v16, %v1468_v46  ;;  %v1484_v49 = vsub.f32 %v1482_v7, %v1483_v61  ;;  %v1370_v19 = vmul.f32 %v6844_v10, %v9845_v60  ;;  %v1371_v62 = vmul.f32 %v6817_v13, %v6864_v27 }
 0x117   : > { %v1465_v32 = vsub.f32 %v1463_v57, %v1464_v48  ;;  %v1477_v54 = vsub.f32 %v1475_v4, %v1476_v25  ;;  %v1364_v21 = vsub.f32 %v1362_v29, %v1363_v47  ;;  %v1369_v22 = vsub.f32 %v1367_v28, %v1368_v50 }
 0x118   : > { %v1472_v40 = vadd.f32 %v1471_v8, %v1470_v1  ;;  %v1486_v11 = vsub.f32 %v1484_v49, %v1485_v42  ;;  %v1372_v44 = vsub.f32 %v1370_v19, %v1371_v62  ;;  %v6908_v24 = vmul.f32 %v6820_v41, %v6847_v14 }
 0x119   : > { %5489 = vst [vmem:[%s6017_s29 + $0x10] sm:$0x1] %v1465_v32  ;;  %v1479_v12 = vadd.f32 %v1478_v26, %v1477_v54  ;;  %v1373_v16 = vmul.f32 2.0, %v1364_v21  ;;  %v1374_v39 = vmul.f32 2.0, %v1369_v22  ;;  %v1613_v63 = vshrl.u32 %v1612_v3, 23 }
 0x11a   : > { %9846 = vst [vmem:[#allocation9_spill] sm:$0xff] %v6908_v24  ;;  %v1375_v43 = vmul.f32 2.0, %v1372_v44  ;;  %v1415_v25 = vrot.slane %v6814_v2, 3  ;;  %v1419_v48 = vrot.slane %v6814_v2, 2  ;;  %v6916_v8 = vmul.f32 %v6820_v41, %v6850_v18 }
 0x11b   : > { %5490 = vst [vmem:[%s6017_s29 + $0x11] sm:$0x1] %v1472_v40  ;;  %v1377_v50 = vmul.f32 %v1374_v39, %v6866_v34  ;;  %v1379_v38 = vmul.f32 %v1373_v16, %v6866_v34  ;;  %v1382_v26 = vmul.f32 %v1374_v39, %v6844_v10  ;;  %v1383_v5 = vmul.f32 %v1373_v16, %v6864_v27 }
 0x11c   : > { %9847 = vst [vmem:[#allocation10_spill] sm:$0xff] %v6916_v8  ;;  %v1376_v3 = vmul.f32 %v1375_v43, %v6864_v27  ;;  %v1380_v58 = vmul.f32 %v1375_v43, %v6844_v10  ;;  %v1385_v30 = vmul.f32 %v1373_v16, %v6856_v51  ;;  %v1394_v7 = vmul.f32 %v1374_v39, %v6856_v51 }
 0x11d   : > { %5491 = vst [vmem:[%s6017_s29 + $0x12] sm:$0x1] %v1479_v12  ;;  %v1384_v41 = vsub.f32 %v1382_v26, %v1383_v5  ;;  %v1403_v46 = vmul.f32 %v1375_v43, %v6856_v51  ;;  %v9702_v61 = vand.u32 2147483647, %v6840_v6  ;;  %v5500_v42 = vadd.s32 4294967169, %v1613_v63  ;;  %v9849_v5 = vld [vmem:[#allocation23_spill] sm:$0xff] }
 0x11e   : > { %5492 = vst [vmem:[%s6017_s29 + $0x13] sm:$0x1] %v1486_v11  ;;  %v1378_v29 = vsub.f32 %v1376_v3, %v1377_v50  ;;  %v1381_v57 = vsub.f32 %v1379_v38, %v1380_v58  ;;  %v1387_v4 = vrot.slane %v1385_v30, 4  ;;  %v1396_v60 = vrot.slane %v1394_v7, 3  ;;  %v9848_v50 = vld [vmem:[#allocation25_spill] sm:$0xff]  ;;  %v9850_v58 = vld [vmem:[#allocation24_spill] sm:$0xff] }
 0x11f   : > { %v1405_v47 = vrot.slane %v1403_v46, 2  ;;  %v1409_v28 = vrot.slane %v1384_v41, 2  ;;  %v6932_v1 = vmul.f32 %v6908_v24, %v6908_v24  ;;  %v6936_v49 = vmul.f32 %v6916_v8, %v6916_v8  ;;  %v9851_v41 = vld [vmem:[#allocation26_spill] sm:$0xff] }
 0x120   : > { %v1389_v19 = vadd.f32 %v6814_v2, %v1387_v4  ;;  %v1391_v62 = vrot.slane %v1378_v29, 4  ;;  %v1398_v32 = vadd.f32 %v6814_v2, %v1396_v60  ;;  %v1400_v54 = vrot.slane %v1381_v57, 3 }
 0x121   : > { %v1407_v21 = vadd.f32 %v6814_v2, %v1405_v47  ;;  %v1422_v22 = vmul.f32 %v6814_v2, %v6657_v56  ;;  %v6945_v40 = vand.u32 8388607, %v9702_v61  ;;  %v6949_v11 = vmul.f32 %v6854_v20, %v6854_v20 }
 0x122   : > { %v1393_v44 = vadd.f32 %v1391_v62, %v1389_v19  ;;  %v1402_v12 = vadd.f32 %v1400_v54, %v1398_v32  ;;  %v1430_v16 = vmul.f32 %v6814_v2, %v6660_v17  ;;  %v1619_v39 = vadd.s32 1, %v5500_v42 }
 0x123   : > { %v1411_v63 = vadd.f32 %v1409_v28, %v1407_v21  ;;  %v1438_v43 = vmul.f32 %v6814_v2, %v6668_v36  ;;  %v6957_v38 = vadd.f32 %v6814_v2, %v9848_v50  ;;  %v1423_v42 = vadd.f32 %v1422_v22, %v6698_v55  ;;  %v9852_v50 = vld [vmem:[#allocation27_spill] sm:$0xff] }
 0x124   : > { %v1412_v3 = vsub.f32 %v1393_v44, %v9849_v5  ;;  %v1414_v30 = vsub.f32 %v1402_v12, %v9850_v58  ;;  %vm1620_vm4 = vcmp.gt.s32.totalorder %v1619_v39, 0  ;;  %v1431_v47 = vadd.f32 %v1430_v16, %v6700_v35  ;;  %v9853_v35 = vld [vmem:[#allocation28_spill] sm:$0xff]  ;;  %v7014_v2 = vld [vmem:[#allocation5 + $0x1] sm:$0x1] }
 0x125   : > { %v1418_v46 = vsub.f32 %v1411_v63, %v9851_v41  ;;  %v1558_v29 = vmul.f32 %v6957_v38, %v6604_v45  ;;  %v1562_v57 = vmul.f32 %v6957_v38, %v6620_v59  ;;  %v1439_v55 = vadd.f32 %v1438_v43, %v6702_v33 }
 0x126   : > { %v1413_v4 = vmul.f32 %v1412_v3, %v6817_v13  ;;  %v1417_v60 = vmul.f32 %v1415_v25, %v1414_v30  ;;  %v1566_v62 = vmul.f32 %v6957_v38, %v6630_v15  ;;  %v1621_v32 = vsel %vm1620_vm4, %v1619_v39, 0 }
 0x127   : > { %v1421_v19 = vmul.f32 %v1419_v48, %v1418_v46  ;;  %v6980_v3 = vadd.f32 %v1558_v29, %v9852_v50  ;;  %v6983_v16 = vadd.f32 %v1562_v57, %v9853_v35  ;;  %v9857_v26 = vmov 683565275  }
 0x128   : > { %v1447_v54 = vrot.slane %v1413_v4, 4  ;;  %v1451_v21 = vrot.slane %v1417_v60, 5  ;;  %v1424_v22 = vmul.f32 0.5, %v1413_v4  ;;  %v1432_v44 = vmul.f32 0.5, %v1417_v60  ;;  %v9854_v4 = vld [vmem:[#allocation29_spill] sm:$0xff] }
 0x129   : > { %v1455_v12 = vrot.slane %v1421_v19, 6  ;;  %v1440_v63 = vmul.f32 0.5, %v1421_v19  ;;  %v7000_v57 = vadd.f32 %v1566_v62, %v9854_v4  ;;  %v7002_v60 = vand.u32 31, %v1621_v32 }
 0x12a   : > { %v6986_v30 = vadd.f32 %v1447_v54, %v6657_v56  ;;  %v6989_v33 = vadd.f32 %v1451_v21, %v6660_v17  ;;  %v1425_v39 = vmul.f32 %v1424_v22, %v6817_v13  ;;  %v1433_v43 = vmul.f32 %v1432_v44, %v1415_v25  ;;  %v7004_v56 = vld [vmem:[#allocation5 + $0x2] sm:$0x1]  ;;  %v7010_v25 = vld [vmem:[#allocation5] sm:$0x1] }
 0x12b   : > { %v6995_v46 = vadd.f32 %v1455_v12, %v6668_v36  ;;  %v1441_v29 = vmul.f32 %v1440_v63, %v1419_v48  ;;  %v7022_v12 = vshrl.u32 %v1621_v32, 5  ;;  %v7025_v63 = vsub.s32 32, %v7002_v60 }
 0x12c   : > { %v1488_v17 = vmul.f32 %v7004_v56, %v6989_v33  ;;  %v1490_v13 = vmul.f32 %v7004_v56, %v6986_v30  ;;  %v1493_v36 = vmul.f32 %v7010_v25, %v6989_v33  ;;  %v1494_v48 = vmul.f32 %v7014_v2, %v6986_v30 }
 0x12d   : > { %v1487_v19 = vmul.f32 %v7014_v2, %v6995_v46  ;;  %v1491_v62 = vmul.f32 %v7010_v25, %v6995_v46  ;;  %v1427_v54 = vrot.slane %v1425_v39, 4  ;;  %v1435_v21 = vrot.slane %v1433_v43, 5 }
 0x12e   : > { %v1495_v22 = vsub.f32 %v1493_v36, %v1494_v48  ;;  %v1443_v44 = vrot.slane %v1441_v29, 6  ;;  %v1626_v39 = vshll.u32 %v9857_v26, %v7002_v60  ;;  %v9858_v43 = vmov 2475754826  }
 0x12f   : > { %v1489_v50 = vsub.f32 %v1487_v19, %v1488_v17  ;;  %v1492_v35 = vsub.f32 %v1490_v13, %v1491_v62  ;;  %v7027_v4 = vadd.f32 %v1427_v54, %v1423_v42  ;;  %v7029_v61 = vadd.f32 %v1435_v21, %v1431_v47 }
 0x130   : > { %v1498_v7 = vmul.f32 2.0, %v1495_v22  ;;  %v7031_v28 = vadd.f32 %v1443_v44, %v1439_v55  ;;  %v1627_v29 = vshrl.u32 %v9858_v43, %v7025_v63  ;;  %vm1641_vm3 = vcmp.lt.s32.totalorder %v7022_v12, 1 }
 0x131   : > { %9855 = vst [vmem:[#allocation25_spill] sm:$0xff] %v7029_v61  ;;  %v1496_v32 = vmul.f32 2.0, %v1489_v50  ;;  %v1497_v36 = vmul.f32 2.0, %v1492_v35  ;;  %v1518_v48 = vmul.f32 %v7004_v56, %v7029_v61  ;;  %v1520_v42 = vmul.f32 %v7004_v56, %v7027_v4 }
 0x132   : > { %9856 = vst [vmem:[#allocation27_spill] sm:$0xff] %v7031_v28  ;;  %v1499_v47 = vmul.f32 %v7014_v2, %v1498_v7  ;;  %v1503_v17 = vmul.f32 %v7010_v25, %v1498_v7  ;;  %v1514_v55 = vmul.f32 %v1498_v7, %v6488_v9  ;;  %v1517_v13 = vmul.f32 %v7014_v2, %v7031_v28 }
 0x133   : > { %v1500_v19 = vmul.f32 %v7004_v56, %v1497_v36  ;;  %v1508_v62 = vmul.f32 %v1496_v32, %v6488_v9  ;;  %v1502_v54 = vmul.f32 %v7004_v56, %v1496_v32  ;;  %v1511_v21 = vmul.f32 %v1497_v36, %v6488_v9 }
 0x134   : > { %v1505_v22 = vmul.f32 %v7010_v25, %v1497_v36  ;;  %v1506_v44 = vmul.f32 %v7014_v2, %v1496_v32  ;;  %v1515_v50 = vadd.f32 %v1514_v55, %v6995_v46  ;;  %v1519_v35 = vsub.f32 %v1517_v13, %v1518_v48 }
 0x135   : > { %v1501_v18 = vsub.f32 %v1499_v47, %v1500_v19  ;;  %v1509_v7 = vadd.f32 %v1508_v62, %v6986_v30  ;;  %v1504_v14 = vsub.f32 %v1502_v54, %v1503_v17  ;;  %v1512_v8 = vadd.f32 %v1511_v21, %v6989_v33  ;;  %v7067_v21 = vld [vmem:[#allocation5 + $0x3] sm:$0x1] }
 0x136   : > { %v1507_v24 = vsub.f32 %v1505_v22, %v1506_v44  ;;  %v1521_v20 = vmul.f32 %v7010_v25, %v7031_v28  ;;  %v1523_v9 = vmul.f32 %v7010_v25, %v7029_v61  ;;  %v1524_v36 = vmul.f32 %v7014_v2, %v7027_v4 }
 0x137   : > { %v1510_v32 = vadd.f32 %v1509_v7, %v1501_v18  ;;  %v1513_v41 = vadd.f32 %v1512_v8, %v1504_v14  ;;  %v1526_v48 = vmul.f32 2.0, %v1519_v35  ;;  %v7061_v47 = vor.u32 %v1627_v29, %v1626_v39 }
 0x138   : > { %v1516_v55 = vadd.f32 %v1515_v50, %v1507_v24  ;;  %v1522_v17 = vsub.f32 %v1520_v42, %v1521_v20  ;;  %v1525_v13 = vsub.f32 %v1523_v9, %v1524_v36  ;;  %v1629_v19 = vshll.u32 %v9858_v43, %v7002_v60 }
 0x139   : > { %v1552_v62 = vadd.f32 %v1510_v32, %v6604_v45  ;;  %v1554_v54 = vadd.f32 %v1513_v41, %v6620_v59  ;;  %v1538_v18 = vmul.f32 %v7067_v21, %v1526_v48  ;;  %v1532_v14 = vmul.f32 %v7004_v56, %v1526_v48 }
 0x13a   : > { %v1556_v8 = vadd.f32 %v1516_v55, %v6630_v15  ;;  %v1527_v24 = vmul.f32 2.0, %v1522_v17  ;;  %v1528_v20 = vmul.f32 2.0, %v1525_v13  ;;  %v1536_v39 = vmul.f32 %v7014_v2, %v1526_v48 }
 0x13b   : > { %5493 = vst [vmem:[%s6017_s29 + $0x14] sm:$0x1] %v1552_v62  ;;  %v1539_v29 = vadd.f32 %v1538_v18, %v7027_v4  ;;  %v9859_v45 = vmov 2131351028   ;;  %v9860_v41 = vmov 2102212464  }
 0x13c   : > { %v1630_v42 = vshrl.u32 %v9859_v45, %v7025_v63  ;;  %v1632_v59 = vshll.u32 %v9859_v45, %v7002_v60  ;;  %v1633_v22 = vshrl.u32 %v9860_v41, %v7025_v63  ;;  %5494 = vst [vmem:[%s6017_s29 + $0x15] sm:$0x1] %v1554_v54  ;;  %v1529_v44 = vmul.f32 %v7014_v2, %v1528_v20 }
 0x13d   : > { %v1530_v15 = vmul.f32 %v7004_v56, %v1527_v24  ;;  %v1533_v50 = vmul.f32 %v7010_v25, %v1528_v20  ;;  %v1541_v35 = vmul.f32 %v7067_v21, %v1527_v24  ;;  %5495 = vst [vmem:[%s6017_s29 + $0x16] sm:$0x1] %v1556_v8  ;;  %v1535_v7 = vmul.f32 %v7010_v25, %v1527_v24 }
 0x13e   : > { %v1544_v9 = vmul.f32 %v7067_v21, %v1528_v20  ;;  %v1631_v36 = vor.u32 %v1630_v42, %v1629_v19  ;;  %v1634_v32 = vor.u32 %v1633_v22, %v1632_v59  ;;  %v1635_v13 = vshll.u32 %v9860_v41, %v7002_v60 }
 0x13f   : > { %v1531_v48 = vsub.f32 %v1529_v44, %v1530_v15  ;;  %v1534_v55 = vsub.f32 %v1532_v14, %v1533_v50  ;;  %v1542_v17 = vadd.f32 %v1541_v35, %v7029_v61  ;;  %v1537_v62 = vsub.f32 %v1535_v7, %v1536_v39 }
 0x140   : > { %v1545_v54 = vadd.f32 %v1544_v9, %v7031_v28  ;;  %v9861_v18 = vmov 920167782   ;;  %v9862_v20 = vmov 1326507024   ;;  %vm1643_vm0 = vcmp.lt.s32.totalorder %v7022_v12, 3 }
 0x141   : > { %v1636_v58 = vshrl.u32 %v9861_v18, %v7025_v63  ;;  %v1638_v8 = vshll.u32 %v9861_v18, %v7002_v60  ;;  %v1540_v24 = vadd.f32 %v1539_v29, %v1531_v48  ;;  %v1543_v19 = vadd.f32 %v1542_v17, %v1534_v55 }
 0x142   : > { %v1639_v14 = vshrl.u32 %v9862_v20, %v7025_v63  ;;  %v1546_v42 = vadd.f32 %v1545_v54, %v1537_v62  ;;  %v9863_v39 = vrot.slane %v6932_v1, 1  ;;  %vm1644_vm1 = vcmp.lt.s32.totalorder %v7022_v12, 4 }
 0x143   : > { %v1637_v59 = vor.u32 %v1636_v58, %v1635_v13  ;;  %v1560_v60 = vadd.f32 %v6980_v3, %v1540_v24  ;;  %v1564_v29 = vadd.f32 %v6983_v16, %v1543_v19  ;;  %vm1642_vm2 = vcmp.lt.s32.totalorder %v7022_v12, 2 }
 0x144   : > { %v2216_v22 = vadd.f32 %v9863_v39, %v6949_v11  ;;  %v1640_v44 = vor.u32 %v1639_v14, %v1638_v8  ;;  %v1568_v15 = vadd.f32 %v7000_v57, %v1546_v42  ;;  %v1649_v58 = vsel %vm1641_vm3, %v7061_v47, %v1631_v36 }
 0x145   : > { %5496 = vst [vmem:[%s6017_s29 + $0x17] sm:$0x1] %v1560_v60  ;;  %v1650_v1 = vsel %vm1644_vm1, %v1637_v59, 920167782  ;;  %v1653_v11 = vsel %vm1641_vm3, %v1631_v36, %v1634_v32  ;;  %v9864_v50 = vor.u32 8388608, %v6945_v40  ;;  %v9865_v48 = vrot.slane %v6936_v49, 2 }
 0x146   : > { %v1654_v3 = vsel %vm1644_vm1, %v1640_v44, 1326507024  ;;  %5497 = vst [vmem:[%s6017_s29 + $0x18] sm:$0x1] %v1564_v29  ;;  %v1651_v16 = vsel %vm1643_vm0, %v1634_v32, %v1650_v1  ;;  %v1625_v40 = vshrl.u32 %v9857_v26, %v7025_v63  ;;  %v1646_v49 = vsel %vm1644_vm1, %v1634_v32, 2102212464 }
 0x147   : > { %v1655_v57 = vsel %vm1643_vm0, %v1637_v59, %v1654_v3  ;;  %v7126_v35 = vshll.u32 %v9864_v50, 8  ;;  %5498 = vst [vmem:[%s6017_s29 + $0x19] sm:$0x1] %v1568_v15  ;;  %v1652_v7 = vsel %vm1642_vm2, %v1649_v58, %v1651_v16  ;;  %v7135_v55 = vadd.f32 %v9865_v48, %v2216_v22 }
 0x148   : > { %v1656_v9 = vsel %vm1642_vm2, %v1653_v11, %v1655_v57  ;;  %v1682_v8 = vand.u32 65535, %v1652_v7  ;;  %v1683_v24 = vshrl.u32 %v1652_v7, 16  ;;  %v1645_v63 = vsel %vm1641_vm3, %v1625_v40, %v7061_v47 }
 0x149   : > { %9866 = vst [vmem:[#allocation28_spill] sm:$0xff] %v7135_v55  ;;  %v1658_v17 = vand.u32 65535, %v7126_v35  ;;  %v1659_v13 = vshrl.u32 %v7126_v35, 16  ;;  %v1660_v62 = vand.u32 65535, %v1656_v9  ;;  %v1661_v54 = vshrl.u32 %v1656_v9, 16 }
 0x14a   : > { %5704 = vrsqrt.f32 %v7135_v55  ;;  %v1647_v11 = vsel %vm1643_vm0, %v1631_v36, %v1646_v49  ;;  %v9867_v50 = vmov 0   ;;  %vm2229_vm10 = vcmp.eq.f32.partialorder %v7135_v55, inf }
 0x14b   : > { %v1662_v19 = vmul.u32 %v1660_v62, %v1658_v17  ;;  %v1663_v14 = vmul.u32 %v1661_v54, %v1658_v17  ;;  %v1664_v42 = vmul.u32 %v1660_v62, %v1659_v13  ;;  %v1684_v59 = vmul.u32 %v1682_v8, %v1658_v17 }
 0x14c   : > { %v1685_v39 = vmul.u32 %v1683_v24, %v1658_v17  ;;  %v1686_v22 = vmul.u32 %v1682_v8, %v1659_v13  ;;  %v1665_v60 = vmul.u32 %v1661_v54, %v1659_v13  ;;  %v1687_v15 = vmul.u32 %v1683_v24, %v1659_v13  ;;  %v5533_v13 = vld [vmem:[%s6003_s27 + $0x20] sm:$0xff] }
 0x14d   : > { %v1666_v29 = vshll.u32 %v1663_v14, 16  ;;  %v1668_v44 = vshll.u32 %v1664_v42, 16  ;;  %v1667_v3 = vshrl.u32 %v1663_v14, 16  ;;  %v1669_v57 = vshrl.u32 %v1664_v42, 16 }
 0x14e   : > { %v1688_v58 = vshll.u32 %v1685_v39, 16  ;;  %v1690_v1 = vshll.u32 %v1686_v22, 16  ;;  %v1689_v54 = vshrl.u32 %v1685_v39, 16  ;;  %v1691_v14 = vshrl.u32 %v1686_v22, 16 }
 0x14f   : > { %vm1670_vm5 = vc.u32 %v1662_v19, %v1666_v29  ;;  %v1672_v32 = vadd.s32 %v1666_v29, %v1662_v19  ;;  %v2831_v19 = vrot.slane %v5533_v13, 7  ;;  %v7155_v49 = vrot.slane %v5533_v13, 6 }
 0x150   : > { %v5705_v16 = vpop.eup %5704  ;;  %v1671_v7 = vsel %vm1670_vm5, 1, %v9867_v50  ;;  %vm1692_vm6 = vc.u32 %v1684_v59, %v1688_v58  ;;  %v1694_v9 = vadd.s32 %v1688_v58, %v1684_v59  ;;  %v7157_v59 = vrot.slane %v5533_v13, 5 }
 0x151   : > { %v1673_v48 = vadd.s32 %v1671_v7, %v1665_v60  ;;  %vm1674_vm7 = vc.u32 %v1672_v32, %v1668_v44  ;;  %v1693_v47 = vsel %vm1692_vm6, 1, %v9867_v50  ;;  %v2223_v17 = vmul.f32 %v5705_v16, %v7135_v55  ;;  %9868 = vst [vmem:[#allocation29_spill] sm:$0xff] %v7155_v49 }
 0x152   : > { %v1675_v62 = vsel %vm1674_vm7, 1, %v9867_v50  ;;  %v1695_v36 = vadd.s32 %v1693_v47, %v1687_v15  ;;  %vm1696_vm8 = vc.u32 %v1694_v9, %v1690_v1  ;;  %9869 = vst [vmem:[#allocation30_spill] sm:$0xff] %v7157_v59  ;;  %v1698_v29 = vadd.s32 %v1694_v9, %v1690_v1 }
 0x153   : > { %v1677_v40 = vadd.s32 %v1675_v62, %v1673_v48  ;;  %v1697_v8 = vsel %vm1696_vm8, 1, %v9867_v50  ;;  %v2224_v24 = vmul.f32 %v5705_v16, %v2223_v17  ;;  %v7159_v58 = vmul.f32 %v5533_v13, %v2831_v19 }
 0x154   : > { %v1699_v42 = vadd.s32 %v1697_v8, %v1695_v36  ;;  %v1648_v39 = vsel %vm1642_vm2, %v1645_v63, %v1647_v11  ;;  %v7164_v32 = vmul.f32 %v5533_v13, %v7155_v49  ;;  %v7167_v7 = vmul.f32 %v5533_v13, %v7157_v59 }
 0x155   : > { %v1678_v60 = vadd.s32 %v1677_v40, %v1667_v3  ;;  %v2225_v44 = vmul.f32 0.5, %v2224_v24  ;;  %9870 = vst [vmem:[#allocation31_spill] sm:$0xff] %v7159_v58  ;;  %v2840_v3 = vmul.f32 %v7159_v58, %v7159_v58  ;;  %v1702_v63 = vmul.u32 %v7126_v35, %v1648_v39 }
 0x156   : > { %v1700_v15 = vadd.s32 %v1699_v42, %v1689_v54  ;;  %9871 = vst [vmem:[#allocation32_spill] sm:$0xff] %v7164_v32  ;;  %v2841_v1 = vmul.f32 %v7164_v32, %v7164_v32  ;;  %v2846_v12 = vmul.f32 %v7167_v7, %v7167_v7  ;;  %vm2231_vm11 = vcmp.eq.f32.partialorder %v7135_v55, 0.0 }
 0x157   : > { %9872 = vst [vmem:[#allocation33_spill] sm:$0xff] %v7167_v7  ;;  %v1679_v22 = vadd.s32 %v1678_v60, %v1669_v57  ;;  %v2226_v48 = vsub.f32 1.5, %v2225_v44  ;;  %v2232_v57 = vand.u32 2147483648, %v7135_v55 }
 0x158   : > { %v1701_v47 = vadd.s32 %v1700_v15, %v1691_v14  ;;  %v2843_v17 = vrot.slane %v2841_v1, 1  ;;  %v2848_v13 = vrot.slane %v2846_v12, 2  ;;  %v7192_v14 = vsel %vm1606_vm12, %v6829_v23, 1.0 }
 0x159   : > { %vm1704_vm9 = vc.u32 %v1679_v22, %v1698_v29  ;;  %v2227_v11 = vmul.f32 %v5705_v16, %v2226_v48  ;;  %vm1769_vm0 = vweird.f32 %v7192_v14 }
 0x15a   : > { %v1705_v9 = vadd.s32 1, %v1701_v47  ;;  %v2845_v36 = vadd.f32 %v2843_v17, %v2840_v3 }
 0x15b   : > { %v2228_v62 = vmul.f32 %v2227_v11, %v7135_v55 }
 0x15c   : > { %v1706_v54 = vsel %vm1704_vm9, %v1705_v9, %v1701_v47  ;;  %v7184_v16 = vadd.f32 %v2848_v13, %v2845_v36 }
 0x15d   : > { %v1707_v40 = vadd.s32 %v1706_v54, %v1702_v63  ;;  %v2230_v8 = vsel %vm2229_vm10, %v7135_v55, %v2228_v62 }
 0x15e   : > { %v7182_v35 = vsel %vm2231_vm11, %v2232_v57, %v2230_v8  ;;  %9873 = vst [vmem:[#allocation34_spill] sm:$0xff] %v7184_v16  ;;  %5706 = vrsqrt.f32 %v7184_v16 }
 0x15f   : > { %v1708_v24 = vadd.s32 536870912, %v1707_v40  ;;  %v7187_v19 = vmul.f32 0.5, %v7182_v35  ;;  %5708 = vrcp.f32 %v7192_v14 }
 0x161   : > { %9874 = vst [vmem:[#allocation35_spill] sm:$0xff] %v7187_v19  ;;  %v1709_v42 = vshrl.u32 %v1708_v24, 30  ;;  %v9710_v60 = vand.u32 2147483647, %v7187_v19  ;;  %v2241_v44 = vand.u32 2139095040, %v7187_v19 }
 0x163   : > { %v1710_v39 = vshll.u32 %v1709_v42, 30  ;;  %v2242_v15 = vshrl.u32 %v2241_v44, 23  ;;  %v2245_v3 = vand.u32 8388607, %v9710_v60  ;;  %v1733_v11 = vsub.s32 4, %v1709_v42 }
 0x164   : > { %v7200_v63 = vpop.eup %5706 }
 0x165   : > { %v1711_v48 = vsub.s32 %v1707_v40, %v1710_v39  ;;  %v5517_v47 = vadd.s32 4294967169, %v2242_v15  ;;  %v2246_v57 = vor.u32 8388608, %v2245_v3  ;;  %v7202_v17 = vpop.eup %5708  ;;  %v2852_v54 = vmul.f32 %v7200_v63, %v7184_v16 }
 0x166   : > { %v1765_v62 = vmul.f32 %v7202_v17, %v7192_v14  ;;  %v1734_v40 = vsel %vm1611_vm15, %v1733_v11, %v1709_v42  ;;  %v9875_v39 = vand.u32 2147483647, %v6840_v6  ;;  %vm1770_vm1 = vweird.f32 %v7202_v17 }
 0x167   : > { %vm1712_vm13 = vcmp.lt.s32.totalorder %v1711_v48, 0  ;;  %v1713_v1 = vsub.s32 0, %v1711_v48  ;;  %v2248_v12 = vadd.s32 1, %v5517_v47  ;;  %v7211_v44 = vshll.u32 %v2246_v57, 8  ;;  %vm7248_vm2 = vmor %vm1769_vm0, %vm1770_vm1 }
 0x168   : > { %v1766_v8 = vsub.f32 1.0, %v1765_v62  ;;  %vm7215_vm4 = vcmp.le.f32.partialorder %v9875_v39, 0.7853982  ;;  %v1703_v47 = vadd.s32 %v1698_v29, %v1679_v22  ;;  %v7224_v57 = vmul.f32 %v6380_v37, %v6380_v37 }
 0x169   : > { %v1714_v9 = vsel %vm1712_vm13, %v1713_v1, %v1711_v48  ;;  %vm2249_vm14 = vcmp.gt.s32.totalorder %v2248_v12, 0  ;;  %v1736_v1 = vsel %vm7215_vm4, 0, %v1734_v40  ;;  %v7228_v39 = vand.u32 65535, %v7211_v44 }
 0x16a   : > { %v1715_v13 = vclz %v1714_v9  ;;  %v2250_v24 = vsel %vm2249_vm14, %v2248_v12, 0  ;;  %v2853_v9 = vmul.f32 %v7200_v63, %v2852_v54  ;;  %v1767_v62 = vmul.f32 %v7202_v17, %v1766_v8 }
 0x16b   : > { %v2252_v12 = vand.u32 31, %v2250_v24  ;;  %v7231_v40 = vshrl.u32 %v7211_v44, 16  ;;  %v7236_v54 = vshrl.u32 %v2250_v24, 5  ;;  %v7271_v61 = vand.u32 3, %v1736_v1 }
 0x16c   : > { %v5501_v36 = vadd.s32 4294967294, %v1715_v13  ;;  %v7238_v59 = vmul.f32 0.5, %v2853_v9  ;;  %v7308_v15 = vmul.f32 %v6380_v37, %v6378_v31 }
 0x16d   : > { %v2253_v8 = vsub.s32 32, %v2252_v12  ;;  %v2261_v49 = vshll.u32 %v9859_v45, %v2252_v12  ;;  %vm2270_vm5 = vcmp.lt.s32.totalorder %v7236_v54, 1  ;;  %vm2271_vm6 = vcmp.lt.s32.totalorder %v7236_v54, 2 }
 0x16e   : > { %vm5502_vm3 = vcmp.lt.s32.totalorder %v5501_v36, 0  ;;  %vm2272_vm7 = vcmp.lt.s32.totalorder %v7236_v54, 3  ;;  %vm2273_vm8 = vcmp.lt.s32.totalorder %v7236_v54, 4  ;;  %vm1933_vm11 = vcmp.eq.s32.totalorder %v7271_v61, 2 }
 0x16f   : > { %v1718_v3 = vsel %vm5502_vm3, 0, %v5501_v36  ;;  %v1753_v36 = vadd.s32 3, %v1736_v1  ;;  %v2254_v9 = vshrl.u32 %v9857_v26, %v2253_v8  ;;  %v2262_v55 = vshrl.u32 %v9860_v41, %v2253_v8 }
 0x170   : > { %v1719_v13 = vsub.s32 32, %v1718_v3  ;;  %v1720_v42 = vshll.u32 %v1711_v48, %v1718_v3  ;;  %v1723_v11 = vsub.s32 4294967266, %v1718_v3  ;;  %v1775_v48 = vand.u32 2147483648, %v7192_v14 }
 0x171   : > { %v7244_v58 = vand.u32 3, %v1753_v36  ;;  %v2256_v36 = vshrl.u32 %v9858_v43, %v2253_v8  ;;  %v2855_v54 = vsub.f32 1.5, %v7238_v59 }
 0x172   : > { %v1721_v29 = vshrl.u32 %v1703_v47, %v1719_v13  ;;  %v1724_v22 = vadd.s32 127, %v1723_v11  ;;  %v1768_v47 = vadd.f32 %v7202_v17, %v1767_v62  ;;  %v2255_v13 = vshll.u32 %v9857_v26, %v2252_v12 }
 0x173   : > { %v2258_v11 = vshll.u32 %v9858_v43, %v2252_v12  ;;  %v1776_v62 = vor.u32 1.1754944e-38, %v1775_v48  ;;  %v2264_v48 = vshll.u32 %v9860_v41, %v2252_v12  ;;  %v2265_v26 = vshrl.u32 %v9861_v18, %v2253_v8 }
 0x174   : > { %v1722_v3 = vor.u32 %v1721_v29, %v1720_v42  ;;  %v1725_v60 = vshll.u32 %v1724_v22, 23  ;;  %v1773_v42 = vand.u32 2147483647, %v7192_v14  ;;  %v7256_v29 = vmul.f32 %v6380_v37, %v6362_v52 }
 0x175   : > { %v1772_v14 = vsel %vm7248_vm2, %v7202_v17, %v1768_v47  ;;  %v2267_v52 = vshll.u32 %v9861_v18, %v2252_v12  ;;  %v2266_v43 = vor.u32 %v2265_v26, %v2264_v48  ;;  %vm1759_vm10 = vcmp.eq.s32.totalorder %v7244_v58, 2 }
 0x176   : > { %v1726_v7 = vor.u32 4788187, %v1725_v60  ;;  %v1729_v32 = vcvt.s32.f32 %v1722_v3  ;;  %v7260_v60 = vmul.f32 %v7224_v57, %v6391_v0  ;;  %v2259_v3 = vshrl.u32 %v9859_v45, %v2253_v8 }
 0x177   : > { %v2257_v0 = vor.u32 %v2256_v36, %v2255_v13  ;;  %v2268_v45 = vshrl.u32 %v9862_v20, %v2253_v8  ;;  %vm7278_vm9 = vcmp.eq.f32.partialorder %v1773_v42, 8.507059e+37  ;;  %v2279_v26 = vsel %vm2273_vm8, %v2266_v43, 920167782 }
 0x178   : > { %v1727_v22 = vand.u32 2147483647, %v1726_v7  ;;  %v2260_v28 = vor.u32 %v2259_v3, %v2258_v11  ;;  %v2263_v7 = vor.u32 %v2262_v55, %v2261_v49  ;;  %v7304_v42 = vsel %vm7278_vm9, %v1776_v62, %v1772_v14 }
 0x179   : > { %v2274_v17 = vsel %vm2270_vm5, %v2254_v9, %v2257_v0  ;;  %vm1756_vm13 = vcmp.eq.s32.totalorder %v7244_v58, 0  ;;  %vm1755_vm14 = vcmp.lt.s32.totalorder %v7244_v58, 2  ;;  %vm1929_vm2 = vcmp.lt.s32.totalorder %v7271_v61, 2 }
 0x17a   : > { %v1730_v19 = vmul.f32 %v1729_v32, %v1727_v22  ;;  %v2269_v32 = vor.u32 %v2268_v45, %v2267_v52  ;;  %v2278_v55 = vsel %vm2270_vm5, %v2257_v0, %v2260_v28  ;;  %v2280_v12 = vsel %vm2272_vm7, %v2263_v7, %v2279_v26 }
 0x17b   : > { %v2282_v8 = vsel %vm2270_vm5, %v2260_v28, %v2263_v7  ;;  %v2275_v52 = vsel %vm2273_vm8, %v2263_v7, 2102212464  ;;  %v2281_v45 = vsel %vm2271_vm6, %v2278_v55, %v2280_v12  ;;  %v7312_v22 = vmul.f32 %v7224_v57, %v6406_v53 }
 0x17c   : > { %v1731_v5 = vxor.u32 2147483648, %v1730_v19  ;;  %v2283_v13 = vsel %vm2273_vm8, %v2269_v32, 1326507024  ;;  %v2311_v11 = vand.u32 65535, %v2281_v45  ;;  %v2312_v24 = vshrl.u32 %v2281_v45, 16 }
 0x17d   : > { %v2276_v62 = vsel %vm2272_vm7, %v2260_v28, %v2275_v52  ;;  %v1939_v0 = vsub.f32 1.0, %v7308_v15  ;;  %vm1930_vm5 = vcmp.eq.s32.totalorder %v7271_v61, 0  ;;  %v2861_v61 = vand.u32 2147483648, %v7184_v16 }
 0x17e   : > { %v1732_v49 = vsel %vm1611_vm15, %v1731_v5, %v1730_v19  ;;  %v2284_v19 = vsel %vm2272_vm7, %v2266_v43, %v2283_v13  ;;  %v2314_v37 = vmul.u32 %v2312_v24, %v7228_v39  ;;  %v7322_v14 = vmul.u32 %v2311_v11, %v7231_v40 }
 0x17f   : > { %v7294_v47 = vsel %vm7215_vm4, %v6840_v6, %v1732_v49  ;;  %v2285_v36 = vsel %vm2271_vm6, %v2282_v8, %v2284_v19  ;;  %v2313_v28 = vmul.u32 %v2311_v11, %v7228_v39  ;;  %v7335_v13 = vsel %vm2271_vm6, %v2274_v17, %v2276_v62 }
 0x180   : > { %v1737_v5 = vmul.f32 %v7294_v47, %v7294_v47  ;;  %v2289_v43 = vand.u32 65535, %v2285_v36  ;;  %v2290_v7 = vshrl.u32 %v2285_v36, 16  ;;  %v2317_v49 = vshll.u32 %v2314_v37, 16 }
 0x181   : > { %v2316_v36 = vmul.u32 %v2312_v24, %v7231_v40  ;;  %v2319_v15 = vshll.u32 %v7322_v14, 16  ;;  %vm1752_vm4 = vweird.f32 %v6840_v6  ;;  %vm2858_vm7 = vcmp.eq.f32.partialorder %v7184_v16, inf  ;;  %v9883_v6 = vld [vmem:[#allocation15_spill] sm:$0xff] }
 0x182   : > { %v1738_v3 = vmul.f32 -0.001358992, %v1737_v5  ;;  %v1745_v48 = vmul.f32 -0.00019511016, %v1737_v5  ;;  %v2291_v55 = vmul.u32 %v2289_v43, %v7228_v39  ;;  %v2292_v26 = vmul.u32 %v2290_v7, %v7228_v39 }
 0x183   : > { %v2293_v9 = vmul.u32 %v2289_v43, %v7231_v40  ;;  %v2294_v52 = vmul.u32 %v2290_v7, %v7231_v40  ;;  %vm2321_vm3 = vc.u32 %v2313_v28, %v2317_v49  ;;  %v2323_v43 = vadd.s32 %v2317_v49, %v2313_v28 }
 0x184   : > { %v1739_v57 = vadd.f32 0.041655596, %v1738_v3  ;;  %v1746_v32 = vadd.f32 0.008332121, %v1745_v48  ;;  %v2295_v45 = vshll.u32 %v2292_v26, 16  ;;  %v2318_v40 = vshrl.u32 %v2314_v37, 16 }
 0x185   : > { %v2297_v19 = vshll.u32 %v2293_v9, 16  ;;  %v2296_v24 = vshrl.u32 %v2292_v26, 16  ;;  %vm2325_vm1 = vc.u32 %v2323_v43, %v2319_v15  ;;  %v2320_v28 = vshrl.u32 %v7322_v14, 16 }
 0x186   : > { %v1740_v12 = vmul.f32 %v1739_v57, %v1737_v5  ;;  %v1747_v8 = vmul.f32 %v1746_v32, %v1737_v5  ;;  %vm2299_vm15 = vc.u32 %v2291_v55, %v2295_v45  ;;  %v2301_v39 = vadd.s32 %v2295_v45, %v2291_v55 }
 0x187   : > { %v2300_v11 = vsel %vm2299_vm15, 1, %v9867_v50  ;;  %v2322_v57 = vsel %vm2321_vm3, 1, %v9867_v50  ;;  %v2298_v45 = vshrl.u32 %v2293_v9, 16  ;;  %v2326_v59 = vsel %vm2325_vm1, 1, %v9867_v50 }
 0x188   : > { %v1741_v3 = vadd.f32 -0.4999988, %v1740_v12  ;;  %v1748_v48 = vadd.f32 -0.16666654, %v1747_v8  ;;  %v2302_v62 = vadd.s32 %v2300_v11, %v2294_v52  ;;  %vm2303_vm0 = vc.u32 %v2301_v39, %v2297_v19 }
 0x189   : > { %v2304_v55 = vsel %vm2303_vm0, 1, %v9867_v50  ;;  %v2324_v8 = vadd.s32 %v2322_v57, %v2316_v36  ;;  %v2856_v26 = vmul.f32 %v7200_v63, %v2855_v54  ;;  %v7351_v19 = vadd.s32 %v2323_v43, %v2319_v15 }
 0x18a   : > { %v1742_v7 = vmul.f32 %v1741_v3, %v1737_v5  ;;  %v1749_v17 = vmul.f32 %v1748_v48, %v1737_v5  ;;  %v2306_v1 = vadd.s32 %v2304_v55, %v2302_v62  ;;  %v1941_v63 = vadd.f32 %v7312_v22, %v1939_v0 }
 0x18b   : > { %v2328_v37 = vadd.s32 %v2326_v59, %v2324_v8  ;;  %v2857_v54 = vmul.f32 %v2856_v26, %v7184_v16  ;;  %vm2860_vm8 = vcmp.eq.f32.partialorder %v7184_v16, 0.0  ;;  %v9885_v8 = vld [vmem:[#allocation16_spill] sm:$0xff] }
 0x18c   : > { %v1743_v32 = vadd.f32 1.0, %v1742_v7  ;;  %v1750_v12 = vadd.f32 1.0, %v1749_v17  ;;  %v2307_v52 = vadd.s32 %v2306_v1, %v2296_v24  ;;  %v2331_v1 = vmul.u32 %v7211_v44, %v7335_v13 }
 0x18d   : > { %v2329_v3 = vadd.s32 %v2328_v37, %v2318_v40  ;;  %v2859_v62 = vsel %vm2858_vm7, %v7184_v16, %v2857_v54 }
 0x18e   : > { %v1751_v5 = vmul.f32 %v1750_v12, %v7294_v47  ;;  %v1760_v49 = vxor.u32 2147483648, %v1743_v32  ;;  %v9882_v47 = vsub.f32 0.5, %v7256_v29  ;;  %v7361_v39 = vadd.s32 %v2307_v52, %v2298_v45 }
 0x18f   : > { %v2330_v43 = vadd.s32 %v2329_v3, %v2320_v28  ;;  %v7388_v55 = vsel %vm2860_vm8, %v2861_v61, %v2859_v62  ;;  %v9886_v28 = vld [vmem:[#allocation17_spill] sm:$0xff] }
 0x190   : > { %v1757_v36 = vxor.u32 2147483648, %v1751_v5  ;;  %v1761_v9 = vsel %vm1759_vm10, %v1760_v49, %v1751_v5  ;;  %v1935_v14 = vsel %vm1933_vm11, %v1760_v49, %v1751_v5  ;;  %v1782_v48 = vadd.f32 %v7260_v60, %v9882_v47  ;;  %9884 = vst [vmem:[#allocation15_spill] sm:$0xff] %v7388_v55 }
 0x191   : > { %vm2333_vm6 = vc.u32 %v7361_v39, %v7351_v19  ;;  %v2334_v22 = vadd.s32 1, %v2330_v43 }
 0x192   : > { %v1758_v15 = vsel %vm1756_vm13, %v1743_v32, %v1757_v36  ;;  %v1932_v11 = vsel %vm1930_vm5, %v1743_v32, %v1757_v36 }
 0x193   : > { %v1762_v7 = vsel %vm1755_vm14, %v1758_v15, %v1761_v9  ;;  %v1936_v29 = vsel %vm1929_vm2, %v1932_v11, %v1935_v14  ;;  %v2335_v17 = vsel %vm2333_vm6, %v2334_v22, %v2330_v43  ;;  %v7398_v9 = vmul.f32 0.5, %v7388_v55 }
 0x194   : > { %v1763_v44 = vsel %vm1752_vm4, nan, %v1762_v7  ;;  %v1937_v60 = vsel %vm1752_vm4, nan, %v1936_v29  ;;  %v2336_v24 = vadd.s32 %v2335_v17, %v2331_v1 }
 0x195   : > { %v1778_v0 = vmul.f32 %v7304_v42, %v1763_v44  ;;  %v1942_v58 = vsel %vm1606_vm12, %v1937_v60, %v1941_v63 }
 0x196   : > { %v1956_v13 = vrot.slane %v1942_v58, 1  ;;  %v2337_v42 = vadd.s32 536870912, %v2336_v24 }
 0x197   : > { %v1783_v40 = vsel %vm1606_vm12, %v1778_v0, %v1782_v48  ;;  %vm2235_vm12 = vcmp.gt.f32.partialorder %v7182_v35, 1e-06 }
 0x198   : > { %v1943_v57 = vmul.f32 %v1783_v40, %v9883_v6  ;;  %v1945_v32 = vrot.slane %v1783_v40, 7  ;;  %v1948_v12 = vrot.slane %v1783_v40, 6  ;;  %v1958_v49 = vmul.f32 %v1956_v13, %v6844_v10 }
 0x199   : > { %v1984_v37 = vmul.f32 %v1956_v13, %v6856_v51  ;;  %v7394_v26 = vshrl.u32 %v2337_v42, 30  ;;  %v1973_v14 = vmul.f32 %v1956_v13, %v6864_v27  ;;  %v1982_v62 = vmul.f32 %v1956_v13, %v6866_v34 }
 0x19a   : > { %v1947_v45 = vmul.f32 %v1945_v32, %v9885_v8  ;;  %v1950_v59 = vmul.f32 %v1948_v12, %v9886_v28  ;;  %v1952_v5 = vrot.slane %v1943_v57, 1  ;;  %v2870_v32 = vand.u32 2139095040, %v7398_v9 }
 0x19b   : > { %v2339_v48 = vshll.u32 %v7394_v26, 30 }
 0x19c   : > { %v1954_v23 = vmul.f32 %v1952_v5, %v6856_v51  ;;  %v1961_v52 = vrot.slane %v1950_v59, 3  ;;  %v1966_v36 = vrot.slane %v1947_v45, 2  ;;  %v1980_v3 = vmul.f32 %v1952_v5, %v6864_v27  ;;  %v9887_v59 = vld [vmem:[#allocation13_spill] sm:$0xff] }
 0x19d   : > { %v1985_v47 = vmul.f32 %v1952_v5, %v6844_v10  ;;  %v7412_v0 = vsub.s32 %v2336_v24, %v2339_v48  ;;  %v1975_v61 = vmul.f32 %v1952_v5, %v6866_v34 }
 0x19e   : > { %v1959_v63 = vadd.f32 %v1958_v49, %v1954_v23  ;;  %v1963_v1 = vmul.f32 %v1961_v52, %v6864_v27  ;;  %v1968_v15 = vmul.f32 %v1966_v36, %v6866_v34  ;;  %v1970_v11 = vmul.f32 %v1966_v36, %v6856_v51 }
 0x19f   : > { %v1971_v43 = vmul.f32 %v1961_v52, %v6844_v10  ;;  %v1977_v54 = vmul.f32 %v1961_v52, %v6856_v51  ;;  %v1978_v7 = vmul.f32 %v1966_v36, %v6844_v10  ;;  %v1986_v29 = vsub.f32 %v1984_v37, %v1985_v47  ;;  %v7419_v51 = vld [vmem:[%s6003_s27 + $0x10] sm:$0xff] }
 0x1a0   : > { %v1964_v44 = vadd.f32 %v1963_v1, %v1959_v63  ;;  %v1987_v60 = vmul.f32 %v1966_v36, %v6864_v27  ;;  %v1989_v22 = vmul.f32 %v1961_v52, %v6866_v34  ;;  %v7422_v10 = vrot.slane %v7419_v51, 4 }
 0x1a1   : > { %v1972_v58 = vsub.f32 %v1970_v11, %v1971_v43  ;;  %v1979_v17 = vadd.f32 %v1978_v7, %v1977_v54  ;;  %v2342_v24 = vsub.s32 0, %v7412_v0  ;;  %vm2341_vm9 = vcmp.lt.s32.totalorder %v7412_v0, 0 }
 0x1a2   : > { %v7416_v40 = vsub.f32 %v1964_v44, %v1968_v15  ;;  %v1988_v6 = vsub.f32 %v1986_v29, %v1987_v60  ;;  %v9888_v60 = vld [vmem:[#allocation14_spill] sm:$0xff] }
 0x1a3   : > { %v1974_v27 = vadd.f32 %v1973_v14, %v1972_v58  ;;  %v1981_v57 = vsub.f32 %v1979_v17, %v1980_v3 }
 0x1a4   : > { %v7427_v12 = vsub.f32 %v1988_v6, %v1989_v22  ;;  %v2088_v34 = vmul.f32 %v7067_v21, %v7416_v40  ;;  %v2100_v13 = vmul.f32 %v7004_v56, %v7416_v40  ;;  %v2105_v42 = vmul.f32 %v7014_v2, %v7416_v40 }
 0x1a5   : > { %v7436_v8 = vadd.f32 %v1975_v61, %v1974_v27  ;;  %v7438_v45 = vadd.f32 %v1982_v62, %v1981_v57  ;;  %v2110_v28 = vmul.f32 %v7010_v25, %v7416_v40  ;;  %v1997_v5 = vmul.f32 %v7416_v40, %v9887_v59 }
 0x1a6   : > { %v2089_v49 = vmul.f32 %v7010_v25, %v7427_v12  ;;  %v2098_v37 = vmul.f32 %v7014_v2, %v7427_v12  ;;  %v2107_v23 = vmul.f32 %v7004_v56, %v7427_v12  ;;  %v2109_v52 = vmul.f32 %v7067_v21, %v7427_v12 }
 0x1a7   : > { %v2091_v36 = vmul.f32 %v7014_v2, %v7438_v45  ;;  %v2093_v14 = vmul.f32 %v7004_v56, %v7436_v8  ;;  %v2095_v3 = vmul.f32 %v7067_v21, %v7436_v8  ;;  %v2096_v47 = vmul.f32 %v7010_v25, %v7438_v45 }
 0x1a8   : > { %v2090_v48 = vadd.f32 %v2089_v49, %v2088_v34  ;;  %v2102_v63 = vmul.f32 %v7067_v21, %v7438_v45  ;;  %v2103_v1 = vmul.f32 %v7010_v25, %v7436_v8  ;;  %v2111_v15 = vsub.f32 %v2109_v52, %v2110_v28 }
 0x1a9   : > { %v2097_v11 = vsub.f32 %v2095_v3, %v2096_v47  ;;  %v2112_v43 = vmul.f32 %v7014_v2, %v7436_v8  ;;  %v2114_v54 = vmul.f32 %v7004_v56, %v7438_v45  ;;  %v1991_v7 = vmul.f32 %v7436_v8, %v9887_v59 }
 0x1aa   : > { %v2092_v29 = vadd.f32 %v2091_v36, %v2090_v48  ;;  %v2104_v44 = vadd.f32 %v2103_v1, %v2102_v63  ;;  %v1992_v21 = vmul.f32 %v7438_v45, %v9888_v60  ;;  %v1996_v25 = vmul.f32 %v7422_v10, %v7438_v45 }
 0x1ab   : > { %v2099_v22 = vadd.f32 %v2098_v37, %v2097_v11  ;;  %v2113_v58 = vsub.f32 %v2111_v15, %v2112_v43  ;;  %v1999_v2 = vmul.f32 %v7416_v40, %v9888_v60  ;;  %v2000_v56 = vmul.f32 %v7422_v10, %v7436_v8 }
 0x1ac   : > { %v2094_v61 = vsub.f32 %v2092_v29, %v2093_v14  ;;  %v2106_v17 = vsub.f32 %v2104_v44, %v2105_v42  ;;  %v1993_v62 = vsub.f32 %v1991_v7, %v1992_v21  ;;  %v1998_v6 = vsub.f32 %v1996_v25, %v1997_v5 }
 0x1ad   : > { %v2101_v27 = vadd.f32 %v2100_v13, %v2099_v22  ;;  %v2115_v57 = vsub.f32 %v2113_v58, %v2114_v54  ;;  %v2001_v34 = vsub.f32 %v1999_v2, %v2000_v56  ;;  %v7481_v28 = vsel %vm2235_vm12, %v7182_v35, 1.0 }
 0x1ae   : > { %5506 = vst [vmem:[%s6017_s29 + $0x20] sm:$0x1] %v2094_v61  ;;  %v2108_v59 = vadd.f32 %v2107_v23, %v2106_v17  ;;  %v2002_v49 = vmul.f32 2.0, %v1993_v62  ;;  %v2003_v37 = vmul.f32 2.0, %v1998_v6  ;;  %v2332_v52 = vadd.s32 %v7351_v19, %v7361_v39  ;;  %v7515_v17 = vld [vmem:[#allocation5 + $0x4] sm:$0x1] }
 0x1af   : > { %5507 = vst [vmem:[%s6017_s29 + $0x21] sm:$0x1] %v2101_v27  ;;  %v2004_v42 = vmul.f32 2.0, %v2001_v34  ;;  %v2343_v13 = vsel %vm2341_vm9, %v2342_v24, %v7412_v0  ;;  %v2871_v36 = vshrl.u32 %v2870_v32, 23  ;;  %v2051_v1 = vmul.f32 %v7419_v51, %v6986_v30 }
 0x1b0   : > { %5508 = vst [vmem:[%s6017_s29 + $0x22] sm:$0x1] %v2108_v59  ;;  %v2006_v14 = vmul.f32 %v2003_v37, %v7438_v45  ;;  %v2008_v3 = vmul.f32 %v2002_v49, %v7438_v45  ;;  %v2011_v23 = vmul.f32 %v2003_v37, %v7416_v40  ;;  %v2012_v47 = vmul.f32 %v2002_v49, %v7436_v8 }
 0x1b1   : > { %5509 = vst [vmem:[%s6017_s29 + $0x23] sm:$0x1] %v2115_v57  ;;  %v2005_v19 = vmul.f32 %v2004_v42, %v7436_v8  ;;  %v2009_v39 = vmul.f32 %v2004_v42, %v7416_v40  ;;  %v2014_v48 = vmul.f32 %v2002_v49, %v7427_v12  ;;  %v2023_v24 = vmul.f32 %v2003_v37, %v7427_v12 }
 0x1b2   : > { %v2013_v63 = vsub.f32 %v2011_v23, %v2012_v47  ;;  %v2032_v32 = vmul.f32 %v2004_v42, %v7427_v12  ;;  %v2344_v15 = vclz %v2343_v13  ;;  %v2059_v60 = vmul.f32 %v7419_v51, %v6989_v33  ;;  %v9889_v42 = vld [vmem:[#allocation23_spill] sm:$0xff]  ;;  %v9891_v23 = vld [vmem:[#allocation25_spill] sm:$0xff] }
 0x1b3   : > { %v2007_v11 = vsub.f32 %v2005_v19, %v2006_v14  ;;  %v2010_v43 = vsub.f32 %v2008_v3, %v2009_v39  ;;  %v2016_v54 = vrot.slane %v2014_v48, 4  ;;  %v2025_v7 = vrot.slane %v2023_v24, 3  ;;  %v9890_v14 = vld [vmem:[#allocation24_spill] sm:$0xff]  ;;  %v9892_v39 = vld [vmem:[#allocation26_spill] sm:$0xff]  ;;  %v9893_v24 = vld [vmem:[#allocation27_spill] sm:$0xff] }
 0x1b4   : > { %v2034_v29 = vrot.slane %v2032_v32, 2  ;;  %v2038_v44 = vrot.slane %v2013_v63, 2  ;;  %v7508_v21 = vadd.f32 %v7419_v51, %v6957_v38  ;;  %v2067_v61 = vmul.f32 %v7419_v51, %v6995_v46  ;;  %v7529_v32 = vld [vmem:[#allocation5 + $0x7] sm:$0x1] }
 0x1b5   : > { %v2018_v25 = vadd.f32 %v7419_v51, %v2016_v54  ;;  %v2020_v22 = vrot.slane %v2007_v11, 4  ;;  %v2027_v58 = vadd.f32 %v7419_v51, %v2025_v7  ;;  %v2029_v2 = vrot.slane %v2010_v43, 3  ;;  %9894 = vst [vmem:[#allocation16_spill] sm:$0xff] %v7529_v32  ;;  %v7536_v43 = vld [vmem:[#allocation5 + $0x5] sm:$0x1] }
 0x1b6   : > { %v2036_v56 = vadd.f32 %v7419_v51, %v2034_v29  ;;  %v2187_v62 = vmul.f32 %v7515_v17, %v7508_v21  ;;  %v5518_v6 = vadd.s32 4294967294, %v2344_v15  ;;  %v2044_v57 = vrot.slane %v7419_v51, 3 }
 0x1b7   : > { %v2022_v27 = vadd.f32 %v2020_v22, %v2018_v25  ;;  %v2031_v38 = vadd.f32 %v2029_v2, %v2027_v58  ;;  %v2048_v34 = vrot.slane %v7419_v51, 2  ;;  %v2052_v49 = vadd.f32 %v2051_v1, %v7027_v4 }
 0x1b8   : > { %v2040_v59 = vadd.f32 %v2038_v44, %v2036_v56  ;;  %vm5519_vm10 = vcmp.lt.s32.totalorder %v5518_v6, 0  ;;  %v7522_v37 = vadd.s32 4294967169, %v2871_v36  ;;  %v2060_v47 = vadd.f32 %v2059_v60, %v9891_v23  ;;  %v7543_v56 = vld [vmem:[#allocation5 + $0x6] sm:$0x1] }
 0x1b9   : > { %v2041_v13 = vsub.f32 %v2022_v27, %v9889_v42  ;;  %v2043_v3 = vsub.f32 %v2031_v38, %v9890_v14  ;;  %v2347_v19 = vsel %vm5519_vm10, 0, %v5518_v6  ;;  %v2068_v63 = vadd.f32 %v2067_v61, %v9893_v24 }
 0x1ba   : > { %v2047_v48 = vsub.f32 %v2040_v59, %v9892_v39  ;;  %v7532_v51 = vadd.f32 %v7529_v32, %v2187_v62  ;;  %v2348_v4 = vsub.s32 32, %v2347_v19  ;;  %v2352_v15 = vsub.s32 4294967266, %v2347_v19 }
 0x1bb   : > { %v2042_v36 = vmul.f32 %v2041_v13, %v7422_v10  ;;  %v2046_v1 = vmul.f32 %v2044_v57, %v2043_v3  ;;  %5710 = vrcp.f32 %v7481_v28  ;;  %v7540_v54 = vmul.f32 %v7536_v43, %v7508_v21 }
 0x1bc   : > { %v2050_v11 = vmul.f32 %v2048_v34, %v2047_v48  ;;  %v2349_v7 = vshll.u32 %v7412_v0, %v2347_v19  ;;  %v2350_v29 = vshrl.u32 %v2332_v52, %v2348_v4  ;;  %v7547_v61 = vmul.f32 %v7543_v56, %v7508_v21  ;;  %v7561_v19 = vld [vmem:[#allocation5 + $0x2] sm:$0x1]  ;;  %v7567_v48 = vld [vmem:[#allocation5] sm:$0x1] }
 0x1bd   : > { %v2076_v44 = vrot.slane %v2042_v36, 4  ;;  %v2080_v60 = vrot.slane %v2046_v1, 5  ;;  %v2053_v25 = vmul.f32 0.5, %v2042_v36  ;;  %v2061_v22 = vmul.f32 0.5, %v2046_v1 }
 0x1be   : > { %v2084_v58 = vrot.slane %v2050_v11, 6  ;;  %v2069_v2 = vmul.f32 0.5, %v2050_v11  ;;  %v2353_v62 = vadd.s32 127, %v2352_v15  ;;  %v2351_v13 = vor.u32 %v2350_v29, %v2349_v7 }
 0x1bf   : > { %v7550_v6 = vadd.f32 %v2076_v44, %v6986_v30  ;;  %v7553_v27 = vadd.f32 %v2080_v60, %v6989_v33  ;;  %v2054_v0 = vmul.f32 %v2053_v25, %v7422_v10  ;;  %v2062_v52 = vmul.f32 %v2061_v22, %v2044_v57 }
 0x1c0   : > { %v7557_v38 = vadd.f32 %v2084_v58, %v6995_v46  ;;  %v2070_v59 = vmul.f32 %v2069_v2, %v2048_v34  ;;  %v2354_v3 = vshll.u32 %v2353_v62, 23  ;;  %v7571_v46 = vld [vmem:[#allocation5 + $0x1] sm:$0x1]  ;;  %v2362_v7 = vsub.s32 4, %v7394_v26 }
 0x1c1   : > { %v7559_v23 = vpop.eup %5710  ;;  %v2117_v30 = vmul.f32 %v7561_v19, %v7553_v27  ;;  %v2119_v33 = vmul.f32 %v7561_v19, %v7550_v6  ;;  %v2122_v10 = vmul.f32 %v7567_v48, %v7553_v27  ;;  %v2123_v57 = vmul.f32 %v7571_v46, %v7550_v6 }
 0x1c2   : > { %v2116_v34 = vmul.f32 %v7571_v46, %v7557_v38  ;;  %v2120_v24 = vmul.f32 %v7567_v48, %v7557_v38  ;;  %v2056_v4 = vrot.slane %v2054_v0, 4  ;;  %v2064_v36 = vrot.slane %v2062_v52, 5 }
 0x1c3   : > { %v2124_v1 = vsub.f32 %v2122_v10, %v2123_v57  ;;  %v2072_v15 = vrot.slane %v2070_v59, 6  ;;  %v2355_v11 = vor.u32 4788187, %v2354_v3  ;;  %v2358_v62 = vcvt.s32.f32 %v2351_v13  ;;  %v7592_v3 = vld [vmem:[#allocation5 + $0x3] sm:$0x1] }
 0x1c4   : > { %v2118_v29 = vsub.f32 %v2116_v34, %v2117_v30  ;;  %v2121_v44 = vsub.f32 %v2119_v33, %v2120_v24  ;;  %v7580_v60 = vadd.f32 %v2056_v4, %v2052_v49  ;;  %v7582_v25 = vadd.f32 %v2064_v36, %v2060_v47  ;;  %v9895_v13 = vld [vmem:[#allocation35_spill] sm:$0xff] }
 0x1c5   : > { %v2127_v22 = vmul.f32 2.0, %v2124_v1  ;;  %v7584_v58 = vadd.f32 %v2072_v15, %v2068_v63  ;;  %v2356_v2 = vand.u32 2147483647, %v2355_v11  ;;  %vm2240_vm11 = vcmp.lt.s32.totalorder %v9895_v13, 0 }
 0x1c6   : > { %v2125_v5 = vmul.f32 2.0, %v2118_v29  ;;  %v2126_v16 = vmul.f32 2.0, %v2121_v44  ;;  %v2147_v0 = vmul.f32 %v7561_v19, %v7582_v25  ;;  %v2149_v52 = vmul.f32 %v7561_v19, %v7580_v60 }
 0x1c7   : > { %v2128_v59 = vmul.f32 %v7571_v46, %v2127_v22  ;;  %v2132_v49 = vmul.f32 %v7567_v48, %v2127_v22  ;;  %v2143_v47 = vmul.f32 %v7592_v3, %v2127_v22  ;;  %v2146_v63 = vmul.f32 %v7571_v46, %v7584_v58 }
 0x1c8   : > { %v2129_v30 = vmul.f32 %v7561_v19, %v2126_v16  ;;  %v2137_v33 = vmul.f32 %v7592_v3, %v2125_v5  ;;  %v2131_v10 = vmul.f32 %v7561_v19, %v2125_v5  ;;  %v2140_v57 = vmul.f32 %v7592_v3, %v2126_v16 }
 0x1c9   : > { %v9896_v34 = vand.u32 2147483647, %v9895_v13  ;;  %v2134_v4 = vmul.f32 %v7567_v48, %v2126_v16  ;;  %v2135_v36 = vmul.f32 %v7571_v46, %v2125_v5  ;;  %v2144_v1 = vadd.f32 %v2143_v47, %v7557_v38 }
 0x1ca   : > { %v2148_v15 = vsub.f32 %v2146_v63, %v2147_v0  ;;  %v2130_v11 = vsub.f32 %v2128_v59, %v2129_v30  ;;  %v2138_v29 = vadd.f32 %v2137_v33, %v7550_v6  ;;  %v2133_v44 = vsub.f32 %v2131_v10, %v2132_v49  ;;  %v7619_v30 = vld [vmem:[#allocation5 + $0x8] sm:$0x1] }
 0x1cb   : > { %vm7604_vm13 = vcmp.le.f32.partialorder %v9896_v34, 0.7853982  ;;  %v2141_v22 = vadd.f32 %v2140_v57, %v7553_v27  ;;  %v2136_v55 = vsub.f32 %v2134_v4, %v2135_v36  ;;  %v2150_v34 = vmul.f32 %v7567_v48, %v7584_v58  ;;  %v7626_v36 = vld [vmem:[#allocation5 + $0x9] sm:$0x1] }
 0x1cc   : > { %v2152_v50 = vmul.f32 %v7567_v48, %v7582_v25  ;;  %v2153_v16 = vmul.f32 %v7571_v46, %v7580_v60  ;;  %v2139_v5 = vadd.f32 %v2138_v29, %v2130_v11  ;;  %v2155_v47 = vmul.f32 2.0, %v2148_v15 }
 0x1cd   : > { %v2142_v32 = vadd.f32 %v2141_v22, %v2133_v44  ;;  %v2359_v0 = vmul.f32 %v2358_v62, %v2356_v2  ;;  %v2145_v59 = vadd.f32 %v2144_v1, %v2136_v55  ;;  %v2151_v63 = vsub.f32 %v2149_v52, %v2150_v34 }
 0x1ce   : > { %v2154_v49 = vsub.f32 %v2152_v50, %v2153_v16  ;;  %v2192_v33 = vadd.f32 %v7619_v30, %v7540_v54  ;;  %v2181_v10 = vadd.f32 %v7515_v17, %v2139_v5  ;;  %v2167_v4 = vmul.f32 %v7592_v3, %v2155_v47 }
 0x1cf   : > { %v2183_v57 = vadd.f32 %v7536_v43, %v2142_v32  ;;  %v2196_v55 = vadd.f32 %v7626_v36, %v7547_v61  ;;  %v2185_v50 = vadd.f32 %v7543_v56, %v2145_v59  ;;  %v2156_v2 = vmul.f32 2.0, %v2151_v63 }
 0x1d0   : > { %v2157_v62 = vmul.f32 2.0, %v2154_v49  ;;  %v2161_v52 = vmul.f32 %v7561_v19, %v2155_v47  ;;  %5510 = vst [vmem:[%s6017_s29 + $0x24] sm:$0x1] %v2181_v10  ;;  %v2168_v54 = vadd.f32 %v2167_v4, %v7580_v60  ;;  %v2165_v1 = vmul.f32 %v7571_v46, %v2155_v47 }
 0x1d1   : > { %v2360_v32 = vxor.u32 2147483648, %v2359_v0  ;;  %v2363_v15 = vsel %vm2240_vm11, %v2362_v7, %v7394_v26  ;;  %5511 = vst [vmem:[%s6017_s29 + $0x25] sm:$0x1] %v2183_v57  ;;  %v2159_v61 = vmul.f32 %v7561_v19, %v2156_v2  ;;  %v2170_v44 = vmul.f32 %v7592_v3, %v2156_v2 }
 0x1d2   : > { %v2158_v11 = vmul.f32 %v7571_v46, %v2157_v62  ;;  %v2162_v29 = vmul.f32 %v7567_v48, %v2157_v62  ;;  %5512 = vst [vmem:[%s6017_s29 + $0x26] sm:$0x1] %v2185_v50  ;;  %v2164_v22 = vmul.f32 %v7567_v48, %v2156_v2  ;;  %v2173_v34 = vmul.f32 %v7592_v3, %v2157_v62 }
 0x1d3   : > { %v2361_v16 = vsel %vm2240_vm11, %v2360_v32, %v2359_v0  ;;  %v2394_v26 = vmul.f32 %v7559_v23, %v7481_v28  ;;  %v2171_v47 = vadd.f32 %v2170_v44, %v7582_v25  ;;  %v2365_v10 = vsel %vm7604_vm13, 0, %v2363_v15 }
 0x1d4   : > { %v2160_v7 = vsub.f32 %v2158_v11, %v2159_v61  ;;  %v2163_v5 = vsub.f32 %v2161_v52, %v2162_v29  ;;  %v2364_v59 = vsel %vm7604_vm13, %v9895_v13, %v2361_v16  ;;  %v2166_v63 = vsub.f32 %v2164_v22, %v2165_v1 }
 0x1d5   : > { %v2174_v49 = vadd.f32 %v2173_v34, %v7584_v58  ;;  %v2366_v57 = vmul.f32 %v2364_v59, %v2364_v59  ;;  %v2877_v50 = vadd.s32 1, %v7522_v37  ;;  %v2395_v32 = vsub.f32 1.0, %v2394_v26  ;;  %v9900_v37 = vld [vmem:[#allocation28_spill] sm:$0xff] }
 0x1d6   : > { %v2169_v0 = vadd.f32 %v2168_v54, %v2160_v7  ;;  %v2172_v4 = vadd.f32 %v2171_v47, %v2163_v5  ;;  %v2382_v1 = vadd.s32 3, %v2365_v10  ;;  %v9899_v29 = vand.u32 2147483647, %v7398_v9  ;;  %v9901_v7 = vld [vmem:[#allocation18_spill] sm:$0xff] }
 0x1d7   : > { %v2175_v2 = vadd.f32 %v2174_v49, %v2166_v63  ;;  %v2367_v62 = vmul.f32 -0.001358992, %v2366_v57  ;;  %v2374_v52 = vmul.f32 -0.00019511016, %v2366_v57  ;;  %v2396_v22 = vmul.f32 %v7559_v23, %v2395_v32 }
 0x1d8   : > { %v2189_v11 = vadd.f32 %v7532_v51, %v2169_v0  ;;  %v2193_v61 = vadd.f32 %v2192_v33, %v2172_v4  ;;  %v7661_v24 = vand.u32 8388607, %v9899_v29  ;;  %v2234_v34 = vmul.f32 %v9900_v37, %v9900_v37 }
 0x1d9   : > { %v2197_v15 = vadd.f32 %v2196_v55, %v2175_v2  ;;  %v2368_v44 = vadd.f32 0.041655596, %v2367_v62  ;;  %v2375_v54 = vadd.f32 0.008332121, %v2374_v52  ;;  %vm2398_vm14 = vweird.f32 %v7481_v28  ;;  %v9904_v2 = vld [vmem:[#allocation20_spill] sm:$0xff] }
 0x1da   : > { %5513 = vst [vmem:[%s6017_s29 + $0x27] sm:$0x1] %v2189_v11  ;;  %vm2399_vm15 = vweird.f32 %v7559_v23  ;;  %vm2878_vm4 = vcmp.gt.s32.totalorder %v2877_v50, 0  ;;  %v2402_v16 = vand.u32 2147483647, %v7481_v28  ;;  %v2404_v55 = vand.u32 2147483648, %v7481_v28 }
 0x1db   : > { %5514 = vst [vmem:[%s6017_s29 + $0x28] sm:$0x1] %v2193_v61  ;;  %v2369_v51 = vmul.f32 %v2368_v44, %v2366_v57  ;;  %v2376_v33 = vmul.f32 %v2375_v54, %v2366_v57  ;;  %v2397_v26 = vadd.f32 %v7559_v23, %v2396_v22  ;;  %v2408_v5 = vmul.f32 %v9900_v37, %v9901_v7  ;;  %vm7680_vm3 = vmor %vm2398_vm14, %vm2399_vm15 }
 0x1dc   : > { %5515 = vst [vmem:[%s6017_s29 + $0x29] sm:$0x1] %v2197_v15  ;;  %v2567_v47 = vmul.f32 %v9900_v37, %v6378_v31  ;;  %v2383_v0 = vand.u32 3, %v2382_v1  ;;  %v2410_v62 = vmul.f32 %v2234_v34, %v9904_v2  ;;  %v2557_v52 = vand.u32 3, %v2365_v10 }
 0x1dd   : > { %v2370_v63 = vadd.f32 -0.4999988, %v2369_v51  ;;  %v2377_v49 = vadd.f32 -0.16666654, %v2376_v33  ;;  %v2875_v32 = vor.u32 8388608, %v7661_v24  ;;  %v2879_v11 = vsel %vm2878_vm4, %v2877_v50, 0 }
 0x1de   : > { %vm7687_vm0 = vcmp.eq.f32.partialorder %v2402_v16, 8.507059e+37  ;;  %v2405_v1 = vor.u32 1.1754944e-38, %v2404_v55  ;;  %v2401_v28 = vsel %vm7680_vm3, %v7559_v23, %v2397_v26  ;;  %v2409_v44 = vsub.f32 0.5, %v2408_v5 }
 0x1df   : > { %v2371_v61 = vmul.f32 %v2370_v63, %v2366_v57  ;;  %v2378_v29 = vmul.f32 %v2377_v49, %v2366_v57  ;;  %v2568_v54 = vsub.f32 1.0, %v2567_v47  ;;  %v2569_v22 = vmul.f32 %v2234_v34, %v6406_v53 }
 0x1e0   : > { %vm2381_vm1 = vweird.f32 %v9895_v13  ;;  %vm2384_vm2 = vcmp.lt.s32.totalorder %v2383_v0, 2  ;;  %vm2385_vm5 = vcmp.eq.s32.totalorder %v2383_v0, 0  ;;  %vm2388_vm6 = vcmp.eq.s32.totalorder %v2383_v0, 2 }
 0x1e1   : > { %v2372_v10 = vadd.f32 1.0, %v2371_v61  ;;  %v2379_v37 = vadd.f32 1.0, %v2378_v29  ;;  %vm2562_vm7 = vcmp.eq.s32.totalorder %v2557_v52, 2  ;;  %v2881_v57 = vand.u32 31, %v2879_v11 }
 0x1e2   : > { %v2406_v51 = vsel %vm7687_vm0, %v2405_v1, %v2401_v28  ;;  %vm2558_vm8 = vcmp.lt.s32.totalorder %v2557_v52, 2  ;;  %v2411_v23 = vadd.f32 %v2410_v62, %v2409_v44  ;;  %vm2559_vm9 = vcmp.eq.s32.totalorder %v2557_v52, 0 }
 0x1e3   : > { %v2380_v50 = vmul.f32 %v2379_v37, %v2364_v59  ;;  %v2389_v24 = vxor.u32 2147483648, %v2372_v10  ;;  %v2570_v33 = vadd.f32 %v2569_v22, %v2568_v54  ;;  %v2882_v16 = vsub.s32 32, %v2881_v57  ;;  %v7712_v37 = vld [vmem:[%s6003_s27 + $0x28] sm:$0xff] }
 0x1e4   : > { %v7698_v5 = vshrl.u32 %v2879_v11, 5  ;;  %v9907_v47 = vmov 683565275   ;;  %v9908_v49 = vmov 2475754826   ;;  %v2893_v29 = vshll.u32 %v9860_v41, %v2881_v57 }
 0x1e5   : > { %v2386_v34 = vxor.u32 2147483648, %v2380_v50  ;;  %v2390_v55 = vsel %vm2388_vm6, %v2389_v24, %v2380_v50  ;;  %v2564_v26 = vsel %vm2562_vm7, %v2389_v24, %v2380_v50  ;;  %v2884_v63 = vshll.u32 %v9907_v47, %v2881_v57 }
 0x1e6   : > { %v2887_v4 = vshll.u32 %v9908_v49, %v2881_v57  ;;  %v9909_v59 = vmov 2131351028   ;;  %v2885_v1 = vshrl.u32 %v9908_v49, %v2882_v16  ;;  %v2891_v54 = vshrl.u32 %v9860_v41, %v2882_v16 }
 0x1e7   : > { %v2890_v61 = vshll.u32 %v9909_v59, %v2881_v57  ;;  %v2387_v15 = vsel %vm2385_vm5, %v2372_v10, %v2386_v34  ;;  %v2561_v62 = vsel %vm2559_vm9, %v2372_v10, %v2386_v34  ;;  %v2888_v28 = vshrl.u32 %v9909_v59, %v2882_v16 }
 0x1e8   : > { %v2391_v44 = vsel %vm2384_vm2, %v2387_v15, %v2390_v55  ;;  %v2565_v11 = vsel %vm2558_vm8, %v2561_v62, %v2564_v26  ;;  %v2894_v22 = vshrl.u32 %v9861_v18, %v2882_v16  ;;  %v7718_v24 = vshll.u32 %v2875_v32, 8  ;;  %v7726_v62 = vld [vmem:[%s6003_s27 + $0x18] sm:$0xff] }
 0x1e9   : > { %v2392_v50 = vsel %vm2381_vm1, nan, %v2391_v44  ;;  %v2566_v10 = vsel %vm2381_vm1, nan, %v2565_v11  ;;  %v2896_v55 = vshll.u32 %v9861_v18, %v2881_v57  ;;  %v2897_v26 = vshrl.u32 %v9862_v20, %v2882_v16 }
 0x1ea   : > { %v2407_v0 = vmul.f32 %v2406_v51, %v2392_v50  ;;  %v2571_v52 = vsel %vm2235_vm12, %v2566_v10, %v2570_v33  ;;  %v7729_v44 = vrot.slane %v7726_v62, 4  ;;  %v2883_v13 = vshrl.u32 %v9907_v47, %v2882_v16  ;;  %v9910_v33 = vld [vmem:[#allocation22_spill] sm:$0xff] }
 0x1eb   : > { %v2585_v15 = vrot.slane %v2571_v52, 1  ;;  %v2886_v32 = vor.u32 %v2885_v1, %v2884_v63  ;;  %v2889_v51 = vor.u32 %v2888_v28, %v2887_v4  ;;  %v2892_v50 = vor.u32 %v2891_v54, %v2890_v61  ;;  %v9911_v63 = vld [vmem:[#allocation9_spill] sm:$0xff] }
 0x1ec   : > { %v2412_v11 = vsel %vm2235_vm12, %v2407_v0, %v2411_v23  ;;  %v2895_v34 = vor.u32 %v2894_v22, %v2893_v29  ;;  %vm2902_vm10 = vcmp.lt.s32.totalorder %v7698_v5, 4  ;;  %v2898_v52 = vor.u32 %v2897_v26, %v2896_v55  ;;  %v9912_v23 = vld [vmem:[#allocation10_spill] sm:$0xff] }
 0x1ed   : > { %v2572_v10 = vmul.f32 %v2412_v11, %v9910_v33  ;;  %v2574_v57 = vrot.slane %v2412_v11, 7  ;;  %v2577_v18 = vrot.slane %v2412_v11, 6  ;;  %vm2899_vm11 = vcmp.lt.s32.totalorder %v7698_v5, 1 }
 0x1ee   : > { %vm2901_vm13 = vcmp.lt.s32.totalorder %v7698_v5, 3  ;;  %v2904_v16 = vsel %vm2902_vm10, %v2892_v50, 2102212464  ;;  %v2587_v29 = vmul.f32 %v2585_v15, %v7416_v40  ;;  %v2602_v1 = vmul.f32 %v2585_v15, %v7436_v8 }
 0x1ef   : > { %v2576_v35 = vmul.f32 %v2574_v57, %v9911_v63  ;;  %v2579_v4 = vmul.f32 %v2577_v18, %v9912_v23  ;;  %v2581_v61 = vrot.slane %v2572_v10, 1  ;;  %v2611_v28 = vmul.f32 %v2585_v15, %v7438_v45 }
 0x1f0   : > { %v2613_v54 = vmul.f32 %v2585_v15, %v7427_v12  ;;  %v7748_v22 = vsel %vm2899_vm11, %v2883_v13, %v2886_v32  ;;  %v7753_v18 = vsel %vm2901_vm13, %v2889_v51, %v2904_v16  ;;  %v2912_v47 = vsel %vm2902_vm10, %v2898_v52, 1326507024 }
 0x1f1   : > { %v2583_v0 = vmul.f32 %v2581_v61, %v7427_v12  ;;  %v2590_v55 = vrot.slane %v2579_v4, 3  ;;  %v2595_v26 = vrot.slane %v2576_v35, 2  ;;  %v2609_v11 = vmul.f32 %v2581_v61, %v7436_v8 }
 0x1f2   : > { %v2614_v33 = vmul.f32 %v2581_v61, %v7416_v40  ;;  %v2604_v15 = vmul.f32 %v2581_v61, %v7438_v45  ;;  %vm2900_vm12 = vcmp.lt.s32.totalorder %v7698_v5, 2  ;;  %v9913_v61 = vld [vmem:[#allocation11_spill] sm:$0xff]  ;;  %v7838_v2 = vand.u32 65535, %v7718_v24 }
 0x1f3   : > { %v2588_v57 = vadd.f32 %v2587_v29, %v2583_v0  ;;  %v2592_v13 = vmul.f32 %v2590_v55, %v7436_v8  ;;  %v2597_v63 = vmul.f32 %v2595_v26, %v7438_v45  ;;  %v2599_v23 = vmul.f32 %v2595_v26, %v7427_v12 }
 0x1f4   : > { %v2600_v35 = vmul.f32 %v2590_v55, %v7416_v40  ;;  %v2606_v16 = vmul.f32 %v2590_v55, %v7427_v12  ;;  %v2607_v4 = vmul.f32 %v2595_v26, %v7416_v40  ;;  %v2615_v20 = vsub.f32 %v2613_v54, %v2614_v33 }
 0x1f5   : > { %v2593_v59 = vadd.f32 %v2592_v13, %v2588_v57  ;;  %v2616_v49 = vmul.f32 %v2595_v26, %v7436_v8  ;;  %v2618_v10 = vmul.f32 %v2590_v55, %v7438_v45  ;;  %v2908_v29 = vsel %vm2902_vm10, %v2895_v34, 920167782 }
 0x1f6   : > { %v2601_v0 = vsub.f32 %v2599_v23, %v2600_v35  ;;  %v2608_v41 = vadd.f32 %v2607_v4, %v2606_v16  ;;  %v7776_v40 = vsel %vm2899_vm11, %v2886_v32, %v2889_v51  ;;  %v2911_v8 = vsel %vm2899_vm11, %v2889_v51, %v2892_v50 }
 0x1f7   : > { %v7772_v53 = vsub.f32 %v2593_v59, %v2597_v63  ;;  %v2617_v12 = vsub.f32 %v2615_v20, %v2616_v49  ;;  %v7783_v45 = vsel %vm2901_vm13, %v2892_v50, %v2908_v29  ;;  %v2913_v59 = vsel %vm2901_vm13, %v2895_v34, %v2912_v47 }
 0x1f8   : > { %v2603_v54 = vadd.f32 %v2602_v1, %v2601_v0  ;;  %v2610_v55 = vsub.f32 %v2608_v41, %v2609_v11  ;;  %vm2869_vm6 = vcmp.lt.s32.totalorder %v7398_v9, 0 }
 0x1f9   : > { %v7787_v52 = vsub.f32 %v2617_v12, %v2618_v10  ;;  %v2717_v20 = vmul.f32 %v7592_v3, %v7772_v53  ;;  %v2729_v49 = vmul.f32 %v7561_v19, %v7772_v53  ;;  %v2734_v41 = vmul.f32 %v7571_v46, %v7772_v53 }
 0x1fa   : > { %v7795_v32 = vadd.f32 %v2604_v15, %v2603_v54  ;;  %v7797_v51 = vadd.f32 %v2611_v28, %v2610_v55  ;;  %v2739_v50 = vmul.f32 %v7567_v48, %v7772_v53  ;;  %v2626_v47 = vmul.f32 %v7772_v53, %v9913_v61  ;;  %v9914_v54 = vld [vmem:[#allocation12_spill] sm:$0xff] }
 0x1fb   : > { %v2718_v34 = vmul.f32 %v7567_v48, %v7787_v52  ;;  %v2727_v1 = vmul.f32 %v7571_v46, %v7787_v52  ;;  %v2736_v26 = vmul.f32 %v7561_v19, %v7787_v52  ;;  %v2738_v11 = vmul.f32 %v7592_v3, %v7787_v52 }
 0x1fc   : > { %v2720_v28 = vmul.f32 %v7571_v46, %v7797_v51  ;;  %v2722_v33 = vmul.f32 %v7561_v19, %v7795_v32  ;;  %v2724_v10 = vmul.f32 %v7592_v3, %v7795_v32  ;;  %v2725_v15 = vmul.f32 %v7567_v48, %v7797_v51 }
 0x1fd   : > { %v2719_v57 = vadd.f32 %v2718_v34, %v2717_v20  ;;  %v2731_v13 = vmul.f32 %v7592_v3, %v7797_v51  ;;  %v2732_v63 = vmul.f32 %v7567_v48, %v7795_v32  ;;  %v2740_v23 = vsub.f32 %v2738_v11, %v2739_v50 }
 0x1fe   : > { %v2726_v35 = vsub.f32 %v2724_v10, %v2725_v15  ;;  %v2741_v16 = vmul.f32 %v7571_v46, %v7795_v32  ;;  %v2743_v4 = vmul.f32 %v7561_v19, %v7797_v51  ;;  %v2620_v29 = vmul.f32 %v7795_v32, %v9913_v61 }
 0x1ff   : > { %v2721_v0 = vadd.f32 %v2720_v28, %v2719_v57  ;;  %v2733_v12 = vadd.f32 %v2732_v63, %v2731_v13  ;;  %v2621_v55 = vmul.f32 %v7797_v51, %v9914_v54  ;;  %v2625_v20 = vmul.f32 %v7729_v44, %v7797_v51 }
 0x200   : > { %v2728_v50 = vadd.f32 %v2727_v1, %v2726_v35  ;;  %v2742_v34 = vsub.f32 %v2740_v23, %v2741_v16  ;;  %v2628_v11 = vmul.f32 %v7772_v53, %v9914_v54  ;;  %v2629_v10 = vmul.f32 %v7729_v44, %v7795_v32 }
 0x201   : > { %v2723_v15 = vsub.f32 %v2721_v0, %v2722_v33  ;;  %v2735_v61 = vsub.f32 %v2733_v12, %v2734_v41  ;;  %v2622_v28 = vsub.f32 %v2620_v29, %v2621_v55  ;;  %v2627_v57 = vsub.f32 %v2625_v20, %v2626_v47 }
 0x202   : > { %v2730_v13 = vadd.f32 %v2729_v49, %v2728_v50  ;;  %v2744_v63 = vsub.f32 %v2742_v34, %v2743_v4  ;;  %v2630_v31 = vsub.f32 %v2628_v11, %v2629_v10  ;;  %v2914_v16 = vsel %vm2900_vm12, %v2911_v8, %v2913_v59 }
 0x203   : > { %5523 = vst [vmem:[%s6017_s29 + $0x30] sm:$0x1] %v2723_v15  ;;  %v2737_v1 = vadd.f32 %v2736_v26, %v2735_v61  ;;  %v2631_v23 = vmul.f32 2.0, %v2622_v28  ;;  %v2632_v35 = vmul.f32 2.0, %v2627_v57  ;;  %v2680_v41 = vmul.f32 %v7726_v62, %v7550_v6 }
 0x204   : > { %5524 = vst [vmem:[%s6017_s29 + $0x31] sm:$0x1] %v2730_v13  ;;  %v2633_v33 = vmul.f32 2.0, %v2630_v31  ;;  %v2688_v49 = vmul.f32 %v7726_v62, %v7553_v27  ;;  %v7849_v47 = vshrl.u32 %v7718_v24, 16  ;;  %v2696_v20 = vmul.f32 %v7726_v62, %v7557_v38 }
 0x205   : > { %5525 = vst [vmem:[%s6017_s29 + $0x32] sm:$0x1] %v2737_v1  ;;  %v2635_v4 = vmul.f32 %v2632_v35, %v7797_v51  ;;  %v2637_v26 = vmul.f32 %v2631_v23, %v7797_v51  ;;  %v2640_v29 = vmul.f32 %v2632_v35, %v7772_v53  ;;  %v2641_v8 = vmul.f32 %v2631_v23, %v7795_v32 }
 0x206   : > { %5526 = vst [vmem:[%s6017_s29 + $0x33] sm:$0x1] %v2744_v63  ;;  %v2634_v31 = vmul.f32 %v2633_v33, %v7795_v32  ;;  %v2638_v59 = vmul.f32 %v2633_v33, %v7772_v53  ;;  %v2643_v0 = vmul.f32 %v2631_v23, %v7787_v52  ;;  %v2652_v12 = vmul.f32 %v2632_v35, %v7787_v52 }
 0x207   : > { %v2642_v54 = vsub.f32 %v2640_v29, %v2641_v8  ;;  %v2661_v55 = vmul.f32 %v2633_v33, %v7787_v52  ;;  %v2918_v50 = vand.u32 65535, %v2914_v16  ;;  %v7866_v57 = vadd.f32 %v7726_v62, %v7508_v21 }
 0x208   : > { %v2636_v34 = vsub.f32 %v2634_v31, %v2635_v4  ;;  %v2639_v11 = vsub.f32 %v2637_v26, %v2638_v59  ;;  %v2645_v10 = vrot.slane %v2643_v0, 4  ;;  %v2654_v15 = vrot.slane %v2652_v12, 3 }
 0x209   : > { %v2663_v61 = vrot.slane %v2661_v55, 2  ;;  %v2667_v28 = vrot.slane %v2642_v54, 2  ;;  %v2919_v13 = vshrl.u32 %v2914_v16, 16  ;;  %v2816_v4 = vmul.f32 %v7515_v17, %v7866_v57 }
 0x20a   : > { %v2647_v63 = vadd.f32 %v7726_v62, %v2645_v10  ;;  %v2649_v1 = vrot.slane %v2636_v34, 4  ;;  %v2656_v23 = vadd.f32 %v7726_v62, %v2654_v15  ;;  %v2658_v35 = vrot.slane %v2639_v11, 3 }
 0x20b   : > { %v2665_v33 = vadd.f32 %v7726_v62, %v2663_v61  ;;  %v2920_v26 = vmul.u32 %v2918_v50, %v7838_v2  ;;  %v7875_v29 = vmul.u32 %v2919_v13, %v7838_v2  ;;  %v7881_v16 = vsel %vm2900_vm12, %v7776_v40, %v7783_v45  ;;  %v9915_v45 = vld [vmem:[#allocation16_spill] sm:$0xff] }
 0x20c   : > { %v2651_v8 = vadd.f32 %v2649_v1, %v2647_v63  ;;  %v2660_v21 = vadd.f32 %v2658_v35, %v2656_v23  ;;  %v7884_v31 = vmul.u32 %v2918_v50, %v7849_v47  ;;  %v2681_v0 = vadd.f32 %v2680_v41, %v7580_v60 }
 0x20d   : > { %v2669_v59 = vadd.f32 %v2667_v28, %v2665_v33  ;;  %v2689_v12 = vadd.f32 %v2688_v49, %v7582_v25  ;;  %v2924_v54 = vshll.u32 %v7875_v29, 16  ;;  %v2697_v11 = vadd.f32 %v2696_v20, %v7584_v58 }
 0x20e   : > { %v2670_v55 = vsub.f32 %v2651_v8, %v9889_v42  ;;  %v2672_v34 = vsub.f32 %v2660_v21, %v9890_v14  ;;  %v2923_v10 = vmul.u32 %v2919_v13, %v7849_v47  ;;  %v7895_v50 = vadd.f32 %v9915_v45, %v2816_v4 }
 0x20f   : > { %v2676_v40 = vsub.f32 %v2669_v59, %v9892_v39  ;;  %v2926_v15 = vshll.u32 %v7884_v31, 16  ;;  %vm2928_vm14 = vc.u32 %v2920_v26, %v2924_v54  ;;  %v9916_v25 = vrot.slane %v7726_v62, 3 }
 0x210   : > { %v2671_v60 = vmul.f32 %v2670_v55, %v7729_v44  ;;  %v2820_v49 = vmul.f32 %v7536_v43, %v7866_v57  ;;  %v2925_v58 = vshrl.u32 %v7875_v29, 16  ;;  %v9917_v20 = vrot.slane %v7726_v62, 2 }
 0x211   : > { %v2675_v41 = vmul.f32 %v9916_v25, %v2672_v34  ;;  %v7908_v28 = vmul.f32 %v7543_v56, %v7866_v57  ;;  %v9918_v13 = vmov 0   ;;  %v2930_v1 = vadd.s32 %v2924_v54, %v2920_v26 }
 0x212   : > { %v2679_v61 = vmul.f32 %v9917_v20, %v2676_v40  ;;  %v2929_v63 = vsel %vm2928_vm14, 1, %v9918_v13  ;;  %v2705_v23 = vrot.slane %v2671_v60, 4  ;;  %v2682_v33 = vmul.f32 0.5, %v2671_v60 }
 0x213   : > { %v2709_v35 = vrot.slane %v2675_v41, 5  ;;  %v2690_v4 = vmul.f32 0.5, %v2675_v41  ;;  %vm2932_vm15 = vc.u32 %v2930_v1, %v2926_v15  ;;  %v9919_v45 = vmov %v9916_v25 }
 0x214   : > { %v2713_v8 = vrot.slane %v2679_v61, 6  ;;  %v2698_v21 = vmul.f32 0.5, %v2679_v61  ;;  %v7913_v55 = vadd.f32 %v2705_v23, %v7550_v6  ;;  %v2683_v40 = vmul.f32 %v2682_v33, %v7729_v44 }
 0x215   : > { %v7916_v34 = vadd.f32 %v2709_v35, %v7553_v27  ;;  %v2691_v26 = vmul.f32 %v2690_v4, %v9919_v45  ;;  %v9920_v60 = vmov %v9917_v20  ;;  %v2931_v41 = vadd.s32 %v2929_v63, %v2923_v10 }
 0x216   : > { %v7922_v54 = vadd.f32 %v2713_v8, %v7557_v38  ;;  %v2699_v25 = vmul.f32 %v2698_v21, %v9920_v60  ;;  %v2933_v15 = vsel %vm2932_vm15, 1, %v9918_v13  ;;  %v2748_v27 = vmul.f32 %v7561_v19, %v7913_v55 }
 0x217   : > { %v2746_v6 = vmul.f32 %v7561_v19, %v7916_v34  ;;  %v2751_v44 = vmul.f32 %v7567_v48, %v7916_v34  ;;  %v2752_v20 = vmul.f32 %v7571_v46, %v7913_v55  ;;  %v2685_v10 = vrot.slane %v2683_v40, 4 }
 0x218   : > { %v2745_v38 = vmul.f32 %v7571_v46, %v7922_v54  ;;  %v2749_v62 = vmul.f32 %v7567_v48, %v7922_v54  ;;  %v2693_v61 = vrot.slane %v2691_v26, 5  ;;  %v2701_v1 = vrot.slane %v2699_v25, 6 }
 0x219   : > { %v2753_v63 = vsub.f32 %v2751_v44, %v2752_v20  ;;  %v7940_v23 = vadd.f32 %v7619_v30, %v2820_v49  ;;  %v2940_v35 = vand.u32 65535, %v7881_v16  ;;  %v7943_v8 = vadd.f32 %v2685_v10, %v2681_v0 }
 0x21a   : > { %v2747_v33 = vsub.f32 %v2745_v38, %v2746_v6  ;;  %v2750_v4 = vsub.f32 %v2748_v27, %v2749_v62  ;;  %v7945_v21 = vadd.f32 %v2693_v61, %v2689_v12  ;;  %v7947_v60 = vadd.f32 %v2701_v1, %v2697_v11 }
 0x21b   : > { %v2756_v45 = vmul.f32 2.0, %v2753_v63  ;;  %v7949_v59 = vadd.s32 %v2933_v15, %v2931_v41  ;;  %v2941_v40 = vshrl.u32 %v7881_v16, 16  ;;  %v2778_v49 = vmul.f32 %v7561_v19, %v7943_v8 }
 0x21c   : > { %v2754_v26 = vmul.f32 2.0, %v2747_v33  ;;  %v2755_v25 = vmul.f32 2.0, %v2750_v4  ;;  %v2776_v30 = vmul.f32 %v7561_v19, %v7945_v21  ;;  %v2775_v11 = vmul.f32 %v7571_v46, %v7947_v60 }
 0x21d   : > { %v2757_v0 = vmul.f32 %v7571_v46, %v2756_v45  ;;  %v2761_v12 = vmul.f32 %v7567_v48, %v2756_v45  ;;  %v2772_v6 = vmul.f32 %v7592_v3, %v2756_v45  ;;  %v2779_v4 = vmul.f32 %v7567_v48, %v7947_v60 }
 0x21e   : > { %v2758_v41 = vmul.f32 %v7561_v19, %v2755_v25  ;;  %v2766_v16 = vmul.f32 %v7592_v3, %v2754_v26  ;;  %v2760_v15 = vmul.f32 %v7561_v19, %v2754_v26  ;;  %v2769_v27 = vmul.f32 %v7592_v3, %v2755_v25 }
 0x21f   : > { %v2763_v44 = vmul.f32 %v7567_v48, %v2755_v25  ;;  %v2764_v20 = vmul.f32 %v7571_v46, %v2754_v26  ;;  %v2773_v38 = vadd.f32 %v2772_v6, %v7922_v54  ;;  %v2777_v62 = vsub.f32 %v2775_v11, %v2776_v30 }
 0x220   : > { %v2759_v10 = vsub.f32 %v2757_v0, %v2758_v41  ;;  %v2767_v61 = vadd.f32 %v2766_v16, %v7913_v55  ;;  %v2762_v63 = vsub.f32 %v2760_v15, %v2761_v12  ;;  %v2770_v1 = vadd.f32 %v2769_v27, %v7916_v34 }
 0x221   : > { %v2765_v33 = vsub.f32 %v2763_v44, %v2764_v20  ;;  %v2781_v45 = vmul.f32 %v7567_v48, %v7945_v21  ;;  %v2782_v25 = vmul.f32 %v7571_v46, %v7943_v8  ;;  %v2784_v30 = vmul.f32 2.0, %v2777_v62 }
 0x222   : > { %v2768_v26 = vadd.f32 %v2767_v61, %v2759_v10  ;;  %v2771_v6 = vadd.f32 %v2770_v1, %v2762_v63  ;;  %v2943_v0 = vmul.u32 %v2941_v40, %v7838_v2  ;;  %v2780_v12 = vsub.f32 %v2778_v49, %v2779_v4 }
 0x223   : > { %v2774_v11 = vadd.f32 %v2773_v38, %v2765_v33  ;;  %v2783_v41 = vsub.f32 %v2781_v45, %v2782_v25  ;;  %v2942_v16 = vmul.u32 %v2940_v35, %v7838_v2  ;;  %v2796_v44 = vmul.f32 %v7592_v3, %v2784_v30 }
 0x224   : > { %v2810_v15 = vadd.f32 %v7515_v17, %v2768_v26  ;;  %v2812_v27 = vadd.f32 %v7536_v43, %v2771_v6  ;;  %v2944_v20 = vmul.u32 %v2940_v35, %v7849_v47  ;;  %v2785_v62 = vmul.f32 2.0, %v2780_v12 }
 0x225   : > { %v2814_v10 = vadd.f32 %v7543_v56, %v2774_v11  ;;  %v2786_v61 = vmul.f32 2.0, %v2783_v41  ;;  %v2790_v38 = vmul.f32 %v7561_v19, %v2784_v30  ;;  %v2797_v49 = vadd.f32 %v2796_v44, %v7943_v8 }
 0x226   : > { %5527 = vst [vmem:[%s6017_s29 + $0x34] sm:$0x1] %v2810_v15  ;;  %v2794_v2 = vmul.f32 %v7571_v46, %v2784_v30  ;;  %v2945_v17 = vmul.u32 %v2941_v40, %v7849_v47  ;;  %v2946_v63 = vshll.u32 %v2943_v0, 16  ;;  %v2788_v1 = vmul.f32 %v7561_v19, %v2785_v62 }
 0x227   : > { %5528 = vst [vmem:[%s6017_s29 + $0x35] sm:$0x1] %v2812_v27  ;;  %v2787_v43 = vmul.f32 %v7571_v46, %v2786_v61  ;;  %v2791_v35 = vmul.f32 %v7567_v48, %v2786_v61  ;;  %v2799_v56 = vmul.f32 %v7592_v3, %v2785_v62  ;;  %v2793_v33 = vmul.f32 %v7567_v48, %v2785_v62 }
 0x228   : > { %5529 = vst [vmem:[%s6017_s29 + $0x36] sm:$0x1] %v2814_v10  ;;  %v2802_v4 = vmul.f32 %v7592_v3, %v2786_v61  ;;  %v2825_v45 = vadd.f32 %v7626_v36, %v7908_v28  ;;  %v2948_v25 = vshll.u32 %v2944_v20, 16  ;;  %vm2950_vm4 = vc.u32 %v2942_v16, %v2946_v63 }
 0x229   : > { %v2789_v47 = vsub.f32 %v2787_v43, %v2788_v1  ;;  %v2792_v40 = vsub.f32 %v2790_v38, %v2791_v35  ;;  %v2800_v26 = vadd.f32 %v2799_v56, %v7945_v21  ;;  %v2795_v46 = vsub.f32 %v2793_v33, %v2794_v2 }
 0x22a   : > { %v2803_v19 = vadd.f32 %v2802_v4, %v7947_v60  ;;  %v2951_v6 = vsel %vm2950_vm4, 1, %v9918_v13  ;;  %v2952_v30 = vadd.s32 %v2946_v63, %v2942_v16  ;;  %v2936_v3 = vadd.s32 %v7949_v59, %v2925_v58 }
 0x22b   : > { %v2798_v11 = vadd.f32 %v2797_v49, %v2789_v47  ;;  %v2801_v48 = vadd.f32 %v2800_v26, %v2792_v40  ;;  %v2953_v36 = vadd.s32 %v2951_v6, %v2945_v17  ;;  %v2947_v12 = vshrl.u32 %v2943_v0, 16 }
 0x22c   : > { %v2804_v28 = vadd.f32 %v2803_v19, %v2795_v46  ;;  %vm2954_vm3 = vc.u32 %v2952_v30, %v2948_v25  ;;  %v9921_v41 = vrot.slane %v7712_v37, 7  ;;  %v8013_v29 = vrot.slane %v7712_v37, 6 }
 0x22d   : > { %v2818_v16 = vadd.f32 %v7895_v50, %v2798_v11  ;;  %v2822_v27 = vadd.f32 %v7940_v23, %v2801_v48  ;;  %v2955_v44 = vsel %vm2954_vm3, 1, %v9918_v13  ;;  %v2949_v59 = vshrl.u32 %v2944_v20, 16 }
 0x22e   : > { %v8007_v15 = vmul.f32 %v7712_v37, %v9921_v41  ;;  %9923 = vst [vmem:[#allocation13_spill] sm:$0xff] %v8013_v29  ;;  %v2826_v58 = vadd.f32 %v2825_v45, %v2804_v28  ;;  %v2957_v10 = vadd.s32 %v2955_v44, %v2953_v36  ;;  %v9924_v0 = vshrl.u32 %v7884_v31, 16 }
 0x22f   : > { %5530 = vst [vmem:[%s6017_s29 + $0x37] sm:$0x1] %v2818_v16  ;;  %v2956_v61 = vadd.s32 %v2952_v30, %v2948_v25  ;;  %v8020_v38 = vmul.f32 %v7712_v37, %v8013_v29  ;;  %v8023_v50 = vrot.slane %v7712_v37, 5  ;;  %v2906_v23 = vsel %vm2900_vm12, %v7748_v22, %v7753_v18  ;;  %v9928_v25 = vld [vmem:[#allocation15_spill] sm:$0xff] }
 0x230   : > { %9922 = vst [vmem:[#allocation17_spill] sm:$0xff] %v8007_v15  ;;  %v2937_v62 = vadd.s32 %v2936_v3, %v9924_v0  ;;  %v2958_v20 = vadd.s32 %v2957_v10, %v2947_v12  ;;  %v3469_v49 = vmul.f32 %v8007_v15, %v8007_v15  ;;  %v2960_v63 = vmul.u32 %v7718_v24, %v2906_v23 }
 0x231   : > { %9925 = vst [vmem:[#allocation14_spill] sm:$0xff] %v8020_v38  ;;  %v8033_v31 = vmul.f32 %v7712_v37, %v8023_v50  ;;  %v3470_v2 = vmul.f32 %v8020_v38, %v8020_v38  ;;  %vm2864_vm1 = vcmp.gt.f32.partialorder %v9928_v25, 1e-06 }
 0x232   : > { %9926 = vst [vmem:[#allocation23_spill] sm:$0xff] %v8023_v50  ;;  %v2959_v17 = vadd.s32 %v2958_v20, %v2949_v59  ;;  %vm2962_vm0 = vc.u32 %v2937_v62, %v2956_v61  ;;  %v8050_v26 = vsel %vm2864_vm1, %v9928_v25, 1.0  ;;  %v2961_v3 = vadd.s32 %v2956_v61, %v2937_v62 }
 0x233   : > { %5531 = vst [vmem:[%s6017_s29 + $0x38] sm:$0x1] %v2822_v27  ;;  %v3472_v43 = vrot.slane %v3470_v2, 1  ;;  %v3475_v5 = vmul.f32 %v8033_v31, %v8033_v31  ;;  %vm3027_vm10 = vweird.f32 %v8050_v26 }
 0x234   : > { %5532 = vst [vmem:[%s6017_s29 + $0x39] sm:$0x1] %v2826_v58  ;;  %v2963_v22 = vadd.s32 1, %v2959_v17 }
 0x235   : > { %9927 = vst [vmem:[#allocation24_spill] sm:$0xff] %v8033_v31  ;;  %v3474_v18 = vadd.f32 %v3472_v43, %v3469_v49  ;;  %v3477_v1 = vrot.slane %v3475_v5, 2 }
 0x236   : > { %v2964_v35 = vsel %vm2962_vm0, %v2963_v22, %v2959_v17 }
 0x237   : > { %v2965_v37 = vadd.s32 %v2964_v35, %v2960_v63  ;;  %v8042_v56 = vadd.f32 %v3477_v1, %v3474_v18  ;;  %v9929_v63 = vand.u32 2147483647, %v7398_v9 }
 0x239   : > { %v2966_v33 = vadd.s32 536870912, %v2965_v37  ;;  %5712 = vrsqrt.f32 %v8042_v56  ;;  %vm3487_vm7 = vcmp.eq.f32.partialorder %v8042_v56, inf  ;;  %v3490_v17 = vand.u32 2147483648, %v8042_v56 }
 0x23a   : > { %5714 = vrcp.f32 %v8050_v26  ;;  %vm8064_vm8 = vcmp.le.f32.partialorder %v9929_v63, 0.7853982  ;;  %vm3489_vm9 = vcmp.eq.f32.partialorder %v8042_v56, 0.0 }
 0x23b   : > { %v2967_v4 = vshrl.u32 %v2966_v33, 30 }
 0x23d   : > { %v2968_v45 = vshll.u32 %v2967_v4, 30  ;;  %v2991_v59 = vsub.s32 4, %v2967_v4 }
 0x23f   : > { %v5713_v24 = vpop.eup %5712  ;;  %v2969_v47 = vsub.s32 %v2965_v37, %v2968_v45  ;;  %v2992_v49 = vsel %vm2869_vm6, %v2991_v59, %v2967_v4  ;;  %v5567_v37 = vld [vmem:[%s6003_s27 + $0x30] sm:$0xff] }
 0x240   : > { %v3481_v40 = vmul.f32 %v5713_v24, %v8042_v56  ;;  %v8053_v28 = vpop.eup %5714  ;;  %v2994_v18 = vsel %vm8064_vm8, 0, %v2992_v49  ;;  %v8077_v45 = vrot.slane %v5567_v37, 6 }
 0x241   : > { %vm2970_vm2 = vcmp.lt.s32.totalorder %v2969_v47, 0  ;;  %v2971_v46 = vsub.s32 0, %v2969_v47  ;;  %v3023_v10 = vmul.f32 %v8053_v28, %v8050_v26  ;;  %vm3028_vm11 = vweird.f32 %v8053_v28 }
 0x242   : > { %v3482_v19 = vmul.f32 %v5713_v24, %v3481_v40  ;;  %9932 = vst [vmem:[#allocation25_spill] sm:$0xff] %v8077_v45  ;;  %vm8106_vm13 = vmor %vm3027_vm10, %vm3028_vm11 }
 0x243   : > { %v2972_v6 = vsel %vm2970_vm2, %v2971_v46, %v2969_v47  ;;  %v3024_v2 = vsub.f32 1.0, %v3023_v10  ;;  %v3011_v46 = vadd.s32 3, %v2994_v18  ;;  %vm3010_vm2 = vweird.f32 %v7398_v9 }
 0x244   : > { %v2973_v30 = vclz %v2972_v6  ;;  %v3483_v48 = vmul.f32 0.5, %v3482_v19  ;;  %v3033_v6 = vand.u32 2147483648, %v8050_v26 }
 0x245   : > { %v3025_v33 = vmul.f32 %v8053_v28, %v3024_v2 }
 0x246   : > { %v5535_v11 = vadd.s32 4294967294, %v2973_v30  ;;  %v3484_v27 = vsub.f32 1.5, %v3483_v48  ;;  %v4089_v30 = vrot.slane %v5567_v37, 7 }
 0x248   : > { %vm5536_vm5 = vcmp.lt.s32.totalorder %v5535_v11, 0  ;;  %v3485_v20 = vmul.f32 %v5713_v24, %v3484_v27  ;;  %v9933_v24 = vld [vmem:[#allocation34_spill] sm:$0xff] }
 0x249   : > { %v2976_v36 = vsel %vm5536_vm5, 0, %v5535_v11  ;;  %v3037_v59 = vmul.f32 %v9933_v24, %v9901_v7 }
 0x24a   : > { %v2977_v12 = vsub.s32 32, %v2976_v36  ;;  %v2978_v41 = vshll.u32 %v2969_v47, %v2976_v36  ;;  %v2981_v16 = vsub.s32 4294967266, %v2976_v36  ;;  %v3486_v22 = vmul.f32 %v3485_v20, %v8042_v56 }
 0x24b   : > { %v2863_v47 = vmul.f32 %v9933_v24, %v9933_v24 }
 0x24c   : > { %v2979_v44 = vshrl.u32 %v2961_v3, %v2977_v12  ;;  %v2982_v58 = vadd.s32 127, %v2981_v16  ;;  %v3488_v35 = vsel %vm3487_vm7, %v8042_v56, %v3486_v22  ;;  %v8091_v3 = vmul.f32 %v5567_v37, %v8077_v45 }
 0x24d   : > { %v8075_v4 = vsel %vm3489_vm9, %v3490_v17, %v3488_v35  ;;  %v3026_v12 = vadd.f32 %v8053_v28, %v3025_v33  ;;  %v8100_v16 = vrot.slane %v5567_v37, 5  ;;  %v8126_v22 = vand.u32 3, %v2994_v18 }
 0x24e   : > { %v2980_v0 = vor.u32 %v2979_v44, %v2978_v41  ;;  %v2983_v23 = vshll.u32 %v2982_v58, 23  ;;  %v8082_v19 = vmul.f32 0.5, %v8075_v4  ;;  %9934 = vst [vmem:[#allocation27_spill] sm:$0xff] %v8091_v3  ;;  %v3031_v41 = vand.u32 2147483647, %v8050_v26 }
 0x24f   : > { %9935 = vst [vmem:[#allocation35_spill] sm:$0xff] %v8100_v16  ;;  %v8104_v44 = vand.u32 3, %v3011_v46  ;;  %v4099_v63 = vmul.f32 %v8091_v3, %v8091_v3  ;;  %v3030_v43 = vsel %vm8106_vm13, %v8053_v28, %v3026_v12  ;;  %vm3187_vm0 = vcmp.lt.s32.totalorder %v8126_v22, 2 }
 0x250   : > { %v2984_v62 = vor.u32 4788187, %v2983_v23  ;;  %v2987_v61 = vcvt.s32.f32 %v2980_v0  ;;  %v3499_v48 = vand.u32 2139095040, %v8082_v19  ;;  %v3034_v0 = vor.u32 1.1754944e-38, %v3033_v6  ;;  %v9938_v23 = vld [vmem:[#allocation20_spill] sm:$0xff]  ;;  %v9944_v6 = vld [vmem:[#allocation21_spill] sm:$0xff] }
 0x251   : > { %v3039_v20 = vmul.f32 %v2863_v47, %v9938_v23  ;;  %vm8122_vm12 = vcmp.eq.f32.partialorder %v3031_v41, 8.507059e+37  ;;  %v4101_v18 = vrot.slane %v4099_v63, 1  ;;  %vm3014_vm15 = vcmp.eq.s32.totalorder %v8104_v44, 0 }
 0x252   : > { %v2985_v5 = vand.u32 2147483647, %v2984_v62  ;;  %v3500_v10 = vshrl.u32 %v3499_v48, 23  ;;  %v9939_v62 = vld [vmem:[#allocation19_spill] sm:$0xff]  ;;  %vm3017_vm4 = vcmp.eq.s32.totalorder %v8104_v44, 2  ;;  %vm3013_vm3 = vcmp.lt.s32.totalorder %v8104_v44, 2 }
 0x253   : > { %v3196_v26 = vmul.f32 %v9933_v24, %v9939_v62  ;;  %v3038_v24 = vsub.f32 0.5, %v3037_v59  ;;  %vm3188_vm5 = vcmp.eq.s32.totalorder %v8126_v22, 0 }
 0x254   : > { %v2988_v1 = vmul.f32 %v2987_v61, %v2985_v5  ;;  %v8115_v61 = vmul.f32 %v5567_v37, %v4089_v30  ;;  %v5551_v17 = vadd.s32 4294967169, %v3500_v10  ;;  %v3198_v30 = vmul.f32 %v2863_v47, %v9944_v6 }
 0x255   : > { %v3197_v46 = vsub.f32 1.0, %v3196_v26  ;;  %v3040_v10 = vadd.f32 %v3039_v20, %v3038_v24  ;;  %v9945_v20 = vmov 683565275  }
 0x256   : > { %v2989_v40 = vxor.u32 2147483648, %v2988_v1  ;;  %9940 = vst [vmem:[#allocation28_spill] sm:$0xff] %v8115_v61  ;;  %v4098_v28 = vmul.f32 %v8115_v61, %v8115_v61 }
 0x258   : > { %v2990_v11 = vsel %vm2869_vm6, %v2989_v40, %v2988_v1  ;;  %v8129_v1 = vmul.f32 %v5567_v37, %v8100_v16  ;;  %v3506_v40 = vadd.s32 1, %v5551_v17  ;;  %v3035_v37 = vsel %vm8122_vm12, %v3034_v0, %v3030_v43 }
 0x259   : > { %v8096_v36 = vsel %vm8064_vm8, %v7398_v9, %v2990_v11  ;;  %v9752_v11 = vand.u32 2147483647, %v8082_v19  ;;  %vm3191_vm6 = vcmp.eq.s32.totalorder %v8126_v22, 2  ;;  %v4103_v43 = vadd.f32 %v4101_v18, %v4098_v28 }
 0x25a   : > { %v2995_v27 = vmul.f32 %v8096_v36, %v8096_v36  ;;  %9943 = vst [vmem:[#allocation22_spill] sm:$0xff] %v8129_v1  ;;  %vm3507_vm14 = vcmp.gt.s32.totalorder %v3506_v40, 0  ;;  %v4104_v47 = vmul.f32 %v8129_v1, %v8129_v1  ;;  %v9947_v16 = vmov 2475754826  }
 0x25b   : > { %v3508_v41 = vsel %vm3507_vm14, %v3506_v40, 0  ;;  %v3503_v0 = vand.u32 8388607, %v9752_v11  ;;  %v9949_v28 = vmov 920167782  }
 0x25c   : > { %v2996_v49 = vmul.f32 -0.001358992, %v2995_v27  ;;  %v3003_v2 = vmul.f32 -0.00019511016, %v2995_v27  ;;  %v3510_v26 = vand.u32 31, %v3508_v41  ;;  %v8148_v5 = vshrl.u32 %v3508_v41, 5 }
 0x25d   : > { %v4106_v40 = vrot.slane %v4104_v47, 2  ;;  %v9950_v47 = vmov 1326507024  }
 0x25e   : > { %v2997_v35 = vadd.f32 0.041655596, %v2996_v49  ;;  %v3004_v33 = vadd.f32 0.008332121, %v3003_v2  ;;  %v3199_v49 = vadd.f32 %v3198_v30, %v3197_v46  ;;  %v3511_v63 = vsub.s32 32, %v3510_v26 }
 0x25f   : > { %v3516_v46 = vshll.u32 %v9947_v16, %v3510_v26  ;;  %v9948_v30 = vmov 2131351028   ;;  %v3525_v11 = vshll.u32 %v9949_v28, %v3510_v26  ;;  %v8162_v50 = vadd.f32 %v4106_v40, %v4103_v43 }
 0x260   : > { %v2998_v48 = vmul.f32 %v2997_v35, %v2995_v27  ;;  %v3005_v12 = vmul.f32 %v3004_v33, %v2995_v27  ;;  %v3513_v35 = vshll.u32 %v9945_v20, %v3510_v26  ;;  %v9946_v33 = vmov 2102212464  }
 0x261   : > { %v3522_v24 = vshll.u32 %v9946_v33, %v3510_v26  ;;  %v3514_v45 = vshrl.u32 %v9947_v16, %v3511_v63  ;;  %v3517_v1 = vshrl.u32 %v9948_v30, %v3511_v63  ;;  %v3523_v18 = vshrl.u32 %v9949_v28, %v3511_v63 }
 0x262   : > { %v2999_v58 = vadd.f32 -0.4999988, %v2998_v48  ;;  %v3006_v59 = vadd.f32 -0.16666654, %v3005_v12  ;;  %v3512_v3 = vshrl.u32 %v9945_v20, %v3511_v63  ;;  %vm3528_vm7 = vcmp.lt.s32.totalorder %v8148_v5, 1 }
 0x263   : > { %v3524_v61 = vor.u32 %v3523_v18, %v3522_v24  ;;  %v3515_v15 = vor.u32 %v3514_v45, %v3513_v35  ;;  %vm3531_vm8 = vcmp.lt.s32.totalorder %v8148_v5, 4  ;;  %vm3530_vm9 = vcmp.lt.s32.totalorder %v8148_v5, 3 }
 0x264   : > { %v3000_v2 = vmul.f32 %v2999_v58, %v2995_v27  ;;  %v3007_v17 = vmul.f32 %v3006_v59, %v2995_v27  ;;  %v3519_v58 = vshll.u32 %v9948_v30, %v3510_v26  ;;  %v3520_v27 = vshrl.u32 %v9946_v33, %v3511_v63 }
 0x265   : > { %vm3529_vm10 = vcmp.lt.s32.totalorder %v8148_v5, 2  ;;  %v3532_v9 = vsel %vm3528_vm7, %v3512_v3, %v3515_v15  ;;  %5716 = vrsqrt.f32 %v8162_v50 }
 0x266   : > { %v3001_v48 = vadd.f32 1.0, %v3000_v2  ;;  %v3008_v12 = vadd.f32 1.0, %v3007_v17  ;;  %v3526_v2 = vshrl.u32 %v9950_v47, %v3511_v63  ;;  %v3504_v17 = vor.u32 8388608, %v3503_v0 }
 0x268   : > { %v3009_v41 = vmul.f32 %v3008_v12, %v8096_v36  ;;  %v3018_v59 = vxor.u32 2147483648, %v3001_v48  ;;  %v3518_v36 = vor.u32 %v3517_v1, %v3516_v46  ;;  %v3521_v12 = vor.u32 %v3520_v27, %v3519_v58  ;;  %v9951_v27 = vld [vmem:[#allocation31_spill] sm:$0xff] }
 0x269   : > { %v3527_v63 = vor.u32 %v3526_v2, %v3525_v11  ;;  %v3537_v1 = vsel %vm3531_vm8, %v3524_v61, 920167782  ;;  %v8181_v35 = vshll.u32 %v3504_v17, 8  ;;  %v9952_v17 = vld [vmem:[#allocation32_spill] sm:$0xff] }
 0x26a   : > { %v3015_v29 = vxor.u32 2147483648, %v3009_v41  ;;  %v3019_v31 = vsel %vm3017_vm4, %v3018_v59, %v3009_v41  ;;  %v3193_v38 = vsel %vm3191_vm6, %v3018_v59, %v3009_v41  ;;  %v3533_v44 = vsel %vm3531_vm8, %v3521_v12, 2102212464 }
 0x26b   : > { %v3536_v22 = vsel %vm3528_vm7, %v3515_v15, %v3518_v36  ;;  %v3538_v11 = vsel %vm3530_vm9, %v3521_v12, %v3537_v1  ;;  %v3540_v46 = vsel %vm3528_vm7, %v3518_v36, %v3521_v12  ;;  %v8222_v2 = vand.u32 65535, %v8181_v35  ;;  %v9953_v12 = vld [vmem:[#allocation33_spill] sm:$0xff] }
 0x26c   : > { %v3016_v26 = vsel %vm3014_vm15, %v3001_v48, %v3015_v29  ;;  %v3190_v0 = vsel %vm3188_vm5, %v3001_v48, %v3015_v29  ;;  %v3541_v48 = vsel %vm3531_vm8, %v3527_v63, 1326507024  ;;  %v8212_v41 = vsel %vm3529_vm10, %v3536_v22, %v3538_v11 }
 0x26d   : > { %v3020_v43 = vsel %vm3013_vm3, %v3016_v26, %v3019_v31  ;;  %v3194_v45 = vsel %vm3187_vm0, %v3190_v0, %v3193_v38  ;;  %v3542_v58 = vsel %vm3530_vm9, %v3524_v61, %v3541_v48  ;;  %v8225_v61 = vshrl.u32 %v8181_v35, 16 }
 0x26e   : > { %v3021_v24 = vsel %vm3010_vm2, nan, %v3020_v43  ;;  %v3195_v29 = vsel %vm3010_vm2, nan, %v3194_v45  ;;  %v8231_v63 = vsel %vm3529_vm10, %v3540_v46, %v3542_v58  ;;  %vm3493_vm15 = vcmp.gt.f32.partialorder %v8075_v4, 1e-06 }
 0x26f   : > { %v3036_v31 = vmul.f32 %v3035_v37, %v3021_v24  ;;  %v3200_v38 = vsel %vm2864_vm1, %v3195_v29, %v3199_v49  ;;  %v3534_v49 = vsel %vm3530_vm9, %v3518_v36, %v3533_v44  ;;  %v8240_v29 = vpop.eup %5716  ;;  %v9762_v5 = vand.u32 65535, %v8231_v63 }
 0x270   : > { %v3214_v40 = vrot.slane %v3200_v38, 1  ;;  %v8236_v45 = vsel %vm3529_vm10, %v3532_v9, %v3534_v49  ;;  %v9957_v23 = vand.u32 65535, %v8231_v63  ;;  %vm4116_vm4 = vcmp.eq.f32.partialorder %v8162_v50, inf }
 0x271   : > { %v3041_v37 = vsel %vm2864_vm1, %v3036_v31, %v3040_v10  ;;  %v8216_v10 = vld [vmem:[%s6003_s27 + $0x20] sm:$0xff]  ;;  %vm4118_vm3 = vcmp.eq.f32.partialorder %v8162_v50, 0.0  ;;  %vm3498_vm2 = vcmp.lt.s32.totalorder %v8082_v19, 0 }
 0x272   : > { %v3201_v18 = vmul.f32 %v3041_v37, %v9951_v27  ;;  %v3203_v15 = vrot.slane %v3041_v37, 7  ;;  %v3206_v3 = vrot.slane %v3041_v37, 6  ;;  %v3216_v25 = vmul.f32 %v3214_v40, %v7772_v53 }
 0x273   : > { %v8219_v59 = vrot.slane %v8216_v10, 4  ;;  %v3242_v43 = vmul.f32 %v3214_v40, %v7787_v52  ;;  %v3231_v22 = vmul.f32 %v3214_v40, %v7795_v32  ;;  %v3240_v1 = vmul.f32 %v3214_v40, %v7797_v51  ;;  %v8278_v40 = vld [vmem:[#allocation5 + $0x3] sm:$0x1] }
 0x274   : > { %v3205_v36 = vmul.f32 %v3203_v15, %v9952_v17  ;;  %v3208_v26 = vmul.f32 %v3206_v3, %v9953_v12  ;;  %v3210_v0 = vrot.slane %v3201_v18, 1 }
 0x276   : > { %v3212_v44 = vmul.f32 %v3210_v0, %v7787_v52  ;;  %v3219_v31 = vrot.slane %v3208_v26, 3  ;;  %v3224_v38 = vrot.slane %v3205_v36, 2  ;;  %v3238_v11 = vmul.f32 %v3210_v0, %v7795_v32 }
 0x277   : > { %v3243_v48 = vmul.f32 %v3210_v0, %v7772_v53 }
 0x278   : > { %v3217_v37 = vadd.f32 %v3216_v25, %v3212_v44  ;;  %v3221_v49 = vmul.f32 %v3219_v31, %v7795_v32  ;;  %v3226_v46 = vmul.f32 %v3224_v38, %v7797_v51  ;;  %v3228_v58 = vmul.f32 %v3224_v38, %v7787_v52 }
 0x279   : > { %v3229_v27 = vmul.f32 %v3219_v31, %v7772_v53  ;;  %v3235_v18 = vmul.f32 %v3219_v31, %v7787_v52  ;;  %v3236_v15 = vmul.f32 %v3224_v38, %v7772_v53  ;;  %v3244_v3 = vsub.f32 %v3242_v43, %v3243_v48 }
 0x27a   : > { %v3222_v17 = vadd.f32 %v3221_v49, %v3217_v37  ;;  %v3245_v36 = vmul.f32 %v3224_v38, %v7795_v32  ;;  %v3247_v12 = vmul.f32 %v3219_v31, %v7797_v51  ;;  %v8258_v25 = vmul.f32 %v8240_v29, %v8162_v50  ;;  %v8282_v49 = vld [vmem:[#allocation5 + $0x2] sm:$0x1] }
 0x27b   : > { %v3230_v26 = vsub.f32 %v3228_v58, %v3229_v27  ;;  %v3233_v44 = vmul.f32 %v3210_v0, %v7797_v51  ;;  %v3237_v24 = vadd.f32 %v3236_v15, %v3235_v18  ;;  %v8269_v31 = vmul.u32 %v9762_v5, %v8222_v2  ;;  %v8294_v27 = vld [vmem:[#allocation5] sm:$0x1]  ;;  %v9955_v15 = vld [vmem:[#allocation29_spill] sm:$0xff] }
 0x27c   : > { %v8262_v9 = vsub.f32 %v3222_v17, %v3226_v46  ;;  %v3246_v52 = vsub.f32 %v3244_v3, %v3245_v36  ;;  %v9954_v0 = vshrl.u32 %v8231_v63, 16 }
 0x27d   : > { %v3232_v32 = vadd.f32 %v3231_v22, %v3230_v26  ;;  %v3239_v38 = vsub.f32 %v3237_v24, %v3238_v11  ;;  %v8286_v22 = vld [vmem:[#allocation5 + $0x1] sm:$0x1] }
 0x27e   : > { %v8274_v48 = vmul.u32 %v9954_v0, %v8222_v2  ;;  %v8276_v51 = vsub.f32 %v3246_v52, %v3247_v12  ;;  %v3346_v37 = vmul.f32 %v8278_v40, %v8262_v9  ;;  %v3358_v24 = vmul.f32 %v8282_v49, %v8262_v9 }
 0x27f   : > { %v3363_v11 = vmul.f32 %v8286_v22, %v8262_v9  ;;  %v8290_v46 = vadd.f32 %v3233_v44, %v3232_v32  ;;  %v8292_v58 = vadd.f32 %v3240_v1, %v3239_v38  ;;  %v3368_v18 = vmul.f32 %v8294_v27, %v8262_v9 }
 0x280   : > { %v3255_v3 = vmul.f32 %v8262_v9, %v9955_v15  ;;  %v3347_v17 = vmul.f32 %v8294_v27, %v8276_v51  ;;  %v3356_v36 = vmul.f32 %v8286_v22, %v8276_v51  ;;  %v3365_v12 = vmul.f32 %v8282_v49, %v8276_v51 }
 0x281   : > { %v3367_v1 = vmul.f32 %v8278_v40, %v8276_v51  ;;  %v3349_v26 = vmul.f32 %v8286_v22, %v8292_v58  ;;  %v3351_v44 = vmul.f32 %v8282_v49, %v8290_v46  ;;  %v3353_v52 = vmul.f32 %v8278_v40, %v8290_v46 }
 0x282   : > { %v3354_v32 = vmul.f32 %v8294_v27, %v8292_v58  ;;  %v3348_v38 = vadd.f32 %v3347_v17, %v3346_v37  ;;  %v3360_v0 = vmul.f32 %v8278_v40, %v8292_v58  ;;  %v3361_v43 = vmul.f32 %v8294_v27, %v8290_v46  ;;  %v9956_v17 = vld [vmem:[#allocation30_spill] sm:$0xff] }
 0x283   : > { %v3369_v53 = vsub.f32 %v3367_v1, %v3368_v18  ;;  %v3370_v6 = vmul.f32 %v8286_v22, %v8290_v46  ;;  %v3372_v62 = vmul.f32 %v8282_v49, %v8292_v58  ;;  %v3249_v47 = vmul.f32 %v8290_v46, %v9955_v15 }
 0x284   : > { %v3355_v5 = vsub.f32 %v3353_v52, %v3354_v32  ;;  %v3350_v28 = vadd.f32 %v3349_v26, %v3348_v38  ;;  %v3362_v37 = vadd.f32 %v3361_v43, %v3360_v0  ;;  %v3250_v33 = vmul.f32 %v8292_v58, %v9956_v17 }
 0x285   : > { %v3254_v30 = vmul.f32 %v8219_v59, %v8292_v58  ;;  %v3371_v1 = vsub.f32 %v3369_v53, %v3370_v6  ;;  %v3257_v52 = vmul.f32 %v8262_v9, %v9956_v17  ;;  %v3258_v32 = vmul.f32 %v8219_v59, %v8290_v46 }
 0x286   : > { %v3357_v18 = vadd.f32 %v3356_v36, %v3355_v5  ;;  %v3352_v16 = vsub.f32 %v3350_v28, %v3351_v44  ;;  %v3364_v15 = vsub.f32 %v3362_v37, %v3363_v11  ;;  %v3251_v26 = vsub.f32 %v3249_v47, %v3250_v33 }
 0x287   : > { %v3256_v43 = vsub.f32 %v3254_v30, %v3255_v3  ;;  %v3373_v0 = vsub.f32 %v3371_v1, %v3372_v62  ;;  %v3259_v20 = vsub.f32 %v3257_v52, %v3258_v32  ;;  %v8337_v5 = vmul.u32 %v9957_v23, %v8225_v61 }
 0x288   : > { %v3359_v38 = vadd.f32 %v3358_v24, %v3357_v18  ;;  %5540 = vst [vmem:[%s6017_s29 + $0x40] sm:$0x1] %v3352_v16  ;;  %v3366_v6 = vadd.f32 %v3365_v12, %v3364_v15  ;;  %v3260_v53 = vmul.f32 2.0, %v3251_v26  ;;  %v3553_v17 = vshll.u32 %v8274_v48, 16 }
 0x289   : > { %v3261_v36 = vmul.f32 2.0, %v3256_v43  ;;  %v3262_v28 = vmul.f32 2.0, %v3259_v20  ;;  %v9958_v33 = vshrl.u32 %v8231_v63, 16  ;;  %v3554_v62 = vshrl.u32 %v8274_v48, 16  ;;  %5543 = vst [vmem:[%s6017_s29 + $0x43] sm:$0x1] %v3373_v0 }
 0x28a   : > { %5541 = vst [vmem:[%s6017_s29 + $0x41] sm:$0x1] %v3359_v38  ;;  %v9959_v47 = vand.u32 65535, %v8212_v41  ;;  %v3266_v24 = vmul.f32 %v3260_v53, %v8292_v58  ;;  %v3270_v20 = vmul.f32 %v3260_v53, %v8290_v46  ;;  %v3272_v12 = vmul.f32 %v3260_v53, %v8276_v51 }
 0x28b   : > { %v3552_v30 = vmul.u32 %v9958_v33, %v8225_v61  ;;  %5542 = vst [vmem:[%s6017_s29 + $0x42] sm:$0x1] %v3366_v6  ;;  %v3264_v16 = vmul.f32 %v3261_v36, %v8292_v58  ;;  %v3269_v11 = vmul.f32 %v3261_v36, %v8262_v9  ;;  %v3263_v63 = vmul.f32 %v3262_v28, %v8290_v46 }
 0x28c   : > { %v8349_v23 = vmul.u32 %v9959_v47, %v8222_v2  ;;  %v3267_v3 = vmul.f32 %v3262_v28, %v8262_v9  ;;  %v3281_v44 = vmul.f32 %v3261_v36, %v8276_v51  ;;  %v3290_v18 = vmul.f32 %v3262_v28, %v8276_v51 }
 0x28d   : > { %v3271_v37 = vsub.f32 %v3269_v11, %v3270_v20  ;;  %v3555_v1 = vshll.u32 %v8337_v5, 16  ;;  %vm8364_vm1 = vc.u32 %v8269_v31, %v3553_v17  ;;  %v3265_v32 = vsub.f32 %v3263_v63, %v3264_v16  ;;  %v8381_v20 = vld [vmem:[#allocation5 + $0x4] sm:$0x1] }
 0x28e   : > { %v3268_v15 = vsub.f32 %v3266_v24, %v3267_v3  ;;  %v3274_v26 = vrot.slane %v3272_v12, 4  ;;  %v3283_v43 = vrot.slane %v3281_v44, 3  ;;  %v3292_v38 = vrot.slane %v3290_v18, 2 }
 0x28f   : > { %v3296_v0 = vrot.slane %v3271_v37, 2  ;;  %v3309_v6 = vmul.f32 %v8216_v10, %v7913_v55  ;;  %v8372_v53 = vadd.f32 %v8216_v10, %v7866_v57  ;;  %v3278_v28 = vrot.slane %v3265_v32, 4 }
 0x290   : > { %v3276_v36 = vadd.f32 %v8216_v10, %v3274_v26  ;;  %v3285_v33 = vadd.f32 %v8216_v10, %v3283_v43  ;;  %v3287_v47 = vrot.slane %v3268_v15, 3  ;;  %v3294_v16 = vadd.f32 %v8216_v10, %v3292_v38  ;;  %v8393_v38 = vld [vmem:[#allocation5 + $0x5] sm:$0x1] }
 0x291   : > { %v3317_v24 = vmul.f32 %v8216_v10, %v7916_v34  ;;  %v3325_v11 = vmul.f32 %v8216_v10, %v7922_v54  ;;  %v3445_v57 = vmul.f32 %v8381_v20, %v8372_v53  ;;  %v3558_v12 = vsel %vm8364_vm1, 1, %v9918_v13  ;;  %9962 = vst [vmem:[#allocation9_spill] sm:$0xff] %v8393_v38 }
 0x292   : > { %v3280_v63 = vadd.f32 %v3278_v28, %v3276_v36  ;;  %v3289_v3 = vadd.f32 %v3287_v47, %v3285_v33  ;;  %v3559_v44 = vadd.s32 %v3553_v17, %v8269_v31  ;;  %v3298_v37 = vadd.f32 %v3296_v0, %v3294_v16  ;;  %v5752_v16 = vld [vmem:[#allocation5 + $0x8] sm:$0x1] }
 0x293   : > { %v3310_v18 = vadd.f32 %v3309_v6, %v7943_v8  ;;  %v3556_v32 = vshrl.u32 %v8337_v5, 16  ;;  %v3560_v15 = vadd.s32 %v3558_v12, %v3552_v30  ;;  %v3449_v36 = vmul.f32 %v8393_v38, %v8372_v53  ;;  %v8404_v6 = vld [vmem:[#allocation5 + $0x7] sm:$0x1] }
 0x294   : > { %v3299_v26 = vsub.f32 %v3280_v63, %v9889_v42  ;;  %v3301_v43 = vsub.f32 %v3289_v3, %v9890_v14  ;;  %vm3561_vm11 = vc.u32 %v3559_v44, %v3555_v1  ;;  %v3305_v52 = vsub.f32 %v3298_v37, %v9892_v39  ;;  %9964 = vst [vmem:[#allocation10_spill] sm:$0xff] %v8404_v6 }
 0x295   : > { %v3318_v31 = vadd.f32 %v3317_v24, %v7945_v21  ;;  %v3326_v17 = vadd.f32 %v3325_v11, %v7947_v60  ;;  %v3562_v8 = vsel %vm3561_vm11, 1, %v9918_v13  ;;  %v9963_v30 = vrot.slane %v8216_v10, 3  ;;  %v8413_v60 = vld [vmem:[#allocation5 + $0x6] sm:$0x1] }
 0x296   : > { %v3300_v5 = vmul.f32 %v3299_v26, %v8219_v59  ;;  %v8407_v28 = vadd.f32 %v8404_v6, %v3445_v57  ;;  %v3564_v33 = vadd.s32 %v3562_v8, %v3560_v15  ;;  %v9965_v1 = vrot.slane %v8216_v10, 2  ;;  %9966 = vst [vmem:[#allocation11_spill] sm:$0xff] %v8413_v60 }
 0x297   : > { %v3304_v0 = vmul.f32 %v9963_v30, %v3301_v43  ;;  %v8411_v21 = vadd.f32 %v5752_v16, %v3449_v36  ;;  %v8417_v24 = vmul.f32 %v8413_v60, %v8372_v53  ;;  %v9967_v11 = vshrl.u32 %v8212_v41, 16 }
 0x298   : > { %v3308_v47 = vmul.f32 %v9965_v1, %v3305_v52  ;;  %v3334_v57 = vrot.slane %v3300_v5, 4  ;;  %v3311_v12 = vmul.f32 0.5, %v3300_v5  ;;  %v3565_v26 = vadd.s32 %v3564_v33, %v3554_v62 }
 0x299   : > { %v8422_v63 = vmul.u32 %v9967_v11, %v8222_v2  ;;  %v3338_v3 = vrot.slane %v3304_v0, 5  ;;  %v3319_v44 = vmul.f32 0.5, %v3304_v0  ;;  %v9968_v43 = vand.u32 65535, %v8212_v41 }
 0x29a   : > { %v3342_v37 = vrot.slane %v3308_v47, 6  ;;  %v3327_v15 = vmul.f32 0.5, %v3308_v47  ;;  %v8432_v52 = vadd.f32 %v3334_v57, %v7913_v55  ;;  %v3312_v8 = vmul.f32 %v3311_v12, %v8219_v59 }
 0x29b   : > { %v8429_v36 = vmul.u32 %v9968_v43, %v8225_v61  ;;  %v8435_v2 = vadd.f32 %v3338_v3, %v7916_v34  ;;  %v9969_v5 = vmov %v9963_v30  ;;  %v9970_v48 = vmov %v9965_v1 }
 0x29c   : > { %v3320_v30 = vmul.f32 %v3319_v44, %v9969_v5  ;;  %v8441_v0 = vadd.f32 %v3342_v37, %v7922_v54  ;;  %v3328_v62 = vmul.f32 %v3327_v15, %v9970_v48  ;;  %v9971_v33 = vmov %v9967_v11 }
 0x29d   : > { %v3574_v1 = vmul.u32 %v9971_v33, %v8225_v61  ;;  %v3575_v55 = vshll.u32 %v8422_v63, 16  ;;  %v3375_v34 = vmul.f32 %v8282_v49, %v8435_v2  ;;  %v3377_v59 = vmul.f32 %v8282_v49, %v8432_v52 }
 0x29e   : > { %v3380_v47 = vmul.f32 %v8294_v27, %v8435_v2  ;;  %v3381_v54 = vmul.f32 %v8286_v22, %v8432_v52  ;;  %v3374_v10 = vmul.f32 %v8286_v22, %v8441_v0  ;;  %v3378_v41 = vmul.f32 %v8294_v27, %v8441_v0 }
 0x29f   : > { %v3314_v61 = vrot.slane %v3312_v8, 4  ;;  %v3322_v16 = vrot.slane %v3320_v30, 5  ;;  %v3330_v57 = vrot.slane %v3328_v62, 6  ;;  %v8461_v3 = vadd.s32 %v3565_v26, %v3556_v32 }
 0x2a0   : > { %v3382_v11 = vsub.f32 %v3380_v47, %v3381_v54  ;;  %v3376_v44 = vsub.f32 %v3374_v10, %v3375_v34  ;;  %v3379_v37 = vsub.f32 %v3377_v59, %v3378_v41  ;;  %vm8471_vm13 = vc.u32 %v8349_v23, %v3575_v55 }
 0x2a1   : > { %v8464_v15 = vadd.f32 %v3314_v61, %v3310_v18  ;;  %v8466_v43 = vadd.f32 %v3322_v16, %v3318_v31  ;;  %v8468_v48 = vadd.f32 %v3330_v57, %v3326_v17  ;;  %v3581_v8 = vadd.s32 %v3575_v55, %v8349_v23 }
 0x2a2   : > { %v3385_v5 = vmul.f32 2.0, %v3382_v11  ;;  %v3383_v32 = vmul.f32 2.0, %v3376_v44  ;;  %v3384_v26 = vmul.f32 2.0, %v3379_v37 }
 0x2a3   : > { %9972 = vst [vmem:[#allocation12_spill] sm:$0xff] %v8468_v48  ;;  %v3405_v30 = vmul.f32 %v8282_v49, %v8466_v43  ;;  %v3407_v18 = vmul.f32 %v8282_v49, %v8464_v15  ;;  %v3404_v34 = vmul.f32 %v8286_v22, %v8468_v48  ;;  %v3410_v12 = vmul.f32 %v8294_v27, %v8466_v43 }
 0x2a4   : > { %v3386_v31 = vmul.f32 %v8286_v22, %v3385_v5  ;;  %v3390_v17 = vmul.f32 %v8294_v27, %v3385_v5  ;;  %v3401_v62 = vmul.f32 %v8278_v40, %v3385_v5  ;;  %v3387_v59 = vmul.f32 %v8282_v49, %v3384_v26 }
 0x2a5   : > { %v3395_v23 = vmul.f32 %v8278_v40, %v3383_v32  ;;  %v3389_v55 = vmul.f32 %v8282_v49, %v3383_v32  ;;  %v3398_v47 = vmul.f32 %v8278_v40, %v3384_v26  ;;  %v3392_v54 = vmul.f32 %v8294_v27, %v3384_v26 }
 0x2a6   : > { %v3393_v10 = vmul.f32 %v8286_v22, %v3383_v32  ;;  %v3402_v41 = vadd.f32 %v3401_v62, %v8441_v0  ;;  %v3406_v61 = vsub.f32 %v3404_v34, %v3405_v30  ;;  %v3388_v16 = vsub.f32 %v3386_v31, %v3387_v59 }
 0x2a7   : > { %v3396_v11 = vadd.f32 %v3395_v23, %v8432_v52  ;;  %v3391_v57 = vsub.f32 %v3389_v55, %v3390_v17  ;;  %v3399_v44 = vadd.f32 %v3398_v47, %v8435_v2  ;;  %v3408_v5 = vmul.f32 %v8294_v27, %v8468_v48 }
 0x2a8   : > { %v3394_v37 = vsub.f32 %v3392_v54, %v3393_v10  ;;  %v3411_v26 = vmul.f32 %v8286_v22, %v8464_v15  ;;  %v3413_v30 = vmul.f32 2.0, %v3406_v61  ;;  %v3580_v31 = vsel %vm8471_vm13, 1, %v9918_v13 }
 0x2a9   : > { %v3397_v32 = vadd.f32 %v3396_v11, %v3388_v16  ;;  %v3400_v62 = vadd.f32 %v3399_v44, %v3391_v57  ;;  %v3409_v34 = vsub.f32 %v3407_v18, %v3408_v5  ;;  %v3576_v23 = vshrl.u32 %v8422_v63, 16 }
 0x2aa   : > { %v3403_v17 = vadd.f32 %v3402_v41, %v3394_v37  ;;  %v3412_v59 = vsub.f32 %v3410_v12, %v3411_v26  ;;  %v3425_v54 = vmul.f32 %v8278_v40, %v3413_v30  ;;  %v3582_v10 = vadd.s32 %v3580_v31, %v3574_v1 }
 0x2ab   : > { %v3439_v55 = vadd.f32 %v8381_v20, %v3397_v32  ;;  %v3441_v47 = vadd.f32 %v8393_v38, %v3400_v62  ;;  %v3414_v16 = vmul.f32 2.0, %v3409_v34  ;;  %v3419_v33 = vmul.f32 %v8282_v49, %v3413_v30 }
 0x2ac   : > { %v3443_v61 = vadd.f32 %v8413_v60, %v3403_v17  ;;  %v3415_v11 = vmul.f32 2.0, %v3412_v59  ;;  %v3426_v18 = vadd.f32 %v3425_v54, %v8464_v15  ;;  %v3423_v12 = vmul.f32 %v8286_v22, %v3413_v30  ;;  %v8530_v54 = vld [vmem:[#allocation5 + $0x9] sm:$0x1] }
 0x2ad   : > { %5544 = vst [vmem:[%s6017_s29 + $0x44] sm:$0x1] %v3439_v55  ;;  %v3578_v63 = vshrl.u32 %v8429_v36, 16  ;;  %v9975_v41 = vshll.u32 %v8429_v36, 16  ;;  %v3417_v1 = vmul.f32 %v8282_v49, %v3414_v16  ;;  %v3428_v37 = vmul.f32 %v8278_v40, %v3414_v16 }
 0x2ae   : > { %5545 = vst [vmem:[%s6017_s29 + $0x45] sm:$0x1] %v3441_v47  ;;  %v3416_v57 = vmul.f32 %v8286_v22, %v3415_v11  ;;  %v3420_v44 = vmul.f32 %v8294_v27, %v3415_v11  ;;  %v3422_v5 = vmul.f32 %v8294_v27, %v3414_v16  ;;  %v3431_v26 = vmul.f32 %v8278_v40, %v3415_v11 }
 0x2af   : > { %vm3583_vm12 = vc.u32 %v3581_v8, %v9975_v41  ;;  %5546 = vst [vmem:[%s6017_s29 + $0x46] sm:$0x1] %v3443_v61  ;;  %v9976_v62 = vmov %v9975_v41  ;;  %v3429_v34 = vadd.f32 %v3428_v37, %v8466_v43  ;;  %v3454_v61 = vadd.f32 %v8530_v54, %v8417_v24  ;;  %v5584_v41 = vld [vmem:[%s6003_s27 + $0x38] sm:$0xff] }
 0x2b0   : > { %v3584_v32 = vsel %vm3583_vm12, 1, %v9918_v13  ;;  %v8526_v30 = vadd.s32 %v3581_v8, %v9976_v62  ;;  %v3418_v31 = vsub.f32 %v3416_v57, %v3417_v1  ;;  %v3421_v17 = vsub.f32 %v3419_v33, %v3420_v44  ;;  %9977 = vst [vmem:[#allocation16_spill] sm:$0xff] %v8530_v54 }
 0x2b1   : > { %v3586_v59 = vadd.s32 %v3584_v32, %v3582_v10  ;;  %v3424_v55 = vsub.f32 %v3422_v5, %v3423_v12  ;;  %v3432_v47 = vadd.f32 %v3431_v26, %v8468_v48  ;;  %v4111_v16 = vmul.f32 %v8240_v29, %v8258_v25  ;;  %v9997_v48 = vld [vmem:[#allocation19_spill] sm:$0xff] }
 0x2b2   : > { %v3427_v11 = vadd.f32 %v3426_v18, %v3418_v31  ;;  %v3430_v36 = vadd.f32 %v3429_v34, %v3421_v17  ;;  %v3589_v10 = vmul.u32 %v8181_v35, %v8236_v45  ;;  %vm3591_vm14 = vc.u32 %v8461_v3, %v8526_v30 }
 0x2b3   : > { %v3587_v8 = vadd.s32 %v3586_v59, %v3576_v23  ;;  %v3433_v33 = vadd.f32 %v3432_v47, %v3424_v55  ;;  %v4112_v12 = vmul.f32 0.5, %v4111_v16  ;;  %v8543_v18 = vrot.slane %v5584_v41, 6 }
 0x2b4   : > { %v3447_v24 = vadd.f32 %v8407_v28, %v3427_v11  ;;  %v3451_v57 = vadd.f32 %v8411_v21, %v3430_v36  ;;  %v4718_v44 = vrot.slane %v5584_v41, 7  ;;  %v8545_v37 = vrot.slane %v5584_v41, 5 }
 0x2b5   : > { %v3588_v25 = vadd.s32 %v3587_v8, %v3578_v63  ;;  %9978 = vst [vmem:[#allocation15_spill] sm:$0xff] %v8543_v18  ;;  %v3455_v1 = vadd.f32 %v3454_v61, %v3433_v33  ;;  %v4113_v23 = vsub.f32 1.5, %v4112_v12  ;;  %v8549_v35 = vmul.f32 %v5584_v41, %v8543_v18 }
 0x2b6   : > { %9979 = vst [vmem:[#allocation34_spill] sm:$0xff] %v8545_v37  ;;  %v4119_v21 = vand.u32 2147483648, %v8162_v50  ;;  %v8562_v63 = vmul.f32 %v5584_v41, %v8545_v37  ;;  %v8565_v62 = vmul.f32 %v5584_v41, %v4718_v44  ;;  %v8573_v34 = vsel %vm3493_vm15, %v8075_v4, 1.0 }
 0x2b7   : > { %5547 = vst [vmem:[%s6017_s29 + $0x47] sm:$0x1] %v3447_v24  ;;  %v3592_v5 = vadd.s32 1, %v3588_v25  ;;  %v4114_v45 = vmul.f32 %v8240_v29, %v4113_v23  ;;  %v4728_v29 = vmul.f32 %v8549_v35, %v8549_v35  ;;  %5718 = vrcp.f32 %v8573_v34 }
 0x2b8   : > { %9980 = vst [vmem:[#allocation31_spill] sm:$0xff] %v8549_v35  ;;  %v4733_v55 = vmul.f32 %v8562_v63, %v8562_v63  ;;  %v4727_v16 = vmul.f32 %v8565_v62, %v8565_v62  ;;  %vm3656_vm8 = vweird.f32 %v8573_v34  ;;  %v9991_v35 = vmov 683565275  }
 0x2b9   : > { %5548 = vst [vmem:[%s6017_s29 + $0x48] sm:$0x1] %v3451_v57  ;;  %v3593_v28 = vsel %vm3591_vm14, %v3592_v5, %v3588_v25  ;;  %v4115_v32 = vmul.f32 %v4114_v45, %v8162_v50  ;;  %v4730_v11 = vrot.slane %v4728_v29, 1  ;;  %v9985_v29 = vand.u32 2147483647, %v8082_v19 }
 0x2ba   : > { %5549 = vst [vmem:[%s6017_s29 + $0x49] sm:$0x1] %v3455_v1  ;;  %v3594_v26 = vadd.s32 %v3593_v28, %v3589_v10  ;;  %v4735_v41 = vrot.slane %v4733_v55, 2  ;;  %v9993_v54 = vmov 2131351028   ;;  %v3825_v39 = vmul.f32 %v8042_v56, %v9997_v48 }
 0x2bb   : > { %9981 = vst [vmem:[#allocation32_spill] sm:$0xff] %v8562_v63  ;;  %v4117_v17 = vsel %vm4116_vm4, %v8162_v50, %v4115_v32  ;;  %v4732_v24 = vadd.f32 %v4730_v11, %v4727_v16  ;;  %vm8600_vm6 = vcmp.le.f32.partialorder %v9985_v29, 0.7853982 }
 0x2bc   : > { %9982 = vst [vmem:[#allocation33_spill] sm:$0xff] %v8565_v62  ;;  %v3595_v31 = vadd.s32 536870912, %v3594_v26  ;;  %v8575_v59 = vsel %vm4118_vm3, %v4119_v21, %v4117_v17 }
 0x2bd   : > { %v8580_v61 = vmul.f32 0.5, %v8575_v59  ;;  %v8589_v45 = vadd.f32 %v4735_v41, %v4732_v24  ;;  %v8591_v28 = vpop.eup %5718 }
 0x2be   : > { %v3596_v47 = vshrl.u32 %v3595_v31, 30  ;;  %v3652_v32 = vmul.f32 %v8591_v28, %v8573_v34  ;;  %vm3657_vm9 = vweird.f32 %v8591_v28 }
 0x2bf   : > { %9983 = vst [vmem:[#allocation29_spill] sm:$0xff] %v8580_v61  ;;  %v4128_v8 = vand.u32 2139095040, %v8580_v61  ;;  %v9768_v10 = vand.u32 2147483647, %v8580_v61  ;;  %5720 = vrsqrt.f32 %v8589_v45  ;;  %vm8620_vm10 = vmor %vm3656_vm8, %vm3657_vm9 }
 0x2c0   : > { %v3597_v36 = vshll.u32 %v3596_v47, 30  ;;  %v3620_v25 = vsub.s32 4, %v3596_v47  ;;  %9984 = vst [vmem:[#allocation30_spill] sm:$0xff] %v8589_v45  ;;  %v3653_v55 = vsub.f32 1.0, %v3652_v32 }
 0x2c1   : > { %v4129_v12 = vshrl.u32 %v4128_v8, 23  ;;  %v4132_v44 = vand.u32 8388607, %v9768_v10  ;;  %v9990_v10 = vld [vmem:[#allocation20_spill] sm:$0xff] }
 0x2c2   : > { %v3598_v33 = vsub.s32 %v3594_v26, %v3597_v36  ;;  %v3621_v26 = vsel %vm3498_vm2, %v3620_v25, %v3596_v47  ;;  %v3590_v36 = vadd.s32 %v8526_v30, %v8461_v3  ;;  %v3654_v41 = vmul.f32 %v8591_v28, %v3653_v55 }
 0x2c3   : > { %v5568_v1 = vadd.s32 4294967169, %v4129_v12  ;;  %v4133_v16 = vor.u32 8388608, %v4132_v44  ;;  %v3623_v47 = vsel %vm8600_vm6, 0, %v3621_v26  ;;  %v3492_v30 = vmul.f32 %v8042_v56, %v8042_v56 }
 0x2c4   : > { %vm3599_vm0 = vcmp.lt.s32.totalorder %v3598_v33, 0  ;;  %v3600_v57 = vsub.s32 0, %v3598_v33  ;;  %v3666_v55 = vmul.f32 %v8042_v56, %v9901_v7  ;;  %v8643_v63 = vand.u32 3, %v3623_v47 }
 0x2c5   : > { %v4135_v5 = vadd.s32 1, %v5568_v1  ;;  %v3640_v1 = vadd.s32 3, %v3623_v47  ;;  %v8614_v3 = vpop.eup %5720  ;;  %v3668_v37 = vmul.f32 %v3492_v30, %v9990_v10  ;;  %v9995_v10 = vmov 920167782  }
 0x2c6   : > { %v3601_v23 = vsel %vm3599_vm0, %v3600_v57, %v3598_v33  ;;  %v3667_v62 = vsub.f32 0.5, %v3666_v55  ;;  %v9996_v55 = vmov 1326507024   ;;  %vm3820_vm3 = vcmp.eq.s32.totalorder %v8643_v63, 2 }
 0x2c7   : > { %v3602_v21 = vclz %v3601_v23  ;;  %vm4136_vm5 = vcmp.gt.s32.totalorder %v4135_v5, 0  ;;  %v8610_v23 = vshll.u32 %v4133_v16, 8 }
 0x2c8   : > { %v4137_v11 = vsel %vm4136_vm5, %v4135_v5, 0 }
 0x2c9   : > { %v5552_v17 = vadd.s32 4294967294, %v3602_v21  ;;  %v4139_v25 = vand.u32 31, %v4137_v11  ;;  %v3655_v21 = vadd.f32 %v8591_v28, %v3654_v41  ;;  %v8626_v16 = vshrl.u32 %v4137_v11, 5 }
 0x2ca   : > { %v3660_v11 = vand.u32 2147483647, %v8573_v34 }
 0x2cb   : > { %vm5553_vm7 = vcmp.lt.s32.totalorder %v5552_v17, 0  ;;  %v4148_v29 = vshll.u32 %v9993_v54, %v4139_v25  ;;  %v4154_v38 = vshll.u32 %v9995_v10, %v4139_v25  ;;  %vm4157_vm1 = vcmp.lt.s32.totalorder %v8626_v16, 1 }
 0x2cc   : > { %v3605_v8 = vsel %vm5553_vm7, 0, %v5552_v17  ;;  %v4140_v17 = vsub.s32 32, %v4139_v25  ;;  %vm4159_vm11 = vcmp.lt.s32.totalorder %v8626_v16, 3  ;;  %vm4160_vm13 = vcmp.lt.s32.totalorder %v8626_v16, 4 }
 0x2cd   : > { %v3606_v12 = vsub.s32 32, %v3605_v8  ;;  %v3607_v24 = vshll.u32 %v3598_v33, %v3605_v8  ;;  %v3610_v57 = vsub.s32 4294967266, %v3605_v8  ;;  %v3662_v33 = vand.u32 2147483648, %v8573_v34 }
 0x2ce   : > { %v8632_v8 = vshrl.u32 %v8610_v23, 16  ;;  %v4146_v61 = vshrl.u32 %v9993_v54, %v4140_v17  ;;  %v9994_v34 = vmov 2102212464   ;;  %v4152_v60 = vshrl.u32 %v9995_v10, %v4140_v17 }
 0x2cf   : > { %v3608_v44 = vshrl.u32 %v3590_v36, %v3606_v12  ;;  %v3611_v5 = vadd.s32 127, %v3610_v57  ;;  %v8629_v36 = vand.u32 65535, %v8610_v23  ;;  %v4739_v57 = vmul.f32 %v8614_v3, %v8589_v45 }
 0x2d0   : > { %v4155_v6 = vshrl.u32 %v9996_v55, %v4140_v17  ;;  %vm3661_vm12 = vcmp.eq.f32.partialorder %v3660_v11, 8.507059e+37  ;;  %vm4158_vm14 = vcmp.lt.s32.totalorder %v8626_v16, 2  ;;  %vm3639_vm7 = vweird.f32 %v8082_v19 }
 0x2d1   : > { %v3609_v26 = vor.u32 %v3608_v44, %v3607_v24  ;;  %v3612_v32 = vshll.u32 %v3611_v5, 23  ;;  %v8634_v24 = vand.u32 3, %v3640_v1  ;;  %v3659_v44 = vsel %vm8620_vm10, %v8591_v28, %v3655_v21 }
 0x2d2   : > { %v3663_v5 = vor.u32 1.1754944e-38, %v3662_v33  ;;  %v4149_v33 = vshrl.u32 %v9994_v34, %v4140_v17 }
 0x2d3   : > { %v3613_v41 = vor.u32 4788187, %v3612_v32  ;;  %v3616_v12 = vcvt.s32.f32 %v3609_v26  ;;  %v4142_v32 = vshll.u32 %v9991_v35, %v4139_v25  ;;  %v9992_v26 = vmov 2475754826  }
 0x2d4   : > { %v4143_v1 = vshrl.u32 %v9992_v26, %v4140_v17  ;;  %v4145_v7 = vshll.u32 %v9992_v26, %v4139_v25  ;;  %v4150_v54 = vor.u32 %v4149_v33, %v4148_v29  ;;  %vm3646_vm4 = vcmp.eq.s32.totalorder %v8634_v24, 2 }
 0x2d5   : > { %v3614_v18 = vand.u32 2147483647, %v3613_v41  ;;  %v4151_v41 = vshll.u32 %v9994_v34, %v4139_v25  ;;  %vm3643_vm0 = vcmp.eq.s32.totalorder %v8634_v24, 0  ;;  %vm3642_vm5 = vcmp.lt.s32.totalorder %v8634_v24, 2 }
 0x2d6   : > { %v8650_v21 = vor.u32 %v4143_v1, %v4142_v32  ;;  %v8654_v47 = vor.u32 %v4146_v61, %v4145_v7  ;;  %v3826_v32 = vsub.f32 1.0, %v3825_v39  ;;  %v8688_v1 = vsel %vm3661_vm12, %v3663_v5, %v3659_v44 }
 0x2d7   : > { %v3617_v28 = vmul.f32 %v3616_v12, %v3614_v18  ;;  %v4153_v18 = vor.u32 %v4152_v60, %v4151_v41  ;;  %v4156_v12 = vor.u32 %v4155_v6, %v4154_v38  ;;  %v9998_v38 = vld [vmem:[#allocation21_spill] sm:$0xff] }
 0x2d8   : > { %v4165_v56 = vsel %vm4157_vm1, %v8650_v21, %v8654_v47  ;;  %v3827_v6 = vmul.f32 %v3492_v30, %v9998_v38  ;;  %v4169_v25 = vsel %vm4157_vm1, %v8654_v47, %v4150_v54  ;;  %v8690_v30 = vadd.f32 %v3668_v37, %v3667_v62 }
 0x2d9   : > { %v3618_v26 = vxor.u32 2147483648, %v3617_v28  ;;  %v4166_v61 = vsel %vm4160_vm13, %v4153_v18, 920167782  ;;  %v4170_v31 = vsel %vm4160_vm13, %v4156_v12, 1326507024 }
 0x2da   : > { %v8699_v62 = vadd.f32 %v3827_v6, %v3826_v32 }
 0x2db   : > { %v3619_v7 = vsel %vm3498_vm2, %v3618_v26, %v3617_v28  ;;  %v4167_v26 = vsel %vm4159_vm11, %v4150_v54, %v4166_v61  ;;  %v4171_v28 = vsel %vm4159_vm11, %v4153_v18, %v4170_v31  ;;  %v4141_v61 = vshrl.u32 %v9991_v35, %v4140_v17 }
 0x2dc   : > { %v8674_v60 = vsel %vm8600_vm6, %v8082_v19, %v3619_v7  ;;  %v4168_v29 = vsel %vm4158_vm14, %v4165_v56, %v4167_v26  ;;  %v4172_v39 = vsel %vm4158_vm14, %v4169_v25, %v4171_v28  ;;  %v4162_v56 = vsel %vm4160_vm13, %v4150_v54, 2102212464 }
 0x2dd   : > { %v3624_v11 = vmul.f32 %v8674_v60, %v8674_v60  ;;  %v4198_v7 = vand.u32 65535, %v4168_v29  ;;  %v4176_v55 = vand.u32 65535, %v4172_v39  ;;  %v4177_v12 = vshrl.u32 %v4172_v39, 16 }
 0x2de   : > { %v4199_v44 = vshrl.u32 %v4168_v29, 16  ;;  %v4740_v26 = vmul.f32 %v8614_v3, %v4739_v57  ;;  %vm3817_vm2 = vcmp.eq.s32.totalorder %v8643_v63, 0  ;;  %vm3816_vm6 = vcmp.lt.s32.totalorder %v8643_v63, 2 }
 0x2df   : > { %v3625_v33 = vmul.f32 -0.001358992, %v3624_v11  ;;  %v3632_v41 = vmul.f32 -0.00019511016, %v3624_v11  ;;  %v4178_v18 = vmul.u32 %v4176_v55, %v8629_v36  ;;  %v4179_v25 = vmul.u32 %v4177_v12, %v8629_v36 }
 0x2e0   : > { %v8708_v17 = vmul.u32 %v4176_v55, %v8632_v8  ;;  %v4200_v6 = vmul.u32 %v4198_v7, %v8629_v36  ;;  %v4201_v32 = vmul.u32 %v4199_v44, %v8629_v36  ;;  %v4181_v54 = vmul.u32 %v4177_v12, %v8632_v8 }
 0x2e1   : > { %v3626_v5 = vadd.f32 0.041655596, %v3625_v33  ;;  %v3633_v37 = vadd.f32 0.008332121, %v3632_v41  ;;  %v4182_v28 = vshll.u32 %v4179_v25, 16  ;;  %v4202_v55 = vmul.u32 %v4198_v7, %v8632_v8 }
 0x2e2   : > { %v4184_v33 = vshll.u32 %v8708_v17, 16  ;;  %v4161_v36 = vsel %vm4157_vm1, %v4141_v61, %v8650_v21  ;;  %v4204_v57 = vshll.u32 %v4201_v32, 16  ;;  %v4163_v61 = vsel %vm4159_vm11, %v8654_v47, %v4162_v56 }
 0x2e3   : > { %v3627_v31 = vmul.f32 %v3626_v5, %v3624_v11  ;;  %v3634_v29 = vmul.f32 %v3633_v37, %v3624_v11  ;;  %vm4186_vm8 = vc.u32 %v4178_v18, %v4182_v28  ;;  %v4188_v12 = vadd.s32 %v4182_v28, %v4178_v18 }
 0x2e4   : > { %v4203_v5 = vmul.u32 %v4199_v44, %v8632_v8  ;;  %v4741_v37 = vmul.f32 0.5, %v4740_v26  ;;  %vm4208_vm9 = vc.u32 %v4200_v6, %v4204_v57  ;;  %v4206_v34 = vshll.u32 %v4202_v55, 16 }
 0x2e5   : > { %v3628_v41 = vadd.f32 -0.4999988, %v3627_v31  ;;  %v3635_v39 = vadd.f32 -0.16666654, %v3634_v29  ;;  %v4187_v31 = vsel %vm4186_vm8, 1, %v9918_v13  ;;  %vm4190_vm10 = vc.u32 %v4188_v12, %v4184_v33 }
 0x2e6   : > { %v4189_v29 = vadd.s32 %v4187_v31, %v4181_v54  ;;  %v4209_v35 = vsel %vm4208_vm9, 1, %v9918_v13  ;;  %v4183_v18 = vshrl.u32 %v4179_v25, 16  ;;  %v4185_v8 = vshrl.u32 %v8708_v17, 16 }
 0x2e7   : > { %v3629_v10 = vmul.f32 %v3628_v41, %v3624_v11  ;;  %v3636_v7 = vmul.f32 %v3635_v39, %v3624_v11  ;;  %v4191_v44 = vsel %vm4190_vm10, 1, %v9918_v13  ;;  %v4210_v11 = vadd.s32 %v4204_v57, %v4200_v6 }
 0x2e8   : > { %v4742_v26 = vsub.f32 1.5, %v4741_v37  ;;  %v4193_v33 = vadd.s32 %v4191_v44, %v4189_v29  ;;  %v4211_v41 = vadd.s32 %v4209_v35, %v4203_v5  ;;  %v4205_v39 = vshrl.u32 %v4201_v32, 16 }
 0x2e9   : > { %v3630_v38 = vadd.f32 1.0, %v3629_v10  ;;  %v3637_v21 = vadd.f32 1.0, %v3636_v7  ;;  %v4207_v12 = vshrl.u32 %v4202_v55, 16  ;;  %vm4212_vm1 = vc.u32 %v4210_v11, %v4206_v34 }
 0x2ea   : > { %v4743_v10 = vmul.f32 %v8614_v3, %v4742_v26  ;;  %vm4745_vm11 = vcmp.eq.f32.partialorder %v8589_v45, inf  ;;  %v4194_v25 = vadd.s32 %v4193_v33, %v4183_v18  ;;  %v8740_v17 = vadd.s32 %v4210_v11, %v4206_v34  ;;  %v10003_v33 = vld [vmem:[#allocation24_spill] sm:$0xff] }
 0x2eb   : > { %v3638_v28 = vmul.f32 %v3637_v21, %v8674_v60  ;;  %v3647_v54 = vxor.u32 2147483648, %v3630_v38  ;;  %v4213_v60 = vsel %vm4212_vm1, 1, %v9918_v13  ;;  %v4748_v55 = vand.u32 2147483648, %v8589_v45 }
 0x2ec   : > { %v4744_v35 = vmul.f32 %v4743_v10, %v8589_v45  ;;  %v4215_v32 = vadd.s32 %v4213_v60, %v4211_v41  ;;  %vm4747_vm13 = vcmp.eq.f32.partialorder %v8589_v45, 0.0  ;;  %v4164_v18 = vsel %vm4158_vm14, %v4161_v36, %v4163_v61  ;;  %v10002_v36 = vld [vmem:[#allocation14_spill] sm:$0xff] }
 0x2ed   : > { %v3644_v7 = vxor.u32 2147483648, %v3638_v28  ;;  %v3648_v47 = vsel %vm3646_vm4, %v3647_v54, %v3638_v28  ;;  %v3822_v56 = vsel %vm3820_vm3, %v3647_v54, %v3638_v28 }
 0x2ee   : > { %v4746_v34 = vsel %vm4745_vm11, %v8589_v45, %v4744_v35  ;;  %v4216_v29 = vadd.s32 %v4215_v32, %v4205_v39 }
 0x2ef   : > { %v3645_v6 = vsel %vm3643_vm0, %v3630_v38, %v3644_v7  ;;  %v3819_v3 = vsel %vm3817_vm2, %v3630_v38, %v3644_v7  ;;  %v4195_v38 = vadd.s32 %v4194_v25, %v4185_v8  ;;  %v8764_v11 = vsel %vm4747_vm13, %v4748_v55, %v4746_v34  ;;  %v10000_v8 = vld [vmem:[#allocation17_spill] sm:$0xff] }
 0x2f0   : > { %v3649_v57 = vsel %vm3642_vm5, %v3645_v6, %v3648_v47  ;;  %v3823_v5 = vsel %vm3816_vm6, %v3819_v3, %v3822_v56  ;;  %v4217_v44 = vadd.s32 %v4216_v29, %v4207_v12  ;;  %9999 = vst [vmem:[#allocation36_spill] sm:$0xff] %v8764_v11  ;;  %v8773_v16 = vmul.f32 0.5, %v8764_v11  ;;  %v8780_v12 = vld [vmem:[%s6003_s27 + $0x28] sm:$0xff] }
 0x2f1   : > { %v3650_v37 = vsel %vm3639_vm7, nan, %v3649_v57  ;;  %v3824_v31 = vsel %vm3639_vm7, nan, %v3823_v5  ;;  %vm4220_vm12 = vc.u32 %v4195_v38, %v8740_v17  ;;  %v8783_v10 = vrot.slane %v8780_v12, 4 }
 0x2f2   : > { %v3665_v21 = vmul.f32 %v8688_v1, %v3650_v37  ;;  %v3829_v24 = vsel %vm3493_vm15, %v3824_v31, %v8699_v62  ;;  %v4218_v62 = vmul.u32 %v8610_v23, %v4164_v18  ;;  %v4221_v54 = vadd.s32 1, %v4217_v44  ;;  %10001 = vst [vmem:[#allocation17_spill] sm:$0xff] %v8773_v16 }
 0x2f3   : > { %v3843_v63 = vrot.slane %v3829_v24, 1  ;;  %v4757_v3 = vand.u32 2139095040, %v8773_v16 }
 0x2f4   : > { %v3670_v19 = vsel %vm3493_vm15, %v3665_v21, %v8690_v30  ;;  %vm4122_vm15 = vcmp.gt.f32.partialorder %v8575_v59, 1e-06  ;;  %v4222_v23 = vsel %vm4220_vm12, %v4221_v54, %v4217_v44 }
 0x2f5   : > { %v3830_v26 = vmul.f32 %v3670_v19, %v10000_v8  ;;  %v3832_v28 = vrot.slane %v3670_v19, 7  ;;  %v3835_v1 = vrot.slane %v3670_v19, 6  ;;  %v3845_v4 = vmul.f32 %v3843_v63, %v8262_v9 }
 0x2f6   : > { %v3871_v30 = vmul.f32 %v3843_v63, %v8276_v51  ;;  %v3860_v25 = vmul.f32 %v3843_v63, %v8290_v46  ;;  %v8790_v6 = vadd.s32 %v4222_v23, %v4218_v62  ;;  %v3869_v24 = vmul.f32 %v3843_v63, %v8292_v58 }
 0x2f7   : > { %v3834_v61 = vmul.f32 %v3832_v28, %v10002_v36  ;;  %v3837_v41 = vmul.f32 %v3835_v1, %v10003_v33  ;;  %v3839_v39 = vrot.slane %v3830_v26, 1  ;;  %v4758_v36 = vshrl.u32 %v4757_v3, 23 }
 0x2f8   : > { %v4224_v28 = vadd.s32 536870912, %v8790_v6 }
 0x2f9   : > { %v3841_v7 = vmul.f32 %v3839_v39, %v8276_v51  ;;  %v3848_v47 = vrot.slane %v3837_v41, 3  ;;  %v3853_v56 = vrot.slane %v3834_v61, 2  ;;  %v3867_v60 = vmul.f32 %v3839_v39, %v8290_v46 }
 0x2fa   : > { %v3872_v35 = vmul.f32 %v3839_v39, %v8262_v9  ;;  %v3862_v8 = vmul.f32 %v3839_v39, %v8292_v58  ;;  %v8814_v54 = vshrl.u32 %v4224_v28, 30 }
 0x2fb   : > { %v3846_v32 = vadd.f32 %v3845_v4, %v3841_v7  ;;  %v3850_v55 = vmul.f32 %v3848_v47, %v8290_v46  ;;  %v3855_v57 = vmul.f32 %v3853_v56, %v8292_v58  ;;  %v3857_v5 = vmul.f32 %v3853_v56, %v8276_v51  ;;  %v10004_v4 = vld [vmem:[#allocation13_spill] sm:$0xff] }
 0x2fc   : > { %v3858_v34 = vmul.f32 %v3848_v47, %v8262_v9  ;;  %v3864_v37 = vmul.f32 %v3848_v47, %v8276_v51  ;;  %v3865_v31 = vmul.f32 %v3853_v56, %v8262_v9  ;;  %v3873_v29 = vsub.f32 %v3871_v30, %v3872_v35 }
 0x2fd   : > { %v3851_v21 = vadd.f32 %v3850_v55, %v3846_v32  ;;  %v3874_v18 = vmul.f32 %v3853_v56, %v8290_v46  ;;  %v3876_v44 = vmul.f32 %v3848_v47, %v8292_v58  ;;  %v8809_v9 = vsel %vm4122_vm15, %v8575_v59, 1.0 }
 0x2fe   : > { %v3859_v19 = vsub.f32 %v3857_v5, %v3858_v34  ;;  %v3866_v26 = vadd.f32 %v3865_v31, %v3864_v37  ;;  %v8812_v51 = vadd.s32 %v8740_v17, %v4195_v38  ;;  %5722 = vrcp.f32 %v8809_v9 }
 0x2ff   : > { %v8804_v1 = vsub.f32 %v3851_v21, %v3855_v57  ;;  %v3875_v62 = vsub.f32 %v3873_v29, %v3874_v18  ;;  %v10005_v18 = vld [vmem:[#allocation23_spill] sm:$0xff]  ;;  %vm4285_vm2 = vweird.f32 %v8809_v9 }
 0x300   : > { %v3861_v46 = vadd.f32 %v3860_v25, %v3859_v19  ;;  %v3868_v63 = vsub.f32 %v3866_v26, %v3867_v60 }
 0x301   : > { %v8816_v58 = vsub.f32 %v3875_v62, %v3876_v44  ;;  %v3975_v61 = vmul.f32 %v8278_v40, %v8804_v1  ;;  %v3987_v33 = vmul.f32 %v8282_v49, %v8804_v1  ;;  %v3992_v41 = vmul.f32 %v8286_v22, %v8804_v1 }
 0x302   : > { %v8824_v39 = vadd.f32 %v3862_v8, %v3861_v46  ;;  %v8826_v17 = vadd.f32 %v3869_v24, %v3868_v63  ;;  %v3997_v38 = vmul.f32 %v8294_v27, %v8804_v1  ;;  %v3884_v30 = vmul.f32 %v8804_v1, %v10004_v4 }
 0x303   : > { %v3976_v23 = vmul.f32 %v8294_v27, %v8816_v58  ;;  %v3985_v7 = vmul.f32 %v8286_v22, %v8816_v58  ;;  %v3994_v47 = vmul.f32 %v8282_v49, %v8816_v58  ;;  %v3996_v56 = vmul.f32 %v8278_v40, %v8816_v58 }
 0x304   : > { %v3978_v25 = vmul.f32 %v8286_v22, %v8826_v17  ;;  %v3980_v60 = vmul.f32 %v8282_v49, %v8824_v39  ;;  %v3982_v35 = vmul.f32 %v8278_v40, %v8824_v39  ;;  %v3983_v3 = vmul.f32 %v8294_v27, %v8826_v17 }
 0x305   : > { %v3977_v32 = vadd.f32 %v3976_v23, %v3975_v61  ;;  %v3989_v55 = vmul.f32 %v8278_v40, %v8826_v17  ;;  %v3990_v57 = vmul.f32 %v8294_v27, %v8824_v39  ;;  %v3998_v5 = vsub.f32 %v3996_v56, %v3997_v38 }
 0x306   : > { %v3984_v34 = vsub.f32 %v3982_v35, %v3983_v3  ;;  %v3999_v37 = vmul.f32 %v8286_v22, %v8824_v39  ;;  %v4001_v31 = vmul.f32 %v8282_v49, %v8826_v17  ;;  %v3878_v29 = vmul.f32 %v8824_v39, %v10004_v4 }
 0x307   : > { %v3979_v21 = vadd.f32 %v3978_v25, %v3977_v32  ;;  %v3991_v24 = vadd.f32 %v3990_v57, %v3989_v55  ;;  %v3879_v40 = vmul.f32 %v8826_v17, %v10005_v18  ;;  %v3883_v27 = vmul.f32 %v8783_v10, %v8826_v17 }
 0x308   : > { %v3986_v44 = vadd.f32 %v3985_v7, %v3984_v34  ;;  %v4000_v19 = vsub.f32 %v3998_v5, %v3999_v37  ;;  %v3886_v22 = vmul.f32 %v8804_v1, %v10005_v18  ;;  %v3887_v49 = vmul.f32 %v8783_v10, %v8824_v39 }
 0x309   : > { %v3981_v8 = vsub.f32 %v3979_v21, %v3980_v60  ;;  %v3993_v26 = vsub.f32 %v3991_v24, %v3992_v41  ;;  %v3880_v28 = vsub.f32 %v3878_v29, %v3879_v40  ;;  %v3885_v62 = vsub.f32 %v3883_v27, %v3884_v30 }
 0x30a   : > { %v3988_v46 = vadd.f32 %v3987_v33, %v3986_v44  ;;  %v4002_v63 = vsub.f32 %v4000_v19, %v4001_v31  ;;  %v3888_v61 = vsub.f32 %v3886_v22, %v3887_v49  ;;  %v9790_v38 = vand.u32 2147483647, %v8773_v16 }
 0x30b   : > { %5557 = vst [vmem:[%s6017_s29 + $0x50] sm:$0x1] %v3981_v8  ;;  %v3995_v4 = vadd.f32 %v3994_v47, %v3993_v26  ;;  %v3889_v23 = vmul.f32 2.0, %v3880_v28  ;;  %v3890_v7 = vmul.f32 2.0, %v3885_v62  ;;  %v5585_v56 = vadd.s32 4294967169, %v4758_v36 }
 0x30c   : > { %5558 = vst [vmem:[%s6017_s29 + $0x51] sm:$0x1] %v3988_v46  ;;  %v3891_v25 = vmul.f32 2.0, %v3888_v61  ;;  %v3938_v60 = vmul.f32 %v8780_v12, %v8432_v52  ;;  %v3946_v41 = vmul.f32 %v8780_v12, %v8435_v2  ;;  %v4226_v33 = vshll.u32 %v8814_v54, 30 }
 0x30d   : > { %5559 = vst [vmem:[%s6017_s29 + $0x52] sm:$0x1] %v3995_v4  ;;  %v3893_v30 = vmul.f32 %v3890_v7, %v8826_v17  ;;  %v3895_v35 = vmul.f32 %v3889_v23, %v8826_v17  ;;  %v3898_v47 = vmul.f32 %v3890_v7, %v8804_v1  ;;  %v3899_v3 = vmul.f32 %v3889_v23, %v8824_v39 }
 0x30e   : > { %5560 = vst [vmem:[%s6017_s29 + $0x53] sm:$0x1] %v4002_v63  ;;  %v3892_v36 = vmul.f32 %v3891_v25, %v8824_v39  ;;  %v3896_v32 = vmul.f32 %v3891_v25, %v8804_v1  ;;  %v3901_v55 = vmul.f32 %v3889_v23, %v8816_v58  ;;  %v3910_v57 = vmul.f32 %v3890_v7, %v8816_v58 }
 0x30f   : > { %v3900_v5 = vsub.f32 %v3898_v47, %v3899_v3  ;;  %v3919_v34 = vmul.f32 %v3891_v25, %v8816_v58  ;;  %v8887_v37 = vadd.f32 %v8780_v12, %v8372_v53  ;;  %v8890_v31 = vsub.s32 %v8790_v6, %v4226_v33  ;;  %v10006_v47 = vld [vmem:[#allocation26_spill] sm:$0xff] }
 0x310   : > { %v3894_v29 = vsub.f32 %v3892_v36, %v3893_v30  ;;  %v3897_v21 = vsub.f32 %v3895_v35, %v3896_v32  ;;  %v3903_v24 = vrot.slane %v3901_v55, 4  ;;  %v3912_v18 = vrot.slane %v3910_v57, 3  ;;  %v10007_v36 = vld [vmem:[#allocation12_spill] sm:$0xff]  ;;  %v10008_v55 = vld [vmem:[#allocation10_spill] sm:$0xff] }
 0x311   : > { %v3921_v40 = vrot.slane %v3919_v34, 2  ;;  %v3925_v27 = vrot.slane %v3900_v5, 2  ;;  %vm4228_vm14 = vcmp.lt.s32.totalorder %v8890_v31, 0  ;;  %v4229_v44 = vsub.s32 0, %v8890_v31  ;;  %v10009_v5 = vld [vmem:[#allocation9_spill] sm:$0xff] }
 0x312   : > { %v3905_v19 = vadd.f32 %v8780_v12, %v3903_v24  ;;  %v3907_v22 = vrot.slane %v3894_v29, 4  ;;  %v3914_v49 = vadd.f32 %v8780_v12, %v3912_v18  ;;  %v3916_v53 = vrot.slane %v3897_v21, 3 }
 0x313   : > { %v3923_v8 = vadd.f32 %v8780_v12, %v3921_v40  ;;  %v3954_v6 = vmul.f32 %v8780_v12, %v8441_v0  ;;  %v4074_v26 = vmul.f32 %v8381_v20, %v8887_v37  ;;  %v4230_v28 = vsel %vm4228_vm14, %v4229_v44, %v8890_v31 }
 0x314   : > { %v3909_v62 = vadd.f32 %v3907_v22, %v3905_v19  ;;  %v3918_v46 = vadd.f32 %v3916_v53, %v3914_v49  ;;  %v3931_v63 = vrot.slane %v8780_v12, 3  ;;  %v4231_v61 = vclz %v4230_v28 }
 0x315   : > { %v3927_v4 = vadd.f32 %v3925_v27, %v3923_v8  ;;  %v3935_v23 = vrot.slane %v8780_v12, 2  ;;  %v3939_v7 = vadd.f32 %v3938_v60, %v8464_v15  ;;  %v8907_v25 = vmul.f32 %v8162_v50, %v8162_v50 }
 0x316   : > { %v3928_v33 = vsub.f32 %v3909_v62, %v9889_v42  ;;  %v3930_v20 = vsub.f32 %v3918_v46, %v9890_v14  ;;  %v3947_v30 = vadd.f32 %v3946_v41, %v8466_v43  ;;  %v5569_v35 = vadd.s32 4294967294, %v4231_v61  ;;  %v10010_v43 = vld [vmem:[#allocation11_spill] sm:$0xff] }
 0x317   : > { %v3934_v3 = vsub.f32 %v3927_v4, %v10006_v47  ;;  %v3955_v32 = vadd.f32 %v3954_v6, %v10007_v36  ;;  %v8915_v57 = vadd.f32 %v10008_v55, %v4074_v26  ;;  %v8917_v12 = vadd.s32 1, %v5585_v56  ;;  %v8941_v4 = vld [vmem:[#allocation5 + $0x2] sm:$0x1] }
 0x318   : > { %v3929_v15 = vmul.f32 %v3928_v33, %v8783_v10  ;;  %v3933_v60 = vmul.f32 %v3931_v63, %v3930_v20  ;;  %v8922_v34 = vmul.f32 %v10009_v5, %v8887_v37  ;;  %vm5570_vm4 = vcmp.lt.s32.totalorder %v5569_v35, 0 }
 0x319   : > { %v3937_v29 = vmul.f32 %v3935_v23, %v3934_v3  ;;  %v8926_v41 = vmul.f32 %v10010_v43, %v8887_v37  ;;  %v4234_v21 = vsel %vm5570_vm4, 0, %v5569_v35  ;;  %v4249_v24 = vsub.s32 4, %v8814_v54 }
 0x31a   : > { %v3963_v18 = vrot.slane %v3929_v15, 4  ;;  %v3967_v40 = vrot.slane %v3933_v60, 5  ;;  %v3940_v56 = vmul.f32 0.5, %v3929_v15  ;;  %v3948_v27 = vmul.f32 0.5, %v3933_v60 }
 0x31b   : > { %v3971_v44 = vrot.slane %v3937_v29, 6  ;;  %v3956_v19 = vmul.f32 0.5, %v3937_v29  ;;  %v4235_v22 = vsub.s32 32, %v4234_v21  ;;  %v4236_v49 = vshll.u32 %v8890_v31, %v4234_v21 }
 0x31c   : > { %v8931_v53 = vadd.f32 %v3963_v18, %v8432_v52  ;;  %v8934_v8 = vadd.f32 %v3967_v40, %v8435_v2  ;;  %v3941_v6 = vmul.f32 %v3940_v56, %v8783_v10  ;;  %v3949_v26 = vmul.f32 %v3948_v27, %v3931_v63  ;;  %v8947_v2 = vld [vmem:[#allocation5] sm:$0x1]  ;;  %v8951_v63 = vld [vmem:[#allocation5 + $0x1] sm:$0x1] }
 0x31d   : > { %v8938_v28 = vadd.f32 %v3971_v44, %v8441_v0  ;;  %v3957_v62 = vmul.f32 %v3956_v19, %v3935_v23  ;;  %v4237_v46 = vshrl.u32 %v8812_v51, %v4235_v22  ;;  %v4239_v61 = vsub.s32 4294967266, %v4234_v21  ;;  %v10011_v21 = vld [vmem:[#allocation29_spill] sm:$0xff]  ;;  %v8975_v22 = vld [vmem:[#allocation5 + $0x3] sm:$0x1] }
 0x31e   : > { %v4004_v31 = vmul.f32 %v8941_v4, %v8934_v8  ;;  %v4006_v52 = vmul.f32 %v8941_v4, %v8931_v53  ;;  %v4009_v10 = vmul.f32 %v8947_v2, %v8934_v8  ;;  %v4010_v0 = vmul.f32 %v8951_v63, %v8931_v53 }
 0x31f   : > { %v4003_v51 = vmul.f32 %v8951_v63, %v8938_v28  ;;  %v4007_v23 = vmul.f32 %v8947_v2, %v8938_v28  ;;  %v3943_v33 = vrot.slane %v3941_v6, 4  ;;  %v3951_v20 = vrot.slane %v3949_v26, 5 }
 0x320   : > { %v4011_v35 = vsub.f32 %v4009_v10, %v4010_v0  ;;  %v3959_v3 = vrot.slane %v3957_v62, 6  ;;  %v4240_v36 = vadd.s32 127, %v4239_v61  ;;  %vm4127_vm3 = vcmp.lt.s32.totalorder %v10011_v21, 0  ;;  %v8984_v61 = vpop.eup %5722 }
 0x321   : > { %v4005_v55 = vsub.f32 %v4003_v51, %v4004_v31  ;;  %v4008_v15 = vsub.f32 %v4006_v52, %v4007_v23  ;;  %v8960_v60 = vadd.f32 %v3943_v33, %v3939_v7  ;;  %v8962_v5 = vadd.f32 %v3951_v20, %v3947_v30 }
 0x322   : > { %v4014_v29 = vmul.f32 2.0, %v4011_v35  ;;  %v8964_v43 = vadd.f32 %v3959_v3, %v3955_v32  ;;  %v8967_v18 = vor.u32 %v4237_v46, %v4236_v49  ;;  %v4241_v40 = vshll.u32 %v4240_v36, 23 }
 0x323   : > { %v4012_v56 = vmul.f32 2.0, %v4005_v55  ;;  %v4013_v27 = vmul.f32 2.0, %v4008_v15  ;;  %v4034_v44 = vmul.f32 %v8941_v4, %v8962_v5  ;;  %v4036_v19 = vmul.f32 %v8941_v4, %v8960_v60 }
 0x324   : > { %v4015_v7 = vmul.f32 %v8951_v63, %v4014_v29  ;;  %v4019_v30 = vmul.f32 %v8947_v2, %v4014_v29  ;;  %v4030_v32 = vmul.f32 %v8975_v22, %v4014_v29  ;;  %v4033_v49 = vmul.f32 %v8951_v63, %v8964_v43 }
 0x325   : > { %v4016_v6 = vmul.f32 %v8941_v4, %v4013_v27  ;;  %v4024_v26 = vmul.f32 %v8975_v22, %v4012_v56  ;;  %v4018_v62 = vmul.f32 %v8941_v4, %v4012_v56  ;;  %v4027_v46 = vmul.f32 %v8975_v22, %v4013_v27 }
 0x326   : > { %v4021_v31 = vmul.f32 %v8947_v2, %v4013_v27  ;;  %v4022_v52 = vmul.f32 %v8951_v63, %v4012_v56  ;;  %v4031_v10 = vadd.f32 %v4030_v32, %v8938_v28  ;;  %v4035_v0 = vsub.f32 %v4033_v49, %v4034_v44 }
 0x327   : > { %v10012_v51 = vand.u32 2147483647, %v10011_v21  ;;  %v4017_v33 = vsub.f32 %v4015_v7, %v4016_v6  ;;  %v4025_v20 = vadd.f32 %v4024_v26, %v8931_v53  ;;  %v4020_v35 = vsub.f32 %v4018_v62, %v4019_v30  ;;  %v9004_v26 = vld [vmem:[#allocation5 + $0x4] sm:$0x1] }
 0x328   : > { %v4028_v3 = vadd.f32 %v4027_v46, %v8934_v8  ;;  %v4023_v36 = vsub.f32 %v4021_v31, %v4022_v52  ;;  %v4037_v55 = vmul.f32 %v8947_v2, %v8964_v43  ;;  %v4039_v15 = vmul.f32 %v8947_v2, %v8962_v5  ;;  %v9007_v46 = vld [vmem:[#allocation5 + $0x5] sm:$0x1] }
 0x329   : > { %vm8991_vm0 = vcmp.le.f32.partialorder %v10012_v51, 0.7853982  ;;  %v4040_v29 = vmul.f32 %v8951_v63, %v8960_v60  ;;  %v4026_v56 = vadd.f32 %v4025_v20, %v4017_v33  ;;  %v4042_v44 = vmul.f32 2.0, %v4035_v0  ;;  %v9022_v20 = vld [vmem:[#allocation5 + $0x8] sm:$0x1] }
 0x32a   : > { %v4029_v27 = vadd.f32 %v4028_v3, %v4020_v35  ;;  %v4242_v32 = vor.u32 4788187, %v4241_v40  ;;  %v4032_v7 = vadd.f32 %v4031_v10, %v4023_v36  ;;  %v4038_v49 = vsub.f32 %v4036_v19, %v4037_v55  ;;  %v9016_v19 = vld [vmem:[#allocation5 + $0x6] sm:$0x1] }
 0x32b   : > { %v4041_v30 = vsub.f32 %v4039_v15, %v4040_v29  ;;  %v4245_v6 = vcvt.s32.f32 %v8967_v18  ;;  %v4068_v62 = vadd.f32 %v9004_v26, %v4026_v56  ;;  %v4054_v52 = vmul.f32 %v8975_v22, %v4042_v44 }
 0x32c   : > { %v4070_v31 = vadd.f32 %v9007_v46, %v4029_v27  ;;  %v4250_v40 = vsel %vm4127_vm3, %v4249_v24, %v8814_v54  ;;  %v4072_v18 = vadd.f32 %v9016_v19, %v4032_v7  ;;  %v4043_v10 = vmul.f32 2.0, %v4038_v49 }
 0x32d   : > { %v4044_v0 = vmul.f32 2.0, %v4041_v30  ;;  %v4048_v51 = vmul.f32 %v8941_v4, %v4042_v44  ;;  %5561 = vst [vmem:[%s6017_s29 + $0x54] sm:$0x1] %v4068_v62  ;;  %v4055_v33 = vadd.f32 %v4054_v52, %v8960_v60  ;;  %v4079_v35 = vadd.f32 %v9022_v20, %v8922_v34 }
 0x32e   : > { %v4052_v3 = vmul.f32 %v8951_v63, %v4042_v44  ;;  %v4243_v54 = vand.u32 2147483647, %v4242_v32  ;;  %5562 = vst [vmem:[%s6017_s29 + $0x55] sm:$0x1] %v4070_v31  ;;  %v4046_v36 = vmul.f32 %v8941_v4, %v4043_v10  ;;  %v4057_v15 = vmul.f32 %v8975_v22, %v4043_v10  ;;  %v10015_v31 = vld [vmem:[#allocation16_spill] sm:$0xff] }
 0x32f   : > { %v4045_v24 = vmul.f32 %v8951_v63, %v4044_v0  ;;  %v4049_v55 = vmul.f32 %v8947_v2, %v4044_v0  ;;  %5563 = vst [vmem:[%s6017_s29 + $0x56] sm:$0x1] %v4072_v18  ;;  %v4051_v29 = vmul.f32 %v8947_v2, %v4043_v10  ;;  %v4060_v56 = vmul.f32 %v8975_v22, %v4044_v0 }
 0x330   : > { %v4246_v27 = vmul.f32 %v4245_v6, %v4243_v54  ;;  %v4252_v34 = vsel %vm8991_vm0, 0, %v4250_v40  ;;  %v4058_v7 = vadd.f32 %v4057_v15, %v8962_v5  ;;  %v4281_v49 = vmul.f32 %v8984_v61, %v8809_v9 }
 0x331   : > { %v4047_v44 = vsub.f32 %v4045_v24, %v4046_v36  ;;  %v4050_v32 = vsub.f32 %v4048_v51, %v4049_v55  ;;  %v4053_v30 = vsub.f32 %v4051_v29, %v4052_v3  ;;  %v4061_v62 = vadd.f32 %v4060_v56, %v8964_v43 }
 0x332   : > { %v4083_v52 = vadd.f32 %v10015_v31, %v8926_v41  ;;  %v4247_v18 = vxor.u32 2147483648, %v4246_v27  ;;  %v4269_v0 = vadd.s32 3, %v4252_v34  ;;  %v4282_v54 = vsub.f32 1.0, %v4281_v49  ;;  %v10019_v49 = vld [vmem:[#allocation20_spill] sm:$0xff] }
 0x333   : > { %v4056_v10 = vadd.f32 %v4055_v33, %v4047_v44  ;;  %v4059_v6 = vadd.f32 %v4058_v7, %v4050_v32  ;;  %v4062_v40 = vadd.f32 %v4061_v62, %v4053_v30  ;;  %v9048_v3 = vand.u32 8388607, %v9790_v38 }
 0x334   : > { %v4248_v51 = vsel %vm4127_vm3, %v4247_v18, %v4246_v27  ;;  %vm4765_vm5 = vcmp.gt.s32.totalorder %v8917_v12, 0  ;;  %v4283_v15 = vmul.f32 %v8984_v61, %v4282_v54  ;;  %vm4286_vm6 = vweird.f32 %v8984_v61 }
 0x335   : > { %v4076_v24 = vadd.f32 %v8915_v57, %v4056_v10  ;;  %v4080_v41 = vadd.f32 %v4079_v35, %v4059_v6  ;;  %v4251_v33 = vsel %vm8991_vm0, %v10011_v21, %v4248_v51  ;;  %v4084_v36 = vadd.f32 %v4083_v52, %v4062_v40  ;;  %vm9060_vm7 = vmor %vm4285_vm2, %vm4286_vm6  ;;  %v10018_v35 = vld [vmem:[#allocation18_spill] sm:$0xff] }
 0x336   : > { %v4253_v55 = vmul.f32 %v4251_v33, %v4251_v33  ;;  %v9058_v29 = vand.u32 3, %v4269_v0  ;;  %v4289_v57 = vand.u32 2147483647, %v8809_v9  ;;  %v4291_v23 = vand.u32 2147483648, %v8809_v9 }
 0x337   : > { %5564 = vst [vmem:[%s6017_s29 + $0x57] sm:$0x1] %v4076_v24  ;;  %v4295_v27 = vmul.f32 %v8162_v50, %v10018_v35  ;;  %v4284_v7 = vadd.f32 %v8984_v61, %v4283_v15  ;;  %v4297_v30 = vmul.f32 %v8907_v25, %v10019_v49  ;;  %v4454_v52 = vmul.f32 %v8162_v50, %v9997_v48 }
 0x338   : > { %5565 = vst [vmem:[%s6017_s29 + $0x58] sm:$0x1] %v4080_v41  ;;  %v4254_v44 = vmul.f32 -0.001358992, %v4253_v55  ;;  %v4261_v32 = vmul.f32 -0.00019511016, %v4253_v55  ;;  %vm4268_vm13 = vweird.f32 %v10011_v21 }
 0x339   : > { %5566 = vst [vmem:[%s6017_s29 + $0x59] sm:$0x1] %v4084_v36  ;;  %vm4290_vm8 = vcmp.eq.f32.partialorder %v4289_v57, 8.507059e+37  ;;  %v4292_v62 = vor.u32 1.1754944e-38, %v4291_v23  ;;  %v4296_v31 = vsub.f32 0.5, %v4295_v27  ;;  %v4288_v10 = vsel %vm9060_vm7, %v8984_v61, %v4284_v7 }
 0x33a   : > { %v4255_v18 = vadd.f32 0.041655596, %v4254_v44  ;;  %v4262_v9 = vadd.f32 0.008332121, %v4261_v32  ;;  %v4444_v6 = vand.u32 3, %v4252_v34  ;;  %v4766_v0 = vsel %vm4765_vm5, %v8917_v12, 0 }
 0x33b   : > { %v4762_v51 = vor.u32 8388608, %v9048_v3  ;;  %v9082_v24 = vshrl.u32 %v4766_v0, 5  ;;  %vm4272_vm9 = vcmp.eq.s32.totalorder %v9058_v29, 0  ;;  %vm4275_vm10 = vcmp.eq.s32.totalorder %v9058_v29, 2  ;;  %v10020_v12 = vld [vmem:[#allocation21_spill] sm:$0xff] }
 0x33c   : > { %v4256_v54 = vmul.f32 %v4255_v18, %v4253_v55  ;;  %v4263_v40 = vmul.f32 %v4262_v9, %v4253_v55  ;;  %v4293_v50 = vsel %vm4290_vm8, %v4292_v62, %v4288_v10  ;;  %v4455_v41 = vsub.f32 1.0, %v4454_v52 }
 0x33d   : > { %vm4271_vm1 = vcmp.lt.s32.totalorder %v9058_v29, 2  ;;  %v4298_v61 = vadd.f32 %v4297_v30, %v4296_v31  ;;  %vm4445_vm11 = vcmp.lt.s32.totalorder %v4444_v6, 2  ;;  %vm4446_vm12 = vcmp.eq.s32.totalorder %v4444_v6, 0 }
 0x33e   : > { %v4257_v36 = vadd.f32 -0.4999988, %v4256_v54  ;;  %v4264_v15 = vadd.f32 -0.16666654, %v4263_v40  ;;  %vm4449_vm14 = vcmp.eq.s32.totalorder %v4444_v6, 2  ;;  %v4456_v34 = vmul.f32 %v8907_v25, %v10020_v12 }
 0x33f   : > { %v4768_v3 = vand.u32 31, %v4766_v0  ;;  %vm4786_vm4 = vcmp.lt.s32.totalorder %v9082_v24, 1  ;;  %vm4788_vm3 = vcmp.lt.s32.totalorder %v9082_v24, 3  ;;  %v10021_v27 = vmov 683565275  }
 0x340   : > { %v4258_v56 = vmul.f32 %v4257_v36, %v4253_v55  ;;  %v4265_v57 = vmul.f32 %v4264_v15, %v4253_v55  ;;  %v10022_v32 = vmov 2475754826   ;;  %v10023_v30 = vmov 2131351028  }
 0x341   : > { %v4769_v23 = vsub.s32 32, %v4768_v3  ;;  %v4771_v44 = vshll.u32 %v10021_v27, %v4768_v3  ;;  %v4774_v7 = vshll.u32 %v10022_v32, %v4768_v3  ;;  %v4777_v62 = vshll.u32 %v10023_v30, %v4768_v3 }
 0x342   : > { %v4259_v31 = vadd.f32 1.0, %v4258_v56  ;;  %v4266_v52 = vadd.f32 1.0, %v4265_v57  ;;  %v10024_v18 = vmov 2102212464   ;;  %vm4789_vm0 = vcmp.lt.s32.totalorder %v9082_v24, 4 }
 0x343   : > { %v4780_v9 = vshll.u32 %v10024_v18, %v4768_v3  ;;  %v4772_v25 = vshrl.u32 %v10022_v32, %v4769_v23  ;;  %v4775_v55 = vshrl.u32 %v10023_v30, %v4769_v23  ;;  %v4778_v10 = vshrl.u32 %v10024_v18, %v4769_v23 }
 0x344   : > { %v10025_v0 = vmov 920167782   ;;  %v4267_v40 = vmul.f32 %v4266_v52, %v4251_v33  ;;  %v4276_v36 = vxor.u32 2147483648, %v4259_v31  ;;  %v10026_v38 = vmov 1326507024  }
 0x345   : > { %v4783_v54 = vshll.u32 %v10025_v0, %v4768_v3  ;;  %v4781_v15 = vshrl.u32 %v10025_v0, %v4769_v23  ;;  %v4784_v49 = vshrl.u32 %v10026_v38, %v4769_v23  ;;  %v4770_v56 = vshrl.u32 %v10021_v27, %v4769_v23 }
 0x346   : > { %v4773_v57 = vor.u32 %v4772_v25, %v4771_v44  ;;  %v4776_v12 = vor.u32 %v4775_v55, %v4774_v7  ;;  %v4779_v35 = vor.u32 %v4778_v10, %v4777_v62  ;;  %v4273_v45 = vxor.u32 2147483648, %v4267_v40  ;;  %v9147_v10 = vld [vmem:[%s6003_s27 + $0x30] sm:$0xff] }
 0x347   : > { %v4277_v32 = vsel %vm4275_vm10, %v4276_v36, %v4267_v40  ;;  %v4451_v30 = vsel %vm4449_vm14, %v4276_v36, %v4267_v40  ;;  %v4782_v18 = vor.u32 %v4781_v15, %v4780_v9  ;;  %v4457_v48 = vadd.f32 %v4456_v34, %v4455_v41 }
 0x348   : > { %v4785_v3 = vor.u32 %v4784_v49, %v4783_v54  ;;  %vm4787_vm2 = vcmp.lt.s32.totalorder %v9082_v24, 2  ;;  %v4791_v33 = vsel %vm4789_vm0, %v4779_v35, 2102212464  ;;  %v4274_v38 = vsel %vm4272_vm9, %v4259_v31, %v4273_v45 }
 0x349   : > { %v4448_v23 = vsel %vm4446_vm12, %v4259_v31, %v4273_v45  ;;  %v4795_v27 = vsel %vm4789_vm0, %v4782_v18, 920167782  ;;  %v9115_v44 = vshll.u32 %v4762_v51, 8  ;;  %v4278_v7 = vsel %vm4271_vm1, %v4274_v38, %v4277_v32 }
 0x34a   : > { %v4452_v49 = vsel %vm4445_vm11, %v4448_v23, %v4451_v30  ;;  %v4794_v41 = vsel %vm4786_vm4, %v4773_v57, %v4776_v12  ;;  %v4796_v34 = vsel %vm4788_vm3, %v4779_v35, %v4795_v27  ;;  %v4279_v45 = vsel %vm4268_vm13, nan, %v4278_v7  ;;  %v10029_v30 = vld [vmem:[#allocation22_spill] sm:$0xff] }
 0x34b   : > { %v4453_v62 = vsel %vm4268_vm13, nan, %v4452_v49  ;;  %v4790_v51 = vsel %vm4786_vm4, %v4770_v56, %v4773_v57  ;;  %v4792_v29 = vsel %vm4788_vm3, %v4776_v12, %v4791_v33  ;;  %v4294_v6 = vmul.f32 %v4293_v50, %v4279_v45  ;;  %v10028_v57 = vld [vmem:[#allocation27_spill] sm:$0xff] }
 0x34c   : > { %v4458_v31 = vsel %vm4122_vm15, %v4453_v62, %v4457_v48  ;;  %v4798_v52 = vsel %vm4786_vm4, %v4776_v12, %v4779_v35  ;;  %v4799_v9 = vsel %vm4789_vm0, %v4785_v3, 1326507024  ;;  %v9140_v21 = vsel %vm4787_vm2, %v4794_v41, %v4796_v34  ;;  %v10027_v12 = vld [vmem:[#allocation28_spill] sm:$0xff] }
 0x34d   : > { %v4472_v25 = vrot.slane %v4458_v31, 1  ;;  %v4800_v55 = vsel %vm4788_vm3, %v4782_v18, %v4799_v9  ;;  %v4299_v50 = vsel %vm4122_vm15, %v4294_v6, %v4298_v61  ;;  %v9150_v48 = vrot.slane %v9147_v10, 4 }
 0x34e   : > { %v9154_v35 = vsel %vm4787_vm2, %v4790_v51, %v4792_v29  ;;  %v4459_v0 = vmul.f32 %v4299_v50, %v10027_v12  ;;  %v4461_v54 = vrot.slane %v4299_v50, 7  ;;  %v4464_v40 = vrot.slane %v4299_v50, 6 }
 0x34f   : > { %v9159_v36 = vsel %vm4787_vm2, %v4798_v52, %v4800_v55  ;;  %v9162_v59 = vand.u32 65535, %v9115_v44  ;;  %v9165_v61 = vshrl.u32 %v9115_v44, 16  ;;  %v4474_v33 = vmul.f32 %v4472_v25, %v8804_v1 }
 0x350   : > { %v4463_v32 = vmul.f32 %v4461_v54, %v10028_v57  ;;  %v4466_v18 = vmul.f32 %v4464_v40, %v10029_v30  ;;  %v4468_v3 = vrot.slane %v4459_v0, 1  ;;  %v4489_v24 = vmul.f32 %v4472_v25, %v8824_v39 }
 0x351   : > { %v4498_v38 = vmul.f32 %v4472_v25, %v8826_v17  ;;  %v4500_v23 = vmul.f32 %v4472_v25, %v8816_v58  ;;  %v9794_v27 = vshrl.u32 %v9159_v36, 16  ;;  %v4805_v34 = vand.u32 65535, %v9159_v36 }
 0x352   : > { %v4470_v7 = vmul.f32 %v4468_v3, %v8816_v58  ;;  %v4477_v49 = vrot.slane %v4466_v18, 3  ;;  %v4482_v41 = vrot.slane %v4463_v32, 2  ;;  %v4496_v45 = vmul.f32 %v4468_v3, %v8824_v39 }
 0x353   : > { %v4501_v62 = vmul.f32 %v4468_v3, %v8804_v1  ;;  %v9184_v29 = vmul.u32 %v9794_v27, %v9162_v59  ;;  %v4491_v30 = vmul.f32 %v4468_v3, %v8826_v17  ;;  %v10032_v11 = vshrl.u32 %v9159_v36, 16 }
 0x354   : > { %v4475_v6 = vadd.f32 %v4474_v33, %v4470_v7  ;;  %v4479_v31 = vmul.f32 %v4477_v49, %v8824_v39  ;;  %v4484_v52 = vmul.f32 %v4482_v41, %v8826_v17  ;;  %v4486_v9 = vmul.f32 %v4482_v41, %v8816_v58 }
 0x355   : > { %v4487_v25 = vmul.f32 %v4477_v49, %v8804_v1  ;;  %v4493_v55 = vmul.f32 %v4477_v49, %v8816_v58  ;;  %v4494_v50 = vmul.f32 %v4482_v41, %v8804_v1  ;;  %v4502_v12 = vsub.f32 %v4500_v23, %v4501_v62 }
 0x356   : > { %v4480_v0 = vadd.f32 %v4479_v31, %v4475_v6  ;;  %v4503_v54 = vmul.f32 %v4482_v41, %v8824_v39  ;;  %v4505_v40 = vmul.f32 %v4477_v49, %v8826_v17  ;;  %v9197_v33 = vmul.u32 %v4805_v34, %v9162_v59 }
 0x357   : > { %v4488_v32 = vsub.f32 %v4486_v9, %v4487_v25  ;;  %v4495_v18 = vadd.f32 %v4494_v50, %v4493_v55  ;;  %v4567_v1 = vmul.f32 %v9147_v10, %v8931_v53  ;;  %v9204_v23 = vmul.u32 %v4805_v34, %v9165_v61 }
 0x358   : > { %v9199_v7 = vsub.f32 %v4480_v0, %v4484_v52  ;;  %v4504_v58 = vsub.f32 %v4502_v12, %v4503_v54  ;;  %v4575_v41 = vmul.f32 %v9147_v10, %v8934_v8  ;;  %v10030_v52 = vld [vmem:[#allocation25_spill] sm:$0xff] }
 0x359   : > { %v4490_v39 = vadd.f32 %v4489_v24, %v4488_v32  ;;  %v4497_v49 = vsub.f32 %v4495_v18, %v4496_v45 }
 0x35a   : > { %v9209_v3 = vsub.f32 %v4504_v58, %v4505_v40  ;;  %v4604_v62 = vmul.f32 %v8975_v22, %v9199_v7  ;;  %v4616_v6 = vmul.f32 %v8941_v4, %v9199_v7  ;;  %v4621_v31 = vmul.f32 %v8951_v63, %v9199_v7 }
 0x35b   : > { %v9217_v34 = vadd.f32 %v4491_v30, %v4490_v39  ;;  %v9219_v24 = vadd.f32 %v4498_v38, %v4497_v49  ;;  %v4626_v45 = vmul.f32 %v8947_v2, %v9199_v7  ;;  %v4513_v9 = vmul.f32 %v9199_v7, %v10030_v52 }
 0x35c   : > { %v4605_v25 = vmul.f32 %v8947_v2, %v9209_v3  ;;  %v4614_v55 = vmul.f32 %v8951_v63, %v9209_v3  ;;  %v4623_v50 = vmul.f32 %v8941_v4, %v9209_v3  ;;  %v4625_v12 = vmul.f32 %v8975_v22, %v9209_v3 }
 0x35d   : > { %v4607_v38 = vmul.f32 %v8951_v63, %v9219_v24  ;;  %v4609_v0 = vmul.f32 %v8941_v4, %v9217_v34  ;;  %v4611_v54 = vmul.f32 %v8975_v22, %v9217_v34  ;;  %v4612_v40 = vmul.f32 %v8947_v2, %v9219_v24 }
 0x35e   : > { %v4606_v32 = vadd.f32 %v4605_v25, %v4604_v62  ;;  %v4618_v30 = vmul.f32 %v8975_v22, %v9219_v24  ;;  %v4619_v18 = vmul.f32 %v8947_v2, %v9217_v34  ;;  %v4627_v58 = vsub.f32 %v4625_v12, %v4626_v45  ;;  %v10031_v25 = vld [vmem:[#allocation35_spill] sm:$0xff] }
 0x35f   : > { %v4613_v39 = vsub.f32 %v4611_v54, %v4612_v40  ;;  %v4628_v49 = vmul.f32 %v8951_v63, %v9217_v34  ;;  %v4630_v57 = vmul.f32 %v8941_v4, %v9219_v24  ;;  %v4507_v51 = vmul.f32 %v9217_v34, %v10030_v52 }
 0x360   : > { %v4608_v15 = vadd.f32 %v4607_v38, %v4606_v32  ;;  %v4620_v62 = vadd.f32 %v4619_v18, %v4618_v30  ;;  %v4508_v56 = vmul.f32 %v9219_v24, %v10031_v25  ;;  %v4512_v17 = vmul.f32 %v9150_v48, %v9219_v24 }
 0x361   : > { %v4615_v45 = vadd.f32 %v4614_v55, %v4613_v39  ;;  %v4629_v12 = vsub.f32 %v4627_v58, %v4628_v49  ;;  %v4515_v54 = vmul.f32 %v9199_v7, %v10031_v25  ;;  %v4516_v40 = vmul.f32 %v9150_v48, %v9217_v34 }
 0x362   : > { %v4610_v27 = vsub.f32 %v4608_v15, %v4609_v0  ;;  %v4622_v52 = vsub.f32 %v4620_v62, %v4621_v31  ;;  %v4509_v38 = vsub.f32 %v4507_v51, %v4508_v56  ;;  %v4514_v32 = vsub.f32 %v4512_v17, %v4513_v9 }
 0x363   : > { %v4617_v30 = vadd.f32 %v4616_v6, %v4615_v45  ;;  %v4631_v18 = vsub.f32 %v4629_v12, %v4630_v57  ;;  %v4517_v16 = vsub.f32 %v4515_v54, %v4516_v40  ;;  %v4810_v55 = vmul.u32 %v10032_v11, %v9165_v61 }
 0x364   : > { %5574 = vst [vmem:[%s6017_s29 + $0x60] sm:$0x1] %v4610_v27  ;;  %v4624_v58 = vadd.f32 %v4623_v50, %v4622_v52  ;;  %v4518_v39 = vmul.f32 2.0, %v4509_v38  ;;  %v4519_v49 = vmul.f32 2.0, %v4514_v32  ;;  %v4583_v25 = vmul.f32 %v9147_v10, %v8938_v28 }
 0x365   : > { %5575 = vst [vmem:[%s6017_s29 + $0x61] sm:$0x1] %v4617_v30  ;;  %v4520_v15 = vmul.f32 2.0, %v4517_v16  ;;  %v9267_v56 = vadd.f32 %v4567_v1, %v8960_v60  ;;  %v9270_v51 = vadd.f32 %v4575_v41, %v8962_v5  ;;  %v10033_v57 = vshll.u32 %v9184_v29, 16 }
 0x366   : > { %5576 = vst [vmem:[%s6017_s29 + $0x62] sm:$0x1] %v4624_v58  ;;  %v4522_v36 = vmul.f32 %v4519_v49, %v9219_v24  ;;  %v4524_v27 = vmul.f32 %v4518_v39, %v9219_v24  ;;  %v4527_v16 = vmul.f32 %v4519_v49, %v9199_v7  ;;  %v4528_v60 = vmul.f32 %v4518_v39, %v9217_v34 }
 0x367   : > { %vm9275_vm15 = vc.u32 %v9197_v33, %v10033_v57  ;;  %5577 = vst [vmem:[%s6017_s29 + $0x63] sm:$0x1] %v4631_v18  ;;  %v4521_v5 = vmul.f32 %v4520_v15, %v9217_v34  ;;  %v4525_v1 = vmul.f32 %v4520_v15, %v9199_v7  ;;  %v4530_v41 = vmul.f32 %v4518_v39, %v9209_v3 }
 0x368   : > { %v4539_v17 = vmul.f32 %v4519_v49, %v9209_v3  ;;  %v4529_v6 = vsub.f32 %v4527_v16, %v4528_v60  ;;  %v4548_v31 = vmul.f32 %v4520_v15, %v9209_v3  ;;  %v4813_v9 = vshll.u32 %v9204_v23, 16 }
 0x369   : > { %v10036_v50 = vmov %v10033_v57  ;;  %v4523_v62 = vsub.f32 %v4521_v5, %v4522_v36  ;;  %v4526_v45 = vsub.f32 %v4524_v27, %v4525_v1  ;;  %v4532_v12 = vrot.slane %v4530_v41, 4 }
 0x36a   : > { %v4817_v0 = vadd.s32 %v10036_v50, %v9197_v33  ;;  %v4541_v54 = vrot.slane %v4539_v17, 3  ;;  %v4550_v40 = vrot.slane %v4548_v31, 2  ;;  %v4554_v52 = vrot.slane %v4529_v6, 2  ;;  %v9320_v6 = vld [vmem:[#allocation5 + $0x7] sm:$0x1] }
 0x36b   : > { %v9296_v38 = vadd.f32 %v9147_v10, %v8887_v37  ;;  %v4816_v32 = vsel %vm9275_vm15, 1, %v9918_v13  ;;  %v4534_v30 = vadd.f32 %v9147_v10, %v4532_v12  ;;  %v4536_v18 = vrot.slane %v4523_v62, 4 }
 0x36c   : > { %v4543_v58 = vadd.f32 %v9147_v10, %v4541_v54  ;;  %v4545_v33 = vrot.slane %v4526_v45, 3  ;;  %v4552_v39 = vadd.f32 %v9147_v10, %v4550_v40  ;;  %v4584_v49 = vadd.f32 %v4583_v25, %v8964_v43 }
 0x36d   : > { %v4703_v15 = vmul.f32 %v9004_v26, %v9296_v38  ;;  %v4707_v37 = vmul.f32 %v9007_v46, %v9296_v38  ;;  %v4538_v57 = vadd.f32 %v4536_v18, %v4534_v30  ;;  %v4818_v11 = vadd.s32 %v4816_v32, %v4810_v55 }
 0x36e   : > { %v4547_v36 = vadd.f32 %v4545_v33, %v4543_v58  ;;  %vm4819_vm5 = vc.u32 %v4817_v0, %v4813_v9  ;;  %v4556_v27 = vadd.f32 %v4554_v52, %v4552_v39  ;;  %v4812_v16 = vshrl.u32 %v9184_v29, 16 }
 0x36f   : > { %v4814_v60 = vshrl.u32 %v9204_v23, 16  ;;  %v4820_v5 = vsel %vm4819_vm5, 1, %v9918_v13  ;;  %v4557_v1 = vsub.f32 %v4538_v57, %v9889_v42  ;;  %v10037_v41 = vshrl.u32 %v9140_v21, 16 }
 0x370   : > { %v4559_v43 = vsub.f32 %v4547_v36, %v9890_v14  ;;  %v4822_v25 = vadd.s32 %v4820_v5, %v4818_v11  ;;  %v4563_v55 = vsub.f32 %v4556_v27, %v10006_v47  ;;  %v9323_v29 = vadd.f32 %v9320_v6, %v4703_v15 }
 0x371   : > { %v9317_v17 = vmul.u32 %v10037_v41, %v9162_v59  ;;  %v10038_v31 = vand.u32 65535, %v9140_v21  ;;  %v4558_v62 = vmul.f32 %v4557_v1, %v9150_v48  ;;  %v10040_v45 = vrot.slane %v9147_v10, 3 }
 0x372   : > { %v9337_v54 = vadd.f32 %v9022_v20, %v4707_v37  ;;  %v10041_v52 = vrot.slane %v9147_v10, 2  ;;  %v9342_v30 = vadd.s32 %v4822_v25, %v4812_v16 }
 0x373   : > { %v4829_v9 = vmul.u32 %v10038_v31, %v9162_v59  ;;  %v10039_v50 = vmov %v10038_v31  ;;  %v4562_v12 = vmul.f32 %v10040_v45, %v4559_v43  ;;  %v4833_v40 = vshll.u32 %v9317_v17, 16 }
 0x374   : > { %v9331_v0 = vmul.u32 %v10039_v50, %v9165_v61  ;;  %v4566_v32 = vmul.f32 %v10041_v52, %v4563_v55  ;;  %v10042_v59 = vmov %v10037_v41  ;;  %v4834_v58 = vshrl.u32 %v9317_v17, 16 }
 0x375   : > { %v4832_v18 = vmul.u32 %v10042_v59, %v9165_v61  ;;  %v4592_v33 = vrot.slane %v4558_v62, 4  ;;  %v4596_v39 = vrot.slane %v4562_v12, 5  ;;  %v4569_v15 = vmul.f32 0.5, %v4558_v62 }
 0x376   : > { %v4577_v57 = vmul.f32 0.5, %v4562_v12  ;;  %v4600_v36 = vrot.slane %v4566_v32, 6  ;;  %v4585_v20 = vmul.f32 0.5, %v4566_v32  ;;  %v4835_v37 = vshll.u32 %v9331_v0, 16 }
 0x377   : > { %vm4837_vm6 = vc.u32 %v4829_v9, %v4833_v40  ;;  %v9350_v11 = vadd.f32 %v4592_v33, %v8931_v53  ;;  %v9353_v27 = vadd.f32 %v4596_v39, %v8934_v8  ;;  %v4570_v21 = vmul.f32 %v4569_v15, %v9150_v48 }
 0x378   : > { %v10043_v61 = vmov %v10040_v45  ;;  %v9359_v5 = vadd.f32 %v4600_v36, %v8938_v28  ;;  %v10044_v1 = vmov %v10041_v52  ;;  %v4838_v25 = vsel %vm4837_vm6, 1, %v9918_v13 }
 0x379   : > { %v4578_v16 = vmul.f32 %v4577_v57, %v10043_v61  ;;  %v4586_v43 = vmul.f32 %v4585_v20, %v10044_v1  ;;  %v4839_v41 = vadd.s32 %v4833_v40, %v4829_v9  ;;  %v4633_v53 = vmul.f32 %v8941_v4, %v9353_v27 }
 0x37a   : > { %v4635_v8 = vmul.f32 %v8941_v4, %v9350_v11  ;;  %v4638_v48 = vmul.f32 %v8947_v2, %v9353_v27  ;;  %v4639_v55 = vmul.f32 %v8951_v63, %v9350_v11  ;;  %v4632_v28 = vmul.f32 %v8951_v63, %v9359_v5 }
 0x37b   : > { %v4636_v10 = vmul.f32 %v8947_v2, %v9359_v5  ;;  %v4572_v31 = vrot.slane %v4570_v21, 4  ;;  %v4580_v9 = vrot.slane %v4578_v16, 5  ;;  %v4588_v62 = vrot.slane %v4586_v43, 6 }
 0x37c   : > { %v4640_v50 = vsub.f32 %v4638_v48, %v4639_v55  ;;  %v4836_v45 = vshrl.u32 %v9331_v0, 16  ;;  %vm4841_vm7 = vc.u32 %v4839_v41, %v4835_v37  ;;  %v4634_v12 = vsub.f32 %v4632_v28, %v4633_v53 }
 0x37d   : > { %v4637_v40 = vsub.f32 %v4635_v8, %v4636_v10  ;;  %v9380_v52 = vadd.f32 %v4572_v31, %v9267_v56  ;;  %v9383_v32 = vadd.f32 %v4580_v9, %v9270_v51  ;;  %v9385_v33 = vadd.f32 %v4588_v62, %v4584_v49 }
 0x37e   : > { %v4643_v59 = vmul.f32 2.0, %v4640_v50  ;;  %v4840_v39 = vadd.s32 %v4838_v25, %v4832_v18  ;;  %v4842_v15 = vsel %vm4841_vm7, 1, %v9918_v13  ;;  %v4641_v57 = vmul.f32 2.0, %v4634_v12 }
 0x37f   : > { %v4642_v36 = vmul.f32 2.0, %v4637_v40  ;;  %v4663_v20 = vmul.f32 %v8941_v4, %v9383_v32  ;;  %v4665_v21 = vmul.f32 %v8941_v4, %v9380_v52  ;;  %v4662_v49 = vmul.f32 %v8951_v63, %v9385_v33 }
 0x380   : > { %v4644_v56 = vmul.f32 %v8951_v63, %v4643_v59  ;;  %v4648_v61 = vmul.f32 %v8947_v2, %v4643_v59  ;;  %v4659_v51 = vmul.f32 %v8975_v22, %v4643_v59  ;;  %v4653_v13 = vmul.f32 %v8975_v22, %v4641_v57 }
 0x381   : > { %v4645_v18 = vmul.f32 %v8941_v4, %v4642_v36  ;;  %v4647_v16 = vmul.f32 %v8941_v4, %v4641_v57  ;;  %v4656_v1 = vmul.f32 %v8975_v22, %v4642_v36  ;;  %v4650_v43 = vmul.f32 %v8947_v2, %v4642_v36 }
 0x382   : > { %v4651_v25 = vmul.f32 %v8951_v63, %v4641_v57  ;;  %v4660_v53 = vadd.f32 %v4659_v51, %v9359_v5  ;;  %v4664_v8 = vsub.f32 %v4662_v49, %v4663_v20  ;;  %v4654_v55 = vadd.f32 %v4653_v13, %v9350_v11 }
 0x383   : > { %v4646_v48 = vsub.f32 %v4644_v56, %v4645_v18  ;;  %v4649_v28 = vsub.f32 %v4647_v16, %v4648_v61  ;;  %v4657_v10 = vadd.f32 %v4656_v1, %v9353_v27  ;;  %v4666_v9 = vmul.f32 %v8947_v2, %v9385_v33 }
 0x384   : > { %v4652_v31 = vsub.f32 %v4650_v43, %v4651_v25  ;;  %v4668_v50 = vmul.f32 %v8947_v2, %v9383_v32  ;;  %v4669_v62 = vmul.f32 %v8951_v63, %v9380_v52  ;;  %v4671_v59 = vmul.f32 2.0, %v4664_v8 }
 0x385   : > { %v4655_v12 = vadd.f32 %v4654_v55, %v4646_v48  ;;  %v4658_v40 = vadd.f32 %v4657_v10, %v4649_v28  ;;  %v4844_v57 = vadd.s32 %v4842_v15, %v4840_v39  ;;  %v4667_v20 = vsub.f32 %v4665_v21, %v4666_v9 }
 0x386   : > { %v4661_v36 = vadd.f32 %v4660_v53, %v4652_v31  ;;  %v4670_v56 = vsub.f32 %v4668_v50, %v4669_v62  ;;  %v4824_v61 = vadd.s32 %v9342_v30, %v4814_v60  ;;  %v4683_v18 = vmul.f32 %v8975_v22, %v4671_v59 }
 0x387   : > { %v4697_v51 = vadd.f32 %v9004_v26, %v4655_v12  ;;  %v4699_v49 = vadd.f32 %v9007_v46, %v4658_v40  ;;  %v4843_v13 = vadd.s32 %v4839_v41, %v4835_v37  ;;  %v4672_v15 = vmul.f32 2.0, %v4667_v20 }
 0x388   : > { %v4701_v39 = vadd.f32 %v9016_v19, %v4661_v36  ;;  %v4673_v21 = vmul.f32 2.0, %v4670_v56  ;;  %v4677_v16 = vmul.f32 %v8941_v4, %v4671_v59  ;;  %v4684_v23 = vadd.f32 %v4683_v18, %v9380_v52 }
 0x389   : > { %5578 = vst [vmem:[%s6017_s29 + $0x64] sm:$0x1] %v4697_v51  ;;  %v4681_v60 = vmul.f32 %v8951_v63, %v4671_v59  ;;  %v4711_v26 = vmul.f32 %v9016_v19, %v9296_v38  ;;  %v4845_v46 = vadd.s32 %v4844_v57, %v4834_v58  ;;  %v4675_v37 = vmul.f32 %v8941_v4, %v4672_v15 }
 0x38a   : > { %5579 = vst [vmem:[%s6017_s29 + $0x65] sm:$0x1] %v4699_v49  ;;  %v4674_v30 = vmul.f32 %v8951_v63, %v4673_v21  ;;  %v4678_v41 = vmul.f32 %v8947_v2, %v4673_v21  ;;  %v4686_v1 = vmul.f32 %v8975_v22, %v4672_v15  ;;  %v4680_v43 = vmul.f32 %v8947_v2, %v4672_v15  ;;  %v9443_v2 = vld [vmem:[#allocation5 + $0x9] sm:$0x1] }
 0x38b   : > { %5580 = vst [vmem:[%s6017_s29 + $0x66] sm:$0x1] %v4701_v39  ;;  %v4689_v25 = vmul.f32 %v8975_v22, %v4673_v21  ;;  %v4846_v19 = vadd.s32 %v4845_v46, %v4836_v45  ;;  %v4847_v17 = vmul.u32 %v9115_v44, %v9154_v35  ;;  %vm4849_vm8 = vc.u32 %v4824_v61, %v4843_v13  ;;  %v10046_v46 = vld [vmem:[#allocation17_spill] sm:$0xff] }
 0x38c   : > { %v4676_v58 = vsub.f32 %v4674_v30, %v4675_v37  ;;  %v4679_v53 = vsub.f32 %v4677_v16, %v4678_v41  ;;  %v4687_v4 = vadd.f32 %v4686_v1, %v9383_v32  ;;  %v4682_v63 = vsub.f32 %v4680_v43, %v4681_v60 }
 0x38d   : > { %v4690_v8 = vadd.f32 %v4689_v25, %v9385_v33  ;;  %v4712_v22 = vadd.f32 %v9443_v2, %v4711_v26  ;;  %v4850_v0 = vadd.s32 1, %v4846_v19  ;;  %v4848_v20 = vadd.s32 %v4843_v13, %v4824_v61 }
 0x38e   : > { %v4685_v45 = vadd.f32 %v4684_v23, %v4676_v58  ;;  %v4688_v48 = vadd.f32 %v4687_v4, %v4679_v53  ;;  %vm4756_vm11 = vcmp.lt.s32.totalorder %v10046_v46, 0  ;;  %v10047_v37 = vand.u32 2147483647, %v10046_v46 }
 0x38f   : > { %v4691_v55 = vadd.f32 %v4690_v8, %v4682_v63  ;;  %v4851_v44 = vsel %vm4849_vm8, %v4850_v0, %v4846_v19  ;;  %vm4897_vm8 = vweird.f32 %v10046_v46 }
 0x390   : > { %v4705_v35 = vadd.f32 %v9323_v29, %v4685_v45  ;;  %v4709_v28 = vadd.f32 %v9337_v54, %v4688_v48  ;;  %v4852_v10 = vadd.s32 %v4851_v44, %v4847_v17  ;;  %v10045_v29 = vld [vmem:[#allocation36_spill] sm:$0xff]  ;;  %vm4755_vm13 = vcmp.le.f32.partialorder %v10047_v37, 0.7853982 }
 0x391   : > { %v4713_v31 = vadd.f32 %v4712_v22, %v4691_v55  ;;  %vm4751_vm1 = vcmp.gt.f32.partialorder %v10045_v29, 1e-06 }
 0x392   : > { %5581 = vst [vmem:[%s6017_s29 + $0x67] sm:$0x1] %v4705_v35  ;;  %v4853_v9 = vadd.s32 536870912, %v4852_v10  ;;  %v4752_v15 = vsel %vm4751_vm1, %v10045_v29, 1.0 }
 0x393   : > { %5582 = vst [vmem:[%s6017_s29 + $0x68] sm:$0x1] %v4709_v28  ;;  %5724 = vrcp.f32 %v4752_v15  ;;  %vm4914_vm12 = vweird.f32 %v4752_v15 }
 0x394   : > { %5583 = vst [vmem:[%s6017_s29 + $0x69] sm:$0x1] %v4713_v31  ;;  %v4854_v50 = vshrl.u32 %v4853_v9, 30  ;;  %v10048_v31 = vld [vmem:[#allocation19_spill] sm:$0xff]  ;;  %v10049_v9 = vld [vmem:[#allocation30_spill] sm:$0xff] }
 0x396   : > { %v4855_v62 = vshll.u32 %v4854_v50, 30  ;;  %v4878_v13 = vsub.s32 4, %v4854_v50 }
 0x398   : > { %v4856_v12 = vsub.s32 %v4852_v10, %v4855_v62  ;;  %v4879_v43 = vsel %vm4756_vm11, %v4878_v13, %v4854_v50  ;;  %v5083_v50 = vmul.f32 %v10049_v9, %v10048_v31  ;;  %v4750_v62 = vmul.f32 %v10049_v9, %v10049_v9 }
 0x399   : > { %v5725_v30 = vpop.eup %5724  ;;  %v4881_v58 = vsel %vm4755_vm13, 0, %v4879_v43 }
 0x39a   : > { %vm4857_vm9 = vcmp.lt.s32.totalorder %v4856_v12, 0  ;;  %v4858_v40 = vsub.s32 0, %v4856_v12  ;;  %v4910_v19 = vmul.f32 %v5725_v30, %v4752_v15  ;;  %v4898_v0 = vadd.s32 3, %v4881_v58 }
 0x39b   : > { %vm4915_vm14 = vweird.f32 %v5725_v30  ;;  %v5073_v10 = vand.u32 3, %v4881_v58 }
 0x39c   : > { %v4859_v59 = vsel %vm4857_vm9, %v4858_v40, %v4856_v12  ;;  %v4911_v63 = vsub.f32 1.0, %v4910_v19  ;;  %v4899_v28 = vand.u32 3, %v4898_v0  ;;  %vm9466_vm0 = vmor %vm4914_vm12, %vm4915_vm14 }
 0x39d   : > { %v4860_v57 = vclz %v4859_v59  ;;  %v4920_v59 = vand.u32 2147483648, %v4752_v15  ;;  %vm5078_vm15 = vcmp.eq.s32.totalorder %v5073_v10, 2  ;;  %vm5075_vm6 = vcmp.eq.s32.totalorder %v5073_v10, 0 }
 0x39e   : > { %v4912_v55 = vmul.f32 %v5725_v30, %v4911_v63  ;;  %vm4900_vm4 = vcmp.lt.s32.totalorder %v4899_v28, 2  ;;  %vm4901_vm3 = vcmp.eq.s32.totalorder %v4899_v28, 0  ;;  %vm4904_vm2 = vcmp.eq.s32.totalorder %v4899_v28, 2  ;;  %v10057_v28 = vld [vmem:[#allocation32_spill] sm:$0xff] }
 0x39f   : > { %v5586_v36 = vadd.s32 4294967294, %v4860_v57  ;;  %vm5074_vm7 = vcmp.lt.s32.totalorder %v5073_v10, 2 }
 0x3a0   : > { %v4913_v57 = vadd.f32 %v5725_v30, %v4912_v55 }
 0x3a1   : > { %vm5587_vm10 = vcmp.lt.s32.totalorder %v5586_v36, 0 }
 0x3a2   : > { %v4863_v56 = vsel %vm5587_vm10, 0, %v5586_v36  ;;  %v4918_v36 = vand.u32 2147483647, %v4752_v15  ;;  %v4917_v13 = vsel %vm9466_vm0, %v5725_v30, %v4913_v57 }
 0x3a3   : > { %v4864_v54 = vsub.s32 32, %v4863_v56  ;;  %v4865_v51 = vshll.u32 %v4856_v12, %v4863_v56  ;;  %v4868_v49 = vsub.s32 4294967266, %v4863_v56 }
 0x3a4   : > { %vm4919_vm5 = vcmp.eq.f32.partialorder %v4918_v36, 8.507059e+37 }
 0x3a5   : > { %v4866_v18 = vshrl.u32 %v4848_v20, %v4864_v54  ;;  %v4869_v39 = vadd.s32 127, %v4868_v49  ;;  %v10050_v20 = vld [vmem:[#allocation18_spill] sm:$0xff] }
 0x3a6   : > { %v4924_v56 = vmul.f32 %v10049_v9, %v10050_v20 }
 0x3a7   : > { %v4867_v21 = vor.u32 %v4866_v18, %v4865_v51  ;;  %v4870_v16 = vshll.u32 %v4869_v39, 23  ;;  %v5084_v18 = vsub.f32 1.0, %v5083_v50  ;;  %v10053_v39 = vld [vmem:[#allocation21_spill] sm:$0xff] }
 0x3a8   : > { %v4925_v37 = vsub.f32 0.5, %v4924_v56 }
 0x3a9   : > { %v4871_v23 = vor.u32 4788187, %v4870_v16  ;;  %v4874_v60 = vcvt.s32.f32 %v4867_v21  ;;  %v5085_v21 = vmul.f32 %v4750_v62, %v10053_v39 }
 0x3ab   : > { %v4872_v26 = vand.u32 2147483647, %v4871_v23  ;;  %v5086_v43 = vadd.f32 %v5085_v21, %v5084_v18 }
 0x3ad   : > { %v4875_v61 = vmul.f32 %v4874_v60, %v4872_v26  ;;  %v4921_v60 = vor.u32 1.1754944e-38, %v4920_v59  ;;  %v10054_v26 = vld [vmem:[#allocation20_spill] sm:$0xff] }
 0x3af   : > { %v4876_v41 = vxor.u32 2147483648, %v4875_v61 }
 0x3b1   : > { %v4877_v1 = vsel %vm4756_vm11, %v4876_v41, %v4875_v61  ;;  %v4926_v61 = vmul.f32 %v4750_v62, %v10054_v26 }
 0x3b2   : > { %v4880_v25 = vsel %vm4755_vm13, %v10046_v46, %v4877_v1  ;;  %v10055_v46 = vld [vmem:[#allocation33_spill] sm:$0xff] }
 0x3b3   : > { %v4882_v17 = vmul.f32 %v4880_v25, %v4880_v25 }
 0x3b5   : > { %v4883_v53 = vmul.f32 -0.001358992, %v4882_v17  ;;  %v4890_v4 = vmul.f32 -0.00019511016, %v4882_v17 }
 0x3b7   : > { %v4884_v8 = vadd.f32 0.041655596, %v4883_v53  ;;  %v4891_v22 = vadd.f32 0.008332121, %v4890_v4  ;;  %v4927_v53 = vadd.f32 %v4926_v61, %v4925_v37 }
 0x3b9   : > { %v4885_v45 = vmul.f32 %v4884_v8, %v4882_v17  ;;  %v4892_v48 = vmul.f32 %v4891_v22, %v4882_v17 }
 0x3bb   : > { %v4886_v44 = vadd.f32 -0.4999988, %v4885_v45  ;;  %v4893_v35 = vadd.f32 -0.16666654, %v4892_v48 }
 0x3bd   : > { %v4887_v12 = vmul.f32 %v4886_v44, %v4882_v17  ;;  %v4894_v40 = vmul.f32 %v4893_v35, %v4882_v17  ;;  %v10056_v35 = vld [vmem:[#allocation31_spill] sm:$0xff] }
 0x3bf   : > { %v4888_v54 = vadd.f32 1.0, %v4887_v12  ;;  %v4895_v51 = vadd.f32 1.0, %v4894_v40 }
 0x3c1   : > { %v4896_v16 = vmul.f32 %v4895_v51, %v4880_v25  ;;  %v4905_v23 = vxor.u32 2147483648, %v4888_v54  ;;  %v4922_v25 = vsel %vm4919_vm5, %v4921_v60, %v4917_v13 }
 0x3c3   : > { %v4902_v15 = vxor.u32 2147483648, %v4896_v16  ;;  %v4906_v41 = vsel %vm4904_vm2, %v4905_v23, %v4896_v16  ;;  %v5080_v1 = vsel %vm5078_vm15, %v4905_v23, %v4896_v16 }
 0x3c5   : > { %v4903_v19 = vsel %vm4901_vm3, %v4888_v54, %v4902_v15  ;;  %v5077_v17 = vsel %vm5075_vm6, %v4888_v54, %v4902_v15 }
 0x3c6   : > { %v4907_v58 = vsel %vm4900_vm4, %v4903_v19, %v4906_v41  ;;  %v5081_v4 = vsel %vm5074_vm7, %v5077_v17, %v5080_v1 }
 0x3c7   : > { %v4908_v63 = vsel %vm4897_vm8, nan, %v4907_v58  ;;  %v5082_v30 = vsel %vm4897_vm8, nan, %v5081_v4  ;;  %v9519_v58 = vld [vmem:[#allocation5 + $0x1] sm:$0x1] }
 0x3c8   : > { %v4923_v8 = vmul.f32 %v4922_v25, %v4908_v63  ;;  %v5087_v22 = vsel %vm4751_vm1, %v5082_v30, %v5086_v43  ;;  %v9523_v30 = vld [vmem:[#allocation5] sm:$0x1] }
 0x3c9   : > { %v5101_v0 = vrot.slane %v5087_v22, 1  ;;  %v10058_v22 = vld [vmem:[#allocation15_spill] sm:$0xff] }
 0x3ca   : > { %v4928_v45 = vsel %vm4751_vm1, %v4923_v8, %v4927_v53 }
 0x3cb   : > { %v5088_v48 = vmul.f32 %v4928_v45, %v10055_v46  ;;  %v5090_v55 = vrot.slane %v4928_v45, 7  ;;  %v5093_v44 = vrot.slane %v4928_v45, 6  ;;  %v5103_v50 = vmul.f32 %v5101_v0, %v9199_v7 }
 0x3cc   : > { %v5129_v62 = vmul.f32 %v5101_v0, %v9209_v3  ;;  %v5118_v29 = vmul.f32 %v5101_v0, %v9217_v34  ;;  %v5127_v37 = vmul.f32 %v5101_v0, %v9219_v24 }
 0x3cd   : > { %v5092_v10 = vmul.f32 %v5090_v55, %v10056_v35  ;;  %v5095_v31 = vmul.f32 %v5093_v44, %v10057_v28  ;;  %v5097_v9 = vrot.slane %v5088_v48, 1 }
 0x3cf   : > { %v5099_v12 = vmul.f32 %v5097_v9, %v9209_v3  ;;  %v5106_v40 = vrot.slane %v5095_v31, 3  ;;  %v5111_v59 = vrot.slane %v5092_v10, 2  ;;  %v5125_v57 = vmul.f32 %v5097_v9, %v9217_v34 }
 0x3d0   : > { %v5130_v36 = vmul.f32 %v5097_v9, %v9199_v7  ;;  %v5120_v61 = vmul.f32 %v5097_v9, %v9219_v24 }
 0x3d1   : > { %v5104_v20 = vadd.f32 %v5103_v50, %v5099_v12  ;;  %v5108_v56 = vmul.f32 %v5106_v40, %v9217_v34  ;;  %v5113_v54 = vmul.f32 %v5111_v59, %v9219_v24  ;;  %v5115_v51 = vmul.f32 %v5111_v59, %v9209_v3 }
 0x3d2   : > { %v5116_v49 = vmul.f32 %v5106_v40, %v9199_v7  ;;  %v5122_v18 = vmul.f32 %v5106_v40, %v9209_v3  ;;  %v5123_v39 = vmul.f32 %v5111_v59, %v9199_v7  ;;  %v5131_v21 = vsub.f32 %v5129_v62, %v5130_v36  ;;  %v9503_v3 = vld [vmem:[%s6003_s27 + $0x38] sm:$0xff] }
 0x3d3   : > { %v5109_v16 = vadd.f32 %v5108_v56, %v5104_v20  ;;  %v5132_v23 = vmul.f32 %v5111_v59, %v9217_v34  ;;  %v5134_v60 = vmul.f32 %v5106_v40, %v9219_v24  ;;  %v9506_v7 = vrot.slane %v9503_v3, 4  ;;  %v9510_v34 = vld [vmem:[#allocation5 + $0x3] sm:$0x1]  ;;  %v9515_v24 = vld [vmem:[#allocation5 + $0x2] sm:$0x1]  ;;  %v10059_v20 = vld [vmem:[#allocation34_spill] sm:$0xff] }
 0x3d4   : > { %v5117_v26 = vsub.f32 %v5115_v51, %v5116_v49  ;;  %v5124_v13 = vadd.f32 %v5123_v39, %v5122_v18 }
 0x3d5   : > { %v9500_v15 = vsub.f32 %v5109_v16, %v5113_v54  ;;  %v5133_v41 = vsub.f32 %v5131_v21, %v5132_v23 }
 0x3d6   : > { %v5119_v1 = vadd.f32 %v5118_v29, %v5117_v26  ;;  %v5126_v43 = vsub.f32 %v5124_v13, %v5125_v57 }
 0x3d7   : > { %v9508_v19 = vsub.f32 %v5133_v41, %v5134_v60  ;;  %v5233_v25 = vmul.f32 %v9510_v34, %v9500_v15  ;;  %5344 = vst [vmem:[#allocation2] sm:$0x1] %v9500_v15  ;;  %v5245_v17 = vmul.f32 %v9515_v24, %v9500_v15  ;;  %v5250_v53 = vmul.f32 %v9519_v58, %v9500_v15 }
 0x3d8   : > { %v5121_v4 = vadd.f32 %v5120_v61, %v5119_v1  ;;  %v5128_v63 = vadd.f32 %v5127_v37, %v5126_v43  ;;  %v5255_v8 = vmul.f32 %v9523_v30, %v9500_v15  ;;  %v5142_v0 = vmul.f32 %v9500_v15, %v10058_v22 }
 0x3d9   : > { %v5234_v45 = vmul.f32 %v9523_v30, %v9508_v19  ;;  %5347 = vst [vmem:[#allocation2 + $0x3] sm:$0x1] %v9508_v19  ;;  %v5243_v46 = vmul.f32 %v9519_v58, %v9508_v19  ;;  %v5252_v48 = vmul.f32 %v9515_v24, %v9508_v19  ;;  %v5254_v55 = vmul.f32 %v9510_v34, %v9508_v19 }
 0x3da   : > { %v5236_v44 = vmul.f32 %v9519_v58, %v5128_v63  ;;  %v5238_v35 = vmul.f32 %v9515_v24, %v5121_v4  ;;  %5345 = vst [vmem:[#allocation2 + $0x1] sm:$0x1] %v5121_v4  ;;  %v5240_v10 = vmul.f32 %v9510_v34, %v5121_v4  ;;  %v5241_v28 = vmul.f32 %v9523_v30, %v5128_v63 }
 0x3db   : > { %v5235_v31 = vadd.f32 %v5234_v45, %v5233_v25  ;;  %5346 = vst [vmem:[#allocation2 + $0x2] sm:$0x1] %v5128_v63  ;;  %v5247_v9 = vmul.f32 %v9510_v34, %v5128_v63  ;;  %v5248_v50 = vmul.f32 %v9523_v30, %v5121_v4  ;;  %v5256_v62 = vsub.f32 %v5254_v55, %v5255_v8 }
 0x3dc   : > { %v5242_v12 = vsub.f32 %v5240_v10, %v5241_v28  ;;  %v5257_v40 = vmul.f32 %v9519_v58, %v5121_v4  ;;  %v5259_v59 = vmul.f32 %v9515_v24, %v5128_v63  ;;  %v5136_v29 = vmul.f32 %v5121_v4, %v10058_v22 }
 0x3dd   : > { %v5237_v57 = vadd.f32 %v5236_v44, %v5235_v31  ;;  %v5249_v36 = vadd.f32 %v5248_v50, %v5247_v9  ;;  %v5137_v56 = vmul.f32 %v5128_v63, %v10059_v20  ;;  %v5141_v54 = vmul.f32 %v9506_v7, %v5128_v63 }
 0x3de   : > { %v5244_v51 = vadd.f32 %v5243_v46, %v5242_v12  ;;  %v5258_v49 = vsub.f32 %v5256_v62, %v5257_v40  ;;  %v5144_v18 = vmul.f32 %v9500_v15, %v10059_v20  ;;  %v5145_v39 = vmul.f32 %v9506_v7, %v5121_v4 }
 0x3df   : > { %v5239_v21 = vsub.f32 %v5237_v57, %v5238_v35  ;;  %v5251_v16 = vsub.f32 %v5249_v36, %v5250_v53  ;;  %v5138_v23 = vsub.f32 %v5136_v29, %v5137_v56  ;;  %v5143_v60 = vsub.f32 %v5141_v54, %v5142_v0 }
 0x3e0   : > { %v5246_v26 = vadd.f32 %v5245_v17, %v5244_v51  ;;  %v5260_v61 = vsub.f32 %v5258_v49, %v5259_v59  ;;  %v5146_v13 = vsub.f32 %v5144_v18, %v5145_v39  ;;  %v9556_v25 = vadd.f32 %v9503_v3, %v9296_v38 }
 0x3e1   : > { %5591 = vst [vmem:[%s6017_s29 + $0x70] sm:$0x1] %v5239_v21  ;;  %v5253_v37 = vadd.f32 %v5252_v48, %v5251_v16  ;;  %v5147_v41 = vmul.f32 2.0, %v5138_v23  ;;  %v5148_v1 = vmul.f32 2.0, %v5143_v60  ;;  %v5193_v29 = vrot.slane %v9503_v3, 2 }
 0x3e2   : > { %5592 = vst [vmem:[%s6017_s29 + $0x71] sm:$0x1] %v5246_v26  ;;  %v5149_v43 = vmul.f32 2.0, %v5146_v13  ;;  %v5196_v56 = vmul.f32 %v9503_v3, %v9350_v11  ;;  %v5204_v18 = vmul.f32 %v9503_v3, %v9353_v27  ;;  %v5212_v39 = vmul.f32 %v9503_v3, %v9359_v5 }
 0x3e3   : > { %5593 = vst [vmem:[%s6017_s29 + $0x72] sm:$0x1] %v5253_v37  ;;  %v5151_v8 = vmul.f32 %v5148_v1, %v5128_v63  ;;  %v5153_v22 = vmul.f32 %v5147_v41, %v5128_v63  ;;  %v5156_v53 = vmul.f32 %v5148_v1, %v9500_v15  ;;  %v5157_v0 = vmul.f32 %v5147_v41, %v5121_v4 }
 0x3e4   : > { %5594 = vst [vmem:[%s6017_s29 + $0x73] sm:$0x1] %v5260_v61  ;;  %v5150_v17 = vmul.f32 %v5149_v43, %v5121_v4  ;;  %v5154_v45 = vmul.f32 %v5149_v43, %v9500_v15  ;;  %v5159_v46 = vmul.f32 %v5147_v41, %v9508_v19  ;;  %v5168_v48 = vmul.f32 %v5148_v1, %v9508_v19 }
 0x3e5   : > { %v5158_v55 = vsub.f32 %v5156_v53, %v5157_v0  ;;  %v5177_v44 = vmul.f32 %v5149_v43, %v9508_v19  ;;  %5354 = vst [vmem:[#allocation2 + $0xa] sm:$0x1] %v9556_v25  ;;  %v5189_v19 = vrot.slane %v9503_v3, 3  ;;  %v5205_v1 = vadd.f32 %v5204_v18, %v9383_v32 }
 0x3e6   : > { %v5152_v38 = vsub.f32 %v5150_v17, %v5151_v8  ;;  %v5155_v35 = vsub.f32 %v5153_v22, %v5154_v45  ;;  %v5161_v10 = vrot.slane %v5159_v46, 4  ;;  %v5170_v63 = vrot.slane %v5168_v48, 3 }
 0x3e7   : > { %v5179_v28 = vrot.slane %v5177_v44, 2  ;;  %v5183_v31 = vrot.slane %v5158_v55, 2 }
 0x3e8   : > { %v5163_v9 = vadd.f32 %v9503_v3, %v5161_v10  ;;  %v5165_v4 = vrot.slane %v5152_v38, 4  ;;  %v5172_v15 = vadd.f32 %v9503_v3, %v5170_v63  ;;  %v5174_v50 = vrot.slane %v5155_v35, 3 }
 0x3e9   : > { %v5181_v62 = vadd.f32 %v9503_v3, %v5179_v28  ;;  %v5213_v3 = vadd.f32 %v5212_v39, %v9385_v33 }
 0x3ea   : > { %v5167_v12 = vadd.f32 %v5165_v4, %v5163_v9  ;;  %v5176_v40 = vadd.f32 %v5174_v50, %v5172_v15 }
 0x3eb   : > { %v5185_v59 = vadd.f32 %v5183_v31, %v5181_v62 }
 0x3ec   : > { %v5186_v57 = vsub.f32 %v5167_v12, %v9889_v42  ;;  %v5188_v36 = vsub.f32 %v5176_v40, %v9890_v14 }
 0x3ed   : > { %v5192_v20 = vsub.f32 %v5185_v59, %v10006_v47  ;;  %v5197_v47 = vadd.f32 %v5196_v56, %v9380_v52 }
 0x3ee   : > { %v5187_v54 = vmul.f32 %v5186_v57, %v9506_v7  ;;  %v5191_v51 = vmul.f32 %v5189_v19, %v5188_v36 }
 0x3ef   : > { %v5195_v49 = vmul.f32 %v5193_v29, %v5192_v20 }
 0x3f0   : > { %v5221_v21 = vrot.slane %v5187_v54, 4  ;;  %v5225_v16 = vrot.slane %v5191_v51, 5  ;;  %v5198_v42 = vmul.f32 0.5, %v5187_v54  ;;  %v5206_v23 = vmul.f32 0.5, %v5191_v51 }
 0x3f1   : > { %v5229_v14 = vrot.slane %v5195_v49, 6  ;;  %v5214_v60 = vmul.f32 0.5, %v5195_v49 }
 0x3f2   : > { %v5223_v26 = vadd.f32 %v5221_v21, %v9350_v11  ;;  %v5227_v61 = vadd.f32 %v5225_v16, %v9353_v27  ;;  %v5199_v13 = vmul.f32 %v5198_v42, %v9506_v7  ;;  %v5207_v37 = vmul.f32 %v5206_v23, %v5189_v19 }
 0x3f3   : > { %v5231_v41 = vadd.f32 %v5229_v14, %v9359_v5  ;;  %v5215_v43 = vmul.f32 %v5214_v60, %v5193_v29  ;;  %v5772_v14 = vld [vmem:[#allocation5 + $0x4] sm:$0x1] }
 0x3f4   : > { %v5262_v8 = vmul.f32 %v9515_v24, %v5227_v61  ;;  %v5264_v22 = vmul.f32 %v9515_v24, %v5223_v26  ;;  %v5267_v52 = vmul.f32 %v9523_v30, %v5227_v61  ;;  %v5268_v11 = vmul.f32 %v9519_v58, %v5223_v26  ;;  %5348 = vst [vmem:[#allocation2 + $0x4] sm:$0x1] %v5223_v26 }
 0x3f5   : > { %v5261_v27 = vmul.f32 %v9519_v58, %v5231_v41  ;;  %v5265_v7 = vmul.f32 %v9523_v30, %v5231_v41  ;;  %5349 = vst [vmem:[#allocation2 + $0x5] sm:$0x1] %v5227_v61  ;;  %v5201_v5 = vrot.slane %v5199_v13, 4  ;;  %v5209_v53 = vrot.slane %v5207_v37, 5 }
 0x3f6   : > { %v5269_v32 = vsub.f32 %v5267_v52, %v5268_v11  ;;  %5350 = vst [vmem:[#allocation2 + $0x6] sm:$0x1] %v5231_v41  ;;  %v5217_v33 = vrot.slane %v5215_v43, 6 }
 0x3f7   : > { %v5263_v0 = vsub.f32 %v5261_v27, %v5262_v8  ;;  %v5266_v17 = vsub.f32 %v5264_v22, %v5265_v7  ;;  %v5203_v45 = vadd.f32 %v5201_v5, %v5197_v47  ;;  %v9594_v46 = vadd.f32 %v5209_v53, %v5205_v1 }
 0x3f8   : > { %v5272_v48 = vmul.f32 2.0, %v5269_v32  ;;  %v9596_v55 = vadd.f32 %v5217_v33, %v5213_v3  ;;  %v5332_v47 = vmul.f32 %v5772_v14, %v9556_v25 }
 0x3f9   : > { %v5270_v44 = vmul.f32 2.0, %v5263_v0  ;;  %v5271_v38 = vmul.f32 2.0, %v5266_v17  ;;  %v5292_v35 = vmul.f32 %v9515_v24, %v9594_v46  ;;  %v5294_v10 = vmul.f32 %v9515_v24, %v5203_v45  ;;  %5351 = vst [vmem:[#allocation2 + $0x7] sm:$0x1] %v5203_v45 }
 0x3fa   : > { %v5273_v63 = vmul.f32 %v9519_v58, %v5272_v48  ;;  %v5277_v28 = vmul.f32 %v9523_v30, %v5272_v48  ;;  %v5288_v31 = vmul.f32 %v9510_v34, %v5272_v48  ;;  %v5291_v9 = vmul.f32 %v9519_v58, %v9596_v55  ;;  %5352 = vst [vmem:[#allocation2 + $0x8] sm:$0x1] %v9594_v46 }
 0x3fb   : > { %v5274_v4 = vmul.f32 %v9515_v24, %v5271_v38  ;;  %v5282_v15 = vmul.f32 %v9510_v34, %v5270_v44  ;;  %v5276_v50 = vmul.f32 %v9515_v24, %v5270_v44  ;;  %v5285_v62 = vmul.f32 %v9510_v34, %v5271_v38  ;;  %5353 = vst [vmem:[#allocation2 + $0x9] sm:$0x1] %v9596_v55 }
 0x3fc   : > { %v5279_v12 = vmul.f32 %v9523_v30, %v5271_v38  ;;  %v5280_v40 = vmul.f32 %v9519_v58, %v5270_v44  ;;  %v5289_v19 = vadd.f32 %v5288_v31, %v5231_v41  ;;  %v5293_v59 = vsub.f32 %v5291_v9, %v5292_v35  ;;  %v5774_v41 = vld [vmem:[#allocation5 + $0x6] sm:$0x1] }
 0x3fd   : > { %v5275_v29 = vsub.f32 %v5273_v63, %v5274_v4  ;;  %v5283_v57 = vadd.f32 %v5282_v15, %v5223_v26  ;;  %v5278_v36 = vsub.f32 %v5276_v50, %v5277_v28  ;;  %v5286_v20 = vadd.f32 %v5285_v62, %v5227_v61  ;;  %v5773_v26 = vld [vmem:[#allocation5 + $0x5] sm:$0x1] }
 0x3fe   : > { %v5281_v56 = vsub.f32 %v5279_v12, %v5280_v40  ;;  %v5295_v54 = vmul.f32 %v9523_v30, %v9596_v55  ;;  %v5297_v51 = vmul.f32 %v9523_v30, %v9594_v46  ;;  %v5298_v49 = vmul.f32 %v9519_v58, %v5203_v45 }
 0x3ff   : > { %v5284_v18 = vadd.f32 %v5283_v57, %v5275_v29  ;;  %v5287_v39 = vadd.f32 %v5286_v20, %v5278_v36  ;;  %v5300_v21 = vmul.f32 2.0, %v5293_v59  ;;  %v5336_v37 = vmul.f32 %v5773_v26, %v9556_v25 }
 0x400   : > { %v5290_v16 = vadd.f32 %v5289_v19, %v5281_v56  ;;  %v5296_v42 = vsub.f32 %v5294_v10, %v5295_v54  ;;  %v5299_v23 = vsub.f32 %v5297_v51, %v5298_v49  ;;  %v5340_v11 = vmul.f32 %v5774_v41, %v9556_v25 }
 0x401   : > { %v5326_v60 = vadd.f32 %v5772_v14, %v5284_v18  ;;  %v5328_v61 = vadd.f32 %v5773_v26, %v5287_v39  ;;  %v5312_v13 = vmul.f32 %v9510_v34, %v5300_v21  ;;  %v5306_v8 = vmul.f32 %v9515_v24, %v5300_v21 }
 0x402   : > { %v5330_v1 = vadd.f32 %v5774_v41, %v5290_v16  ;;  %v5301_v3 = vmul.f32 2.0, %v5296_v42  ;;  %v5302_v43 = vmul.f32 2.0, %v5299_v23  ;;  %v5310_v52 = vmul.f32 %v9519_v58, %v5300_v21 }
 0x403   : > { %5595 = vst [vmem:[%s6017_s29 + $0x74] sm:$0x1] %v5326_v60  ;;  %v5313_v22 = vadd.f32 %v5312_v13, %v5203_v45  ;;  %v5333_v32 = vadd.f32 %v9320_v6, %v5332_v47  ;;  %v5775_v45 = vld [vmem:[#allocation5 + $0x8] sm:$0x1]  ;;  %v5341_v38 = vadd.f32 %v9443_v2, %v5340_v11 }
 0x404   : > { %5596 = vst [vmem:[%s6017_s29 + $0x75] sm:$0x1] %v5328_v61  ;;  %v5303_v27 = vmul.f32 %v9519_v58, %v5302_v43  ;;  %v5304_v7 = vmul.f32 %v9515_v24, %v5301_v3  ;;  %v5307_v5 = vmul.f32 %v9523_v30, %v5302_v43  ;;  %v5315_v53 = vmul.f32 %v9510_v34, %v5301_v3 }
 0x405   : > { %5597 = vst [vmem:[%s6017_s29 + $0x76] sm:$0x1] %v5330_v1  ;;  %v5309_v33 = vmul.f32 %v9523_v30, %v5301_v3  ;;  %v5318_v0 = vmul.f32 %v9510_v34, %v5302_v43  ;;  %v5337_v24 = vadd.f32 %v5775_v45, %v5336_v37 }
 0x406   : > { %v5305_v17 = vsub.f32 %v5303_v27, %v5304_v7  ;;  %v5308_v25 = vsub.f32 %v5306_v8, %v5307_v5  ;;  %v5316_v58 = vadd.f32 %v5315_v53, %v9594_v46 }
 0x407   : > { %v5311_v48 = vsub.f32 %v5309_v33, %v5310_v52  ;;  %v5319_v44 = vadd.f32 %v5318_v0, %v9596_v55 }
 0x408   : > { %v5314_v35 = vadd.f32 %v5313_v22, %v5305_v17  ;;  %v5317_v6 = vadd.f32 %v5316_v58, %v5308_v25 }
 0x409   : > { %v5320_v10 = vadd.f32 %v5319_v44, %v5311_v48 }
 0x40a   : > { %v5334_v30 = vadd.f32 %v5333_v32, %v5314_v35  ;;  %v5338_v63 = vadd.f32 %v5337_v24, %v5317_v6 }
 0x40b   : > { %v5342_v28 = vadd.f32 %v5341_v38, %v5320_v10 }
 0x40c   : > { %5598 = vst [vmem:[%s6017_s29 + $0x77] sm:$0x1] %v5334_v30 }
 0x40d   : > { %5599 = vst [vmem:[%s6017_s29 + $0x78] sm:$0x1] %v5338_v63 }
 0x40e   : > { %5600 = vst [vmem:[%s6017_s29 + $0x79] sm:$0x1] %v5342_v28 }
 0x40f PF: > { %s16_s14 = sadd.s32 1, %s5890_s14   ;;  %s10060_s9 = smov %s5874_s10 }
 0x410   : > { %p13_p1 = scmp.ge.s32.totalorder %s16_s14, 5   ;;  %s10061_s10 = smov %s5878_s11 }
 0x411   : > { %s10062_s11 = smov %s5993_s5  ;;  %s10063_s12 = smov %s5886_s13 }
 0x412   : > { %s10064_s13 = smov %s10066_s26  ;;  %15 = sbr.rel (!%p13_p1) target bundleno = 5 (0x5), region = 91 }
 0x417   :  { %5385 = vsyncpa [#allocation4], 1 }
 0x418   :  { %5387 = vsyncpa [#allocation4 + $0x1], 1 }
 0x419   :  { %5388 = vsyncpa [#allocation6], 1 }

</bundles_post_ra>
